<compile_context>
chip_gen: v5e
topology: v5e:2x2
jax: 0.10.0
libtpu: 0.0.40
codegen_flags: <defaults>
</compile_context>

<pallas_src>
import jax
import jax.numpy as jnp
from jax.experimental import pallas as pl
from jax.experimental.pallas import tpu as pltpu


# ---------------------------------------------------------------------------
# Fused kernel (one grid step == one sample)
# ---------------------------------------------------------------------------
def lenet_fused_kernel(x_ref, m1_ref, m2_ref, mfc_ref,
                       w1t_ref, b1_ref, w2t_ref, b2_ref,
                       wf1_ref, bf1_ref, wf2_ref, bf2_ref,
                       o_ref, flat_ref):
    f32, bf16 = jnp.float32, jnp.bfloat16
    x = x_ref[0]                                        # (28, 28) f32

    # ---- conv1: 5 shifted matmuls vs block-Toeplitz weights ---------------
    # acc1 rows = output row i' (24), cols = (j', co) = 24*32 = 768
    acc1 = jnp.dot(x[0:24, :].astype(bf16), w1t_ref[0],
                   preferred_element_type=f32)
    for di in range(1, 5):
        acc1 = acc1 + jnp.dot(x[di:di + 24, :].astype(bf16), w1t_ref[di],
                              preferred_element_type=f32)
    y1 = (acc1 + b1_ref[...]) * m1_ref[0]               # bias + dropout(0/2)

    # 2x2 max-pool via shifted-slice maxima (dilated result), then ReLU.
    r1 = jnp.maximum(y1[0:23, :], y1[1:24, :])          # valid rows: 2*i
    h1 = jnp.maximum(r1[:, 0:736], r1[:, 32:768])       # valid cols: 64*j + c
    h1 = jnp.maximum(h1, 0.0)                           # (23, 736) f32

    # ---- conv2 on the dilated h1: 5 shifted matmuls ------------------------
    # acc2 rows: valid at 2*oi (15 rows), cols = (oj, co) = 8*64 = 512
    acc2 = jnp.dot(h1[0:15, :].astype(bf16), w2t_ref[0],
                   preferred_element_type=f32)
    for di in range(1, 5):
        acc2 = acc2 + jnp.dot(h1[2 * di:2 * di + 15, :].astype(bf16),
                              w2t_ref[di], preferred_element_type=f32)
    y2 = (acc2 + b2_ref[...]) * m2_ref[0]               # bias + dropout(0/2)

    r2 = jnp.maximum(y2[0:13, :], y2[2:15, :])          # valid rows: 4*hp
    h2 = jnp.maximum(r2[:, 0:448], r2[:, 64:512])       # valid cols: 128*wp + c
    h2 = jnp.maximum(h2, 0.0)                           # (13, 448) f32

    # ---- flatten into (1, 1024) in (hp, wp, c) order -----------------------
    # (fc1 weights were permuted at prep time to match this order)
    for hp in range(4):
        for wp in range(4):
            s = hp * 4 + wp
            flat_ref[0:1, s * 64:(s + 1) * 64] = (
                h2[4 * hp:4 * hp + 1, 128 * wp:128 * wp + 64])

    # ---- fc1 + relu + dropout + fc2 ----------------------------------------
    hf = flat_ref[...].astype(bf16)                     # (1, 1024)
    z1 = jnp.dot(hf, wf1_ref[...], preferred_element_type=f32) + bf1_ref[...]
    z1 = jnp.maximum(z1, 0.0) * mfc_ref[0]              # (1, 128)
    z2 = jnp.dot(z1.astype(bf16), wf2_ref[...],
                 preferred_element_type=f32) + bf2_ref[...]
    o_ref[0] = z2                                       # (1, 10)


# ---------------------------------------------------------------------------
# One-time parameter preparation (block-Toeplitz conv weights, permuted fc1)
# ---------------------------------------------------------------------------
def prepare_params(params):
    f32, bf16 = jnp.float32, jnp.bfloat16
    w1 = params["conv1_w"].astype(f32)      # (32, 1, 5, 5)
    b1 = params["conv1_b"].astype(f32)      # (32,)
    w2 = params["conv2_w"].astype(f32)      # (64, 32, 5, 5)
    b2 = params["conv2_b"].astype(f32)      # (64,)
    fc1_w = params["fc1_w"].astype(f32)     # (128, 1024)
    fc1_b = params["fc1_b"].astype(f32)     # (128,)
    fc2_w = params["fc2_w"].astype(f32)     # (10, 128)
    fc2_b = params["fc2_b"].astype(f32)     # (10,)

    # conv1 Toeplitz: w1t[di, j, j'*32 + co] = w1[co, 0, di, j - j']  (0<=j-j'<5)
    s1 = jnp.stack([jnp.eye(28, 24, k=-dj, dtype=f32) for dj in range(5)])
    w1t = jnp.einsum("ajp,oda->djpo", s1, w1[:, 0])         # (5, 28, 24, 32)
    w1t = w1t.reshape(5, 28, 24 * 32).astype(bf16)          # (5, 28, 768)

    # conv2 Toeplitz on the dilated h1 layout (valid input cols at 64*j + ci):
    # w2t[di, 64*jb + q, 64*oj + co] = w2[co, q, di, jb - oj]  (q<32, 0<=jb-oj<5)
    s2 = jnp.stack([jnp.eye(12, 8, k=-dj, dtype=f32) for dj in range(5)])
    e2 = jnp.eye(64, 32, dtype=f32)
    w2t = jnp.einsum("ajw,qc,ocda->djqwo", s2, e2, w2)      # (5, 12, 64, 8, 64)
    w2t = w2t.reshape(5, 768, 512)[:, :736, :].astype(bf16)  # (5, 736, 512)

    # fc1 permuted so it consumes the in-kernel (s=hp*4+wp, c) flatten order:
    # wf1[s*64 + c, f] = fc1_w[f, c*16 + s]   (torch NCHW flatten = c*16+hp*4+wp)
    wf1 = fc1_w.reshape(128, 64, 16).transpose(2, 1, 0).reshape(1024, 128)
    wf1 = wf1.astype(bf16)
    wf2 = fc2_w.T.astype(bf16)                               # (128, 10)

    return dict(
        w1t=w1t, b1row=jnp.tile(b1, 24).reshape(1, 768),
        w2t=w2t, b2row=jnp.tile(b2, 8).reshape(1, 512),
        wf1=wf1, bf1=fc1_b.reshape(1, 128),
        wf2=wf2, bf2=fc2_b.reshape(1, 10),
    )


def make_dropout_masks(key, batch):
    """{0., 2.}-valued masks matching F.dropout(p=0.5, training=True)."""
    k1, k2, k3 = jax.random.split(key, 3)

    def mk(k, shape):
        return jax.random.bernoulli(k, 0.5, shape).astype(jnp.float32) * 2.0

    return (mk(k1, (batch, 24, 768)),    # conv1 pre-pool activations
            mk(k2, (batch, 15, 512)),    # conv2 pre-pool activations (dilated rows)
            mk(k3, (batch, 1, 128)))     # post-fc1 activations


# ---------------------------------------------------------------------------
# Full forward
# ---------------------------------------------------------------------------
def lenet_dropout_forward(x_nchw, params, key):
    B = x_nchw.shape[0]
    prep = prepare_params(params)
    m1, m2, mfc = make_dropout_masks(key, B)
    x = x_nchw.reshape(B, 28, 28).astype(jnp.float32)

    out = pl.pallas_call(
        lenet_fused_kernel,
        out_shape=jax.ShapeDtypeStruct((B, 1, 10), jnp.float32),
        grid=(B,),
        in_specs=[
            pl.BlockSpec((1, 28, 28), lambda b: (b, 0, 0)),      # x (per sample)
            pl.BlockSpec((1, 24, 768), lambda b: (b, 0, 0)),     # mask conv1
            pl.BlockSpec((1, 15, 512), lambda b: (b, 0, 0)),     # mask conv2
            pl.BlockSpec((1, 1, 128), lambda b: (b, 0, 0)),      # mask fc1
            pl.BlockSpec((5, 28, 768), lambda b: (0, 0, 0)),     # w1 Toeplitz
            pl.BlockSpec((1, 768), lambda b: (0, 0)),            # b1 (lane-tiled)
            pl.BlockSpec((5, 736, 512), lambda b: (0, 0, 0)),    # w2 Toeplitz
            pl.BlockSpec((1, 512), lambda b: (0, 0)),            # b2 (lane-tiled)
            pl.BlockSpec((1024, 128), lambda b: (0, 0)),         # fc1 (permuted)
            pl.BlockSpec((1, 128), lambda b: (0, 0)),            # fc1 bias
            pl.BlockSpec((128, 10), lambda b: (0, 0)),           # fc2
            pl.BlockSpec((1, 10), lambda b: (0, 0)),             # fc2 bias
        ],
        out_specs=pl.BlockSpec((1, 1, 10), lambda b: (b, 0, 0)),
        scratch_shapes=[pltpu.VMEM((1, 1024), jnp.float32)],     # flatten buffer
        compiler_params=pltpu.CompilerParams(
            dimension_semantics=("parallel",),
            vmem_limit_bytes=32 * 1024 * 1024),
    )(x, m1, m2, mfc,
      prep["w1t"], prep["b1row"], prep["w2t"], prep["b2row"],
      prep["wf1"], prep["bf1"], prep["wf2"], prep["bf2"])

    return out.reshape(B, 10)


# ---------------------------------------------------------------------------
# Deterministic synthetic parameters (torch __init__ shapes)
# ---------------------------------------------------------------------------
def init_params(key):
    ks = jax.random.split(key, 8)
    n = jax.random.normal
    return {
        "conv1_w": 0.1 * n(ks[0], (32, 1, 5, 5), jnp.float32),
        "conv1_b": 0.1 * n(ks[1], (32,), jnp.float32),
        "conv2_w": 0.05 * n(ks[2], (64, 32, 5, 5), jnp.float32),
        "conv2_b": 0.1 * n(ks[3], (64,), jnp.float32),
        "fc1_w": 0.03 * n(ks[4], (128, 1024), jnp.float32),
        "fc1_b": 0.1 * n(ks[5], (128,), jnp.float32),
        "fc2_w": 0.08 * n(ks[6], (10, 128), jnp.float32),
        "fc2_b": 0.1 * n(ks[7], (10,), jnp.float32),
    }


if __name__ == "__main__":
    key = jax.random.PRNGKey(0)
    k_x, k_p, k_d = jax.random.split(key, 3)
    # batch=2, 1 channel, 28x28 (required by the 1024-feature flatten).
    x = jax.random.normal(k_x, (2, 1, 28, 28), jnp.float32)
    params = init_params(k_p)

    out = lenet_dropout_forward(x, params, k_d)
    out = jax.block_until_ready(out)
    assert out.shape == (2, 10) and out.dtype == jnp.float32
    assert bool(jnp.all(jnp.isfinite(out)))
    print("KERNEL_OK")
</pallas_src>

<mosaic_0001>
module attributes {stable_mosaic.version = 11 : i64} {
  func.func @lenet_fused_kernel(%arg0: i32, %arg1: memref<1x28x28xf32, #tpu.memory_space<vmem>>, %arg2: memref<1x24x768xf32, #tpu.memory_space<vmem>>, %arg3: memref<1x15x512xf32, #tpu.memory_space<vmem>>, %arg4: memref<1x1x128xf32, #tpu.memory_space<vmem>>, %arg5: memref<5x28x768xbf16, #tpu.memory_space<vmem>>, %arg6: memref<1x768xf32, #tpu.memory_space<vmem>>, %arg7: memref<5x736x512xbf16, #tpu.memory_space<vmem>>, %arg8: memref<1x512xf32, #tpu.memory_space<vmem>>, %arg9: memref<1024x128xbf16, #tpu.memory_space<vmem>>, %arg10: memref<1x128xf32, #tpu.memory_space<vmem>>, %arg11: memref<128x10xbf16, #tpu.memory_space<vmem>>, %arg12: memref<1x10xf32, #tpu.memory_space<vmem>>, %arg13: memref<1x1x10xf32, #tpu.memory_space<vmem>>, %arg14: memref<1x1024xf32, #tpu.memory_space<vmem>>) attributes {dimension_semantics = [#tpu.dimension_semantics<parallel>], iteration_bounds = array<i64: 2>, scalar_prefetch = 0 : i64, scratch_operands = 1 : i64, tpu.core_type = #tpu.core_type<tc>, window_params = [{transform_indices = @transform_0, window_bounds = array<i64: 1, 28, 28>}, {transform_indices = @transform_1, window_bounds = array<i64: 1, 24, 768>}, {transform_indices = @transform_2, window_bounds = array<i64: 1, 15, 512>}, {transform_indices = @transform_3, window_bounds = array<i64: 1, 1, 128>}, {pipeline_mode = #tpu.pipeline_mode<synchronous>, transform_indices = @transform_4, window_bounds = array<i64: 5, 28, 768>}, {pipeline_mode = #tpu.pipeline_mode<synchronous>, transform_indices = @transform_5, window_bounds = array<i64: 1, 768>}, {pipeline_mode = #tpu.pipeline_mode<synchronous>, transform_indices = @transform_6, window_bounds = array<i64: 5, 736, 512>}, {pipeline_mode = #tpu.pipeline_mode<synchronous>, transform_indices = @transform_7, window_bounds = array<i64: 1, 512>}, {pipeline_mode = #tpu.pipeline_mode<synchronous>, transform_indices = @transform_8, window_bounds = array<i64: 1024, 128>}, {pipeline_mode = #tpu.pipeline_mode<synchronous>, transform_indices = @transform_9, window_bounds = array<i64: 1, 128>}, {pipeline_mode = #tpu.pipeline_mode<synchronous>, transform_indices = @transform_10, window_bounds = array<i64: 128, 10>}, {pipeline_mode = #tpu.pipeline_mode<synchronous>, transform_indices = @transform_11, window_bounds = array<i64: 1, 10>}, {transform_indices = @transform_12, window_bounds = array<i64: 1, 1, 10>}]} {
    %c0 = arith.constant 0 : index
    %c0_0 = arith.constant 0 : index
    %c0_1 = arith.constant 0 : index
    %0 = vector.load %arg1[%c0, %c0_0, %c0_1] : memref<1x28x28xf32, #tpu.memory_space<vmem>>, vector<1x28x28xf32>
    %1 = vector.shape_cast %0 : vector<1x28x28xf32> to vector<28x28xf32>
    %2 = vector.extract_strided_slice %1 {offsets = [0, 0], sizes = [24, 28], strides = [1, 1]} : vector<28x28xf32> to vector<24x28xf32>
    %3 = arith.truncf %2 : vector<24x28xf32> to vector<24x28xbf16>
    %c0_2 = arith.constant 0 : index
    %c0_3 = arith.constant 0 : index
    %c0_4 = arith.constant 0 : index
    %4 = vector.load %arg5[%c0_2, %c0_3, %c0_4] : memref<5x28x768xbf16, #tpu.memory_space<vmem>>, vector<1x28x768xbf16>
    %5 = vector.shape_cast %4 : vector<1x28x768xbf16> to vector<28x768xbf16>
    %cst = arith.constant dense<0.000000e+00> : vector<24x768xf32>
    %6 = tpu.matmul %3, %5, %cst {dimension_numbers = #tpu.dot_dimension_numbers<[1], [0], [0], [1], [0, 0, 1, 1], [], []>} : vector<24x28xbf16>, vector<28x768xbf16>, vector<24x768xf32> -> vector<24x768xf32>
    %7 = vector.extract_strided_slice %1 {offsets = [1, 0], sizes = [24, 28], strides = [1, 1]} : vector<28x28xf32> to vector<24x28xf32>
    %8 = arith.truncf %7 : vector<24x28xf32> to vector<24x28xbf16>
    %c1 = arith.constant 1 : index
    %c0_5 = arith.constant 0 : index
    %c0_6 = arith.constant 0 : index
    %9 = vector.load %arg5[%c1, %c0_5, %c0_6] : memref<5x28x768xbf16, #tpu.memory_space<vmem>>, vector<1x28x768xbf16>
    %10 = vector.shape_cast %9 : vector<1x28x768xbf16> to vector<28x768xbf16>
    %cst_7 = arith.constant dense<0.000000e+00> : vector<24x768xf32>
    %11 = tpu.matmul %8, %10, %cst_7 {dimension_numbers = #tpu.dot_dimension_numbers<[1], [0], [0], [1], [0, 0, 1, 1], [], []>} : vector<24x28xbf16>, vector<28x768xbf16>, vector<24x768xf32> -> vector<24x768xf32>
    %12 = arith.addf %6, %11 : vector<24x768xf32>
    %13 = vector.extract_strided_slice %1 {offsets = [2, 0], sizes = [24, 28], strides = [1, 1]} : vector<28x28xf32> to vector<24x28xf32>
    %14 = arith.truncf %13 : vector<24x28xf32> to vector<24x28xbf16>
    %c2 = arith.constant 2 : index
    %c0_8 = arith.constant 0 : index
    %c0_9 = arith.constant 0 : index
    %15 = vector.load %arg5[%c2, %c0_8, %c0_9] : memref<5x28x768xbf16, #tpu.memory_space<vmem>>, vector<1x28x768xbf16>
    %16 = vector.shape_cast %15 : vector<1x28x768xbf16> to vector<28x768xbf16>
    %cst_10 = arith.constant dense<0.000000e+00> : vector<24x768xf32>
    %17 = tpu.matmul %14, %16, %cst_10 {dimension_numbers = #tpu.dot_dimension_numbers<[1], [0], [0], [1], [0, 0, 1, 1], [], []>} : vector<24x28xbf16>, vector<28x768xbf16>, vector<24x768xf32> -> vector<24x768xf32>
    %18 = arith.addf %12, %17 : vector<24x768xf32>
    %19 = vector.extract_strided_slice %1 {offsets = [3, 0], sizes = [24, 28], strides = [1, 1]} : vector<28x28xf32> to vector<24x28xf32>
    %20 = arith.truncf %19 : vector<24x28xf32> to vector<24x28xbf16>
    %c3 = arith.constant 3 : index
    %c0_11 = arith.constant 0 : index
    %c0_12 = arith.constant 0 : index
    %21 = vector.load %arg5[%c3, %c0_11, %c0_12] : memref<5x28x768xbf16, #tpu.memory_space<vmem>>, vector<1x28x768xbf16>
    %22 = vector.shape_cast %21 : vector<1x28x768xbf16> to vector<28x768xbf16>
    %cst_13 = arith.constant dense<0.000000e+00> : vector<24x768xf32>
    %23 = tpu.matmul %20, %22, %cst_13 {dimension_numbers = #tpu.dot_dimension_numbers<[1], [0], [0], [1], [0, 0, 1, 1], [], []>} : vector<24x28xbf16>, vector<28x768xbf16>, vector<24x768xf32> -> vector<24x768xf32>
    %24 = arith.addf %18, %23 : vector<24x768xf32>
    %25 = vector.extract_strided_slice %1 {offsets = [4, 0], sizes = [24, 28], strides = [1, 1]} : vector<28x28xf32> to vector<24x28xf32>
    %26 = arith.truncf %25 : vector<24x28xf32> to vector<24x28xbf16>
    %c4 = arith.constant 4 : index
    %c0_14 = arith.constant 0 : index
    %c0_15 = arith.constant 0 : index
    %27 = vector.load %arg5[%c4, %c0_14, %c0_15] : memref<5x28x768xbf16, #tpu.memory_space<vmem>>, vector<1x28x768xbf16>
    %28 = vector.shape_cast %27 : vector<1x28x768xbf16> to vector<28x768xbf16>
    %cst_16 = arith.constant dense<0.000000e+00> : vector<24x768xf32>
    %29 = tpu.matmul %26, %28, %cst_16 {dimension_numbers = #tpu.dot_dimension_numbers<[1], [0], [0], [1], [0, 0, 1, 1], [], []>} : vector<24x28xbf16>, vector<28x768xbf16>, vector<24x768xf32> -> vector<24x768xf32>
    %30 = arith.addf %24, %29 : vector<24x768xf32>
    %c0_17 = arith.constant 0 : index
    %c0_18 = arith.constant 0 : index
    %31 = vector.load %arg6[%c0_17, %c0_18] : memref<1x768xf32, #tpu.memory_space<vmem>>, vector<1x768xf32>
    %32 = vector.broadcast %31 : vector<1x768xf32> to vector<24x768xf32>
    %33 = arith.addf %30, %32 : vector<24x768xf32>
    %c0_19 = arith.constant 0 : index
    %c0_20 = arith.constant 0 : index
    %c0_21 = arith.constant 0 : index
    %34 = vector.load %arg2[%c0_19, %c0_20, %c0_21] : memref<1x24x768xf32, #tpu.memory_space<vmem>>, vector<1x24x768xf32>
    %35 = vector.shape_cast %34 : vector<1x24x768xf32> to vector<24x768xf32>
    %36 = arith.mulf %33, %35 : vector<24x768xf32>
    %37 = vector.extract_strided_slice %36 {offsets = [0, 0], sizes = [23, 768], strides = [1, 1]} : vector<24x768xf32> to vector<23x768xf32>
    %38 = vector.extract_strided_slice %36 {offsets = [1, 0], sizes = [23, 768], strides = [1, 1]} : vector<24x768xf32> to vector<23x768xf32>
    %39 = arith.maximumf %37, %38 : vector<23x768xf32>
    %40 = vector.extract_strided_slice %39 {offsets = [0, 0], sizes = [23, 736], strides = [1, 1]} : vector<23x768xf32> to vector<23x736xf32>
    %41 = vector.extract_strided_slice %39 {offsets = [0, 32], sizes = [23, 736], strides = [1, 1]} : vector<23x768xf32> to vector<23x736xf32>
    %42 = arith.maximumf %40, %41 : vector<23x736xf32>
    %cst_22 = arith.constant 0.000000e+00 : f32
    %43 = vector.broadcast %cst_22 : f32 to vector<23x736xf32>
    %44 = arith.maximumf %42, %43 : vector<23x736xf32>
    %45 = vector.extract_strided_slice %44 {offsets = [0, 0], sizes = [15, 736], strides = [1, 1]} : vector<23x736xf32> to vector<15x736xf32>
    %46 = arith.truncf %45 : vector<15x736xf32> to vector<15x736xbf16>
    %c0_23 = arith.constant 0 : index
    %c0_24 = arith.constant 0 : index
    %c0_25 = arith.constant 0 : index
    %47 = vector.load %arg7[%c0_23, %c0_24, %c0_25] : memref<5x736x512xbf16, #tpu.memory_space<vmem>>, vector<1x736x512xbf16>
    %48 = vector.shape_cast %47 : vector<1x736x512xbf16> to vector<736x512xbf16>
    %cst_26 = arith.constant dense<0.000000e+00> : vector<15x512xf32>
    %49 = tpu.matmul %46, %48, %cst_26 {dimension_numbers = #tpu.dot_dimension_numbers<[1], [0], [0], [1], [0, 0, 1, 1], [], []>} : vector<15x736xbf16>, vector<736x512xbf16>, vector<15x512xf32> -> vector<15x512xf32>
    %50 = vector.extract_strided_slice %44 {offsets = [2, 0], sizes = [15, 736], strides = [1, 1]} : vector<23x736xf32> to vector<15x736xf32>
    %51 = arith.truncf %50 : vector<15x736xf32> to vector<15x736xbf16>
    %c1_27 = arith.constant 1 : index
    %c0_28 = arith.constant 0 : index
    %c0_29 = arith.constant 0 : index
    %52 = vector.load %arg7[%c1_27, %c0_28, %c0_29] : memref<5x736x512xbf16, #tpu.memory_space<vmem>>, vector<1x736x512xbf16>
    %53 = vector.shape_cast %52 : vector<1x736x512xbf16> to vector<736x512xbf16>
    %cst_30 = arith.constant dense<0.000000e+00> : vector<15x512xf32>
    %54 = tpu.matmul %51, %53, %cst_30 {dimension_numbers = #tpu.dot_dimension_numbers<[1], [0], [0], [1], [0, 0, 1, 1], [], []>} : vector<15x736xbf16>, vector<736x512xbf16>, vector<15x512xf32> -> vector<15x512xf32>
    %55 = arith.addf %49, %54 : vector<15x512xf32>
    %56 = vector.extract_strided_slice %44 {offsets = [4, 0], sizes = [15, 736], strides = [1, 1]} : vector<23x736xf32> to vector<15x736xf32>
    %57 = arith.truncf %56 : vector<15x736xf32> to vector<15x736xbf16>
    %c2_31 = arith.constant 2 : index
    %c0_32 = arith.constant 0 : index
    %c0_33 = arith.constant 0 : index
    %58 = vector.load %arg7[%c2_31, %c0_32, %c0_33] : memref<5x736x512xbf16, #tpu.memory_space<vmem>>, vector<1x736x512xbf16>
    %59 = vector.shape_cast %58 : vector<1x736x512xbf16> to vector<736x512xbf16>
    %cst_34 = arith.constant dense<0.000000e+00> : vector<15x512xf32>
    %60 = tpu.matmul %57, %59, %cst_34 {dimension_numbers = #tpu.dot_dimension_numbers<[1], [0], [0], [1], [0, 0, 1, 1], [], []>} : vector<15x736xbf16>, vector<736x512xbf16>, vector<15x512xf32> -> vector<15x512xf32>
    %61 = arith.addf %55, %60 : vector<15x512xf32>
    %62 = vector.extract_strided_slice %44 {offsets = [6, 0], sizes = [15, 736], strides = [1, 1]} : vector<23x736xf32> to vector<15x736xf32>
    %63 = arith.truncf %62 : vector<15x736xf32> to vector<15x736xbf16>
    %c3_35 = arith.constant 3 : index
    %c0_36 = arith.constant 0 : index
    %c0_37 = arith.constant 0 : index
    %64 = vector.load %arg7[%c3_35, %c0_36, %c0_37] : memref<5x736x512xbf16, #tpu.memory_space<vmem>>, vector<1x736x512xbf16>
    %65 = vector.shape_cast %64 : vector<1x736x512xbf16> to vector<736x512xbf16>
    %cst_38 = arith.constant dense<0.000000e+00> : vector<15x512xf32>
    %66 = tpu.matmul %63, %65, %cst_38 {dimension_numbers = #tpu.dot_dimension_numbers<[1], [0], [0], [1], [0, 0, 1, 1], [], []>} : vector<15x736xbf16>, vector<736x512xbf16>, vector<15x512xf32> -> vector<15x512xf32>
    %67 = arith.addf %61, %66 : vector<15x512xf32>
    %68 = vector.extract_strided_slice %44 {offsets = [8, 0], sizes = [15, 736], strides = [1, 1]} : vector<23x736xf32> to vector<15x736xf32>
    %69 = arith.truncf %68 : vector<15x736xf32> to vector<15x736xbf16>
    %c4_39 = arith.constant 4 : index
    %c0_40 = arith.constant 0 : index
    %c0_41 = arith.constant 0 : index
    %70 = vector.load %arg7[%c4_39, %c0_40, %c0_41] : memref<5x736x512xbf16, #tpu.memory_space<vmem>>, vector<1x736x512xbf16>
    %71 = vector.shape_cast %70 : vector<1x736x512xbf16> to vector<736x512xbf16>
    %cst_42 = arith.constant dense<0.000000e+00> : vector<15x512xf32>
    %72 = tpu.matmul %69, %71, %cst_42 {dimension_numbers = #tpu.dot_dimension_numbers<[1], [0], [0], [1], [0, 0, 1, 1], [], []>} : vector<15x736xbf16>, vector<736x512xbf16>, vector<15x512xf32> -> vector<15x512xf32>
    %73 = arith.addf %67, %72 : vector<15x512xf32>
    %c0_43 = arith.constant 0 : index
    %c0_44 = arith.constant 0 : index
    %74 = vector.load %arg8[%c0_43, %c0_44] : memref<1x512xf32, #tpu.memory_space<vmem>>, vector<1x512xf32>
    %75 = vector.broadcast %74 : vector<1x512xf32> to vector<15x512xf32>
    %76 = arith.addf %73, %75 : vector<15x512xf32>
    %c0_45 = arith.constant 0 : index
    %c0_46 = arith.constant 0 : index
    %c0_47 = arith.constant 0 : index
    %77 = vector.load %arg3[%c0_45, %c0_46, %c0_47] : memref<1x15x512xf32, #tpu.memory_space<vmem>>, vector<1x15x512xf32>
    %78 = vector.shape_cast %77 : vector<1x15x512xf32> to vector<15x512xf32>
    %79 = arith.mulf %76, %78 : vector<15x512xf32>
    %80 = vector.extract_strided_slice %79 {offsets = [0, 0], sizes = [13, 512], strides = [1, 1]} : vector<15x512xf32> to vector<13x512xf32>
    %81 = vector.extract_strided_slice %79 {offsets = [2, 0], sizes = [13, 512], strides = [1, 1]} : vector<15x512xf32> to vector<13x512xf32>
    %82 = arith.maximumf %80, %81 : vector<13x512xf32>
    %83 = vector.extract_strided_slice %82 {offsets = [0, 0], sizes = [13, 448], strides = [1, 1]} : vector<13x512xf32> to vector<13x448xf32>
    %84 = vector.extract_strided_slice %82 {offsets = [0, 64], sizes = [13, 448], strides = [1, 1]} : vector<13x512xf32> to vector<13x448xf32>
    %85 = arith.maximumf %83, %84 : vector<13x448xf32>
    %cst_48 = arith.constant 0.000000e+00 : f32
    %86 = vector.broadcast %cst_48 : f32 to vector<13x448xf32>
    %87 = arith.maximumf %85, %86 : vector<13x448xf32>
    %88 = vector.extract_strided_slice %87 {offsets = [0, 0], sizes = [1, 64], strides = [1, 1]} : vector<13x448xf32> to vector<1x64xf32>
    %c0_49 = arith.constant 0 : index
    %c0_50 = arith.constant 0 : index
    %89 = vector.load %arg14[%c0_49, %c0_50] : memref<1x1024xf32, #tpu.memory_space<vmem>>, vector<1x64xf32>
    tpu.vector_store %arg14[%c0_49, %c0_50], %88 {strides = array<i32>} : memref<1x1024xf32, #tpu.memory_space<vmem>>, vector<1x64xf32>,
    %90 = vector.extract_strided_slice %87 {offsets = [0, 128], sizes = [1, 64], strides = [1, 1]} : vector<13x448xf32> to vector<1x64xf32>
    %c0_51 = arith.constant 0 : index
    %c64 = arith.constant 64 : index
    %91 = vector.load %arg14[%c0_51, %c64] : memref<1x1024xf32, #tpu.memory_space<vmem>>, vector<1x64xf32>
    tpu.vector_store %arg14[%c0_51, %c64], %90 {strides = array<i32>} : memref<1x1024xf32, #tpu.memory_space<vmem>>, vector<1x64xf32>,
    %92 = vector.extract_strided_slice %87 {offsets = [0, 256], sizes = [1, 64], strides = [1, 1]} : vector<13x448xf32> to vector<1x64xf32>
    %c0_52 = arith.constant 0 : index
    %c128 = arith.constant 128 : index
    %93 = vector.load %arg14[%c0_52, %c128] : memref<1x1024xf32, #tpu.memory_space<vmem>>, vector<1x64xf32>
    tpu.vector_store %arg14[%c0_52, %c128], %92 {strides = array<i32>} : memref<1x1024xf32, #tpu.memory_space<vmem>>, vector<1x64xf32>,
    %94 = vector.extract_strided_slice %87 {offsets = [0, 384], sizes = [1, 64], strides = [1, 1]} : vector<13x448xf32> to vector<1x64xf32>
    %c0_53 = arith.constant 0 : index
    %c192 = arith.constant 192 : index
    %95 = vector.load %arg14[%c0_53, %c192] : memref<1x1024xf32, #tpu.memory_space<vmem>>, vector<1x64xf32>
    tpu.vector_store %arg14[%c0_53, %c192], %94 {strides = array<i32>} : memref<1x1024xf32, #tpu.memory_space<vmem>>, vector<1x64xf32>,
    %96 = vector.extract_strided_slice %87 {offsets = [4, 0], sizes = [1, 64], strides = [1, 1]} : vector<13x448xf32> to vector<1x64xf32>
    %c0_54 = arith.constant 0 : index
    %c256 = arith.constant 256 : index
    %97 = vector.load %arg14[%c0_54, %c256] : memref<1x1024xf32, #tpu.memory_space<vmem>>, vector<1x64xf32>
    tpu.vector_store %arg14[%c0_54, %c256], %96 {strides = array<i32>} : memref<1x1024xf32, #tpu.memory_space<vmem>>, vector<1x64xf32>,
    %98 = vector.extract_strided_slice %87 {offsets = [4, 128], sizes = [1, 64], strides = [1, 1]} : vector<13x448xf32> to vector<1x64xf32>
    %c0_55 = arith.constant 0 : index
    %c320 = arith.constant 320 : index
    %99 = vector.load %arg14[%c0_55, %c320] : memref<1x1024xf32, #tpu.memory_space<vmem>>, vector<1x64xf32>
    tpu.vector_store %arg14[%c0_55, %c320], %98 {strides = array<i32>} : memref<1x1024xf32, #tpu.memory_space<vmem>>, vector<1x64xf32>,
    %100 = vector.extract_strided_slice %87 {offsets = [4, 256], sizes = [1, 64], strides = [1, 1]} : vector<13x448xf32> to vector<1x64xf32>
    %c0_56 = arith.constant 0 : index
    %c384 = arith.constant 384 : index
    %101 = vector.load %arg14[%c0_56, %c384] : memref<1x1024xf32, #tpu.memory_space<vmem>>, vector<1x64xf32>
    tpu.vector_store %arg14[%c0_56, %c384], %100 {strides = array<i32>} : memref<1x1024xf32, #tpu.memory_space<vmem>>, vector<1x64xf32>,
    %102 = vector.extract_strided_slice %87 {offsets = [4, 384], sizes = [1, 64], strides = [1, 1]} : vector<13x448xf32> to vector<1x64xf32>
    %c0_57 = arith.constant 0 : index
    %c448 = arith.constant 448 : index
    %103 = vector.load %arg14[%c0_57, %c448] : memref<1x1024xf32, #tpu.memory_space<vmem>>, vector<1x64xf32>
    tpu.vector_store %arg14[%c0_57, %c448], %102 {strides = array<i32>} : memref<1x1024xf32, #tpu.memory_space<vmem>>, vector<1x64xf32>,
    %104 = vector.extract_strided_slice %87 {offsets = [8, 0], sizes = [1, 64], strides = [1, 1]} : vector<13x448xf32> to vector<1x64xf32>
    %c0_58 = arith.constant 0 : index
    %c512 = arith.constant 512 : index
    %105 = vector.load %arg14[%c0_58, %c512] : memref<1x1024xf32, #tpu.memory_space<vmem>>, vector<1x64xf32>
    tpu.vector_store %arg14[%c0_58, %c512], %104 {strides = array<i32>} : memref<1x1024xf32, #tpu.memory_space<vmem>>, vector<1x64xf32>,
    %106 = vector.extract_strided_slice %87 {offsets = [8, 128], sizes = [1, 64], strides = [1, 1]} : vector<13x448xf32> to vector<1x64xf32>
    %c0_59 = arith.constant 0 : index
    %c576 = arith.constant 576 : index
    %107 = vector.load %arg14[%c0_59, %c576] : memref<1x1024xf32, #tpu.memory_space<vmem>>, vector<1x64xf32>
    tpu.vector_store %arg14[%c0_59, %c576], %106 {strides = array<i32>} : memref<1x1024xf32, #tpu.memory_space<vmem>>, vector<1x64xf32>,
    %108 = vector.extract_strided_slice %87 {offsets = [8, 256], sizes = [1, 64], strides = [1, 1]} : vector<13x448xf32> to vector<1x64xf32>
    %c0_60 = arith.constant 0 : index
    %c640 = arith.constant 640 : index
    %109 = vector.load %arg14[%c0_60, %c640] : memref<1x1024xf32, #tpu.memory_space<vmem>>, vector<1x64xf32>
    tpu.vector_store %arg14[%c0_60, %c640], %108 {strides = array<i32>} : memref<1x1024xf32, #tpu.memory_space<vmem>>, vector<1x64xf32>,
    %110 = vector.extract_strided_slice %87 {offsets = [8, 384], sizes = [1, 64], strides = [1, 1]} : vector<13x448xf32> to vector<1x64xf32>
    %c0_61 = arith.constant 0 : index
    %c704 = arith.constant 704 : index
    %111 = vector.load %arg14[%c0_61, %c704] : memref<1x1024xf32, #tpu.memory_space<vmem>>, vector<1x64xf32>
    tpu.vector_store %arg14[%c0_61, %c704], %110 {strides = array<i32>} : memref<1x1024xf32, #tpu.memory_space<vmem>>, vector<1x64xf32>,
    %112 = vector.extract_strided_slice %87 {offsets = [12, 0], sizes = [1, 64], strides = [1, 1]} : vector<13x448xf32> to vector<1x64xf32>
    %c0_62 = arith.constant 0 : index
    %c768 = arith.constant 768 : index
    %113 = vector.load %arg14[%c0_62, %c768] : memref<1x1024xf32, #tpu.memory_space<vmem>>, vector<1x64xf32>
    tpu.vector_store %arg14[%c0_62, %c768], %112 {strides = array<i32>} : memref<1x1024xf32, #tpu.memory_space<vmem>>, vector<1x64xf32>,
    %114 = vector.extract_strided_slice %87 {offsets = [12, 128], sizes = [1, 64], strides = [1, 1]} : vector<13x448xf32> to vector<1x64xf32>
    %c0_63 = arith.constant 0 : index
    %c832 = arith.constant 832 : index
    %115 = vector.load %arg14[%c0_63, %c832] : memref<1x1024xf32, #tpu.memory_space<vmem>>, vector<1x64xf32>
    tpu.vector_store %arg14[%c0_63, %c832], %114 {strides = array<i32>} : memref<1x1024xf32, #tpu.memory_space<vmem>>, vector<1x64xf32>,
    %116 = vector.extract_strided_slice %87 {offsets = [12, 256], sizes = [1, 64], strides = [1, 1]} : vector<13x448xf32> to vector<1x64xf32>
    %c0_64 = arith.constant 0 : index
    %c896 = arith.constant 896 : index
    %117 = vector.load %arg14[%c0_64, %c896] : memref<1x1024xf32, #tpu.memory_space<vmem>>, vector<1x64xf32>
    tpu.vector_store %arg14[%c0_64, %c896], %116 {strides = array<i32>} : memref<1x1024xf32, #tpu.memory_space<vmem>>, vector<1x64xf32>,
    %118 = vector.extract_strided_slice %87 {offsets = [12, 384], sizes = [1, 64], strides = [1, 1]} : vector<13x448xf32> to vector<1x64xf32>
    %c0_65 = arith.constant 0 : index
    %c960 = arith.constant 960 : index
    %119 = vector.load %arg14[%c0_65, %c960] : memref<1x1024xf32, #tpu.memory_space<vmem>>, vector<1x64xf32>
    tpu.vector_store %arg14[%c0_65, %c960], %118 {strides = array<i32>} : memref<1x1024xf32, #tpu.memory_space<vmem>>, vector<1x64xf32>,
    %c0_66 = arith.constant 0 : index
    %c0_67 = arith.constant 0 : index
    %120 = vector.load %arg14[%c0_66, %c0_67] : memref<1x1024xf32, #tpu.memory_space<vmem>>, vector<1x1024xf32>
    %121 = arith.truncf %120 : vector<1x1024xf32> to vector<1x1024xbf16>
    %c0_68 = arith.constant 0 : index
    %c0_69 = arith.constant 0 : index
    %122 = vector.load %arg9[%c0_68, %c0_69] : memref<1024x128xbf16, #tpu.memory_space<vmem>>, vector<1024x128xbf16>
    %cst_70 = arith.constant dense<0.000000e+00> : vector<1x128xf32>
    %123 = tpu.matmul %121, %122, %cst_70 {dimension_numbers = #tpu.dot_dimension_numbers<[1], [0], [0], [1], [0, 0, 1, 1], [], []>} : vector<1x1024xbf16>, vector<1024x128xbf16>, vector<1x128xf32> -> vector<1x128xf32>
    %c0_71 = arith.constant 0 : index
    %c0_72 = arith.constant 0 : index
    %124 = vector.load %arg10[%c0_71, %c0_72] : memref<1x128xf32, #tpu.memory_space<vmem>>, vector<1x128xf32>
    %125 = arith.addf %123, %124 : vector<1x128xf32>
    %cst_73 = arith.constant 0.000000e+00 : f32
    %126 = vector.broadcast %cst_73 : f32 to vector<1x128xf32>
    %127 = arith.maximumf %125, %126 : vector<1x128xf32>
    %c0_74 = arith.constant 0 : index
    %c0_75 = arith.constant 0 : index
    %c0_76 = arith.constant 0 : index
    %128 = vector.load %arg4[%c0_74, %c0_75, %c0_76] : memref<1x1x128xf32, #tpu.memory_space<vmem>>, vector<1x1x128xf32>
    %129 = vector.shape_cast %128 : vector<1x1x128xf32> to vector<1x128xf32>
    %130 = arith.mulf %127, %129 : vector<1x128xf32>
    %131 = arith.truncf %130 : vector<1x128xf32> to vector<1x128xbf16>
    %c0_77 = arith.constant 0 : index
    %c0_78 = arith.constant 0 : index
    %132 = vector.load %arg11[%c0_77, %c0_78] : memref<128x10xbf16, #tpu.memory_space<vmem>>, vector<128x10xbf16>
    %cst_79 = arith.constant dense<0.000000e+00> : vector<1x10xf32>
    %133 = tpu.matmul %131, %132, %cst_79 {dimension_numbers = #tpu.dot_dimension_numbers<[1], [0], [0], [1], [0, 0, 1, 1], [], []>} : vector<1x128xbf16>, vector<128x10xbf16>, vector<1x10xf32> -> vector<1x10xf32>
    %c0_80 = arith.constant 0 : index
    %c0_81 = arith.constant 0 : index
    %134 = vector.load %arg12[%c0_80, %c0_81] : memref<1x10xf32, #tpu.memory_space<vmem>>, vector<1x10xf32>
    %135 = arith.addf %133, %134 : vector<1x10xf32>
    %c0_82 = arith.constant 0 : index
    %c0_83 = arith.constant 0 : index
    %c0_84 = arith.constant 0 : index
    %136 = vector.load %arg13[%c0_82, %c0_83, %c0_84] : memref<1x1x10xf32, #tpu.memory_space<vmem>>, vector<1x1x10xf32>
    %137 = vector.shape_cast %136 : vector<1x1x10xf32> to vector<1x10xf32>
    %138 = vector.shape_cast %135 : vector<1x10xf32> to vector<1x1x10xf32>
    tpu.vector_store %arg13[%c0_82, %c0_83, %c0_84], %138 {strides = array<i32>} : memref<1x1x10xf32, #tpu.memory_space<vmem>>, vector<1x1x10xf32>,
    return
  }
  func.func @transform_0(%arg0: i32) -> (i32, i32, i32) {
    %c0_i32 = arith.constant 0 : i32
    %c0_i32_0 = arith.constant 0 : i32
    %c0_i32_1 = arith.constant 0 : i32
    return %arg0, %c0_i32, %c0_i32_0 : i32, i32, i32
  }
  func.func @transform_1(%arg0: i32) -> (i32, i32, i32) {
    %c0_i32 = arith.constant 0 : i32
    %c0_i32_0 = arith.constant 0 : i32
    %c0_i32_1 = arith.constant 0 : i32
    return %arg0, %c0_i32, %c0_i32_0 : i32, i32, i32
  }
  func.func @transform_2(%arg0: i32) -> (i32, i32, i32) {
    %c0_i32 = arith.constant 0 : i32
    %c0_i32_0 = arith.constant 0 : i32
    %c0_i32_1 = arith.constant 0 : i32
    return %arg0, %c0_i32, %c0_i32_0 : i32, i32, i32
  }
  func.func @transform_3(%arg0: i32) -> (i32, i32, i32) {
    %c0_i32 = arith.constant 0 : i32
    %c0_i32_0 = arith.constant 0 : i32
    %c0_i32_1 = arith.constant 0 : i32
    return %arg0, %c0_i32, %c0_i32_0 : i32, i32, i32
  }
  func.func @transform_4(%arg0: i32) -> (i32, i32, i32) {
    %c0_i32 = arith.constant 0 : i32
    %c0_i32_0 = arith.constant 0 : i32
    %c0_i32_1 = arith.constant 0 : i32
    %c0_i32_2 = arith.constant 0 : i32
    return %c0_i32, %c0_i32_0, %c0_i32_1 : i32, i32, i32
  }
  func.func @transform_5(%arg0: i32) -> (i32, i32) {
    %c0_i32 = arith.constant 0 : i32
    %c0_i32_0 = arith.constant 0 : i32
    %c0_i32_1 = arith.constant 0 : i32
    return %c0_i32, %c0_i32_0 : i32, i32
  }
  func.func @transform_6(%arg0: i32) -> (i32, i32, i32) {
    %c0_i32 = arith.constant 0 : i32
    %c0_i32_0 = arith.constant 0 : i32
    %c0_i32_1 = arith.constant 0 : i32
    %c0_i32_2 = arith.constant 0 : i32
    return %c0_i32, %c0_i32_0, %c0_i32_1 : i32, i32, i32
  }
  func.func @transform_7(%arg0: i32) -> (i32, i32) {
    %c0_i32 = arith.constant 0 : i32
    %c0_i32_0 = arith.constant 0 : i32
    %c0_i32_1 = arith.constant 0 : i32
    return %c0_i32, %c0_i32_0 : i32, i32
  }
  func.func @transform_8(%arg0: i32) -> (i32, i32) {
    %c0_i32 = arith.constant 0 : i32
    %c0_i32_0 = arith.constant 0 : i32
    %c0_i32_1 = arith.constant 0 : i32
    return %c0_i32, %c0_i32_0 : i32, i32
  }
  func.func @transform_9(%arg0: i32) -> (i32, i32) {
    %c0_i32 = arith.constant 0 : i32
    %c0_i32_0 = arith.constant 0 : i32
    %c0_i32_1 = arith.constant 0 : i32
    return %c0_i32, %c0_i32_0 : i32, i32
  }
  func.func @transform_10(%arg0: i32) -> (i32, i32) {
    %c0_i32 = arith.constant 0 : i32
    %c0_i32_0 = arith.constant 0 : i32
    %c0_i32_1 = arith.constant 0 : i32
    return %c0_i32, %c0_i32_0 : i32, i32
  }
  func.func @transform_11(%arg0: i32) -> (i32, i32) {
    %c0_i32 = arith.constant 0 : i32
    %c0_i32_0 = arith.constant 0 : i32
    %c0_i32_1 = arith.constant 0 : i32
    return %c0_i32, %c0_i32_0 : i32, i32
  }
  func.func @transform_12(%arg0: i32) -> (i32, i32, i32) {
    %c0_i32 = arith.constant 0 : i32
    %c0_i32_0 = arith.constant 0 : i32
    %c0_i32_1 = arith.constant 0 : i32
    return %arg0, %c0_i32, %c0_i32_0 : i32, i32, i32
  }
}

</mosaic_0001>

<bundles_post_ra>
// kernel: tpu_custom_call.1
= control target key start
LH: loop header
LB: loop body
LE: loop exit
PB: predicated region body
PF: predicated region fallthrough
CT: control target
= control target key end

     0   :  { %s17964_s0 = inlined_call_operand.vmem [shape: f32[2,28,28], index: 0, kind: input, shape index: {}]   ;;  %s17965_s1 = inlined_call_operand.hbm [shape: f32[2,24,768], index: 1, kind: input, shape index: {}]   ;;  %s17966_s2 = inlined_call_operand.vmem [shape: f32[2,15,512], index: 2, kind: input, shape index: {}]   ;;  %s17967_s3 = inlined_call_operand.hbm [shape: f32[2,1,128], index: 3, kind: input, shape index: {}]   ;;  %s17968_s4 = inlined_call_operand.hbm [shape: bf16[5,28,768], index: 4, kind: input, shape index: {}]   ;;  %s17969_s5 = inlined_call_operand.hbm [shape: f32[1,768], index: 5, kind: input, shape index: {}]   ;;  %s17970_s6 = inlined_call_operand.hbm [shape: bf16[5,736,512], index: 6, kind: input, shape index: {}]   ;;  %s17971_s7 = inlined_call_operand.hbm [shape: f32[1,512], index: 7, kind: input, shape index: {}]   ;;  %s17972_s8 = inlined_call_operand.hbm [shape: bf16[1024,128], index: 8, kind: input, shape index: {}]   ;;  %s17973_s9 = inlined_call_operand.hbm [shape: f32[1,128], index: 9, kind: input, shape index: {}]   ;;  %s17974_s10 = inlined_call_operand.vmem [shape: bf16[128,10], index: 10, kind: input, shape index: {}]   ;;  %s17975_s11 = inlined_call_operand.hbm [shape: f32[1,10], index: 11, kind: input, shape index: {}]   ;;  %s17976_s12 = inlined_call_operand.hbm [shape: f32[2,1,10], index: 12, kind: output, shape index: {}]  }
   0x1   :  { %17979 = sst [smem:[#allocation83_spill]] %s17965_s1 }
   0x2   :  { %17980 = sst [smem:[#allocation84_spill]] %s17968_s4 }
   0x3   :  { %17981 = sst [smem:[#allocation85_spill]] %s17969_s5 }
   0x4   :  { %17982 = sst [smem:[#allocation86_spill]] %s17970_s6 }
   0x5   :  { %17983 = sst [smem:[#allocation87_spill]] %s17971_s7 }
   0x6   :  { %17984 = sst [smem:[#allocation88_spill]] %s17972_s8 }
   0x7   :  { %17985 = sst [smem:[#allocation89_spill]] %s17973_s9 }
   0x8   :  { %17986 = sst [smem:[#allocation90_spill]] %s17974_s10 }
   0x9   :  { %17987 = sst [smem:[#allocation91_spill]] %s17975_s11 }
   0xa   :  { %17988 = sst [smem:[#allocation92_spill]] %s17976_s12 }
   0xb   :  { %17 = vsyncpa [#allocation4], 0 }
   0xc   :  { %19 = vsyncpa [#allocation4 + $0x1], 0 }
   0xd   :  { %20 = vsyncpa [#allocation7], 0 }
   0xe   :  { %22 = vsyncpa [#allocation7 + $0x1], 0 }
   0xf   :  { %23 = vsyncpa [#allocation10], 0 }
  0x10   :  { %24 = vsyncpa [#allocation13], 0 }
  0x11   :  { %25 = vsyncpa [#allocation16], 0 }
  0x12   :  { %26 = vsyncpa [#allocation5], 0 }
  0x13   :  { %28 = vsyncpa [#allocation5 + $0x1], 0  ;;  %s16438_s21 = smov 0   ;;  %s16440_s22 = smov 0  }
  0x14   :  { %s16442_s23 = smov 0   ;;  %s16444_s24 = smov 0  }
  0x15 LB: > { %s17989_s4 = sld [smem:[#allocation84_spill]]  ;;  %s16462_s28 = sadd.s32 4294967295, %s16354_s24   ;;  %s16354_s24 = sphi %s16444_s24, %s18127_s24   ;;  %s16350_s23 = sphi %s16442_s23, %s18126_s23   ;;  %s16346_s22 = sphi %s16440_s22, %s18125_s22   ;;  %s16342_s21 = sphi %s16438_s21, %s18124_s21  }
  0x16   : > { %p10450_p0 = scmp.ge.s32.totalorder %s16354_s24, 1  ;;  %p81_p1 = scmp.eq.s32.totalorder %s16462_s28, 0 }
  0x17   : > { %p337_p2 = scmp.lt.s32.totalorder %s16354_s24, 3  ;;  %s16356_s30 = smov [#allocation8]  }
  0x18   : > { %s350_s13 = sshll.u32 %s16356_s30, 4  ;;  %s17991_s5 = sld [smem:[#allocation85_spill]]  ;;  %s351_s13 = int_to_ptr.vmem [resolvable:$true] %s350_s13 }
  0x19   : > { %p16467_p3 = pnand %p10450_p0, %p337_p2  ;;  %s17993_s7 = sld [smem:[#allocation87_spill]] }
  0x1a   : > { %s16357_s25 = smov [#allocation9]   ;;  %s16358_s30 = smov 384  }
  0x1b   : > { %s348_s27 = sshll.u32 %s17989_s4, 4  ;;  %p15855_p4 = pneg %p16467_p3  ;;  %s349_s27 = int_to_ptr.hbm [resolvable:$true] %s348_s27 }
  0x1c   : > { %s365_s26 = sshll.u32 %s16357_s25, 4  ;;  %s16359_s4 = smov 24   ;;  %s366_s26 = int_to_ptr.vmem [resolvable:$true] %s365_s26 }
  0x1d   : > { %p16479_p6 = pnand %p15855_p4, %p81_p1  ;;  %s17994_s9 = sld [smem:[#allocation89_spill]] }
  0x1e   : > { %s363_s16 = sshll.u32 %s17991_s5, 4  ;;  %s16360_s12 = smov [#allocation12]   ;;  %s364_s16 = int_to_ptr.hbm [resolvable:$true] %s363_s16 }
  0x1f   : > { %s389_s20 = sshll.u32 %s17993_s7, 4  ;;  %s391_s10 = sshll.u32 %s16360_s12, 4  ;;  %s390_s20 = int_to_ptr.hbm [resolvable:$true] %s389_s20  ;;  %s392_s10 = int_to_ptr.vmem [resolvable:$true] %s391_s10 }
  0x20   : > { %15858 = dma.hbm_to_vmem [thread:$0]  (!%p16479_p6), %s349_s27, 7680, %s351_s13, [#allocation7], %s16358_s30, %s16358_s30, %s16359_s4  }
  0x21   : > { %15861 = dma.hbm_to_vmem [thread:$0]  (!%p16479_p6), %s364_s16, 96, %s366_s26, [#allocation10]  }
  0x22   : > { %15867 = dma.hbm_to_vmem [thread:$0]  (!%p16479_p6), %s390_s20, 64, %s392_s10, [#allocation13]  }
  0x23   : > { %s415_s5 = sshll.u32 %s17994_s9, 4  ;;  %s16361_s18 = smov [#allocation15]   ;;  %s416_s5 = int_to_ptr.hbm [resolvable:$true] %s415_s5 }
  0x24   : > { %s417_s19 = sshll.u32 %s16361_s18, 4  ;;  %s17995_s6 = sld [smem:[#allocation86_spill]]  ;;  %s418_s19 = int_to_ptr.vmem [resolvable:$true] %s417_s19 }
  0x25   : > { %15873 = dma.hbm_to_vmem [thread:$0]  (!%p16479_p6), %s416_s5, 16, %s418_s19, [#allocation16]  }
  0x26   : > { %s16362_s27 = smov [#allocation11]   ;;  %s17996_s8 = sld [smem:[#allocation88_spill]] }
  0x27   : > { %s376_s13 = sshll.u32 %s16362_s27, 4  ;;  %s16363_s10 = smov 256   ;;  %s377_s13 = int_to_ptr.vmem [resolvable:$true] %s376_s13 }
  0x28   : > { %s16364_s20 = smov 16   ;;  %s16365_s7 = smov [#allocation14]  }
  0x29   : > { %s402_s5 = sshll.u32 %s16365_s7, 4  ;;  %s16366_s30 = smov 64   ;;  %s403_s5 = int_to_ptr.vmem [resolvable:$true] %s402_s5 }
  0x2a   : > { %s374_s4 = sshll.u32 %s17995_s6, 4  ;;  %s16367_s14 = smov 4   ;;  %s375_s4 = int_to_ptr.hbm [resolvable:$true] %s374_s4 }
  0x2b   : > { %15864 = dma.hbm_to_vmem [thread:$0]  (!%p16479_p6), %s375_s4, 117760, %s377_s13, [#allocation10], %s16363_s10, %s16363_s10, %s16364_s20  }
  0x2c   : > { %s400_s26 = sshll.u32 %s17996_s8, 4  ;;  %s17997_s11 = sld [smem:[#allocation91_spill]]  ;;  %s401_s26 = int_to_ptr.hbm [resolvable:$true] %s400_s26 }
  0x2d   : > { %15870 = dma.hbm_to_vmem [thread:$0]  (!%p16479_p6), %s401_s26, 8192, %s403_s5, [#allocation13], %s16366_s30, %s16366_s30, %s16367_s14  }
  0x2e   : > { %s16368_s25 = smov [#allocation17]   ;;  %s10449_s27 = sadd.s32 4294967294, %s16354_s24  }
  0x2f   : > { %s432_s4 = sshll.u32 %s16368_s25, 4  ;;  %s16514_s13 = sadd.s32 1, %s16354_s24   ;;  %s433_s4 = int_to_ptr.vmem [resolvable:$true] %s432_s4 }
  0x30   : > { %s67_s12 = sadd.s32 1, %s16350_s23  ;;  %s64_s16 = ssub.s32 %s16354_s24, %s16514_s13 }
  0x31   : > { %p74_p7 = scmp.ne.s32.totalorder %s16350_s23, %s16346_s22  ;;  %p65_p8 = scmp.eq.s32.totalorder %s64_s16, 0 }
  0x32   : > { %s430_s19 = sshll.u32 %s17997_s11, 4  ;;  %p75_p9 = scmp.eq.s32.totalorder %s16354_s24, 0  ;;  %s431_s19 = int_to_ptr.hbm [resolvable:$true] %s430_s19 }
  0x33   : > { %15876 = dma.hbm_to_vmem [thread:$0]  (!%p16479_p6), %s431_s19, 16, %s433_s4, [#allocation16]  }
  0x34   : > { %p80_p10 = scmp.ne.s32.totalorder %s16346_s22, %s16342_s21  ;;  %p324_p11 = scmp.eq.s32.totalorder %s16462_s28, 1 }
  0x35   : > { %s16526_s26 = scalar_select %p65_p8, %s16350_s23, %s67_s12  }
  0x36   : > { %p76_p12 = por %p75_p9, %p74_p7  ;;  %p16530_p13 = por %p81_p1, %p80_p10 }
  0x37   : > { %p16534_p0 = por %p324_p11, %p74_p7  ;;  %p330_p2 = scmp.eq.s32.totalorder %s10449_s27, 1 }
  0x38   : > { %p15895_p4 = scmp.lt.s32.totalorder %s16354_s24, 2  ;;  %s16540_s20 = sand.u32 1, %s16350_s23  }
  0x39   : > { %p16542_p6 = por %p330_p2, %p80_p10  ;;  %s15818_s5 = smul.u32 144, %s16540_s20 }
  0x3a   : > { %p16547_p8 = pnand %p15895_p4, %p76_p12  ;;  %s15819_s14 = smul.u32 144, %s16354_s24 }
  0x3b   : > { %s18002_s1 = sld [smem:[#allocation83_spill]]  ;;  %s455_s25 = scalar_lea.vmem [#allocation3], %s15818_s5 }
  0x3c   : > { %s463_s4 = sshll.u32 %s455_s25, 4  ;;  %s452_s12 = scalar_lea.sflag [#allocation4], %s16540_s20  ;;  %s464_s4 = int_to_ptr.vmem [resolvable:$true] %s463_s4 }
  0x3d   : > { %p16212_p9 = pneg %p16547_p8 }
  0x41   : > { %s460_s19 = scalar_lea.hbm %s18002_s1, %s15819_s14  ;;  %s16215_s14 = scalar_lea.hbm %s18002_s1, 288 }
  0x42   : > { %s461_s27 = sshll.u32 %s460_s19, 4  ;;  %s462_s27 = int_to_ptr.hbm [resolvable:$true] %s461_s27 }
  0x43   : > { %s16208_s16 = sshra.s32 %s462_s27, 4  ;;  %s16209_s16 = int_to_ptr.hbm [resolvable:$true] %s16208_s16 }
  0x44   : > { %s16210_s6 = scalar_lea.hbm %s16209_s16, 144  ;;  %p16216_p12 = scmp.lt.s32.totalorder %s16209_s16, %s18002_s1 }
  0x45   : > { %p16211_p7 = scmp.ne.s32.totalorder %s16209_s16, %s16210_s6  ;;  %p16217_p2 = scmp.lt.s32.totalorder %s16215_s14, %s16210_s6 }
  0x47   : > { %p16213_p10 = pnand %p16212_p9, %p16211_p7  ;;  %p16218_p4 = por %p16217_p2, %p16216_p12 }
  0x49   : > { %p16214_p11 = pneg %p16213_p10 }
  0x4b   : > { %p16219_p5 = pnand %p16218_p4, %p16214_p11 }
  0x4d   : > { %16222 = shalt.err (!%p16219_p5)
}
  0x4e   : > { %s16369_s18 = smov 768   ;;  %s16370_s19 = smov 48  }
  0x4f   : > { %15880 = dma.hbm_to_vmem [thread:$0]  (!%p16547_p8), %s462_s27, 2304, %s464_s4, %s452_s12, %s16369_s18, %s16369_s18, %s16370_s19  }
  0x50   : > { %s481_s25 = sand.u32 1, %s16354_s24   ;;  %s487_s11 = scalar_lea.hbm %s17967_s3, %s16354_s24 }
  0x51   : > { %s489_s5 = sshll.u32 %s487_s11, 4  ;;  %s484_s16 = scalar_lea.vmem [#allocation6], %s16540_s20  ;;  %s490_s5 = int_to_ptr.hbm [resolvable:$true] %s489_s5 }
  0x52   : > { %s491_s6 = sshll.u32 %s484_s16, 4  ;;  %s482_s14 = scalar_lea.sflag [#allocation7], %s481_s25  ;;  %s492_s6 = int_to_ptr.vmem [resolvable:$true] %s491_s6 }
  0x53   : > { %s16238_s15 = sshra.s32 %s490_s5, 4  ;;  %s16245_s12 = scalar_lea.hbm %s17967_s3, 2  ;;  %s16239_s15 = int_to_ptr.hbm [resolvable:$true] %s16238_s15 }
  0x54   : > { %s16240_s1 = scalar_lea.hbm %s16239_s15, 1  ;;  %p16246_p11 = scmp.lt.s32.totalorder %s16239_s15, %s17967_s3 }
  0x55   : > { %p16241_p5 = scmp.ne.s32.totalorder %s16239_s15, %s16240_s1  ;;  %p16247_p12 = scmp.lt.s32.totalorder %s16245_s12, %s16240_s1 }
  0x57   : > { %p16243_p7 = pnand %p16241_p5, %p16212_p9  ;;  %p16248_p2 = por %p16247_p12, %p16246_p11 }
  0x59   : > { %p16244_p10 = pneg %p16243_p7 }
  0x5b   : > { %p16249_p4 = pnand %p16248_p2, %p16244_p10 }
  0x5d   : > { %16252 = shalt.err (!%p16249_p4)
}
  0x5e   : > { %15883 = dma.hbm_to_vmem [thread:$0]  (!%p16547_p8), %s490_s5, 16, %s492_s6, %s482_s14  }
  0x5f   : > { %500 = sbr.rel (%p16467_p3) target bundleno = 2256 (0x8d0), region = 68 }
  0x64   : > { %s16589_s11 = sand.u32 1, %s16346_s22  }
  0x65   : > { %s15820_s20 = smul.u32 144, %s16589_s11  ;;  %s503_s25 = scalar_lea.sflag [#allocation4], %s16589_s11 }
  0x67   : > { %s16593_s8 = scalar_lea.vmem [#allocation3], %s15820_s20 }
  0x68   : > { %16313 = dma.done.wait (%p16530_p13), %s503_s25, 2304  }
  0x69   : > { %16315 = vsyncadd (%p16530_p13), %s503_s25, 4294964992  ;;  %s512_s1 = sand.u32 1, %s16462_s28   ;;  %s515_s30 = scalar_lea.vmem [#allocation6], %s16589_s11 }
  0x6a   : > { %s513_s29 = scalar_lea.sflag [#allocation7], %s512_s1 }
  0x6b   : > { %16317 = dma.done.wait (%p16530_p13), %s513_s29, 16  }
  0x6c   : > { %16319 = vsyncadd (%p16530_p13), %s513_s29, 4294967280 }
  0x6d   : > { %16321 = dma.done.wait (%p81_p1), [#allocation7], 7680  }
  0x6e   : > { %16323 = vsyncadd (%p81_p1), [#allocation7], 4294959616 }
  0x6f   : > { %16325 = dma.done.wait (%p81_p1), [#allocation10], 117856  }
  0x70   : > { %16327 = vsyncadd (%p81_p1), [#allocation10], 4294849440 }
  0x71   : > { %16329 = dma.done.wait (%p81_p1), [#allocation13], 8256  }
  0x72   : > { %16331 = vsyncadd (%p81_p1), [#allocation13], 4294959040 }
  0x73   : > { %16333 = dma.done.wait (%p81_p1), [#allocation16], 32  }
  0x74   : > { %16335 = vsyncadd (%p81_p1), [#allocation16], 4294967264  ;;  %p605_p3 = scmp.lt.s32.totalorder %s16462_s28, 1  ;;  %vm725_vm0 = vcmask 1045504   ;;  %v10498_v0 = vld [vmem:[#allocation8 + $0x90] sm:$0xf] }
  0x75   : > { %v14785_v1 = vld [vmem:[#allocation8 + $0xa4] sm:$0x30]  ;;  %v10506_v2 = vld [vmem:[#allocation8 + $0x98] sm:$0xf]  ;;  %v14786_v4 = vld [vmem:[#allocation8 + $0xac] sm:$0x30] }
  0x76   : > { %s16623_s17 = scalar_select %p605_p3, %s16462_s28, 1  ;;  %v10499_v3 = vor.u32 %v14785_v1, %v10498_v0  ;;  %v14783_v5 = vld [vmem:[#allocation8 + $0x9c] sm:$0xf]  ;;  %v10508_v6 = vld [vmem:[#allocation8 + $0xb0] sm:$0x30]  ;;  %v10507_v7 = vor.u32 %v14786_v4, %v10506_v2  ;;  %vm718_vm2 = vcmask 228352  }
  0x77   : > { %v10511_v8 = vor.u32 %v14783_v5, %v10508_v6  ;;  %v10474_v9 = vld [vmem:[#allocation8 + $0x60] sm:$0xf]  ;;  %v14779_v10 = vld [vmem:[#allocation8 + $0x74] sm:$0xf0]  ;;  %v10482_v11 = vld [vmem:[#allocation8 + $0x68] sm:$0xf] }
  0x78   : > { %s14762_s9 = sshll.u32 %s16623_s17, 5  ;;  %v727_v12 = vsel %vm725_vm0, %v10499_v3, 0  ;;  %v14780_v13 = vld [vmem:[#allocation8 + $0x7c] sm:$0xf0]  ;;  %v14777_v14 = vld [vmem:[#allocation8 + $0x6c] sm:$0xf]  ;;  %v10475_v18 = vor.u32 %v14779_v10, %v10474_v9 }
  0x79   : > { %s609_s6 = scalar_lea.vmem %s17964_s0, %s14762_s9  ;;  %750 = vmatpush.bf16.msra.mxu0 %v727_v12  ;;  %15816 = vmatpush.bf16.msra.mxu1 %v727_v12  ;;  %v733_v16 = vsel %vm725_vm0, %v10507_v7, 0  ;;  %v736_v17 = vsel %vm725_vm0, %v10511_v8, 0  ;;  %v10484_v19 = vld [vmem:[#allocation8 + $0x80] sm:$0xf0]  ;;  %v10483_v22 = vor.u32 %v14780_v13, %v10482_v11  ;;  %v14782_v26 = vld [vmem:[#allocation8 + $0x94] sm:$0xf] }
  0x7a   : > { %v616_v15 = vld [vmem:[%s609_s6] sm:$0xff]  ;;  %v617_v20 = vld [vmem:[%s609_s6 + $0x8] sm:$0xff]  ;;  %v16632_v21 = vld [vmem:[%s609_s6 + $0x10] sm:$0xff]  ;;  %786 = vmatpush.bf16.msra.mxu2 %v733_v16  ;;  %804 = vmatpush.bf16.msra.mxu3 %v736_v17  ;;  %v10487_v23 = vor.u32 %v14777_v14, %v10484_v19  ;;  %vm648_vm1 = vsmask.f32 7424  ;;  %vm1052_vm3 = vcmask 1046528  }
  0x7b   : > { %v619_v24 = vld [vmem:[%s609_s6 + $0x18] sm:$0xf]  ;;  %v16634_v25 = vpack.c.bf16 %v617_v20, %v616_v15  ;;  %v10500_v27 = vld [vmem:[#allocation8 + $0xa8] sm:$0x30]  ;;  %v10514_v30 = vld [vmem:[#allocation8 + $0xa0] sm:$0xf] }
  0x7c   : > { %v16637_v28 = vpack.c.bf16 %v619_v24, %v16632_v21  ;;  %v10503_v29 = vor.u32 %v14782_v26, %v10500_v27  ;;  %v14787_v31 = vld [vmem:[#allocation8 + $0xb4] sm:$0x30]  ;;  %v14776_v35 = vld [vmem:[#allocation8 + $0x64] sm:$0xf]  ;;  %v10476_v36 = vld [vmem:[#allocation8 + $0x78] sm:$0xf0] }
  0x7d   : > { %v650_v32 = vshrl.u32 %v16634_v25, 16  ;;  %v652_v33 = vshll.u32 %v16634_v25, 16  ;;  %v10515_v34 = vor.u32 %v14787_v31, %v10514_v30  ;;  %751 = vmatpush.bf16.msra.mxu0 %v10475_v18  ;;  %15817 = vmatpush.bf16.msra.mxu1 %v10475_v18  ;;  %v10490_v39 = vld [vmem:[#allocation8 + $0x70] sm:$0xf]  ;;  %v14781_v40 = vld [vmem:[#allocation8 + $0x84] sm:$0xf0]  ;;  %v10479_v50 = vor.u32 %v14776_v35, %v10476_v36 }
  0x7e   : > { %v657_v37 = vshll.u32 %v16637_v28, 16  ;;  %v661_v38 = vshrl.u32 %v16637_v28, 16  ;;  %787 = vmatpush.bf16.msra.mxu2 %v10483_v22  ;;  %805 = vmatpush.bf16.msra.mxu3 %v10487_v23  ;;  %v730_v42 = vsel %vm725_vm0, %v10503_v29, 0  ;;  %v10558_v44 = vld [vmem:[#allocation8 + $0x30] sm:$0xf]  ;;  %v10491_v56 = vor.u32 %v14781_v40, %v10490_v39  ;;  %s16371_s14 = smov 96  }
  0x7f   : > { %v654_v41 = vrot.slane %v652_v33, 1  ;;  %v739_v43 = vsel %vm725_vm0, %v10515_v34, 0  ;;  %v14773_v48 = vld [vmem:[#allocation8 + $0x44] sm:$0x30]  ;;  %v14770_v52 = vld [vmem:[#allocation8 + $0x34] sm:$0xf] }
  0x80   : > { %v659_v45 = vrot.slane %v657_v37, 1  ;;  %v1277_v46 = vrot.slane %v661_v38, 1  ;;  %v1278_v47 = vrot.slane %v657_v37, 2  ;;  %v10559_v51 = vor.u32 %v14773_v48, %v10558_v44  ;;  %v10560_v53 = vld [vmem:[#allocation8 + $0x48] sm:$0x30]  ;;  %s14763_s15 = sshll.u32 %s16623_s17, 6 }
  0x81   : > { %768 = vmatpush.bf16.msrb.mxu1 %v730_v42  ;;  %822 = vmatpush.bf16.msrb.mxu0 %v739_v43  ;;  %v655_v49 = vor.u32 %v654_v41, %v650_v32  ;;  %v10563_v57 = vor.u32 %v14770_v52, %v10560_v53  ;;  %v10534_v59 = vld [vmem:[#allocation8] sm:$0xf]  ;;  %v14767_v60 = vld [vmem:[#allocation8 + $0x14] sm:$0xf0]  ;;  %v14764_v63 = vld [vmem:[#allocation8 + $0x4] sm:$0xf]  ;;  %s17725_s12 = scalar_lea.vmem %s17966_s2, %s14763_s15 }
  0x82   : > { %v16649_v54 = vor.u32 %v661_v38, %v659_v45  ;;  %v16651_v55 = vor.u32 %v1278_v47, %v1277_v46  ;;  %v912_v61 = vsel %vm725_vm0, %v10559_v51, 0  ;;  %v10536_v0 = vld [vmem:[#allocation8 + $0x18] sm:$0xf0]  ;;  %v14784_v1 = vld [vmem:[#allocation8 + $0xa4] sm:$0xf]  ;;  %v10535_v8 = vor.u32 %v14767_v60, %v10534_v59  ;;  %s16372_s18 = smov 64  }
  0x83   : > { %v16654_v58 = vsel %vm648_vm1, %v655_v49, %v659_v45  ;;  %v915_v62 = vsel %vm725_vm0, %v10563_v57, 0  ;;  %v10516_v2 = vld [vmem:[#allocation8 + $0xb8] sm:$0x30]  ;;  %v10566_v3 = vld [vmem:[#allocation8 + $0x38] sm:$0xf]  ;;  %935 = vmatpush.bf16.msrb.mxu2 %v912_v61  ;;  %v10539_v9 = vor.u32 %v14764_v63, %v10536_v0  ;;  %vm1913_vm5 = vcmask 785408  }
  0x84   : > { %10520 = vmatmul.msk.bf16.vlgmr.msra.gmra.mxu0 %vm718_vm2, %v16654_v58  ;;  %10521 = vmatmul.msk.bf16.vlgmr.msra.gmra.mxu1 %vm718_vm2, %v16649_v54  ;;  %v10519_v4 = vor.u32 %v14784_v1, %v10516_v2  ;;  %v14774_v5 = vld [vmem:[#allocation8 + $0x4c] sm:$0x30]  ;;  %v14778_v6 = vld [vmem:[#allocation8 + $0x74] sm:$0xf]  ;;  %v10492_v7 = vld [vmem:[#allocation8 + $0x88] sm:$0xf0] }
  0x85   : > { %10524 = vmatmul.msk.bf16.vlgmr.msra.gmra.mxu2 %vm718_vm2, %v16654_v58  ;;  %10526 = vmatmul.msk.bf16.vlgmr.msra.gmra.mxu3 %vm718_vm2, %v16654_v58  ;;  %v10567_v10 = vor.u32 %v14774_v5, %v10566_v3  ;;  %v10542_v11 = vld [vmem:[#allocation8 + $0x8] sm:$0xf]  ;;  %v14768_v12 = vld [vmem:[#allocation8 + $0x1c] sm:$0xf0]  ;;  %v10495_v15 = vor.u32 %v14778_v6, %v10492_v7  ;;  %v14775_v18 = vld [vmem:[#allocation8 + $0x54] sm:$0x30] }
  0x86   : > { %769 = vmatpush.bf16.msrb.mxu1 %v10479_v50  ;;  %823 = vmatpush.bf16.msrb.mxu0 %v10491_v56  ;;  %v742_v13 = vsel %vm725_vm0, %v10519_v4, 0  ;;  %v10543_v16 = vor.u32 %v14768_v12, %v10542_v11  ;;  %v10574_v17 = vld [vmem:[#allocation8 + $0x40] sm:$0xf]  ;;  %v14772_v19 = vld [vmem:[#allocation8 + $0x44] sm:$0xf]  ;;  %v16690_v50 = vpack.c.bf16 %v16632_v21, %v16632_v21  ;;  %vm6577_vm6 = vcmask 1044480  }
  0x87   : > { %953 = vmatpush.bf16.msrb.mxu3 %v915_v62  ;;  %v918_v14 = vsel %vm725_vm0, %v10567_v10, 0  ;;  %936 = vmatpush.bf16.msrb.mxu2 %v10535_v8  ;;  %v10575_v20 = vor.u32 %v14775_v18, %v10574_v17  ;;  %v10576_v22 = vld [vmem:[#allocation8 + $0x58] sm:$0x30]  ;;  %v10550_v23 = vld [vmem:[#allocation8 + $0x10] sm:$0xf]  ;;  %vm9420_vm7 = vcmask 523264  }
  0x88   : > { %v14769_v24 = vld [vmem:[#allocation8 + $0x24] sm:$0xf0]  ;;  %v10579_v26 = vor.u32 %v14772_v19, %v10576_v22  ;;  %v14766_v27 = vld [vmem:[#allocation8 + $0x14] sm:$0xf]  ;;  %v10552_v29 = vld [vmem:[#allocation8 + $0x28] sm:$0xf0] }
  0x89   : > { %v924_v30 = vsel %vm725_vm0, %v10575_v20, 0  ;;  %v10551_v34 = vor.u32 %v14769_v24, %v10550_v23  ;;  %v10555_v35 = vor.u32 %v14766_v27, %v10552_v29  ;;  %v14771_v36 = vld [vmem:[#allocation8 + $0x3c] sm:$0xf]  ;;  %v10568_v37 = vld [vmem:[#allocation8 + $0x50] sm:$0x30]  ;;  %s18121_s25 = sld [smem:[#allocation90_spill]] }
  0x8a   : > { %840 = vmatpush.bf16.msra.mxu1 %v742_v13  ;;  %971 = vmatpush.bf16.msra.mxu0 %v918_v14  ;;  %v927_v31 = vsel %vm725_vm0, %v10579_v26, 0  ;;  %v10618_v38 = vld [vmem:[#allocation8 + $0xf0] sm:$0xf]  ;;  %v10571_v39 = vor.u32 %v14771_v36, %v10568_v37  ;;  %v14797_v40 = vld [vmem:[#allocation8 + $0x104] sm:$0x30]  ;;  %s604_s29 = scalar_lea.vmem [#allocation18], %s16589_s11 }
  0x8b   : > { %954 = vmatpush.bf16.msrb.mxu3 %v10539_v9  ;;  %1007 = vmatpush.bf16.msra.mxu2 %v924_v30  ;;  %v14765_v41 = vld [vmem:[#allocation8 + $0xc] sm:$0xf]  ;;  %v10544_v42 = vld [vmem:[#allocation8 + $0x20] sm:$0xf0]  ;;  %v10619_v43 = vor.u32 %v14797_v40, %v10618_v38  ;;  %v10594_v44 = vld [vmem:[#allocation8 + $0xc0] sm:$0xf] }
  0x8c   : > { %v14791_v45 = vld [vmem:[#allocation8 + $0xd4] sm:$0xf0]  ;;  %v921_v46 = vsel %vm725_vm0, %v10571_v39, 0  ;;  %v10547_v48 = vor.u32 %v14765_v41, %v10544_v42  ;;  %v14798_v52 = vld [vmem:[#allocation8 + $0x10c] sm:$0x30]  ;;  %s10272_s17 = sshll.u32 %s604_s29, 4  ;;  %s10273_s17 = int_to_ptr.vmem [resolvable:$true] %s10272_s17 }
  0x8d   : > { %v1117_v47 = vsel %vm725_vm0, %v10619_v43, 0  ;;  %v10595_v49 = vor.u32 %v14791_v45, %v10594_v44  ;;  %v10626_v51 = vld [vmem:[#allocation8 + $0xf8] sm:$0xf]  ;;  %v14795_v53 = vld [vmem:[#allocation8 + $0xfc] sm:$0xf]  ;;  %vm10259_vm12 = vcmask 73728  }
  0x8e   : > { %841 = vmatpush.bf16.msra.mxu1 %v10495_v15  ;;  %972 = vmatpush.bf16.msra.mxu0 %v10543_v16  ;;  %v10627_v56 = vor.u32 %v14798_v52, %v10626_v51  ;;  %v10628_v57 = vld [vmem:[#allocation8 + $0x110] sm:$0x30]  ;;  %v10602_v59 = vld [vmem:[#allocation8 + $0xc8] sm:$0xf]  ;;  %v14792_v21 = vld [vmem:[#allocation8 + $0xdc] sm:$0xf0] }
  0x8f   : > { %1025 = vmatpush.bf16.msra.mxu3 %v927_v31  ;;  %1008 = vmatpush.bf16.msra.mxu2 %v10551_v34  ;;  %v10631_v60 = vor.u32 %v14795_v53, %v10628_v57  ;;  %v14789_v61 = vld [vmem:[#allocation8 + $0xcc] sm:$0xf]  ;;  %v10604_v62 = vld [vmem:[#allocation8 + $0xe0] sm:$0xf0]  ;;  %v10603_v0 = vor.u32 %v14792_v21, %v10602_v59  ;;  %v14794_v2 = vld [vmem:[#allocation8 + $0xf4] sm:$0xf] }
  0x90   : > { %v10607_v1 = vor.u32 %v14789_v61, %v10604_v62  ;;  %v10620_v3 = vld [vmem:[#allocation8 + $0x108] sm:$0x30]  ;;  %v10634_v4 = vld [vmem:[#allocation8 + $0x100] sm:$0xf]  ;;  %v14799_v6 = vld [vmem:[#allocation8 + $0x114] sm:$0x30] }
  0x91   : > { %v1126_v63 = vsel %vm725_vm0, %v10631_v60, 0  ;;  %v10623_v5 = vor.u32 %v14794_v2, %v10620_v3  ;;  %v14788_v7 = vld [vmem:[#allocation8 + $0xc4] sm:$0xf]  ;;  %v10596_v8 = vld [vmem:[#allocation8 + $0xd8] sm:$0xf0]  ;;  %v10635_v9 = vor.u32 %v14799_v6, %v10634_v4  ;;  %v16713_v15 = vrot.slane %v16637_v28, 1 }
  0x92   : > { %v10610_v10 = vld [vmem:[#allocation8 + $0xd0] sm:$0xf]  ;;  %v14793_v11 = vld [vmem:[#allocation8 + $0xe4] sm:$0xf0]  ;;  %v10599_v13 = vor.u32 %v14788_v7, %v10596_v8  ;;  %v1053_v16 = vrot.slane %v16634_v25, 1  ;;  %v1275_v57 = vrot.slane %v652_v33, 2 }
  0x93   : > { %1026 = vmatpush.bf16.msra.mxu3 %v10555_v35  ;;  %v1129_v12 = vsel %vm725_vm0, %v10635_v9, 0  ;;  %v10611_v14 = vor.u32 %v14793_v11, %v10610_v10  ;;  %v10678_v18 = vld [vmem:[#allocation8 + $0x150] sm:$0xf]  ;;  %v14809_v19 = vld [vmem:[#allocation8 + $0x164] sm:$0x30] }
  0x94   : > { %10522 = vmatmul.msk.bf16.vlgmr.msrb.gmra.mxu1 %vm718_vm2, %v16654_v58  ;;  %10528 = vmatmul.msk.bf16.vlgmr.msrb.gmra.mxu0 %vm718_vm2, %v16654_v58  ;;  %v16718_v17 = vsel %vm1052_vm3, %v1053_v16, %v16713_v15  ;;  %v14806_v20 = vld [vmem:[#allocation8 + $0x154] sm:$0xf]  ;;  %v10679_v22 = vor.u32 %v14809_v19, %v10678_v18  ;;  %v10680_v23 = vld [vmem:[#allocation8 + $0x168] sm:$0x30]  ;;  %v10654_v29 = vld [vmem:[#allocation8 + $0x120] sm:$0xf] }
  0x95   : > { %10525 = vmatmul.msk.bf16.gmra.mxu2 %vm718_vm2, %v16649_v54  ;;  %10527 = vmatmul.msk.bf16.gmra.mxu3 %vm718_vm2, %v16649_v54  ;;  %v10683_v24 = vor.u32 %v14806_v20, %v10680_v23  ;;  %v14803_v30 = vld [vmem:[#allocation8 + $0x134] sm:$0xf0]  ;;  %v14800_v31 = vld [vmem:[#allocation8 + $0x124] sm:$0xf]  ;;  %v10656_v35 = vld [vmem:[#allocation8 + $0x138] sm:$0xf0] }
  0x96   : > { %989 = vmatpush.bf16.msrb.mxu1 %v921_v46  ;;  %1140 = vmatpush.bf16.msrb.mxu0 %v1117_v47  ;;  %v1342_v26 = vsel %vm725_vm0, %v10679_v22, 0  ;;  %v10655_v34 = vor.u32 %v14803_v30, %v10654_v29  ;;  %v10659_v36 = vor.u32 %v14800_v31, %v10656_v35  ;;  %v14796_v37 = vld [vmem:[#allocation8 + $0x104] sm:$0xf]  ;;  %v10636_v38 = vld [vmem:[#allocation8 + $0x118] sm:$0x30] }
  0x97   : > { %v1345_v27 = vsel %vm725_vm0, %v10683_v24, 0  ;;  %v10686_v39 = vld [vmem:[#allocation8 + $0x158] sm:$0xf]  ;;  %v10639_v40 = vor.u32 %v14796_v37, %v10636_v38  ;;  %v14810_v41 = vld [vmem:[#allocation8 + $0x16c] sm:$0x30] }
  0x98   : > { %v10687_v42 = vor.u32 %v14810_v41, %v10686_v39  ;;  %v14790_v45 = vld [vmem:[#allocation8 + $0xd4] sm:$0xf]  ;;  %v10612_v46 = vld [vmem:[#allocation8 + $0xe8] sm:$0xf0]  ;;  %v10662_v47 = vld [vmem:[#allocation8 + $0x128] sm:$0xf] }
  0x99   : > { %v1132_v43 = vsel %vm725_vm0, %v10639_v40, 0  ;;  %v10694_v51 = vld [vmem:[#allocation8 + $0x160] sm:$0xf]  ;;  %v14811_v52 = vld [vmem:[#allocation8 + $0x174] sm:$0x30] }
  0x9a   : > { %990 = vmatpush.bf16.msrb.mxu1 %v10547_v48  ;;  %1141 = vmatpush.bf16.msrb.mxu0 %v10595_v49  ;;  %v1348_v44 = vsel %vm725_vm0, %v10687_v42, 0  ;;  %v10615_v48 = vor.u32 %v14790_v45, %v10612_v46  ;;  %v14804_v49 = vld [vmem:[#allocation8 + $0x13c] sm:$0xf0]  ;;  %v14808_v53 = vld [vmem:[#allocation8 + $0x164] sm:$0xf]  ;;  %v10695_v59 = vor.u32 %v14811_v52, %v10694_v51 }
  0x9b   : > { %v10696_v21 = vld [vmem:[#allocation8 + $0x178] sm:$0x30]  ;;  %vm1273_vm4 = vsmask.f32 6400  ;;  %v10672_v3 = vld [vmem:[#allocation8 + $0x148] sm:$0xf0] }
  0x9c   : > { %v10699_v60 = vor.u32 %v14808_v53, %v10696_v21  ;;  %v1354_v61 = vsel %vm725_vm0, %v10695_v59, 0  ;;  %v14807_v10 = vld [vmem:[#allocation8 + $0x15c] sm:$0xf]  ;;  %v10688_v11 = vld [vmem:[#allocation8 + $0x170] sm:$0x30] }
  0x9d   : > { %v14801_v19 = vld [vmem:[#allocation8 + $0x12c] sm:$0xf]  ;;  %v10664_v20 = vld [vmem:[#allocation8 + $0x140] sm:$0xf0]  ;;  %v10714_v22 = vld [vmem:[#allocation8 + $0x180] sm:$0xf] }
  0x9e   : > { %v1357_v62 = vsel %vm725_vm0, %v10699_v60, 0  ;;  %v10746_v38 = vld [vmem:[#allocation8 + $0x1b8] sm:$0xf]  ;;  %v14822_v39 = vld [vmem:[#allocation8 + $0x1cc] sm:$0x30] }
  0x9f   : > { %v10747_v40 = vor.u32 %v14822_v39, %v10746_v38  ;;  %v10748_v41 = vld [vmem:[#allocation8 + $0x1d0] sm:$0x30]  ;;  %v10722_v45 = vld [vmem:[#allocation8 + $0x188] sm:$0xf]  ;;  %v14816_v46 = vld [vmem:[#allocation8 + $0x19c] sm:$0xf0] }
  0xa0   : > { %v10724_v51 = vld [vmem:[#allocation8 + $0x1a0] sm:$0xf0] }
  0xa4   : > { %10523 = vmatmul.msk.bf16.gmra.mxu1 %vm718_vm2, %v16649_v54  ;;  %10529 = vmatmul.msk.bf16.gmra.mxu0 %vm718_vm2, %v16649_v54 }
  0xa5   : > { %10580 = vmatmul.msk.bf16.vlgmr.msrb.gmra.mxu2 %vm718_vm2, %v16634_v25  ;;  %10582 = vmatmul.msk.bf16.vlgmr.msrb.gmra.mxu3 %vm718_vm2, %v16634_v25 }
  0xa6   : > { %1194 = vmatpush.bf16.msrb.mxu3 %v1126_v63  ;;  %v10670_v63 = vld [vmem:[#allocation8 + $0x130] sm:$0xf] }
  0xaa   : > { %1195 = vmatpush.bf16.msrb.mxu3 %v10607_v1  ;;  %v14802_v1 = vld [vmem:[#allocation8 + $0x134] sm:$0xf] }
  0xab   : > { %v10675_v33 = vor.u32 %v14802_v1, %v10672_v3  ;;  %v14823_v1 = vld [vmem:[#allocation8 + $0x1d4] sm:$0x30] }
  0xb4   : > { %10530 = vmatmul.msk.bf16.vlgmr.msra.gmra.mxu1 %vm718_vm2, %v16654_v58  ;;  %10584 = vmatmul.msk.bf16.vlgmr.msra.gmra.mxu0 %vm718_vm2, %v16634_v25  ;;  %v1123_v58 = vsel %vm725_vm0, %v10627_v56, 0  ;;  %v1274_v56 = vrot.slane %v650_v32, 1 }
  0xb5   : > { %10581 = vmatmul.msk.bf16.gmra.mxu2 %vm718_vm2, %v16690_v50  ;;  %10583 = vmatmul.msk.bf16.gmra.mxu3 %vm718_vm2, %v16690_v50 }
  0xb6   : > { %1176 = vmatpush.bf16.msrb.mxu2 %v1123_v58  ;;  %1212 = vmatpush.bf16.msra.mxu0 %v1129_v12  ;;  %v1276_v58 = vor.u32 %v1275_v57, %v1274_v56  ;;  %v10691_v12 = vor.u32 %v14807_v10, %v10688_v11  ;;  %v14812_v10 = vld [vmem:[#allocation8 + $0x184] sm:$0xf]  ;;  %v10716_v11 = vld [vmem:[#allocation8 + $0x198] sm:$0xf0] }
  0xb8   : > { %v1351_v16 = vsel %vm725_vm0, %v10691_v12, 0 }
  0xba   : > { %1177 = vmatpush.bf16.msrb.mxu2 %v10603_v0  ;;  %1213 = vmatpush.bf16.msra.mxu0 %v10611_v14  ;;  %v14805_v0 = vld [vmem:[#allocation8 + $0x144] sm:$0xf0] }
  0xbb   : > { %v10671_v2 = vor.u32 %v14805_v0, %v10670_v63  ;;  %v10754_v63 = vld [vmem:[#allocation8 + $0x1c0] sm:$0xf] }
  0xc4   : > { %10531 = vmatmul.msk.bf16.gmra.mxu1 %vm718_vm2, %v16649_v54  ;;  %10585 = vmatmul.msk.bf16.gmra.mxu0 %vm718_vm2, %v16690_v50  ;;  %v1120_v54 = vsel %vm725_vm0, %v10623_v5, 0  ;;  %v16759_v5 = vsel %vm1273_vm4, %v1276_v58, %v16651_v55  ;;  %v14818_v58 = vld [vmem:[#allocation8 + $0x1b4] sm:$0xf] }
  0xc5   : > { %10588 = vmatmul.msk.bf16.vlgmr.msra.gmra.mxu2 %vm718_vm2, %v16634_v25  ;;  %10590 = vmatmul.msk.bf16.vlgmr.msra.gmra.mxu3 %vm718_vm2, %v16634_v25 }
  0xc6   : > { %1158 = vmatpush.bf16.msra.mxu1 %v1120_v54  ;;  %1365 = vmatpush.bf16.msra.mxu2 %v1342_v26  ;;  %v10738_v54 = vld [vmem:[#allocation8 + $0x1b0] sm:$0xf]  ;;  %v10667_v26 = vor.u32 %v14801_v19, %v10664_v20 }
  0xc7   : > { %1383 = vmatpush.bf16.msra.mxu3 %v1345_v27  ;;  %v14815_v27 = vld [vmem:[#allocation8 + $0x194] sm:$0xf0] }
  0xc8   : > { %v10715_v31 = vor.u32 %v14815_v27, %v10714_v22 }
  0xca   : > { %1159 = vmatpush.bf16.msra.mxu1 %v10599_v13  ;;  %1366 = vmatpush.bf16.msra.mxu2 %v10655_v34  ;;  %v14821_v13 = vld [vmem:[#allocation8 + $0x1c4] sm:$0x30] }
  0xcb   : > { %1384 = vmatpush.bf16.msra.mxu3 %v10659_v36  ;;  %v10739_v14 = vor.u32 %v14821_v13, %v10738_v54  ;;  %v10730_v54 = vld [vmem:[#allocation8 + $0x190] sm:$0xf] }
  0xcd   : > { %v1563_v18 = vsel %vm725_vm0, %v10739_v14, 0  ;;  %v10719_v14 = vor.u32 %v14812_v10, %v10716_v11 }
  0xd4   : > { %10586 = vmatmul.msk.bf16.vlgmr.msrb.gmra.mxu1 %vm718_vm2, %v16634_v25  ;;  %10640 = vmatmul.msk.bf16.vlgmr.msrb.gmra.mxu0 %vm718_vm2, %v16718_v17 }
  0xd5   : > { %10589 = vmatmul.msk.bf16.gmra.mxu2 %vm718_vm2, %v16690_v50  ;;  %10591 = vmatmul.msk.bf16.gmra.mxu3 %vm718_vm2, %v16690_v50 }
  0xd6   : > { %1230 = vmatpush.bf16.msrb.mxu1 %v1132_v43  ;;  %1401 = vmatpush.bf16.msrb.mxu0 %v1348_v44  ;;  %v1569_v43 = vsel %vm725_vm0, %v10747_v40, 0 }
  0xda   : > { %1231 = vmatpush.bf16.msrb.mxu1 %v10615_v48 }
  0xe4   : > { %10587 = vmatmul.msk.bf16.gmra.mxu1 %vm718_vm2, %v16690_v50  ;;  %10641 = vmatmul.msk.bf16.gmra.mxu0 %vm718_vm2, %v16713_v15  ;;  %v10663_v50 = vor.u32 %v14804_v49, %v10662_v47  ;;  %v14813_v47 = vld [vmem:[#allocation8 + $0x18c] sm:$0xf] }
  0xe5   : > { %10644 = vmatmul.msk.bf16.vlgmr.msrb.gmra.mxu2 %vm718_vm2, %v16718_v17  ;;  %10646 = vmatmul.msk.bf16.vlgmr.msrb.gmra.mxu3 %vm718_vm2, %v16718_v17  ;;  %v10727_v56 = vor.u32 %v14813_v47, %v10724_v51 }
  0xe6   : > { %1402 = vmatpush.bf16.msrb.mxu0 %v10663_v50  ;;  %1437 = vmatpush.bf16.msrb.mxu2 %v1354_v61  ;;  %v10723_v50 = vor.u32 %v14816_v46, %v10722_v45  ;;  %v14820_v45 = vld [vmem:[#allocation8 + $0x1c4] sm:$0xf]  ;;  %v10756_v46 = vld [vmem:[#allocation8 + $0x1d8] sm:$0x30] }
  0xe7   : > { %1455 = vmatpush.bf16.msrb.mxu3 %v1357_v62 }
  0xea   : > { %1438 = vmatpush.bf16.msrb.mxu2 %v10671_v2  ;;  %v10755_v2 = vor.u32 %v14823_v1, %v10754_v63 }
  0xeb   : > { %1456 = vmatpush.bf16.msrb.mxu3 %v10675_v33  ;;  %v16818_v33 = vrot.slane %v16637_v28, 2 }
  0xf4   : > { %10642 = vmatmul.msk.bf16.vlgmr.msra.gmra.mxu1 %vm718_vm2, %v16718_v17  ;;  %10648 = vmatmul.msk.bf16.vlgmr.msra.gmra.mxu0 %vm718_vm2, %v16718_v17 }
  0xf5   : > { %10645 = vmatmul.msk.bf16.gmra.mxu2 %vm718_vm2, %v16713_v15  ;;  %10647 = vmatmul.msk.bf16.gmra.mxu3 %vm718_vm2, %v16713_v15 }
  0xf6   : > { %1419 = vmatpush.bf16.msra.mxu1 %v1351_v16  ;;  %1586 = vmatpush.bf16.msra.mxu0 %v1563_v18  ;;  %v14817_v16 = vld [vmem:[#allocation8 + $0x1a4] sm:$0xf0] }
  0xfa   : > { %1420 = vmatpush.bf16.msra.mxu1 %v10667_v26  ;;  %1587 = vmatpush.bf16.msra.mxu0 %v10715_v31 }
 0x101   : > { %v16754_v32 = vpop.f32.mrf.mxu0  ;;  %v16756_v4 = vpop.f32.mrf.mxu1 }
 0x104   : > { %10643 = vmatmul.msk.bf16.gmra.mxu1 %vm718_vm2, %v16713_v15  ;;  %10649 = vmatmul.msk.bf16.gmra.mxu0 %vm718_vm2, %v16713_v15 }
 0x105   : > { %10700 = vmatmul.msk.bf16.vlgmr.msra.gmra.mxu2 %vm718_vm2, %v16759_v5  ;;  %10702 = vmatmul.msk.bf16.vlgmr.msra.gmra.mxu3 %vm718_vm2, %v16759_v5 }
 0x106   : > { %1622 = vmatpush.bf16.msra.mxu2 %v1569_v43 }
 0x108   : > { %v16769_v6 = vpop.f32.mrf.mxu2  ;;  %v16771_v7 = vpop.f32.mrf.mxu3 }
 0x109   : > { %v16773_v8 = vpop.f32.mrf.mxu0  ;;  %v760_v9 = vpop.f32.mrf.mxu1 }
 0x10a   : > { %1623 = vmatpush.bf16.msra.mxu2 %v10723_v50  ;;  %v1499_v9 = vrot.slane %v16634_v25, 2  ;;  %v10731_v25 = vor.u32 %v14817_v16, %v10730_v54 }
 0x10c   : > { %v16828_v28 = vsel %vm725_vm0, %v1499_v9, %v16818_v33 }
 0x110   : > { %v16777_v23 = vpop.f32.mrf.mxu2  ;;  %v16779_v24 = vpop.f32.mrf.mxu3 }
 0x111   : > { %v771_v29 = vpop.f32.mrf.mxu1  ;;  %v16781_v30 = vpop.f32.mrf.mxu0 }
 0x114   : > { %10650 = vmatmul.msk.bf16.vlgmr.msrb.gmra.mxu1 %vm718_vm2, %v16718_v17  ;;  %10704 = vmatmul.msk.bf16.vlgmr.msrb.gmra.mxu0 %vm718_vm2, %v16759_v5  ;;  %v14819_v17 = vld [vmem:[#allocation8 + $0x1bc] sm:$0xf] }
 0x115   : > { %10701 = vmatmul.msk.bf16.gmra.mxu2 %vm718_vm2, %v16651_v55  ;;  %10703 = vmatmul.msk.bf16.gmra.mxu3 %vm718_vm2, %v16651_v55  ;;  %v10751_v42 = vor.u32 %v14819_v17, %v10748_v41 }
 0x117   : > { %v1572_v44 = vsel %vm725_vm0, %v10751_v42, 0 }
 0x118   : > { %v16791_v34 = vpop.f32.mrf.mxu2  ;;  %v16793_v35 = vpop.f32.mrf.mxu3  ;;  %1640 = vmatpush.bf16.msra.mxu3 %v1572_v44 }
 0x119   : > { %v16795_v36 = vpop.f32.mrf.mxu1  ;;  %v16797_v37 = vpop.f32.mrf.mxu0 }
 0x11c   : > { %1641 = vmatpush.bf16.msra.mxu3 %v10727_v56 }
 0x120   : > { %v796_v48 = vpop.f32.mrf.mxu2  ;;  %v814_v49 = vpop.f32.mrf.mxu3 }
 0x121   : > { %v776_v52 = vpop.f32.mrf.mxu1  ;;  %v16801_v53 = vpop.f32.mrf.mxu0  ;;  %v14814_v48 = vld [vmem:[#allocation8 + $0x194] sm:$0xf]  ;;  %v10732_v49 = vld [vmem:[#allocation8 + $0x1a8] sm:$0xf0] }
 0x124   : > { %10651 = vmatmul.msk.bf16.gmra.mxu1 %vm718_vm2, %v16713_v15  ;;  %10705 = vmatmul.msk.bf16.gmra.mxu0 %vm718_vm2, %v16651_v55  ;;  %v10740_v15 = vld [vmem:[#allocation8 + $0x1c8] sm:$0x30] }
 0x125   : > { %10708 = vmatmul.msk.bf16.vlgmr.msrb.gmra.mxu2 %vm718_vm2, %v16759_v5  ;;  %10710 = vmatmul.msk.bf16.vlgmr.msrb.gmra.mxu3 %vm718_vm2, %v16759_v5  ;;  %v10743_v0 = vor.u32 %v14818_v58, %v10740_v15 }
 0x127   : > { %v1566_v3 = vsel %vm725_vm0, %v10743_v0, 0 }
 0x128   : > { %v938_v57 = vpop.f32.mrf.mxu2  ;;  %v956_v59 = vpop.f32.mrf.mxu3  ;;  %1604 = vmatpush.bf16.msrb.mxu1 %v1566_v3 }
 0x129   : > { %v16812_v21 = vadd.f32 %v938_v57, %v16754_v32  ;;  %v16814_v60 = vadd.f32 %v956_v59, %v771_v29  ;;  %v778_v61 = vpop.f32.mrf.mxu1  ;;  %v832_v62 = vpop.f32.mrf.mxu0  ;;  %v1575_v32 = vsel %vm725_vm0, %v10755_v2, 0 }
 0x12a   : > { %1658 = vmatpush.bf16.msrb.mxu0 %v1575_v32 }
 0x12c   : > { %1605 = vmatpush.bf16.msrb.mxu1 %v10719_v14 }
 0x12e   : > { %1659 = vmatpush.bf16.msrb.mxu0 %v10731_v25 }
 0x130   : > { %v16822_v12 = vpop.f32.mrf.mxu2  ;;  %v16824_v13 = vpop.f32.mrf.mxu3 }
 0x131   : > { %v843_v18 = vpop.f32.mrf.mxu1  ;;  %v974_v19 = vpop.f32.mrf.mxu0 }
 0x132   : > { %v975_v20 = vadd.f32 %v974_v19, %v16769_v6 }
 0x134   : > { %10706 = vmatmul.msk.bf16.vlgmr.msra.gmra.mxu1 %vm718_vm2, %v16759_v5  ;;  %10760 = vmatmul.msk.bf16.vlgmr.msra.gmra.mxu0 %vm718_vm2, %v16828_v28 }
 0x135   : > { %10709 = vmatmul.msk.bf16.gmra.mxu2 %vm718_vm2, %v16651_v55  ;;  %10711 = vmatmul.msk.bf16.gmra.mxu3 %vm718_vm2, %v16651_v55 }
 0x138   : > { %v943_v22 = vpop.f32.mrf.mxu2  ;;  %v961_v26 = vpop.f32.mrf.mxu3 }
 0x139   : > { %v944_v27 = vadd.f32 %v943_v22, %v16756_v4  ;;  %v16840_v29 = vadd.f32 %v961_v26, %v776_v52  ;;  %v16842_v6 = vpop.f32.mrf.mxu1  ;;  %v16844_v31 = vpop.f32.mrf.mxu0  ;;  %v10735_v52 = vor.u32 %v14814_v48, %v10732_v49 }
 0x140   : > { %v945_v5 = vpop.f32.mrf.mxu2  ;;  %v963_v38 = vpop.f32.mrf.mxu3 }
 0x141   : > { %v848_v39 = vpop.f32.mrf.mxu1  ;;  %v979_v17 = vpop.f32.mrf.mxu0 }
 0x142   : > { %v980_v40 = vadd.f32 %v979_v17, %v16791_v34 }
 0x144   : > { %10707 = vmatmul.msk.bf16.gmra.mxu1 %vm718_vm2, %v16651_v55  ;;  %10761 = vmatmul.msk.bf16.gmra.mxu0 %vm718_vm2, %v16818_v33  ;;  %v10759_v55 = vor.u32 %v14820_v45, %v10756_v46 }
 0x145   : > { %10764 = vmatmul.msk.bf16.vlgmr.msra.gmra.mxu2 %vm718_vm2, %v16828_v28  ;;  %10766 = vmatmul.msk.bf16.vlgmr.msra.gmra.mxu3 %vm718_vm2, %v16828_v28 }
 0x146   : > { %v1578_v47 = vsel %vm725_vm0, %v10759_v55, 0 }
 0x147   : > { %1676 = vmatpush.bf16.msra.mxu1 %v1578_v47 }
 0x148   : > { %v1010_v4 = vpop.f32.mrf.mxu2  ;;  %v1028_v41 = vpop.f32.mrf.mxu3 }
 0x149   : > { %v1011_v42 = vadd.f32 %v1010_v4, %v16781_v30  ;;  %v16856_v43 = vadd.f32 %v1028_v41, %v843_v18  ;;  %v850_v44 = vpop.f32.mrf.mxu1  ;;  %v981_v34 = vpop.f32.mrf.mxu0 }
 0x14b   : > { %1677 = vmatpush.bf16.msra.mxu1 %v10735_v52 }
 0x150   : > { %v16859_v50 = vpop.f32.mrf.mxu2  ;;  %v16861_v51 = vpop.f32.mrf.mxu3 }
 0x151   : > { %v992_v56 = vpop.f32.mrf.mxu1  ;;  %v1143_v57 = vpop.f32.mrf.mxu0 }
 0x152   : > { %v1242_v30 = vadd.f32 %v1143_v57, %v16812_v21  ;;  %v993_v9 = vadd.f32 %v992_v56, %v16771_v7 }
 0x154   : > { %10762 = vmatmul.msk.bf16.vlgmr.msrb.gmra.mxu1 %vm718_vm2, %v16828_v28  ;;  %10768 = vmatmul.msk.bf16.vlgmr.msrb.gmra.mxu0 %vm718_vm2, %v16828_v28 }
 0x155   : > { %10765 = vmatmul.msk.bf16.gmra.mxu2 %vm718_vm2, %v16818_v33  ;;  %10767 = vmatmul.msk.bf16.gmra.mxu3 %vm718_vm2, %v16818_v33 }
 0x158   : > { %v1015_v59 = vpop.f32.mrf.mxu2  ;;  %v1033_v61 = vpop.f32.mrf.mxu3 }
 0x159   : > { %v1016_v62 = vadd.f32 %v1015_v59, %v16801_v53  ;;  %v1034_v58 = vadd.f32 %v1033_v61, %v848_v39  ;;  %v16873_v15 = vpop.f32.mrf.mxu1  ;;  %v16875_v21 = vpop.f32.mrf.mxu0 }
 0x160   : > { %v1017_v63 = vpop.f32.mrf.mxu2  ;;  %v1035_v0 = vpop.f32.mrf.mxu3 }
 0x161   : > { %v997_v1 = vpop.f32.mrf.mxu1  ;;  %v1148_v2 = vpop.f32.mrf.mxu0 }
 0x162   : > { %v1254_v3 = vadd.f32 %v1148_v2, %v944_v27  ;;  %v998_v7 = vadd.f32 %v997_v1, %v16793_v35 }
 0x164   : > { %10763 = vmatmul.msk.bf16.gmra.mxu1 %vm718_vm2, %v16818_v33  ;;  %10769 = vmatmul.msk.bf16.gmra.mxu0 %vm718_vm2, %v16818_v33 }
 0x168   : > { %v1179_v32 = vpop.f32.mrf.mxu2  ;;  %v1197_v53 = vpop.f32.mrf.mxu3 }
 0x169   : > { %v1244_v10 = vadd.f32 %v1179_v32, %v975_v20  ;;  %v1245_v11 = vadd.f32 %v1197_v53, %v993_v9  ;;  %v999_v54 = vpop.f32.mrf.mxu1  ;;  %v1150_v14 = vpop.f32.mrf.mxu0 }
 0x170   : > { %v16882_v16 = vpop.f32.mrf.mxu2  ;;  %v16884_v18 = vpop.f32.mrf.mxu3 }
 0x171   : > { %v1161_v19 = vpop.f32.mrf.mxu1  ;;  %v1215_v25 = vpop.f32.mrf.mxu0 }
 0x172   : > { %v1243_v22 = vadd.f32 %v1161_v19, %v16814_v60  ;;  %v16887_v26 = vadd.f32 %v1215_v25, %v1011_v42 }
 0x174   : > { %10770 = vmatmul.msk.bf16.vlgmr.msra.gmra.mxu1 %vm718_vm2, %v16828_v28 }
 0x178   : > { %v1184_v27 = vpop.f32.mrf.mxu2  ;;  %v1202_v20 = vpop.f32.mrf.mxu3 }
 0x179   : > { %v16892_v5 = vadd.f32 %v1184_v27, %v980_v40  ;;  %v16894_v38 = vadd.f32 %v1202_v20, %v998_v7  ;;  %v16896_v39 = vpop.f32.mrf.mxu1  ;;  %v16898_v17 = vpop.f32.mrf.mxu0 }
 0x180   : > { %v1186_v4 = vpop.f32.mrf.mxu2  ;;  %v1204_v41 = vpop.f32.mrf.mxu3 }
 0x181   : > { %v1166_v60 = vpop.f32.mrf.mxu1  ;;  %v1220_v42 = vpop.f32.mrf.mxu0 }
 0x182   : > { %v1255_v44 = vadd.f32 %v1166_v60, %v16840_v29  ;;  %v16901_v34 = vadd.f32 %v1220_v42, %v1016_v62 }
 0x184   : > { %10771 = vmatmul.msk.bf16.gmra.mxu1 %vm718_vm2, %v16818_v33 }
 0x188   : > { %v1368_v35 = vpop.f32.mrf.mxu2  ;;  %v1386_v28 = vpop.f32.mrf.mxu3 }
 0x189   : > { %v1467_v40 = vadd.f32 %v1368_v35, %v1242_v30  ;;  %v16905_v45 = vadd.f32 %v1386_v28, %v1243_v22  ;;  %v1168_v46 = vpop.f32.mrf.mxu1  ;;  %v1222_v55 = vpop.f32.mrf.mxu0  ;;  %v16922_v22 = vld [vmem:[#allocation9] sm:$0x3f] }
 0x18a   : > { %v1708_v20 = vperm.slane %v16922_v22, 0  ;;  %v1738_v35 = vld [vmem:[%s16593_s8] sm:$0xff] }
 0x190   : > { %v1370_v47 = vpop.f32.mrf.mxu2  ;;  %v16907_v48 = vpop.f32.mrf.mxu3 }
 0x191   : > { %v1233_v49 = vpop.f32.mrf.mxu1  ;;  %v1404_v52 = vpop.f32.mrf.mxu0 }
 0x192   : > { %v1247_v56 = vadd.f32 %v1233_v49, %v16856_v43  ;;  %v1469_v29 = vadd.f32 %v1404_v52, %v1244_v10  ;;  %v1744_v49 = vld [vmem:[%s16593_s8 + $0x30] sm:$0xff] }
 0x198   : > { %v1373_v57 = vpop.f32.mrf.mxu2  ;;  %v1391_v59 = vpop.f32.mrf.mxu3 }
 0x199   : > { %v1479_v61 = vadd.f32 %v1373_v57, %v1254_v3  ;;  %v16910_v62 = vadd.f32 %v1391_v59, %v1255_v44  ;;  %v16912_v33 = vpop.f32.mrf.mxu1  ;;  %v1406_v30 = vpop.f32.mrf.mxu0 }
 0x1a0   : > { %v1375_v63 = vpop.f32.mrf.mxu2  ;;  %v1393_v0 = vpop.f32.mrf.mxu3 }
 0x1a1   : > { %v1238_v1 = vpop.f32.mrf.mxu1  ;;  %v16914_v2 = vpop.f32.mrf.mxu0 }
 0x1a2   : > { %v1259_v9 = vadd.f32 %v1238_v1, %v1034_v58  ;;  %v941_v58 = vadd.f32 %v16822_v12, %v16773_v8  ;;  %v1750_v1 = vld [vmem:[%s16593_s8 + $0x60] sm:$0xff] }
 0x1a4   : > { %v1248_v4 = vadd.f32 %v16875_v21, %v941_v58 }
 0x1a6   : > { %v1473_v41 = vadd.f32 %v1370_v47, %v1248_v4  ;;  %v977_v4 = vadd.f32 %v16844_v31, %v16777_v23  ;;  %v959_v23 = vadd.f32 %v16824_v13, %v16795_v36  ;;  %v1013_v31 = vadd.f32 %v16859_v50, %v16797_v37 }
 0x1a7   : > { %v1481_v36 = vadd.f32 %v16914_v2, %v16892_v5  ;;  %v1752_v2 = vld [vmem:[%s16593_s8 + $0x70] sm:$0xff] }
 0x1a8   : > { %v1440_v32 = vpop.f32.mrf.mxu2  ;;  %v1458_v53 = vpop.f32.mrf.mxu3 }
 0x1a9   : > { %v16916_v54 = vadd.f32 %v1458_v53, %v1247_v56  ;;  %v1240_v43 = vpop.f32.mrf.mxu1  ;;  %v1411_v10 = vpop.f32.mrf.mxu0 }
 0x1b0   : > { %v16918_v14 = vpop.f32.mrf.mxu2  ;;  %v16920_v3 = vpop.f32.mrf.mxu3 }
 0x1b1   : > { %v1422_v19 = vpop.f32.mrf.mxu1  ;;  %v1589_v25 = vpop.f32.mrf.mxu0 }
 0x1b2   : > { %v16924_v7 = vadd.f32 %v1422_v19, %v1245_v11  ;;  %v1688_v27 = vadd.f32 %v1589_v25, %v1467_v40 }
 0x1b4   : > { %v1720_v60 = vadd.f32 %v1708_v20, %v1688_v27 }
 0x1b6   : > { %v1756_v8 = vmul.f32 %v1738_v35, %v1720_v60 }
 0x1b8   : > { %v16930_v42 = vpop.f32.mrf.mxu2  ;;  %v1463_v44 = vpop.f32.mrf.mxu3  ;;  %v1793_v52 = vrot.slane %v1756_v8, 1 }
 0x1b9   : > { %v16933_v28 = vadd.f32 %v1463_v44, %v1259_v9  ;;  %v16935_v46 = vpop.f32.mrf.mxu1  ;;  %v1591_v11 = vpop.f32.mrf.mxu0  ;;  %v1250_v44 = vadd.f32 %v16882_v16, %v977_v4 }
 0x1ba   : > { %v1694_v55 = vadd.f32 %v1591_v11, %v1473_v41 }
 0x1bb   : > { %v1475_v35 = vadd.f32 %v1406_v30, %v1250_v44 }
 0x1bc   : > { %v1726_v12 = vadd.f32 %v1708_v20, %v1694_v55  ;;  %v1740_v55 = vld [vmem:[%s16593_s8 + $0x10] sm:$0xff] }
 0x1be   : > { %v1762_v40 = vmul.f32 %v1744_v49, %v1726_v12 }
 0x1c0   : > { %v1794_v56 = vrot.slane %v1762_v40, 1  ;;  %v1447_v21 = vpop.f32.mrf.mxu2  ;;  %v1465_v47 = vpop.f32.mrf.mxu3 }
 0x1c1   : > { %v16938_v57 = vpop.f32.mrf.mxu1  ;;  %v1594_v59 = vpop.f32.mrf.mxu0  ;;  %v1746_v47 = vld [vmem:[%s16593_s8 + $0x40] sm:$0xff] }
 0x1c2   : > { %v1700_v63 = vadd.f32 %v1594_v59, %v1479_v61  ;;  %v1795_v0 = vsel %vm1052_vm3, %v1793_v52, %v1794_v56 }
 0x1c3   : > { %v16942_v9 = vmax.f32 %v1756_v8, %v1795_v0 }
 0x1c4   : > { %v1732_v53 = vadd.f32 %v1708_v20, %v1700_v63  ;;  %v1710_v20 = vperm.slane %v16922_v22, 2  ;;  %v1712_v63 = vperm.slane %v16922_v22, 4 }
 0x1c6   : > { %v16944_v43 = vmul.f32 %v1750_v1, %v1732_v53 }
 0x1c8   : > { %v1625_v10 = vpop.f32.mrf.mxu2  ;;  %v16946_v19 = vpop.f32.mrf.mxu3  ;;  %v1811_v25 = vrot.slane %v16944_v43, 1 }
 0x1c9   : > { %v1429_v58 = vpop.f32.mrf.mxu1  ;;  %v1596_v27 = vpop.f32.mrf.mxu0  ;;  %v1690_v41 = vadd.f32 %v1625_v10, %v1469_v29 }
 0x1ca   : > { %v1812_v61 = vsel %vm1052_vm3, %v1794_v56, %v1811_v25  ;;  %v1471_v56 = vadd.f32 %v1440_v32, %v16887_v26  ;;  %v1249_v26 = vadd.f32 %v16896_v39, %v959_v23  ;;  %v1252_v32 = vadd.f32 %v16898_v17, %v1013_v31  ;;  %v1739_v39 = vld [vmem:[%s16593_s8 + $0x8] sm:$0xff]  ;;  %v1742_v27 = vld [vmem:[%s16593_s8 + $0x20] sm:$0xff] }
 0x1cb   : > { %v16955_v60 = vmax.f32 %v1762_v40, %v1812_v61  ;;  %v1722_v11 = vadd.f32 %v1710_v20, %v1690_v41  ;;  %v1709_v40 = vperm.slane %v16922_v22, 1  ;;  %v1483_v23 = vadd.f32 %v16930_v42, %v16901_v34  ;;  %v1751_v34 = vld [vmem:[%s16593_s8 + $0x68] sm:$0xff]  ;;  %v1754_v42 = vld [vmem:[%s16593_s8 + $0x80] sm:$0xff] }
 0x1cc   : > { %v1474_v50 = vadd.f32 %v16907_v48, %v1249_v26 }
 0x1cd   : > { %v1758_v29 = vmul.f32 %v1740_v55, %v1722_v11  ;;  %v1748_v11 = vld [vmem:[%s16593_s8 + $0x50] sm:$0xff] }
 0x1cf   : > { %v1799_v37 = vrot.slane %v1758_v29, 1 }
 0x1d0   : > { %v1627_v49 = vpop.f32.mrf.mxu2  ;;  %v16959_v8 = vpop.f32.mrf.mxu3 }
 0x1d1   : > { %v1696_v12 = vadd.f32 %v1627_v49, %v1475_v35  ;;  %v1607_v52 = vpop.f32.mrf.mxu1  ;;  %v1661_v21 = vpop.f32.mrf.mxu0  ;;  %v1745_v35 = vld [vmem:[%s16593_s8 + $0x38] sm:$0xff] }
 0x1d2   : > { %v1689_v30 = vadd.f32 %v1607_v52, %v16905_v45  ;;  %v1692_v59 = vadd.f32 %v1661_v21, %v1471_v56  ;;  %v1477_v45 = vadd.f32 %v16918_v14, %v1252_v32 }
 0x1d3   : > { %v1728_v16 = vadd.f32 %v1710_v20, %v1696_v12 }
 0x1d4   : > { %v1721_v1 = vadd.f32 %v1709_v40, %v1689_v30  ;;  %v1724_v53 = vadd.f32 %v1712_v63, %v1692_v59 }
 0x1d5   : > { %v1764_v0 = vmul.f32 %v1746_v47, %v1728_v16 }
 0x1d6   : > { %v1757_v55 = vmul.f32 %v1739_v39, %v1721_v1  ;;  %v1760_v49 = vmul.f32 %v1742_v27, %v1724_v53 }
 0x1d7   : > { %v1800_v13 = vrot.slane %v1764_v0, 1 }
 0x1d8   : > { %v1630_v10 = vpop.f32.mrf.mxu2  ;;  %v16976_v58 = vpop.f32.mrf.mxu3  ;;  %v1796_v16 = vrot.slane %v1757_v55, 1  ;;  %v1805_v30 = vrot.slane %v1760_v49, 1 }
 0x1d9   : > { %v1702_v17 = vadd.f32 %v1630_v10, %v1481_v36  ;;  %v1609_v61 = vpop.f32.mrf.mxu1  ;;  %v1663_v4 = vpop.f32.mrf.mxu0  ;;  %v1801_v5 = vsel %vm1052_vm3, %v1799_v37, %v1800_v13 }
 0x1da   : > { %v1695_v41 = vadd.f32 %v1609_v61, %v1474_v50  ;;  %v1698_v44 = vadd.f32 %v1663_v4, %v1477_v45  ;;  %v16982_v48 = vmax.f32 %v1758_v29, %v1801_v5 }
 0x1db   : > { %v1734_v14 = vadd.f32 %v1710_v20, %v1702_v17 }
 0x1dc   : > { %v1727_v12 = vadd.f32 %v1709_v40, %v1695_v41  ;;  %v1730_v52 = vadd.f32 %v1712_v63, %v1698_v44 }
 0x1dd   : > { %v1770_v21 = vmul.f32 %v1752_v2, %v1734_v14 }
 0x1de   : > { %v1763_v56 = vmul.f32 %v1745_v35, %v1727_v12  ;;  %v1766_v47 = vmul.f32 %v1748_v11, %v1730_v52 }
 0x1df   : > { %v1815_v31 = vrot.slane %v1770_v21, 1 }
 0x1e0   : > { %v1797_v29 = vrot.slane %v1763_v56, 1  ;;  %v1806_v59 = vrot.slane %v1766_v47, 1  ;;  %v1632_v20 = vpop.f32.mrf.mxu2  ;;  %v1650_v26 = vpop.f32.mrf.mxu3 }
 0x1e1   : > { %v1612_v32 = vpop.f32.mrf.mxu1  ;;  %v1666_v36 = vpop.f32.mrf.mxu0  ;;  %v1816_v37 = vsel %vm1052_vm3, %v1800_v13, %v1815_v31  ;;  %v16998_v27 = vmax.f32 %v1770_v21, %v1815_v31  ;;  %v10870_v21 = vld [vmem:[#allocation11 + $0x680] sm:$0xf]  ;;  %v15034_v31 = vld [vmem:[#allocation11 + $0x68c] sm:$0xf0]  ;;  %v1482_v26 = vadd.f32 %v16938_v57, %v16894_v38 }
 0x1e2   : > { %v1701_v50 = vadd.f32 %v1612_v32, %v16910_v62  ;;  %v1704_v45 = vadd.f32 %v1666_v36, %v1483_v23  ;;  %v1798_v1 = vsel %vm1052_vm3, %v1796_v16, %v1797_v29  ;;  %v1807_v53 = vsel %vm1052_vm3, %v1805_v30, %v1806_v59  ;;  %v15030_v20 = vld [vmem:[#allocation11 + $0x66c] sm:$0xf0] }
 0x1e3   : > { %v16994_v10 = vmax.f32 %v1757_v55, %v1798_v1  ;;  %v16996_v39 = vmax.f32 %v1760_v49, %v1807_v53  ;;  %v17000_v17 = vmax.f32 %v1764_v0, %v1816_v37  ;;  %v10871_v16 = vor.u32 %v15034_v31, %v10870_v21  ;;  %v1753_v53 = vld [vmem:[%s16593_s8 + $0x78] sm:$0xff] }
 0x1e4   : > { %v1733_v61 = vadd.f32 %v1709_v40, %v1701_v50  ;;  %v1736_v4 = vadd.f32 %v1712_v63, %v1704_v45  ;;  %v17014_v63 = vmax.f32 %v16944_v43, %v1811_v25  ;;  %v10886_v43 = vld [vmem:[#allocation11 + $0x6a0] sm:$0xf]  ;;  %v15038_v25 = vld [vmem:[#allocation11 + $0x6ac] sm:$0xf0]  ;;  %v1031_v30 = vadd.f32 %v16861_v51, %v16842_v6 }
 0x1e5   : > { %v15953_v62 = vpack.i.bf16 %v16994_v10, %v16942_v9  ;;  %v15973_v13 = vpack.i.bf16 %v16996_v39, %v16998_v27  ;;  %v10887_v23 = vor.u32 %v15038_v25, %v10886_v43  ;;  %v1713_v36 = vperm.slane %v16922_v22, 5 }
 0x1e6   : > { %v1769_v5 = vmul.f32 %v1751_v34, %v1733_v61  ;;  %v17006_v2 = vmul.f32 %v1754_v42, %v1736_v4  ;;  %v1253_v37 = vadd.f32 %v16912_v33, %v1031_v30  ;;  %v1703_v6 = vadd.f32 %v16976_v58, %v1482_v26  ;;  %v1749_v34 = vld [vmem:[%s16593_s8 + $0x58] sm:$0xff]  ;;  %v1747_v42 = vld [vmem:[%s16593_s8 + $0x48] sm:$0xff] }
 0x1e7   : > { %15954 = vrot.lane.b32.xlu0 %v15953_v62, %s16371_s14  ;;  %15974 = vrot.lane.b32.xlu2 %v15973_v13, %s16371_s14  ;;  %v1691_v33 = vadd.f32 %v16946_v19, %v16924_v7  ;;  %v1741_v4 = vld [vmem:[%s16593_s8 + $0x18] sm:$0xff] }
 0x1e8   : > { %v1819_v41 = vrot.slane %v17006_v2, 1  ;;  %v1813_v0 = vrot.slane %v1769_v5, 1  ;;  %3322 = vmatpush.bf16.msrb.mxu2 %v10887_v23  ;;  %v1478_v38 = vadd.f32 %v16920_v3, %v1253_v37  ;;  %v10838_v37 = vld [vmem:[#allocation11 + $0x640] sm:$0xf] }
 0x1e9   : > { %v1614_v44 = vpop.f32.mrf.mxu1  ;;  %v1668_v40 = vpop.f32.mrf.mxu0 }
 0x1ea   : > { %v17016_v14 = vmax.f32 %v1769_v5, %v1813_v0  ;;  %v1814_v35 = vsel %vm1052_vm3, %v1797_v29, %v1813_v0  ;;  %v1820_v11 = vsel %vm1052_vm3, %v1806_v59, %v1819_v41  ;;  %v10854_v59 = vld [vmem:[#allocation11 + $0x660] sm:$0xf] }
 0x1eb   : > { %v17022_v55 = vmax.f32 %v1763_v56, %v1814_v35  ;;  %v17024_v49 = vmax.f32 %v1766_v47, %v1820_v11  ;;  %v995_v56 = vadd.f32 %v16873_v15, %v16779_v24  ;;  %v15968_v24 = vpack.i.bf16 %v17000_v17, %v16982_v48 }
 0x1ec   : > { %v15963_v12 = vpack.i.bf16 %v17016_v14, %v17014_v63  ;;  %3323 = vmatpush.bf16.msrb.mxu2 %v10871_v16  ;;  %v10855_v51 = vor.u32 %v15030_v20, %v10854_v59 }
 0x1ed   : > { %v15958_v52 = vpack.i.bf16 %v17022_v55, %v16955_v60  ;;  %v1251_v29 = vadd.f32 %v16884_v18, %v995_v56 }
 0x1ee   : > { %15964 = vrot.lane.b32.xlu1 %v15963_v12, %s16371_s14  ;;  %v1755_v12 = vld [vmem:[%s16593_s8 + $0x88] sm:$0xff] }
 0x1ef   : > { %15959 = vrot.lane.b32.xlu0 %v15958_v52, %s16371_s14  ;;  %v1476_v15 = vadd.f32 %v16935_v46, %v1251_v29  ;;  %v1743_v46 = vld [vmem:[%s16593_s8 + $0x28] sm:$0xff]  ;;  %s18122_s8 = sld [smem:[#allocation92_spill]] }
 0x1f0   : > { %3324 = vmatpush.bf16.msrb.mxu2 %v10855_v51  ;;  %v11014_v51 = vld [vmem:[#allocation11 + $0x7a0] sm:$0xf] }
 0x1f1   : > { %v1679_v47 = vpop.f32.mrf.mxu1  ;;  %v1697_v18 = vadd.f32 %v16959_v8, %v1476_v15 }
 0x1f2   : > { %v1693_v32 = vadd.f32 %v1679_v47, %v16916_v54  ;;  %v1711_v54 = vperm.slane %v16922_v22, 3 }
 0x1f4   : > { %v1725_v57 = vadd.f32 %v1713_v36, %v1693_v32  ;;  %v1735_v58 = vadd.f32 %v1711_v54, %v1703_v6  ;;  %v1729_v1 = vadd.f32 %v1711_v54, %v1697_v18  ;;  %v1723_v3 = vadd.f32 %v1711_v54, %v1691_v33  ;;  %v15026_v6 = vld [vmem:[#allocation11 + $0x64c] sm:$0xf0]  ;;  %v10822_v18 = vld [vmem:[#allocation11 + $0x620] sm:$0xf] }
 0x1f5   : > { %v17081_v32 = vmax.f32 %v17006_v2, %v1819_v41  ;;  %v10839_v2 = vor.u32 %v15026_v6, %v10838_v37  ;;  %v15070_v41 = vld [vmem:[#allocation11 + $0x7ac] sm:$0xf0]  ;;  %v11382_v6 = vld [vmem:[#allocation11 + $0xa80] sm:$0xf]  ;;  %s10270_s1 = scalar_lea.hbm %s18122_s8, %s16462_s28 }
 0x1f6   : > { %15969 = vrot.lane.b32.xlu1 %v15968_v24, %s16371_s14  ;;  %v1761_v8 = vmul.f32 %v1743_v46, %v1725_v57  ;;  %v1771_v62 = vmul.f32 %v1753_v53, %v1735_v58  ;;  %v1765_v13 = vmul.f32 %v1747_v42, %v1729_v1  ;;  %v1759_v7 = vmul.f32 %v1741_v4, %v1723_v3  ;;  %v10998_v57 = vld [vmem:[#allocation11 + $0x780] sm:$0xf]  ;;  %v15066_v33 = vld [vmem:[#allocation11 + $0x78c] sm:$0xf0]  ;;  %s10274_s9 = sshll.u32 %s10270_s1, 4  ;;  %s10275_s9 = int_to_ptr.hbm [resolvable:$true] %s10274_s9 }
 0x1f7   : > { %v11015_v54 = vor.u32 %v15070_v41, %v11014_v51  ;;  %3325 = vmatpush.bf16.msrb.mxu2 %v10839_v2  ;;  %v10806_v58 = vld [vmem:[#allocation11 + $0x600] sm:$0xf]  ;;  %v15062_v53 = vld [vmem:[#allocation11 + $0x76c] sm:$0xf0]  ;;  %s16282_s5 = sshra.s32 %s10275_s9, 4  ;;  %s16283_s5 = int_to_ptr.hbm [resolvable:$true] %s16282_s5 }
 0x1f8   : > { %v1808_v5 = vrot.slane %v1761_v8, 1  ;;  %v1817_v44 = vrot.slane %v1771_v62, 1  ;;  %v1803_v11 = vrot.slane %v1765_v13, 1  ;;  %v1802_v25 = vrot.slane %v1759_v7, 1  ;;  %v10982_v1 = vld [vmem:[#allocation11 + $0x760] sm:$0xf]  ;;  %p16289_p9 = scmp.lt.s32.totalorder %s16283_s5, %s18122_s8 }
 0x1f9   : > { %v1681_v50 = vpop.f32.mrf.mxu1  ;;  %3336 = vmatpush.bf16.msrb.mxu3 %v11015_v54  ;;  %v15134_v3 = vld [vmem:[#allocation11 + $0x9ac] sm:$0xf0]  ;;  %v10983_v4 = vor.u32 %v15062_v53, %v10982_v1  ;;  %v11110_v54 = vld [vmem:[#allocation11 + $0x860] sm:$0xf]  ;;  %s16284_s16 = scalar_lea.hbm %s16283_s5, 1 }
 0x1fa   : > { %v1699_v45 = vadd.f32 %v1681_v50, %v1478_v38  ;;  %v1818_v31 = vsel %vm1052_vm3, %v1803_v11, %v1817_v44  ;;  %v1804_v56 = vsel %vm1052_vm3, %v1802_v25, %v1803_v11  ;;  %v17069_v30 = vmax.f32 %v1771_v62, %v1817_v44  ;;  %v15022_v38 = vld [vmem:[#allocation11 + $0x62c] sm:$0xf0]  ;;  %v10790_v62 = vld [vmem:[#allocation11 + $0x5e0] sm:$0xf]  ;;  %p16285_p1 = scmp.ne.s32.totalorder %s16283_s5, %s16284_s16 }
 0x1fb   : > { %v17067_v16 = vmax.f32 %v1765_v13, %v1818_v31  ;;  %v17071_v29 = vmax.f32 %v1759_v7, %v1804_v56  ;;  %v10823_v46 = vor.u32 %v15022_v38, %v10822_v18  ;;  %v10999_v50 = vor.u32 %v15066_v33, %v10998_v57  ;;  %v10966_v13 = vld [vmem:[#allocation11 + $0x740] sm:$0xf]  ;;  %v15058_v7 = vld [vmem:[#allocation11 + $0x74c] sm:$0xf0] }
 0x1fc   : > { %v1731_v61 = vadd.f32 %v1713_v36, %v1699_v45  ;;  %v15018_v45 = vld [vmem:[#allocation11 + $0x60c] sm:$0xf0]  ;;  %v10967_v25 = vor.u32 %v15058_v7, %v10966_v13  ;;  %v10950_v31 = vld [vmem:[#allocation11 + $0x720] sm:$0xf]  ;;  %p16286_p13 = pnand %p16285_p1, %p16534_p0 }
 0x1fd   : > { %v15993_v15 = vpack.i.bf16 %v17069_v30, %v17067_v16  ;;  %3326 = vmatpush.bf16.msrb.mxu2 %v10823_v46  ;;  %v10807_v42 = vor.u32 %v15018_v45, %v10806_v58  ;;  %3337 = vmatpush.bf16.msrb.mxu3 %v10999_v50  ;;  %v15098_v44 = vld [vmem:[#allocation11 + $0x88c] sm:$0xf0]  ;;  %v10918_v18 = vld [vmem:[#allocation11 + $0x6e0] sm:$0xf] }
 0x1fe   : > { %v1767_v22 = vmul.f32 %v1749_v34, %v1731_v61  ;;  %v11142_v34 = vld [vmem:[#allocation11 + $0x8a0] sm:$0xf]  ;;  %v15130_v11 = vld [vmem:[#allocation11 + $0x98c] sm:$0xf0]  ;;  %p16287_p8 = pneg %p16286_p13 }
 0x1ff   : > { %v11270_v61 = vld [vmem:[#allocation11 + $0x9a0] sm:$0xf]  ;;  %v15054_v56 = vld [vmem:[#allocation11 + $0x72c] sm:$0xf0] }
 0x200   : > { %v1809_v0 = vrot.slane %v1767_v22, 1  ;;  %v15050_v37 = vld [vmem:[#allocation11 + $0x70c] sm:$0xf0]  ;;  %v11238_v46 = vld [vmem:[#allocation11 + $0x960] sm:$0xf] }
 0x201   : > { %v1684_v19 = vpop.f32.mrf.mxu1  ;;  %3327 = vmatpush.bf16.msrb.mxu2 %v10807_v42  ;;  %3338 = vmatpush.bf16.msrb.mxu3 %v10983_v4  ;;  %v15162_v51 = vld [vmem:[#allocation11 + $0xa8c] sm:$0xf0]  ;;  %v11366_v1 = vld [vmem:[#allocation11 + $0xa60] sm:$0xf] }
 0x202   : > { %v1705_v40 = vadd.f32 %v1684_v19, %v16933_v28  ;;  %v1810_v35 = vsel %vm1052_vm3, %v1808_v5, %v1809_v0  ;;  %v11126_v19 = vld [vmem:[#allocation11 + $0x880] sm:$0xf]  ;;  %v11383_v41 = vor.u32 %v15162_v51, %v11382_v6  ;;  %v15046_v38 = vld [vmem:[#allocation11 + $0x6ec] sm:$0xf0] }
 0x203   : > { %v17060_v52 = vmax.f32 %v1761_v8, %v1810_v35  ;;  %v15102_v8 = vld [vmem:[#allocation11 + $0x8ac] sm:$0xf0]  ;;  %v11254_v35 = vld [vmem:[#allocation11 + $0x980] sm:$0xf]  ;;  %v10919_v57 = vor.u32 %v15046_v38, %v10918_v18 }
 0x204   : > { %v1737_v43 = vadd.f32 %v1713_v36, %v1705_v40  ;;  %v11143_v5 = vor.u32 %v15102_v8, %v11142_v34  ;;  %v11127_v40 = vor.u32 %v15098_v44, %v11126_v19  ;;  %v15094_v33 = vld [vmem:[#allocation11 + $0x86c] sm:$0xf0]  ;;  %v10902_v42 = vld [vmem:[#allocation11 + $0x6c0] sm:$0xf] }
 0x205   : > { %v15978_v21 = vpack.i.bf16 %v17024_v49, %v17060_v52  ;;  %3339 = vmatpush.bf16.msrb.mxu3 %v10967_v25  ;;  %v15126_v50 = vld [vmem:[#allocation11 + $0x96c] sm:$0xf0]  ;;  %v11111_v58 = vor.u32 %v15094_v33, %v11110_v54  ;;  %v11494_v19 = vld [vmem:[#allocation11 + $0xb60] sm:$0xf] }
 0x206   : > { %v1773_v23 = vmul.f32 %v1755_v12, %v1737_v43  ;;  %3350 = vmatpush.bf16.msra.mxu0 %v11143_v5  ;;  %v11255_v43 = vor.u32 %v15130_v11, %v11254_v35  ;;  %v11239_v45 = vor.u32 %v15126_v50, %v11238_v46  ;;  %v15158_v53 = vld [vmem:[#allocation11 + $0xa6c] sm:$0xf0]  ;;  %v11078_v11 = vld [vmem:[#allocation11 + $0x820] sm:$0xf] }
 0x207   : > { %15979 = vrot.lane.b32.xlu2 %v15978_v21, %s16371_s14  ;;  %v10774_v21 = vld [vmem:[#allocation11 + $0x5c0] sm:$0xf]  ;;  %v11367_v34 = vor.u32 %v15158_v53, %v11366_v1  ;;  %v15042_v8 = vld [vmem:[#allocation11 + $0x6cc] sm:$0xf0] }
 0x208   : > { %v1821_v47 = vrot.slane %v1773_v23, 1  ;;  %v15090_v4 = vld [vmem:[#allocation11 + $0x84c] sm:$0xf0]  ;;  %v11206_v25 = vld [vmem:[#allocation11 + $0x920] sm:$0xf] }
 0x209   : > { %v1686_v28 = vpop.f32.mrf.mxu1  ;;  %v15154_v7 = vld [vmem:[#allocation11 + $0xa4c] sm:$0xf0]  ;;  %v11190_v6 = vld [vmem:[#allocation11 + $0x900] sm:$0xf] }
 0x20a   : > { %v17073_v59 = vmax.f32 %v1773_v23, %v1821_v47  ;;  %v1822_v20 = vsel %vm1052_vm3, %v1809_v0, %v1821_v47  ;;  %v11271_v0 = vor.u32 %v15134_v3, %v11270_v61  ;;  %v15010_v23 = vld [vmem:[#allocation11 + $0x5cc] sm:$0xf0]  ;;  %v11398_v47 = vld [vmem:[#allocation11 + $0xaa0] sm:$0xf]  ;;  %3351 = vmatpush.bf16.msra.mxu0 %v11127_v40  ;;  %v10903_v3 = vor.u32 %v15042_v8, %v10902_v42 }
 0x20b   : > { %v17076_v26 = vmax.f32 %v1767_v22, %v1822_v20  ;;  %v15014_v22 = vld [vmem:[#allocation11 + $0x5ec] sm:$0xf0]  ;;  %v10775_v20 = vor.u32 %v15010_v23, %v10774_v21  ;;  %v11094_v61 = vld [vmem:[#allocation11 + $0x840] sm:$0xf] }
 0x20c   : > { %v15988_v36 = vpack.i.bf16 %v17071_v29, %v17073_v59  ;;  %3364 = vmatpush.bf16.msrb.mxu1 %v11271_v0  ;;  %v10791_v12 = vor.u32 %v15014_v22, %v10790_v62  ;;  %v15166_v28 = vld [vmem:[#allocation11 + $0xaac] sm:$0xf0]  ;;  %v11222_v62 = vld [vmem:[#allocation11 + $0x940] sm:$0xf]  ;;  %v11095_v13 = vor.u32 %v15090_v4, %v11094_v61 }
 0x20d   : > { %v15983_v24 = vpack.i.bf16 %v17081_v32, %v17076_v26  ;;  %v15122_v22 = vld [vmem:[#allocation11 + $0x94c] sm:$0xf0]  ;;  %v11350_v0 = vld [vmem:[#allocation11 + $0xa40] sm:$0xf] }
 0x20e   : > { %15989 = vrot.lane.b32.xlu1 %v15988_v36, %s16371_s14  ;;  %3328 = vmatpush.bf16.msrb.mxu2 %v10791_v12  ;;  %v10951_v36 = vor.u32 %v15054_v56, %v10950_v31  ;;  %v11223_v5 = vor.u32 %v15122_v22, %v11222_v62  ;;  %v11351_v44 = vor.u32 %v15154_v7, %v11350_v0  ;;  %v15190_v40 = vld [vmem:[#allocation11 + $0xb6c] sm:$0xf0]  ;;  %v11334_v23 = vld [vmem:[#allocation11 + $0xa20] sm:$0xf] }
 0x20f   : > { %15984 = vrot.lane.b32.xlu0 %v15983_v24, %s16371_s14  ;;  %15994 = vrot.lane.b32.xlu2 %v15993_v15, %s16371_s14  ;;  %v11399_v24 = vor.u32 %v15166_v28, %v11398_v47  ;;  %v10934_v15 = vld [vmem:[#allocation11 + $0x700] sm:$0xf]  ;;  %v11495_v35 = vor.u32 %v15190_v40, %v11494_v19  ;;  %v15086_v12 = vld [vmem:[#allocation11 + $0x82c] sm:$0xf0]  ;;  %s16288_s14 = scalar_lea.hbm %s18122_s8, 2 }
 0x210   : > { %3365 = vmatpush.bf16.msrb.mxu1 %v11255_v43  ;;  %3340 = vmatpush.bf16.msrb.mxu3 %v10951_v36  ;;  %v10935_v2 = vor.u32 %v15050_v37, %v10934_v15  ;;  %v11079_v43 = vor.u32 %v15086_v12, %v11078_v11  ;;  %v15118_v21 = vld [vmem:[#allocation11 + $0x92c] sm:$0xf0]  ;;  %v11478_v47 = vld [vmem:[#allocation11 + $0xb40] sm:$0xf]  ;;  %p16290_p5 = scmp.lt.s32.totalorder %s16288_s14, %s16284_s16 }
 0x211   : > { %3352 = vmatpush.bf16.msra.mxu0 %v11111_v58  ;;  %v11207_v31 = vor.u32 %v15118_v21, %v11206_v25  ;;  %v15150_v56 = vld [vmem:[#allocation11 + $0xa2c] sm:$0xf0]  ;;  %v11462_v38 = vld [vmem:[#allocation11 + $0xb20] sm:$0xf]  ;;  %v11016_v25 = vld [vmem:[#allocation11 + $0x7b0] sm:$0xf0] }
 0x212   : > { %3329 = vmatpush.bf16.msrb.mxu2 %v10775_v20  ;;  %v15186_v28 = vld [vmem:[#allocation11 + $0xb4c] sm:$0xf0]  ;;  %v11335_v20 = vor.u32 %v15150_v56, %v11334_v23  ;;  %v11046_v46 = vld [vmem:[#allocation11 + $0x7e0] sm:$0xf]  ;;  %v15100_v21 = vld [vmem:[#allocation11 + $0x8a4] sm:$0xf]  ;;  %p16291_p7 = por %p16290_p5, %p16289_p9 }
 0x213   : > { %v11479_v36 = vor.u32 %v15186_v28, %v11478_v47  ;;  %v15082_v15 = vld [vmem:[#allocation11 + $0x80c] sm:$0xf0]  ;;  %v11302_v53 = vld [vmem:[#allocation11 + $0x9e0] sm:$0xf] }
 0x214   : > { %3341 = vmatpush.bf16.msrb.mxu3 %v10935_v2  ;;  %3366 = vmatpush.bf16.msrb.mxu1 %v11239_v45  ;;  %v15114_v51 = vld [vmem:[#allocation11 + $0x90c] sm:$0xf0]  ;;  %v11318_v2 = vld [vmem:[#allocation11 + $0xa00] sm:$0xf]  ;;  %p16292_p10 = pnand %p16291_p7, %p16287_p8 }
 0x215   : > { %3353 = vmatpush.bf16.msra.mxu0 %v11095_v13  ;;  %v15146_v18 = vld [vmem:[#allocation11 + $0xa0c] sm:$0xf0]  ;;  %v11174_v45 = vld [vmem:[#allocation11 + $0x8e0] sm:$0xf] }
 0x216   : > { %3378 = vmatpush.bf16.msra.mxu2 %v11399_v24  ;;  %v11062_v24 = vld [vmem:[#allocation11 + $0x800] sm:$0xf]  ;;  %v15182_v54 = vld [vmem:[#allocation11 + $0xb2c] sm:$0xf0] }
 0x217   : > { %v11063_v37 = vor.u32 %v15082_v15, %v11062_v24  ;;  %v11463_v33 = vor.u32 %v15182_v54, %v11462_v38  ;;  %v15078_v50 = vld [vmem:[#allocation11 + $0x7ec] sm:$0xf0]  ;;  %v11446_v8 = vld [vmem:[#allocation11 + $0xb00] sm:$0xf]  ;;  %v11000_v24 = vld [vmem:[#allocation11 + $0x790] sm:$0xf0] }
 0x218   : > { %3342 = vmatpush.bf16.msrb.mxu3 %v10919_v57  ;;  %3367 = vmatpush.bf16.msrb.mxu1 %v11223_v5  ;;  %v11319_v57 = vor.u32 %v15146_v18, %v11318_v2  ;;  %v11047_v58 = vor.u32 %v15078_v50, %v11046_v46  ;;  %v15110_v1 = vld [vmem:[#allocation11 + $0x8ec] sm:$0xf0]  ;;  %v11030_v62 = vld [vmem:[#allocation11 + $0x7c0] sm:$0xf]  ;;  %v15060_v2 = vld [vmem:[#allocation11 + $0x764] sm:$0xf] }
 0x219   : > { %3354 = vmatpush.bf16.msra.mxu0 %v11079_v43  ;;  %v15142_v42 = vld [vmem:[#allocation11 + $0x9ec] sm:$0xf0]  ;;  %v11158_v5 = vld [vmem:[#allocation11 + $0x8c0] sm:$0xf]  ;;  %v15068_v43 = vld [vmem:[#allocation11 + $0x7a4] sm:$0xf] }
 0x21a   : > { %3379 = vmatpush.bf16.msra.mxu2 %v11383_v41  ;;  %v11191_v41 = vor.u32 %v15114_v51, %v11190_v6  ;;  %v15178_v61 = vld [vmem:[#allocation11 + $0xb0c] sm:$0xf0]  ;;  %v11286_v7 = vld [vmem:[#allocation11 + $0x9c0] sm:$0xf]  ;;  %v11019_v23 = vor.u32 %v15068_v43, %v11016_v25  ;;  %v11128_v6 = vld [vmem:[#allocation11 + $0x890] sm:$0xf0] }
 0x21b   : > { %v11447_v4 = vor.u32 %v15178_v61, %v11446_v8  ;;  %v15074_v22 = vld [vmem:[#allocation11 + $0x7cc] sm:$0xf0]  ;;  %v11430_v40 = vld [vmem:[#allocation11 + $0xae0] sm:$0xf]  ;;  %v15092_v38 = vld [vmem:[#allocation11 + $0x864] sm:$0xf] }
 0x21c   : > { %3343 = vmatpush.bf16.msrb.mxu3 %v10903_v3  ;;  %3368 = vmatpush.bf16.msrb.mxu1 %v11207_v31  ;;  %v11303_v3 = vor.u32 %v15142_v42, %v11302_v53  ;;  %v11031_v13 = vor.u32 %v15074_v22, %v11030_v62  ;;  %v15106_v0 = vld [vmem:[#allocation11 + $0x8cc] sm:$0xf0]  ;;  %v11144_v31 = vld [vmem:[#allocation11 + $0x8b0] sm:$0xf0]  ;;  %v11414_v47 = vld [vmem:[#allocation11 + $0xac0] sm:$0xf] }
 0x21d   : > { %3355 = vmatpush.bf16.msra.mxu0 %v11063_v37  ;;  %v11159_v19 = vor.u32 %v15106_v0, %v11158_v5  ;;  %v11147_v56 = vor.u32 %v15100_v21, %v11144_v31  ;;  %v15170_v28 = vld [vmem:[#allocation11 + $0xacc] sm:$0xf0]  ;;  %v15096_v37 = vld [vmem:[#allocation11 + $0x884] sm:$0xf]  ;;  %v11112_v54 = vld [vmem:[#allocation11 + $0x870] sm:$0xf0] }
 0x21e   : > { %3380 = vmatpush.bf16.msra.mxu2 %v11367_v34  ;;  %v11175_v34 = vor.u32 %v15110_v1, %v11174_v45  ;;  %v11131_v51 = vor.u32 %v15096_v37, %v11128_v6  ;;  %v11115_v46 = vor.u32 %v15092_v38, %v11112_v54  ;;  %v15056_v50 = vld [vmem:[#allocation11 + $0x744] sm:$0xf]  ;;  %v11096_v42 = vld [vmem:[#allocation11 + $0x850] sm:$0xf0] }
 0x21f   : > { %v15052_v61 = vld [vmem:[#allocation11 + $0x724] sm:$0xf]  ;;  %v11080_v5 = vld [vmem:[#allocation11 + $0x830] sm:$0xf0] }
 0x220   : > { %3394 = vmatpush.bf16.msra.mxu3 %v11495_v35  ;;  %3369 = vmatpush.bf16.msrb.mxu1 %v11191_v41  ;;  %v15174_v35 = vld [vmem:[#allocation11 + $0xaec] sm:$0xf0]  ;;  %v10984_v41 = vld [vmem:[#allocation11 + $0x770] sm:$0xf0]  ;;  %v15044_v54 = vld [vmem:[#allocation11 + $0x6e4] sm:$0xf] }
 0x221   : > { %3356 = vmatpush.bf16.msra.mxu0 %v11047_v58  ;;  %v11431_v12 = vor.u32 %v15174_v35, %v11430_v40  ;;  %v10987_v18 = vor.u32 %v15060_v2, %v10984_v41  ;;  %v10968_v58 = vld [vmem:[#allocation11 + $0x750] sm:$0xf0] }
 0x222   : > { %3381 = vmatpush.bf16.msra.mxu2 %v11351_v44  ;;  %v15138_v44 = vld [vmem:[#allocation11 + $0x9cc] sm:$0xf0]  ;;  %v10971_v53 = vor.u32 %v15056_v50, %v10968_v58  ;;  %v11064_v6 = vld [vmem:[#allocation11 + $0x810] sm:$0xf0] }
 0x223   : > { %v11287_v11 = vor.u32 %v15138_v44, %v11286_v7 }
 0x224   : > { %3395 = vmatpush.bf16.msra.mxu3 %v11479_v36  ;;  %3370 = vmatpush.bf16.msrb.mxu1 %v11175_v34  ;;  %v11415_v36 = vor.u32 %v15170_v28, %v11414_v47  ;;  %v15088_v34 = vld [vmem:[#allocation11 + $0x844] sm:$0xf]  ;;  %v10936_v47 = vld [vmem:[#allocation11 + $0x710] sm:$0xf0] }
 0x225   : > { %3357 = vmatpush.bf16.msra.mxu0 %v11031_v13  ;;  %v11099_v8 = vor.u32 %v15088_v34, %v11096_v42  ;;  %v15084_v13 = vld [vmem:[#allocation11 + $0x824] sm:$0xf] }
 0x226   : > { %3382 = vmatpush.bf16.msra.mxu2 %v11335_v20  ;;  %v15064_v20 = vld [vmem:[#allocation11 + $0x784] sm:$0xf]  ;;  %v11083_v35 = vor.u32 %v15084_v13, %v11080_v5 }
 0x227   : > { %v11003_v15 = vor.u32 %v15064_v20, %v11000_v24  ;;  %v15132_v20 = vld [vmem:[#allocation11 + $0x9a4] sm:$0xf] }
 0x228   : > { %3396 = vmatpush.bf16.msra.mxu3 %v11463_v33  ;;  %3371 = vmatpush.bf16.msrb.mxu1 %v11159_v19 }
 0x229   : > { %3420 = vmatpush.bf16.msrb.mxu0 %v11019_v23 }
 0x22a   : > { %3383 = vmatpush.bf16.msra.mxu2 %v11319_v57 }
 0x22c   : > { %3397 = vmatpush.bf16.msra.mxu3 %v11447_v4  ;;  %3434 = vmatpush.bf16.msra.mxu1 %v11147_v56  ;;  %v15048_v56 = vld [vmem:[#allocation11 + $0x704] sm:$0xf] }
 0x22d   : > { %3421 = vmatpush.bf16.msrb.mxu0 %v11003_v15  ;;  %v10939_v24 = vor.u32 %v15048_v56, %v10936_v47  ;;  %v15080_v15 = vld [vmem:[#allocation11 + $0x804] sm:$0xf] }
 0x22e   : > { %3384 = vmatpush.bf16.msra.mxu2 %v11303_v3  ;;  %v10952_v3 = vld [vmem:[#allocation11 + $0x730] sm:$0xf0]  ;;  %v11067_v41 = vor.u32 %v15080_v15, %v11064_v6  ;;  %v15124_v15 = vld [vmem:[#allocation11 + $0x964] sm:$0xf] }
 0x22f   : > { %v10955_v22 = vor.u32 %v15052_v61, %v10952_v3 }
 0x230   : > { %3398 = vmatpush.bf16.msra.mxu3 %v11431_v12  ;;  %3435 = vmatpush.bf16.msra.mxu1 %v11131_v51 }
 0x231   : > { %3422 = vmatpush.bf16.msrb.mxu0 %v10987_v18 }
 0x232   : > { %3385 = vmatpush.bf16.msra.mxu2 %v11287_v11 }
 0x234   : > { %3399 = vmatpush.bf16.msra.mxu3 %v11415_v36  ;;  %3436 = vmatpush.bf16.msra.mxu1 %v11115_v46  ;;  %v11272_v36 = vld [vmem:[#allocation11 + $0x9b0] sm:$0xf0] }
 0x235   : > { %3423 = vmatpush.bf16.msrb.mxu0 %v10971_v53  ;;  %v11275_v38 = vor.u32 %v15132_v20, %v11272_v36 }
 0x238   : > { %3437 = vmatpush.bf16.msra.mxu1 %v11099_v8 }
 0x239   : > { %3424 = vmatpush.bf16.msrb.mxu0 %v10955_v22 }
 0x23c   : > { %3438 = vmatpush.bf16.msra.mxu1 %v11083_v35  ;;  %v11048_v35 = vld [vmem:[#allocation11 + $0x7f0] sm:$0xf0] }
 0x23d   : > { %3425 = vmatpush.bf16.msrb.mxu0 %v10939_v24 }
 0x240   : > { %3439 = vmatpush.bf16.msra.mxu1 %v11067_v41 }
 0x241   : > { %v17092_v57 = vpop.permute.xlu2 %15974 }
 0x242   : > { %v15976_v0 = vunpack.i.l.bf16 %v17092_v57 }
 0x259   : > { %v17094_v33 = vpop.permute.xlu0 %15954 }
 0x25a   : > { %v15957_v45 = vunpack.i.h.bf16 %v17094_v33  ;;  %v15956_v1 = vunpack.i.l.bf16 %v17094_v33 }
 0x25c   : > { %v1914_v4 = vsel %vm1913_vm5, %v15956_v1, %v15957_v45 }
 0x25d   : > { %v1947_v43 = vmax.f32 %v16942_v9, %v1914_v4 }
 0x25f   : > { %v1965_v51 = vmax.f32 %v1947_v43, 0.0 }
 0x260   : > { %v15965_v62 = vpop.permute.xlu1 %15964 }
 0x261   : > { %v15967_v7 = vunpack.i.h.bf16 %v15965_v62  ;;  %v15966_v19 = vunpack.i.l.bf16 %v15965_v62  ;;  %v15960_v44 = vpop.permute.xlu0 %15959  ;;  %v17102_v40 = vpop.permute.xlu2 %15979  ;;  %v15128_v62 = vld [vmem:[#allocation11 + $0x984] sm:$0xf] }
 0x262   : > { %v15962_v11 = vunpack.i.h.bf16 %v15960_v44  ;;  %v15961_v12 = vunpack.i.l.bf16 %v15960_v44  ;;  %v15076_v44 = vld [vmem:[#allocation11 + $0x7e4] sm:$0xf] }
 0x263   : > { %v1924_v25 = vsel %vm1913_vm5, %v15966_v19, %v15967_v7  ;;  %v1925_v21 = vsel %vm1913_vm5, %v15967_v7, %v15976_v0  ;;  %v11256_v19 = vld [vmem:[#allocation11 + $0x990] sm:$0xf0] }
 0x264   : > { %v1959_v23 = vmax.f32 %v17014_v63, %v1924_v25  ;;  %v1919_v31 = vsel %vm1913_vm5, %v15961_v12, %v15962_v11  ;;  %v1960_v9 = vmax.f32 %v17016_v14, %v1925_v21  ;;  %v10904_v12 = vld [vmem:[#allocation11 + $0x6d0] sm:$0xf0]  ;;  %v11259_v47 = vor.u32 %v15128_v62, %v11256_v19  ;;  %v15028_v62 = vld [vmem:[#allocation11 + $0x664] sm:$0xf] }
 0x265   : > { %v1953_v28 = vmax.f32 %v16955_v60, %v1919_v31  ;;  %v10920_v60 = vld [vmem:[#allocation11 + $0x6f0] sm:$0xf0] }
 0x266   : > { %v1977_v37 = vmax.f32 %v1959_v23, 0.0  ;;  %v1978_v53 = vmax.f32 %v1960_v9, 0.0  ;;  %v10923_v22 = vor.u32 %v15044_v54, %v10920_v60  ;;  %v15072_v23 = vld [vmem:[#allocation11 + $0x7c4] sm:$0xf]  ;;  %v11032_v31 = vld [vmem:[#allocation11 + $0x7d0] sm:$0xf0] }
 0x267   : > { %v1971_v2 = vmax.f32 %v1953_v28, 0.0  ;;  %v11051_v28 = vor.u32 %v15076_v44, %v11048_v35  ;;  %v11240_v9 = vld [vmem:[#allocation11 + $0x970] sm:$0xf0] }
 0x268   : > { %v17111_v63 = vpack.c.bf16 %v1977_v37, %v1977_v37  ;;  %v17113_v18 = vpop.permute.xlu1 %15969  ;;  %3426 = vmatpush.bf16.msrb.mxu0 %v10923_v22  ;;  %v10872_v54 = vld [vmem:[#allocation11 + $0x690] sm:$0xf0]  ;;  %v11243_v60 = vor.u32 %v15124_v15, %v11240_v9 }
 0x269   : > { %v17115_v46 = vpack.c.bf16 %v1971_v2, %v1965_v51  ;;  %v17117_v50 = vpack.c.bf16 %v1977_v37, %v1971_v2  ;;  %v15972_v58 = vunpack.i.h.bf16 %v17113_v18  ;;  %v15971_v14 = vunpack.i.l.bf16 %v17113_v18  ;;  %v17121_v1 = vpop.permute.xlu2 %15994  ;;  %3440 = vmatpush.bf16.msra.mxu1 %v11051_v28  ;;  %v10856_v22 = vld [vmem:[#allocation11 + $0x670] sm:$0xf0] }
 0x26a   : > { %v15997_v34 = vunpack.i.h.bf16 %v17121_v1  ;;  %v15996_v42 = vunpack.i.l.bf16 %v17121_v1  ;;  %v2377_v8 = vrot.slane %v17111_v63, 1  ;;  %v11035_v37 = vor.u32 %v15072_v23, %v11032_v31  ;;  %v11208_v19 = vld [vmem:[#allocation11 + $0x930] sm:$0xf0]  ;;  %v15020_v23 = vld [vmem:[#allocation11 + $0x624] sm:$0xf] }
 0x26b   : > { %v1920_v61 = vsel %vm1913_vm5, %v15962_v11, %v15972_v58  ;;  %v1915_v3 = vsel %vm1913_vm5, %v15957_v45, %v15971_v14  ;;  %v2376_v4 = vrot.slane %v17115_v46, 1  ;;  %v10824_v31 = vld [vmem:[#allocation11 + $0x630] sm:$0xf0] }
 0x26c   : > { %v1954_v13 = vmax.f32 %v17022_v55, %v1920_v61  ;;  %v1948_v5 = vmax.f32 %v16994_v10, %v1915_v3  ;;  %v1921_v7 = vsel %vm1913_vm5, %v15972_v58, %v15996_v42  ;;  %v1926_v33 = vsel %vm1913_vm5, %v15976_v0, %v15997_v34  ;;  %v15040_v55 = vld [vmem:[#allocation11 + $0x6c4] sm:$0xf]  ;;  %v10888_v0 = vld [vmem:[#allocation11 + $0x6b0] sm:$0xf0] }
 0x26d   : > { %v1955_v45 = vmax.f32 %v17000_v17, %v1921_v7  ;;  %v17143_v11 = vsel %vm1052_vm3, %v2376_v4, %v2377_v8  ;;  %v17145_v10 = vpack.c.bf16 %v1978_v53, %v1978_v53  ;;  %v1961_v21 = vmax.f32 %v16998_v27, %v1926_v33  ;;  %v15036_v17 = vld [vmem:[#allocation11 + $0x6a4] sm:$0xf]  ;;  %v11224_v8 = vld [vmem:[#allocation11 + $0x950] sm:$0xf0]  ;;  %3441 = vmatpush.bf16.msra.mxu1 %v11035_v37 }
 0x26e   : > { %v1972_v43 = vmax.f32 %v1954_v13, 0.0  ;;  %v1966_v25 = vmax.f32 %v1948_v5, 0.0  ;;  %3330 = vmatmul.bf16.vlgmr.msrb.gmra.mxu2 %v17143_v11  ;;  %v10907_v27 = vor.u32 %v15040_v55, %v10904_v12  ;;  %v10891_v41 = vor.u32 %v15036_v17, %v10888_v0  ;;  %v15116_v7 = vld [vmem:[#allocation11 + $0x924] sm:$0xf]  ;;  %v17181_v0 = vld [vmem:[#allocation11 + $0x610] sm:$0xf0] }
 0x26f   : > { %v17149_v56 = vmax.f32 %v1955_v45, 0.0  ;;  %3448 = vmatpush.bf16.msrb.mxu2 %v11275_v38  ;;  %v17155_v24 = vmax.f32 %v1961_v21, 0.0  ;;  %v2380_v2 = vrot.slane %v17145_v10, 1  ;;  %v15032_v38 = vld [vmem:[#allocation11 + $0x684] sm:$0xf]  ;;  %v15981_v61 = vunpack.i.l.bf16 %v17102_v40 }
 0x270   : > { %v17151_v20 = vpack.c.bf16 %v1978_v53, %v1972_v43  ;;  %v17153_v36 = vpack.c.bf16 %v1972_v43, %v1966_v25  ;;  %3427 = vmatpush.bf16.msrb.mxu0 %v10907_v27  ;;  %v15120_v53 = vld [vmem:[#allocation11 + $0x944] sm:$0xf]  ;;  %v10875_v3 = vor.u32 %v15032_v38, %v10872_v54  ;;  %v15977_v4 = vunpack.i.h.bf16 %v17092_v57  ;;  %v10840_v57 = vld [vmem:[#allocation11 + $0x650] sm:$0xf0] }
 0x271   : > { %v17159_v6 = vpack.c.bf16 %v17155_v24, %v17149_v56  ;;  %v11227_v13 = vor.u32 %v15120_v53, %v11224_v8  ;;  %v15982_v5 = vunpack.i.h.bf16 %v17102_v40  ;;  %v10859_v33 = vor.u32 %v15028_v62, %v10856_v22  ;;  %v15024_v55 = vld [vmem:[#allocation11 + $0x644] sm:$0xf]  ;;  %v11192_v25 = vld [vmem:[#allocation11 + $0x910] sm:$0xf0] }
 0x272   : > { %v2379_v51 = vrot.slane %v17153_v36, 1  ;;  %v1918_v44 = vsel %vm1913_vm5, %v15977_v4, %v15981_v61  ;;  %v11211_v45 = vor.u32 %v15116_v7, %v11208_v19  ;;  %v17176_v43 = vmax.f32 %v17060_v52, %v15981_v61  ;;  %v15112_v40 = vld [vmem:[#allocation11 + $0x904] sm:$0xf]  ;;  %v11176_v15 = vld [vmem:[#allocation11 + $0x8f0] sm:$0xf0] }
 0x273   : > { %3449 = vmatpush.bf16.msrb.mxu2 %v11259_v47  ;;  %v1922_v35 = vsel %vm1913_vm5, %v15996_v42, %v15982_v5  ;;  %v1951_v12 = vmax.f32 %v16996_v39, %v1918_v44  ;;  %v10843_v17 = vor.u32 %v15024_v55, %v10840_v57  ;;  %v17179_v42 = vld [vmem:[#allocation11 + $0x604] sm:$0xf]  ;;  %v11195_v28 = vor.u32 %v15112_v40, %v11192_v25  ;;  %v17185_v52 = vld [vmem:[#allocation11 + $0x5f0] sm:$0xf0] }
 0x274   : > { %v17164_v58 = vsel %vm1052_vm3, %v2379_v51, %v2380_v2  ;;  %v1956_v21 = vmax.f32 %v17067_v16, %v1922_v35  ;;  %v15108_v47 = vld [vmem:[#allocation11 + $0x8e4] sm:$0xf]  ;;  %v1970_v27 = vmax.f32 %v17176_v43, 0.0  ;;  %v10827_v37 = vor.u32 %v15020_v23, %v10824_v31  ;;  %v11496_v1 = vld [vmem:[#allocation11 + $0xb70] sm:$0xf0] }
 0x275   : > { %3344 = vmatmul.bf16.vlgmr.msrb.gmra.mxu3 %v17164_v58  ;;  %v17183_v39 = vld [vmem:[#allocation11 + $0x5e4] sm:$0xf]  ;;  %v1969_v9 = vmax.f32 %v1951_v12, 0.0  ;;  %v10811_v54 = vor.u32 %v17179_v42, %v17181_v0  ;;  %v11179_v8 = vor.u32 %v15108_v47, %v11176_v15  ;;  %v11022_v42 = vld [vmem:[#allocation11 + $0x7a8] sm:$0xf] }
 0x276   : > { %3406 = vmatpush.bf16.msrb.mxu3 %v10891_v41  ;;  %v1974_v51 = vmax.f32 %v1956_v21, 0.0  ;;  %v10795_v61 = vor.u32 %v17183_v39, %v17185_v52  ;;  %v15104_v35 = vld [vmem:[#allocation11 + $0x8c4] sm:$0xf]  ;;  %v10894_v21 = vld [vmem:[#allocation11 + $0x6a8] sm:$0xf] }
 0x277   : > { %3450 = vmatpush.bf16.msrb.mxu2 %v11243_v60  ;;  %v15071_v0 = vld [vmem:[#allocation11 + $0x7b4] sm:$0xf0]  ;;  %v11464_v39 = vld [vmem:[#allocation11 + $0xb30] sm:$0xf0]  ;;  %v15160_v52 = vld [vmem:[#allocation11 + $0xa84] sm:$0xf] }
 0x27a   : > { %3407 = vmatpush.bf16.msrb.mxu3 %v10875_v3  ;;  %v17194_v3 = vpack.c.bf16 %v17155_v24, %v17155_v24 }
 0x27b   : > { %3451 = vmatpush.bf16.msrb.mxu2 %v11227_v13 }
 0x27c   : > { %v2383_v31 = vrot.slane %v17194_v3, 1 }
 0x27e   : > { %3408 = vmatpush.bf16.msrb.mxu3 %v10859_v33  ;;  %v11160_v33 = vld [vmem:[#allocation11 + $0x8d0] sm:$0xf0] }
 0x27f   : > { %3452 = vmatpush.bf16.msrb.mxu2 %v11211_v45  ;;  %v11163_v43 = vor.u32 %v15104_v35, %v11160_v33 }
 0x280   : > { %v15990_v16 = vpop.permute.xlu1 %15989 }
 0x281   : > { %v15992_v2 = vunpack.i.h.bf16 %v15990_v16  ;;  %v15991_v41 = vunpack.i.l.bf16 %v15990_v16  ;;  %v15985_v38 = vpop.permute.xlu0 %15984  ;;  %v15008_v16 = vld [vmem:[#allocation11 + $0x5c4] sm:$0xf] }
 0x282   : > { %v15987_v60 = vunpack.i.h.bf16 %v15985_v38  ;;  %v15986_v53 = vunpack.i.l.bf16 %v15985_v38  ;;  %3409 = vmatpush.bf16.msrb.mxu3 %v10843_v17 }
 0x283   : > { %v1917_v62 = vsel %vm1913_vm5, %v15992_v2, %v15977_v4  ;;  %v1916_v22 = vsel %vm1913_vm5, %v15971_v14, %v15992_v2  ;;  %v1964_v13 = vmax.f32 %v17073_v59, %v15991_v41  ;;  %3453 = vmatpush.bf16.msrb.mxu2 %v11195_v28  ;;  %v15184_v2 = vld [vmem:[#allocation11 + $0xb44] sm:$0xf] }
 0x284   : > { %v1950_v7 = vmax.f32 %v17071_v29, %v1917_v62  ;;  %v1949_v19 = vmax.f32 %v16982_v48, %v1916_v22  ;;  %v1923_v44 = vsel %vm1913_vm5, %v15982_v5, %v15986_v53  ;;  %v1927_v24 = vsel %vm1913_vm5, %v15997_v34, %v15987_v60  ;;  %v15188_v5 = vld [vmem:[#allocation11 + $0xb64] sm:$0xf]  ;;  %v11400_v22 = vld [vmem:[#allocation11 + $0xab0] sm:$0xf0] }
 0x285   : > { %v1982_v4 = vmax.f32 %v1964_v13, 0.0  ;;  %v1928_v18 = vsel %vm1913_vm5, %v15987_v60, %v15991_v41  ;;  %v1957_v14 = vmax.f32 %v17024_v49, %v1923_v44  ;;  %v1958_v59 = vmax.f32 %v17076_v26, %v15986_v53  ;;  %v11480_v60 = vld [vmem:[#allocation11 + $0xb50] sm:$0xf0]  ;;  %v15164_v53 = vld [vmem:[#allocation11 + $0xaa4] sm:$0xf] }
 0x286   : > { %v1968_v45 = vmax.f32 %v1950_v7, 0.0  ;;  %v1967_v55 = vmax.f32 %v1949_v19, 0.0  ;;  %v1962_v29 = vmax.f32 %v17069_v30, %v1927_v24  ;;  %v1963_v48 = vmax.f32 %v17081_v32, %v1928_v18  ;;  %3410 = vmatpush.bf16.msrb.mxu3 %v10827_v37  ;;  %v15039_v30 = vld [vmem:[#allocation11 + $0x6b4] sm:$0xf0]  ;;  %v10776_v37 = vld [vmem:[#allocation11 + $0x5d0] sm:$0xf0] }
 0x287   : > { %v17212_v57 = vpack.c.bf16 %v1982_v4, %v1982_v4  ;;  %v1975_v34 = vmax.f32 %v1957_v14, 0.0  ;;  %v1976_v12 = vmax.f32 %v1958_v59, 0.0  ;;  %3454 = vmatpush.bf16.msrb.mxu2 %v11179_v8  ;;  %v11499_v17 = vor.u32 %v15188_v5, %v11496_v1  ;;  %v10878_v24 = vld [vmem:[#allocation11 + $0x688] sm:$0xf]  ;;  %v15035_v18 = vld [vmem:[#allocation11 + $0x694] sm:$0xf0] }
 0x288   : > { %v17214_v40 = vpack.c.bf16 %v1974_v51, %v1968_v45  ;;  %v17217_v49 = vpack.c.bf16 %v17149_v56, %v1967_v55  ;;  %v1980_v26 = vmax.f32 %v1962_v29, 0.0  ;;  %v1981_v25 = vmax.f32 %v1963_v48, 0.0  ;;  %v11006_v14 = vld [vmem:[#allocation11 + $0x788] sm:$0xf]  ;;  %v15067_v59 = vld [vmem:[#allocation11 + $0x794] sm:$0xf0] }
 0x289   : > { %v2392_v32 = vrot.slane %v17212_v57, 1  ;;  %v17220_v23 = vpack.c.bf16 %v1975_v34, %v1969_v9  ;;  %v17223_v47 = vpack.c.bf16 %v1976_v12, %v1970_v27  ;;  %v17233_v9 = vpack.c.bf16 %v1982_v4, %v1976_v12  ;;  %v15180_v29 = vld [vmem:[#allocation11 + $0xb24] sm:$0xf]  ;;  %v10862_v1 = vld [vmem:[#allocation11 + $0x668] sm:$0xf] }
 0x28a   : > { %v17225_v28 = vpack.c.bf16 %v1980_v26, %v1980_v26  ;;  %v17227_v15 = vpack.c.bf16 %v1981_v25, %v1981_v25  ;;  %v17229_v56 = vpack.c.bf16 %v1980_v26, %v1974_v51  ;;  %3411 = vmatpush.bf16.msrb.mxu3 %v10811_v54  ;;  %v17231_v41 = vpack.c.bf16 %v1981_v25, %v1975_v34  ;;  %v15031_v34 = vld [vmem:[#allocation11 + $0x674] sm:$0xf0]  ;;  %v10990_v12 = vld [vmem:[#allocation11 + $0x768] sm:$0xf] }
 0x28b   : > { %v2382_v38 = vrot.slane %v17217_v49, 1  ;;  %3455 = vmatpush.bf16.msrb.mxu2 %v11163_v43  ;;  %v2385_v27 = vrot.slane %v17214_v40, 1  ;;  %v2391_v8 = vrot.slane %v17223_v47, 1  ;;  %v2388_v54 = vrot.slane %v17220_v23, 1  ;;  %v15063_v43 = vld [vmem:[#allocation11 + $0x774] sm:$0xf0] }
 0x28c   : > { %v2386_v51 = vrot.slane %v17225_v28, 1  ;;  %v2389_v62 = vrot.slane %v17227_v15, 1  ;;  %v10895_v7 = vor.u32 %v15039_v30, %v10894_v21  ;;  %v11023_v19 = vor.u32 %v15071_v0, %v11022_v42  ;;  %v15176_v21 = vld [vmem:[#allocation11 + $0xb04] sm:$0xf]  ;;  %v11448_v30 = vld [vmem:[#allocation11 + $0xb10] sm:$0xf0] }
 0x28d   : > { %v17242_v13 = vsel %vm1052_vm3, %v2382_v38, %v2383_v31  ;;  %v10779_v44 = vor.u32 %v15008_v16, %v10776_v37  ;;  %v17246_v35 = vsel %vm1052_vm3, %v2391_v8, %v2392_v32  ;;  %v11483_v45 = vor.u32 %v15184_v2, %v11480_v60  ;;  %v15156_v32 = vld [vmem:[#allocation11 + $0xa64] sm:$0xf]  ;;  %v11368_v31 = vld [vmem:[#allocation11 + $0xa70] sm:$0xf0]  ;;  %v10846_v0 = vld [vmem:[#allocation11 + $0x648] sm:$0xf] }
 0x28e   : > { %3358 = vmatmul.bf16.vlgmr.msra.gmra.mxu0 %v17242_v13  ;;  %3412 = vmatpush.bf16.msrb.mxu3 %v10795_v61  ;;  %v17252_v33 = vsel %vm1052_vm3, %v2385_v27, %v2386_v51  ;;  %v17255_v4 = vsel %vm1052_vm3, %v2388_v54, %v2389_v62  ;;  %v11403_v55 = vor.u32 %v15164_v53, %v11400_v22  ;;  %v11384_v61 = vld [vmem:[#allocation11 + $0xa90] sm:$0xf0]  ;;  %v15027_v16 = vld [vmem:[#allocation11 + $0x654] sm:$0xf0]  ;;  %v10974_v37 = vld [vmem:[#allocation11 + $0x748] sm:$0xf] }
 0x28f   : > { %11508 = vmatmul.msk.bf16.vlgmr.msra.gmra.mxu3 %vm1913_vm5, %v17246_v35  ;;  %3478 = vmatpush.bf16.msra.mxu0 %v11499_v17  ;;  %v10879_v48 = vor.u32 %v15035_v18, %v10878_v24  ;;  %v11007_v5 = vor.u32 %v15067_v59, %v11006_v14  ;;  %v11467_v26 = vor.u32 %v15180_v29, %v11464_v39  ;;  %v15059_v2 = vld [vmem:[#allocation11 + $0x754] sm:$0xf0]  ;;  %v15172_v60 = vld [vmem:[#allocation11 + $0xae4] sm:$0xf]  ;;  %v11432_v53 = vld [vmem:[#allocation11 + $0xaf0] sm:$0xf0] }
 0x290   : > { %3372 = vmatmul.bf16.vlgmr.msrb.gmra.mxu1 %v17252_v33  ;;  %3386 = vmatmul.bf16.vlgmr.msra.gmra.mxu2 %v17255_v4  ;;  %v11387_v25 = vor.u32 %v15160_v52, %v11384_v61  ;;  %v10863_v17 = vor.u32 %v15031_v34, %v10862_v1  ;;  %v10991_v42 = vor.u32 %v15063_v43, %v10990_v12  ;;  %v15152_v54 = vld [vmem:[#allocation11 + $0xa44] sm:$0xf]  ;;  %v11352_v62 = vld [vmem:[#allocation11 + $0xa50] sm:$0xf0]  ;;  %v10830_v22 = vld [vmem:[#allocation11 + $0x628] sm:$0xf] }
 0x291   : > { %3490 = vmatpush.bf16.msrb.mxu1 %v10895_v7  ;;  %3504 = vmatpush.bf16.msra.mxu2 %v11023_v19  ;;  %v11451_v38 = vor.u32 %v15176_v21, %v11448_v30  ;;  %v11371_v27 = vor.u32 %v15156_v32, %v11368_v31  ;;  %v10847_v8 = vor.u32 %v15027_v16, %v10846_v0  ;;  %v15023_v7 = vld [vmem:[#allocation11 + $0x634] sm:$0xf0]  ;;  %v15168_v18 = vld [vmem:[#allocation11 + $0xac4] sm:$0xf]  ;;  %v11416_v14 = vld [vmem:[#allocation11 + $0xad0] sm:$0xf0] }
 0x292   : > { %3413 = vmatpush.bf16.msrb.mxu3 %v10779_v44  ;;  %v10975_v51 = vor.u32 %v15059_v2, %v10974_v37  ;;  %v11435_v19 = vor.u32 %v15172_v60, %v11432_v53  ;;  %v10958_v44 = vld [vmem:[#allocation11 + $0x728] sm:$0xf]  ;;  %v15055_v24 = vld [vmem:[#allocation11 + $0x734] sm:$0xf0]  ;;  %v11355_v59 = vor.u32 %v15152_v54, %v11352_v62  ;;  %v11336_v61 = vld [vmem:[#allocation11 + $0xa30] sm:$0xf0]  ;;  %v11419_v1 = vor.u32 %v15168_v18, %v11416_v14 }
 0x293   : > { %3479 = vmatpush.bf16.msra.mxu0 %v11483_v45  ;;  %v10831_v45 = vor.u32 %v15023_v7, %v10830_v22  ;;  %v11150_v29 = vld [vmem:[#allocation11 + $0x8a8] sm:$0xf]  ;;  %v15103_v39 = vld [vmem:[#allocation11 + $0x8b4] sm:$0xf0]  ;;  %v10959_v52 = vor.u32 %v15055_v24, %v10958_v44  ;;  %v15144_v21 = vld [vmem:[#allocation11 + $0xa04] sm:$0xf] }
 0x294   : > { %v10942_v34 = vld [vmem:[#allocation11 + $0x708] sm:$0xf]  ;;  %v15051_v12 = vld [vmem:[#allocation11 + $0x714] sm:$0xf0]  ;;  %v11151_v43 = vor.u32 %v15103_v39, %v11150_v29  ;;  %v11304_v53 = vld [vmem:[#allocation11 + $0x9f0] sm:$0xf0] }
 0x295   : > { %3491 = vmatpush.bf16.msrb.mxu1 %v10879_v48  ;;  %3505 = vmatpush.bf16.msra.mxu2 %v11007_v5  ;;  %v10814_v48 = vld [vmem:[#allocation11 + $0x608] sm:$0xf]  ;;  %v15019_v5 = vld [vmem:[#allocation11 + $0x614] sm:$0xf0]  ;;  %v10943_v31 = vor.u32 %v15051_v12, %v10942_v34 }
 0x296   : > { %3462 = vmatpush.bf16.msra.mxu3 %v11403_v55  ;;  %v15148_v55 = vld [vmem:[#allocation11 + $0xa24] sm:$0xf]  ;;  %v11134_v30 = vld [vmem:[#allocation11 + $0x888] sm:$0xf]  ;;  %v15099_v32 = vld [vmem:[#allocation11 + $0x894] sm:$0xf0] }
 0x297   : > { %3480 = vmatpush.bf16.msra.mxu0 %v11467_v26  ;;  %v11339_v26 = vor.u32 %v15148_v55, %v11336_v61  ;;  %v15015_v0 = vld [vmem:[#allocation11 + $0x5f4] sm:$0xf0]  ;;  %v10926_v16 = vld [vmem:[#allocation11 + $0x6e8] sm:$0xf]  ;;  %v11135_v2 = vor.u32 %v15099_v32, %v11134_v30 }
 0x298   : > { %v15047_v37 = vld [vmem:[#allocation11 + $0x6f4] sm:$0xf0]  ;;  %v10782_v62 = vld [vmem:[#allocation11 + $0x5c8] sm:$0xf] }
 0x299   : > { %3492 = vmatpush.bf16.msrb.mxu1 %v10863_v17  ;;  %3506 = vmatpush.bf16.msra.mxu2 %v10991_v42  ;;  %v11320_v17 = vld [vmem:[#allocation11 + $0xa10] sm:$0xf0]  ;;  %v10798_v42 = vld [vmem:[#allocation11 + $0x5e8] sm:$0xf]  ;;  %v10927_v54 = vor.u32 %v15047_v37, %v10926_v16  ;;  %v15011_v22 = vld [vmem:[#allocation11 + $0x5d4] sm:$0xf0] }
 0x29a   : > { %3463 = vmatpush.bf16.msra.mxu3 %v11387_v25  ;;  %v10815_v25 = vor.u32 %v15019_v5, %v10814_v48  ;;  %v10799_v60 = vor.u32 %v15015_v0, %v10798_v42  ;;  %v10910_v7 = vld [vmem:[#allocation11 + $0x6c8] sm:$0xf]  ;;  %v15167_v24 = vld [vmem:[#allocation11 + $0xab4] sm:$0xf0]  ;;  %v10783_v55 = vor.u32 %v15011_v22, %v10782_v62  ;;  %v15136_v48 = vld [vmem:[#allocation11 + $0x9c4] sm:$0xf] }
 0x29b   : > { %3481 = vmatpush.bf16.msra.mxu0 %v11451_v38  ;;  %v15140_v38 = vld [vmem:[#allocation11 + $0x9e4] sm:$0xf]  ;;  %v11406_v44 = vld [vmem:[#allocation11 + $0xaa8] sm:$0xf]  ;;  %v15091_v39 = vld [vmem:[#allocation11 + $0x854] sm:$0xf0] }
 0x29c   : > { %v11502_v14 = vld [vmem:[#allocation11 + $0xb68] sm:$0xf]  ;;  %v11407_v61 = vor.u32 %v15167_v24, %v11406_v44  ;;  %v11288_v5 = vld [vmem:[#allocation11 + $0x9d0] sm:$0xf0]  ;;  %v15135_v12 = vld [vmem:[#allocation11 + $0x9b4] sm:$0xf0] }
 0x29d   : > { %3493 = vmatpush.bf16.msrb.mxu1 %v10847_v8  ;;  %3507 = vmatpush.bf16.msra.mxu2 %v10975_v51  ;;  %v11118_v8 = vld [vmem:[#allocation11 + $0x868] sm:$0xf]  ;;  %v15095_v51 = vld [vmem:[#allocation11 + $0x874] sm:$0xf0]  ;;  %v11291_v32 = vor.u32 %v15136_v48, %v11288_v5 }
 0x29e   : > { %3464 = vmatpush.bf16.msra.mxu3 %v11371_v27  ;;  %3428 = vmatmul.bf16.vlgmr.msrb.gmra.mxu0 %v17164_v58  ;;  %v11323_v27 = vor.u32 %v15144_v21, %v11320_v17  ;;  %v11119_v18 = vor.u32 %v15095_v51, %v11118_v8  ;;  %v11102_v29 = vld [vmem:[#allocation11 + $0x848] sm:$0xf]  ;;  %v15187_v30 = vld [vmem:[#allocation11 + $0xb54] sm:$0xf0] }
 0x29f   : > { %3414 = vmatmul.bf16.vlgmr.msrb.gmra.mxu3 %v17143_v11  ;;  %3482 = vmatpush.bf16.msra.mxu0 %v11435_v19  ;;  %v15043_v19 = vld [vmem:[#allocation11 + $0x6d4] sm:$0xf0]  ;;  %v11486_v21 = vld [vmem:[#allocation11 + $0xb48] sm:$0xf] }
 0x2a0   : > { %3442 = vmatmul.bf16.vlgmr.msra.gmra.mxu1 %v17242_v13  ;;  %3456 = vmatmul.bf16.vlgmr.msrb.gmra.mxu2 %v17252_v33  ;;  %v15087_v17 = vld [vmem:[#allocation11 + $0x834] sm:$0xf0]  ;;  %v11262_v16 = vld [vmem:[#allocation11 + $0x988] sm:$0xf]  ;;  %v11487_v37 = vor.u32 %v15187_v30, %v11486_v21 }
 0x2a1   : > { %3494 = vmatpush.bf16.msrb.mxu1 %v10831_v45  ;;  %3508 = vmatpush.bf16.msra.mxu2 %v10959_v52  ;;  %v11307_v45 = vor.u32 %v15140_v38, %v11304_v53  ;;  %v10911_v52 = vor.u32 %v15043_v19, %v10910_v7  ;;  %v11374_v38 = vld [vmem:[#allocation11 + $0xa68] sm:$0xf]  ;;  %v15183_v8 = vld [vmem:[#allocation11 + $0xb34] sm:$0xf0] }
 0x2a2   : > { %3465 = vmatpush.bf16.msra.mxu3 %v11355_v59  ;;  %v15191_v59 = vld [vmem:[#allocation11 + $0xb74] sm:$0xf0]  ;;  %v11470_v53 = vld [vmem:[#allocation11 + $0xb28] sm:$0xf] }
 0x2a3   : > { %3483 = vmatpush.bf16.msra.mxu0 %v11419_v1  ;;  %v11278_v1 = vld [vmem:[#allocation11 + $0x9a8] sm:$0xf]  ;;  %v11503_v34 = vor.u32 %v15191_v59, %v11502_v14  ;;  %v11471_v19 = vor.u32 %v15183_v8, %v11470_v53  ;;  %v15127_v44 = vld [vmem:[#allocation11 + $0x974] sm:$0xf0]  ;;  %v15069_v8 = vld [vmem:[#allocation11 + $0x7ac] sm:$0xf] }
 0x2a4   : > { %v11279_v42 = vor.u32 %v15135_v12, %v11278_v1  ;;  %v11070_v51 = vld [vmem:[#allocation11 + $0x808] sm:$0xf]  ;;  %v15123_v5 = vld [vmem:[#allocation11 + $0x954] sm:$0xf0] }
 0x2a5   : > { %3495 = vmatpush.bf16.msrb.mxu1 %v10815_v25  ;;  %3509 = vmatpush.bf16.msra.mxu2 %v10943_v31  ;;  %v11103_v25 = vor.u32 %v15091_v39, %v11102_v29  ;;  %v11086_v31 = vld [vmem:[#allocation11 + $0x828] sm:$0xf]  ;;  %v15079_v29 = vld [vmem:[#allocation11 + $0x7f4] sm:$0xf0] }
 0x2a6   : > { %3466 = vmatpush.bf16.msra.mxu3 %v11339_v26  ;;  %v15163_v26 = vld [vmem:[#allocation11 + $0xa94] sm:$0xf0]  ;;  %v11246_v7 = vld [vmem:[#allocation11 + $0x968] sm:$0xf] }
 0x2a7   : > { %3518 = vmatpush.bf16.msrb.mxu0 %v11151_v43  ;;  %v11390_v43 = vld [vmem:[#allocation11 + $0xa88] sm:$0xf]  ;;  %v11247_v39 = vor.u32 %v15127_v44, %v11246_v7  ;;  %v15075_v21 = vld [vmem:[#allocation11 + $0x7d4] sm:$0xf0]  ;;  %v10880_v7 = vld [vmem:[#allocation11 + $0x698] sm:$0xf0] }
 0x2a8   : > { %v11391_v0 = vor.u32 %v15163_v26, %v11390_v43  ;;  %v11358_v24 = vld [vmem:[#allocation11 + $0xa48] sm:$0xf]  ;;  %v15175_v26 = vld [vmem:[#allocation11 + $0xaf4] sm:$0xf0] }
 0x2a9   : > { %3496 = vmatpush.bf16.msrb.mxu1 %v10799_v60  ;;  %3510 = vmatpush.bf16.msra.mxu2 %v10927_v54  ;;  %v11087_v60 = vor.u32 %v15087_v17, %v11086_v31  ;;  %v15083_v54 = vld [vmem:[#allocation11 + $0x814] sm:$0xf0]  ;;  %v11454_v59 = vld [vmem:[#allocation11 + $0xb08] sm:$0xf]  ;;  %v15037_v17 = vld [vmem:[#allocation11 + $0x6ac] sm:$0xf] }
 0x2aa   : > { %3467 = vmatpush.bf16.msra.mxu3 %v11323_v27  ;;  %v15159_v27 = vld [vmem:[#allocation11 + $0xa74] sm:$0xf0]  ;;  %v11071_v14 = vor.u32 %v15083_v54, %v11070_v51  ;;  %v11342_v1 = vld [vmem:[#allocation11 + $0xa28] sm:$0xf]  ;;  %v11024_v51 = vld [vmem:[#allocation11 + $0x7b8] sm:$0xf0] }
 0x2ab   : > { %3519 = vmatpush.bf16.msrb.mxu0 %v11135_v2  ;;  %v15131_v2 = vld [vmem:[#allocation11 + $0x994] sm:$0xf0]  ;;  %v11375_v22 = vor.u32 %v15159_v27, %v11374_v38  ;;  %v11438_v43 = vld [vmem:[#allocation11 + $0xae8] sm:$0xf] }
 0x2ac   : > { %v11263_v62 = vor.u32 %v15131_v2, %v11262_v16  ;;  %v11214_v31 = vld [vmem:[#allocation11 + $0x928] sm:$0xf]  ;;  %v15119_v16 = vld [vmem:[#allocation11 + $0x934] sm:$0xf0] }
 0x2ad   : > { %3497 = vmatpush.bf16.msrb.mxu1 %v10783_v55  ;;  %3511 = vmatpush.bf16.msra.mxu2 %v10911_v52  ;;  %v11054_v55 = vld [vmem:[#allocation11 + $0x7e8] sm:$0xf]  ;;  %v15147_v2 = vld [vmem:[#allocation11 + $0xa14] sm:$0xf0]  ;;  %v11215_v54 = vor.u32 %v15119_v16, %v11214_v31 }
 0x2ae   : > { %3468 = vmatpush.bf16.msra.mxu3 %v11307_v45  ;;  %11509 = vmatmul.msk.bf16.vlgmr.msra.gmra.mxu0 %vm1913_vm5, %v17246_v35  ;;  %v15179_v45 = vld [vmem:[#allocation11 + $0xb14] sm:$0xf0]  ;;  %v11055_v12 = vor.u32 %v15079_v29, %v11054_v55  ;;  %v11422_v27 = vld [vmem:[#allocation11 + $0xac8] sm:$0xf]  ;;  %v15065_v55 = vld [vmem:[#allocation11 + $0x78c] sm:$0xf] }
 0x2af   : > { %3520 = vmatpush.bf16.msrb.mxu0 %v11119_v18  ;;  %v15155_v18 = vld [vmem:[#allocation11 + $0xa54] sm:$0xf0]  ;;  %v11455_v48 = vor.u32 %v15179_v45, %v11454_v59  ;;  %v11198_v44 = vld [vmem:[#allocation11 + $0x908] sm:$0xf]  ;;  %v11008_v29 = vld [vmem:[#allocation11 + $0x798] sm:$0xf0] }
 0x2b0   : > { %3498 = vmatmul.bf16.vlgmr.msrb.gmra.mxu1 %v17143_v11  ;;  %3512 = vmatmul.bf16.vlgmr.msra.gmra.mxu2 %v17164_v58  ;;  %v11359_v52 = vor.u32 %v15155_v18, %v11358_v24  ;;  %v15115_v24 = vld [vmem:[#allocation11 + $0x914] sm:$0xf0]  ;;  %v11027_v18 = vor.u32 %v15069_v8, %v11024_v51  ;;  %v11166_v16 = vld [vmem:[#allocation11 + $0x8c8] sm:$0xf]  ;;  %v10976_v51 = vld [vmem:[#allocation11 + $0x758] sm:$0xf0] }
 0x2b1   : > { %3546 = vmatpush.bf16.msra.mxu1 %v11407_v61  ;;  %3562 = vmatpush.bf16.msrb.mxu2 %v11503_v34  ;;  %v11230_v61 = vld [vmem:[#allocation11 + $0x948] sm:$0xf]  ;;  %v15151_v34 = vld [vmem:[#allocation11 + $0xa34] sm:$0xf0] }
 0x2b2   : > { %3469 = vmatpush.bf16.msra.mxu3 %v11291_v32  ;;  %v11231_v30 = vor.u32 %v15123_v5, %v11230_v61  ;;  %v11343_v32 = vor.u32 %v15151_v34, %v11342_v1  ;;  %v15143_v59 = vld [vmem:[#allocation11 + $0x9f4] sm:$0xf0]  ;;  %v10864_v61 = vld [vmem:[#allocation11 + $0x678] sm:$0xf0]  ;;  %v11182_v5 = vld [vmem:[#allocation11 + $0x8e8] sm:$0xf]  ;;  %v11011_v34 = vor.u32 %v15065_v55, %v11008_v29 }
 0x2b3   : > { %3521 = vmatpush.bf16.msrb.mxu0 %v11103_v25  ;;  %v11038_v25 = vld [vmem:[#allocation11 + $0x7c8] sm:$0xf]  ;;  %v15111_v1 = vld [vmem:[#allocation11 + $0x8f4] sm:$0xf0]  ;;  %v10960_v29 = vld [vmem:[#allocation11 + $0x738] sm:$0xf0] }
 0x2b4   : > { %v11039_v38 = vor.u32 %v15075_v21, %v11038_v25  ;;  %v10992_v21 = vld [vmem:[#allocation11 + $0x778] sm:$0xf0]  ;;  %v11183_v31 = vor.u32 %v15111_v1, %v11182_v5 }
 0x2b5   : > { %3547 = vmatpush.bf16.msra.mxu1 %v11391_v0  ;;  %3563 = vmatpush.bf16.msrb.mxu2 %v11487_v37  ;;  %v11439_v0 = vor.u32 %v15175_v26, %v11438_v43  ;;  %v11326_v37 = vld [vmem:[#allocation11 + $0xa08] sm:$0xf]  ;;  %v15139_v43 = vld [vmem:[#allocation11 + $0x9d4] sm:$0xf0]  ;;  %v15061_v26 = vld [vmem:[#allocation11 + $0x76c] sm:$0xf] }
 0x2b6   : > { %3532 = vmatpush.bf16.msrb.mxu3 %v11279_v42  ;;  %v10896_v42 = vld [vmem:[#allocation11 + $0x6b8] sm:$0xf0] }
 0x2b7   : > { %3470 = vmatmul.bf16.vlgmr.msra.gmra.mxu3 %v17255_v4  ;;  %3522 = vmatpush.bf16.msrb.mxu0 %v11087_v60  ;;  %v15171_v60 = vld [vmem:[#allocation11 + $0xad4] sm:$0xf0]  ;;  %v10899_v53 = vor.u32 %v15037_v17, %v10896_v42  ;;  %v15025_v17 = vld [vmem:[#allocation11 + $0x64c] sm:$0xf]  ;;  %v10848_v42 = vld [vmem:[#allocation11 + $0x658] sm:$0xf0] }
 0x2b8   : > { %v10851_v8 = vor.u32 %v15025_v17, %v10848_v42  ;;  %v10800_v17 = vld [vmem:[#allocation11 + $0x5f8] sm:$0xf0] }
 0x2b9   : > { %3548 = vmatpush.bf16.msra.mxu1 %v11375_v22  ;;  %3564 = vmatpush.bf16.msrb.mxu2 %v11471_v19  ;;  %v15033_v22 = vld [vmem:[#allocation11 + $0x68c] sm:$0xf]  ;;  %v11423_v19 = vor.u32 %v15171_v60, %v11422_v27 }
 0x2ba   : > { %3533 = vmatpush.bf16.msrb.mxu3 %v11263_v62  ;;  %v11327_v62 = vor.u32 %v15147_v2, %v11326_v37  ;;  %v10883_v45 = vor.u32 %v15033_v22, %v10880_v7  ;;  %v15107_v37 = vld [vmem:[#allocation11 + $0x8d4] sm:$0xf0]  ;;  %v10995_v2 = vor.u32 %v15061_v26, %v10992_v21  ;;  %v15057_v27 = vld [vmem:[#allocation11 + $0x74c] sm:$0xf]  ;;  %v11120_v26 = vld [vmem:[#allocation11 + $0x878] sm:$0xf0] }
 0x2bb   : > { %3523 = vmatpush.bf16.msrb.mxu0 %v11071_v14  ;;  %v11310_v14 = vld [vmem:[#allocation11 + $0x9e8] sm:$0xf]  ;;  %v15101_v60 = vld [vmem:[#allocation11 + $0x8ac] sm:$0xf]  ;;  %v11167_v22 = vor.u32 %v15107_v37, %v11166_v16  ;;  %v10944_v21 = vld [vmem:[#allocation11 + $0x718] sm:$0xf0] }
 0x2bc   : > { %v15021_v7 = vld [vmem:[#allocation11 + $0x62c] sm:$0xf] }
 0x2bd   : > { %3549 = vmatpush.bf16.msra.mxu1 %v11359_v52  ;;  %3565 = vmatpush.bf16.msrb.mxu2 %v11455_v48  ;;  %v15029_v52 = vld [vmem:[#allocation11 + $0x66c] sm:$0xf]  ;;  %v11311_v48 = vor.u32 %v15143_v59, %v11310_v14 }
 0x2be   : > { %3534 = vmatpush.bf16.msrb.mxu3 %v11247_v39  ;;  %v11199_v39 = vor.u32 %v15115_v24, %v11198_v44  ;;  %v10867_v25 = vor.u32 %v15029_v52, %v10864_v61  ;;  %v10979_v24 = vor.u32 %v15057_v27, %v10976_v51  ;;  %v15053_v14 = vld [vmem:[#allocation11 + $0x72c] sm:$0xf]  ;;  %v11248_v52 = vld [vmem:[#allocation11 + $0x978] sm:$0xf0] }
 0x2bf   : > { %3524 = vmatpush.bf16.msrb.mxu0 %v11055_v12  ;;  %v11294_v12 = vld [vmem:[#allocation11 + $0x9c8] sm:$0xf]  ;;  %v15097_v59 = vld [vmem:[#allocation11 + $0x88c] sm:$0xf]  ;;  %v10963_v1 = vor.u32 %v15053_v14, %v10960_v29  ;;  %v11088_v14 = vld [vmem:[#allocation11 + $0x838] sm:$0xf0] }
 0x2c0   : > { %v15017_v61 = vld [vmem:[#allocation11 + $0x60c] sm:$0xf]  ;;  %v11200_v29 = vld [vmem:[#allocation11 + $0x918] sm:$0xf0] }
 0x2c1   : > { %3550 = vmatpush.bf16.msra.mxu1 %v11343_v32  ;;  %3566 = vmatpush.bf16.msrb.mxu2 %v11439_v0  ;;  %v11280_v32 = vld [vmem:[#allocation11 + $0x9b8] sm:$0xf0]  ;;  %v11295_v0 = vor.u32 %v15139_v43, %v11294_v12  ;;  %v15049_v12 = vld [vmem:[#allocation11 + $0x70c] sm:$0xf] }
 0x2c2   : > { %3535 = vmatpush.bf16.msrb.mxu3 %v11231_v30  ;;  %v15133_v30 = vld [vmem:[#allocation11 + $0x9ac] sm:$0xf] }
 0x2c3   : > { %3525 = vmatpush.bf16.msrb.mxu0 %v11039_v38  ;;  %v11283_v38 = vor.u32 %v15133_v30, %v11280_v32  ;;  %v15093_v43 = vld [vmem:[#allocation11 + $0x86c] sm:$0xf]  ;;  %v11232_v32 = vld [vmem:[#allocation11 + $0x958] sm:$0xf0] }
 0x2c4   : > { %v15121_v30 = vld [vmem:[#allocation11 + $0x94c] sm:$0xf]  ;;  %v11123_v42 = vor.u32 %v15093_v43, %v11120_v26  ;;  %v11072_v26 = vld [vmem:[#allocation11 + $0x818] sm:$0xf0] }
 0x2c5   : > { %3551 = vmatpush.bf16.msra.mxu1 %v11327_v62  ;;  %3567 = vmatpush.bf16.msrb.mxu2 %v11423_v19  ;;  %v11264_v62 = vld [vmem:[#allocation11 + $0x998] sm:$0xf0]  ;;  %v11235_v16 = vor.u32 %v15121_v30, %v11232_v32  ;;  %v15045_v37 = vld [vmem:[#allocation11 + $0x6ec] sm:$0xf] }
 0x2c6   : > { %3536 = vmatpush.bf16.msrb.mxu3 %v11215_v54  ;;  %3526 = vmatmul.bf16.vlgmr.msrb.gmra.mxu0 %v17242_v13  ;;  %v15129_v54 = vld [vmem:[#allocation11 + $0x98c] sm:$0xf]  ;;  %v10832_v19 = vld [vmem:[#allocation11 + $0x638] sm:$0xf0] }
 0x2c7   : > { %3574 = vmatpush.bf16.msra.mxu0 %v10899_v53  ;;  %v11152_v53 = vld [vmem:[#allocation11 + $0x8b8] sm:$0xf0]  ;;  %v10835_v55 = vor.u32 %v15021_v7, %v10832_v19  ;;  %v15009_v51 = vld [vmem:[#allocation11 + $0x5cc] sm:$0xf] }
 0x2c8   : > { %11510 = vmatmul.msk.bf16.vlgmr.msrb.gmra.mxu2 %vm1913_vm5, %v17246_v35  ;;  %v11155_v44 = vor.u32 %v15101_v60, %v11152_v53  ;;  %v10928_v60 = vld [vmem:[#allocation11 + $0x6f8] sm:$0xf0]  ;;  %v15117_v53 = vld [vmem:[#allocation11 + $0x92c] sm:$0xf] }
 0x2c9   : > { %3588 = vmatpush.bf16.msra.mxu2 %v11027_v18  ;;  %3552 = vmatpush.bf16.msra.mxu1 %v11311_v48  ;;  %v11267_v18 = vor.u32 %v15129_v54, %v11264_v62  ;;  %v10816_v48 = vld [vmem:[#allocation11 + $0x618] sm:$0xf0]  ;;  %v10931_v19 = vor.u32 %v15045_v37, %v10928_v60  ;;  %v15081_v43 = vld [vmem:[#allocation11 + $0x80c] sm:$0xf] }
 0x2ca   : > { %3537 = vmatpush.bf16.msrb.mxu3 %v11199_v39  ;;  %v15125_v39 = vld [vmem:[#allocation11 + $0x96c] sm:$0xf]  ;;  %v10784_v54 = vld [vmem:[#allocation11 + $0x5d8] sm:$0xf0] }
 0x2cb   : > { %3575 = vmatpush.bf16.msra.mxu0 %v10883_v45  ;;  %v11136_v45 = vld [vmem:[#allocation11 + $0x898] sm:$0xf0]  ;;  %v15105_v60 = vld [vmem:[#allocation11 + $0x8cc] sm:$0xf] }
 0x2cc   : > { %v11139_v5 = vor.u32 %v15097_v59, %v11136_v45  ;;  %v11408_v7 = vld [vmem:[#allocation11 + $0xab8] sm:$0xf0]  ;;  %v10787_v59 = vor.u32 %v15009_v51, %v10784_v54 }
 0x2cd   : > { %3589 = vmatpush.bf16.msra.mxu2 %v11011_v34  ;;  %3553 = vmatpush.bf16.msra.mxu1 %v11295_v0  ;;  %v11251_v34 = vor.u32 %v15125_v39, %v11248_v52  ;;  %v10947_v0 = vor.u32 %v15049_v12, %v10944_v21  ;;  %v10912_v45 = vld [vmem:[#allocation11 + $0x6d8] sm:$0xf0]  ;;  %v15189_v52 = vld [vmem:[#allocation11 + $0xb6c] sm:$0xf] }
 0x2ce   : > { %3538 = vmatpush.bf16.msrb.mxu3 %v11183_v31  ;;  %v15013_v31 = vld [vmem:[#allocation11 + $0x5ec] sm:$0xf]  ;;  %v11184_v30 = vld [vmem:[#allocation11 + $0x8f8] sm:$0xf0] }
 0x2cf   : > { %3576 = vmatpush.bf16.msra.mxu0 %v10867_v25  ;;  %v10819_v25 = vor.u32 %v15017_v61, %v10816_v48  ;;  %v10803_v27 = vor.u32 %v15013_v31, %v10800_v17  ;;  %v11504_v61 = vld [vmem:[#allocation11 + $0xb78] sm:$0xf0]  ;;  %v15109_v21 = vld [vmem:[#allocation11 + $0x8ec] sm:$0xf] }
 0x2d0   : > { %3554 = vmatmul.bf16.vlgmr.msra.gmra.mxu1 %v17255_v4  ;;  %v15185_v31 = vld [vmem:[#allocation11 + $0xb4c] sm:$0xf]  ;;  %v11488_v17 = vld [vmem:[#allocation11 + $0xb58] sm:$0xf0]  ;;  %v11187_v37 = vor.u32 %v15109_v21, %v11184_v30  ;;  %v14850_v21 = vld [vmem:[#allocation11 + $0xcc] sm:$0xf0] }
 0x2d1   : > { %3590 = vmatpush.bf16.msra.mxu2 %v10995_v2  ;;  %3616 = vmatpush.bf16.msrb.mxu1 %v11283_v38  ;;  %v15089_v2 = vld [vmem:[#allocation11 + $0x84c] sm:$0xf]  ;;  %v11104_v38 = vld [vmem:[#allocation11 + $0x858] sm:$0xf0] }
 0x2d2   : > { %3539 = vmatpush.bf16.msrb.mxu3 %v11167_v22  ;;  %v11107_v62 = vor.u32 %v15089_v2, %v11104_v38  ;;  %v15165_v22 = vld [vmem:[#allocation11 + $0xaac] sm:$0xf]  ;;  %v11056_v38 = vld [vmem:[#allocation11 + $0x7f8] sm:$0xf0] }
 0x2d3   : > { %3577 = vmatpush.bf16.msra.mxu0 %v10851_v8  ;;  %v11216_v8 = vld [vmem:[#allocation11 + $0x938] sm:$0xf0]  ;;  %v11411_v39 = vor.u32 %v15165_v22, %v11408_v7  ;;  %v15077_v2 = vld [vmem:[#allocation11 + $0x7ec] sm:$0xf]  ;;  %v14886_v22 = vld [vmem:[#allocation11 + $0x1ec] sm:$0xf0] }
 0x2d4   : > { %v11472_v54 = vld [vmem:[#allocation11 + $0xb38] sm:$0xf0]  ;;  %v11059_v7 = vor.u32 %v15077_v2, %v11056_v38 }
 0x2d5   : > { %3591 = vmatpush.bf16.msra.mxu2 %v10979_v24  ;;  %3617 = vmatpush.bf16.msrb.mxu1 %v11267_v18  ;;  %v15041_v24 = vld [vmem:[#allocation11 + $0x6cc] sm:$0xf] }
 0x2d6   : > { %3602 = vmatpush.bf16.msra.mxu3 %v11155_v44  ;;  %v11219_v44 = vor.u32 %v15117_v53, %v11216_v8  ;;  %v15085_v18 = vld [vmem:[#allocation11 + $0x82c] sm:$0xf]  ;;  %v11168_v53 = vld [vmem:[#allocation11 + $0x8d8] sm:$0xf0] }
 0x2d7   : > { %3540 = vmatmul.bf16.vlgmr.msrb.gmra.mxu3 %v17252_v33  ;;  %3578 = vmatpush.bf16.msra.mxu0 %v10835_v55  ;;  %v15113_v55 = vld [vmem:[#allocation11 + $0x90c] sm:$0xf]  ;;  %v11091_v48 = vor.u32 %v15085_v18, %v11088_v14  ;;  %v11040_v14 = vld [vmem:[#allocation11 + $0x7d8] sm:$0xf0] }
 0x2d8   : > { %v11203_v12 = vor.u32 %v15113_v55, %v11200_v29  ;;  %v15181_v8 = vld [vmem:[#allocation11 + $0xb2c] sm:$0xf]  ;;  %v11626_v55 = vld [vmem:[#allocation11 + $0xe0] sm:$0xf]  ;;  %v14854_v29 = vld [vmem:[#allocation11 + $0xec] sm:$0xf0] }
 0x2d9   : > { %3592 = vmatpush.bf16.msra.mxu2 %v10963_v1  ;;  %3618 = vmatpush.bf16.msrb.mxu1 %v11251_v34  ;;  %v11392_v1 = vld [vmem:[#allocation11 + $0xa98] sm:$0xf0]  ;;  %v10915_v34 = vor.u32 %v15041_v24, %v10912_v45  ;;  %v11171_v24 = vor.u32 %v15105_v60, %v11168_v53  ;;  %v15073_v18 = vld [vmem:[#allocation11 + $0x7cc] sm:$0xf]  ;;  %v11594_v60 = vld [vmem:[#allocation11 + $0xa0] sm:$0xf] }
 0x2da   : > { %3603 = vmatpush.bf16.msra.mxu3 %v11139_v5  ;;  %v15161_v5 = vld [vmem:[#allocation11 + $0xa8c] sm:$0xf]  ;;  %v14846_v53 = vld [vmem:[#allocation11 + $0xac] sm:$0xf0] }
 0x2db   : > { %3579 = vmatpush.bf16.msra.mxu0 %v10819_v25  ;;  %v11507_v25 = vor.u32 %v15189_v52, %v11504_v61  ;;  %v11395_v32 = vor.u32 %v15161_v5, %v11392_v1  ;;  %v15177_v45 = vld [vmem:[#allocation11 + $0xb0c] sm:$0xf]  ;;  %v11456_v52 = vld [vmem:[#allocation11 + $0xb18] sm:$0xf0]  ;;  %v11738_v61 = vld [vmem:[#allocation11 + $0x1c0] sm:$0xf] }
 0x2dc   : > { %v15149_v5 = vld [vmem:[#allocation11 + $0xa2c] sm:$0xf]  ;;  %v11344_v1 = vld [vmem:[#allocation11 + $0xa38] sm:$0xf0] }
 0x2dd   : > { %3593 = vmatpush.bf16.msra.mxu2 %v10947_v0  ;;  %3619 = vmatpush.bf16.msrb.mxu1 %v11235_v16  ;;  %v15157_v0 = vld [vmem:[#allocation11 + $0xa6c] sm:$0xf]  ;;  %v11376_v16 = vld [vmem:[#allocation11 + $0xa78] sm:$0xf0]  ;;  %v11347_v30 = vor.u32 %v15149_v5, %v11344_v1  ;;  %v11562_v1 = vld [vmem:[#allocation11 + $0x60] sm:$0xf] }
 0x2de   : > { %3604 = vmatpush.bf16.msra.mxu3 %v11123_v42  ;;  %v11075_v42 = vor.u32 %v15081_v43, %v11072_v26  ;;  %v11379_v51 = vor.u32 %v15157_v0, %v11376_v16  ;;  %v15173_v26 = vld [vmem:[#allocation11 + $0xaec] sm:$0xf]  ;;  %v11328_v0 = vld [vmem:[#allocation11 + $0xa18] sm:$0xf0] }
 0x2df   : > { %3580 = vmatpush.bf16.msra.mxu0 %v10803_v27  ;;  %v11491_v27 = vor.u32 %v15185_v31, %v11488_v17  ;;  %v11722_v31 = vld [vmem:[#allocation11 + $0x1a0] sm:$0xf]  ;;  %v14878_v17 = vld [vmem:[#allocation11 + $0x1ac] sm:$0xf0] }
 0x2e0   : > { %v11723_v38 = vor.u32 %v14878_v17, %v11722_v31 }
 0x2e1   : > { %3594 = vmatpush.bf16.msra.mxu2 %v10931_v19  ;;  %3620 = vmatpush.bf16.msrb.mxu1 %v11219_v44  ;;  %v15153_v19 = vld [vmem:[#allocation11 + $0xa4c] sm:$0xf]  ;;  %v11360_v44 = vld [vmem:[#allocation11 + $0xa58] sm:$0xf0] }
 0x2e2   : > { %3605 = vmatpush.bf16.msra.mxu3 %v11107_v62  ;;  %v11754_v62 = vld [vmem:[#allocation11 + $0x1e0] sm:$0xf] }
 0x2e3   : > { %3581 = vmatpush.bf16.msra.mxu0 %v10787_v59  ;;  %v11755_v59 = vor.u32 %v14886_v22, %v11754_v62  ;;  %v14918_v62 = vld [vmem:[#allocation11 + $0x2ec] sm:$0xf0]  ;;  %v15141_v22 = vld [vmem:[#allocation11 + $0x9ec] sm:$0xf] }
 0x2e5   : > { %3595 = vmatpush.bf16.msra.mxu2 %v10915_v34  ;;  %3621 = vmatpush.bf16.msrb.mxu1 %v11203_v12  ;;  %v11627_v34 = vor.u32 %v14854_v29, %v11626_v55  ;;  %v11459_v12 = vor.u32 %v15177_v45, %v11456_v52  ;;  %v14870_v45 = vld [vmem:[#allocation11 + $0x16c] sm:$0xf0]  ;;  %v11866_v55 = vld [vmem:[#allocation11 + $0x2c0] sm:$0xf]  ;;  %v11296_v52 = vld [vmem:[#allocation11 + $0x9d8] sm:$0xf0] }
 0x2e6   : > { %3606 = vmatpush.bf16.msra.mxu3 %v11091_v48  ;;  %3582 = vmatmul.bf16.vlgmr.msra.gmra.mxu0 %v17143_v11  ;;  %v11475_v11 = vor.u32 %v15181_v8, %v11472_v54  ;;  %v14882_v48 = vld [vmem:[#allocation11 + $0x1cc] sm:$0xf0] }
 0x2e7   : > { %3630 = vmatpush.bf16.msrb.mxu0 %v11411_v39  ;;  %v11363_v39 = vor.u32 %v15153_v19, %v11360_v44  ;;  %v11739_v43 = vor.u32 %v14882_v48, %v11738_v61  ;;  %v14874_v54 = vld [vmem:[#allocation11 + $0x18c] sm:$0xf0]  ;;  %v11595_v19 = vor.u32 %v14846_v53, %v11594_v60  ;;  %v12010_v48 = vld [vmem:[#allocation11 + $0x3e0] sm:$0xf] }
 0x2e8   : > { %3596 = vmatmul.bf16.vlgmr.msra.gmra.mxu2 %v17164_v58  ;;  %v11043_v58 = vor.u32 %v15073_v18, %v11040_v14  ;;  %v11578_v18 = vld [vmem:[#allocation11 + $0x80] sm:$0xf]  ;;  %v14842_v14 = vld [vmem:[#allocation11 + $0x8c] sm:$0xf0] }
 0x2e9   : > { %3646 = vmatpush.bf16.msrb.mxu2 %v11507_v25  ;;  %3622 = vmatpush.bf16.msrb.mxu1 %v11187_v37  ;;  %v11610_v25 = vld [vmem:[#allocation11 + $0xc0] sm:$0xf]  ;;  %v15169_v37 = vld [vmem:[#allocation11 + $0xacc] sm:$0xf]  ;;  %v14914_v29 = vld [vmem:[#allocation11 + $0x2cc] sm:$0xf0]  ;;  %v11579_v61 = vor.u32 %v14842_v14, %v11578_v18 }
 0x2ea   : > { %3607 = vmatpush.bf16.msra.mxu3 %v11075_v42  ;;  %v15145_v42 = vld [vmem:[#allocation11 + $0xa0c] sm:$0xf]  ;;  %v11611_v16 = vor.u32 %v14850_v21, %v11610_v25  ;;  %v14866_v25 = vld [vmem:[#allocation11 + $0x14c] sm:$0xf0]  ;;  %v11658_v53 = vld [vmem:[#allocation11 + $0x120] sm:$0xf] }
 0x2eb   : > { %3631 = vmatpush.bf16.msrb.mxu0 %v11395_v32  ;;  %v11440_v32 = vld [vmem:[#allocation11 + $0xaf8] sm:$0xf0]  ;;  %v11331_v8 = vor.u32 %v15145_v42, %v11328_v0  ;;  %v11994_v0 = vld [vmem:[#allocation11 + $0x3c0] sm:$0xf]  ;;  %v14858_v14 = vld [vmem:[#allocation11 + $0x10c] sm:$0xf0] }
 0x2ec   : > { %v11443_v2 = vor.u32 %v15173_v26, %v11440_v32  ;;  %v11674_v26 = vld [vmem:[#allocation11 + $0x140] sm:$0xf]  ;;  %v14910_v32 = vld [vmem:[#allocation11 + $0x2ac] sm:$0xf0] }
 0x2ed   : > { %3647 = vmatpush.bf16.msrb.mxu2 %v11491_v27  ;;  %3623 = vmatpush.bf16.msrb.mxu1 %v11171_v24  ;;  %v11424_v27 = vld [vmem:[#allocation11 + $0xad8] sm:$0xf0]  ;;  %v11642_v18 = vld [vmem:[#allocation11 + $0x100] sm:$0xf] }
 0x2ee   : > { %3608 = vmatpush.bf16.msra.mxu3 %v11059_v7  ;;  %v11312_v7 = vld [vmem:[#allocation11 + $0x9f8] sm:$0xf0]  ;;  %v11427_v44 = vor.u32 %v15169_v37, %v11424_v27  ;;  %v14834_v27 = vld [vmem:[#allocation11 + $0x4c] sm:$0xf0] }
 0x2ef   : > { %3632 = vmatpush.bf16.msrb.mxu0 %v11379_v51  ;;  %v11706_v51 = vld [vmem:[#allocation11 + $0x180] sm:$0xf] }
 0x2f0   : > { %3624 = vmatmul.bf16.vlgmr.msrb.gmra.mxu1 %v17252_v33  ;;  %v11882_v33 = vld [vmem:[#allocation11 + $0x2e0] sm:$0xf]  ;;  %v11707_v24 = vor.u32 %v14874_v54, %v11706_v51 }
 0x2f1   : > { %3648 = vmatpush.bf16.msrb.mxu2 %v11475_v11  ;;  %4595 = vmatpush.bf16.msra.mxu1 %v11755_v59  ;;  %v11883_v11 = vor.u32 %v14918_v62, %v11882_v33  ;;  %v11315_v59 = vor.u32 %v15141_v22, %v11312_v7  ;;  %v3331_v31 = vpop.f32.mrf.mxu2  ;;  %v11834_v54 = vld [vmem:[#allocation11 + $0x280] sm:$0xf]  ;;  %v14942_v22 = vld [vmem:[#allocation11 + $0x3ac] sm:$0xf0] }
 0x2f2   : > { %3609 = vmatpush.bf16.msra.mxu3 %v11043_v58  ;;  %v14950_v58 = vld [vmem:[#allocation11 + $0x3ec] sm:$0xf0]  ;;  %v11978_v62 = vld [vmem:[#allocation11 + $0x3a0] sm:$0xf] }
 0x2f3   : > { %3633 = vmatpush.bf16.msrb.mxu0 %v11363_v39  ;;  %v15137_v39 = vld [vmem:[#allocation11 + $0x9cc] sm:$0xf]  ;;  %v12011_v21 = vor.u32 %v14950_v58, %v12010_v48  ;;  %v14826_v48 = vld [vmem:[#allocation11 + $0xc] sm:$0xf0] }
 0x2f5   : > { %3649 = vmatpush.bf16.msrb.mxu2 %v11459_v12  ;;  %4596 = vmatpush.bf16.msra.mxu1 %v11739_v43  ;;  %v11867_v12 = vor.u32 %v14914_v29, %v11866_v55  ;;  %v11299_v43 = vor.u32 %v15137_v39, %v11296_v52  ;;  %v15006_v55 = vld [vmem:[#allocation11 + $0x5ac] sm:$0xf0]  ;;  %v11962_v39 = vld [vmem:[#allocation11 + $0x380] sm:$0xf] }
 0x2f6   : > { %4581 = vmatpush.bf16.msrb.mxu3 %v11627_v34  ;;  %v14838_v34 = vld [vmem:[#allocation11 + $0x6c] sm:$0xf0] }
 0x2f7   : > { %3610 = vmatmul.bf16.vlgmr.msra.gmra.mxu3 %v17242_v13  ;;  %3634 = vmatpush.bf16.msrb.mxu0 %v11347_v30  ;;  %v11690_v13 = vld [vmem:[#allocation11 + $0x160] sm:$0xf]  ;;  %v11563_v42 = vor.u32 %v14838_v34, %v11562_v1  ;;  %v14938_v52 = vld [vmem:[#allocation11 + $0x38c] sm:$0xf0] }
 0x2f8   : > { %v11691_v5 = vor.u32 %v14870_v45, %v11690_v13  ;;  %v11850_v30 = vld [vmem:[#allocation11 + $0x2a0] sm:$0xf]  ;;  %v3345_v17 = vpop.f32.mrf.mxu3  ;;  %v14902_v13 = vld [vmem:[#allocation11 + $0x26c] sm:$0xf0] }
 0x2f9   : > { %3650 = vmatpush.bf16.msrb.mxu2 %v11443_v2  ;;  %4597 = vmatpush.bf16.msra.mxu1 %v11723_v38  ;;  %v17281_v37 = vadd.f32 %v3345_v17, %v3331_v31  ;;  %v11675_v2 = vor.u32 %v14866_v25, %v11674_v26  ;;  %v11546_v38 = vld [vmem:[#allocation11 + $0x40] sm:$0xf]  ;;  %v11851_v60 = vor.u32 %v14910_v32, %v11850_v30  ;;  %v14898_v26 = vld [vmem:[#allocation11 + $0x24c] sm:$0xf0] }
 0x2fa   : > { %4582 = vmatpush.bf16.msrb.mxu3 %v11611_v16  ;;  %v14946_v16 = vld [vmem:[#allocation11 + $0x3cc] sm:$0xf0]  ;;  %v11547_v33 = vor.u32 %v14834_v27, %v11546_v38  ;;  %v12234_v45 = vld [vmem:[#allocation11 + $0x5a0] sm:$0xf] }
 0x2fb   : > { %3635 = vmatpush.bf16.msrb.mxu0 %v11331_v8  ;;  %v14862_v8 = vld [vmem:[#allocation11 + $0x12c] sm:$0xf0]  ;;  %v11995_v51 = vor.u32 %v14946_v16, %v11994_v0  ;;  %v11802_v1 = vld [vmem:[#allocation11 + $0x240] sm:$0xf] }
 0x2fc   : > { %v11659_v7 = vor.u32 %v14862_v8, %v11658_v53  ;;  %v12138_v34 = vld [vmem:[#allocation11 + $0x4e0] sm:$0xf]  ;;  %v14934_v31 = vld [vmem:[#allocation11 + $0x36c] sm:$0xf0] }
 0x2fd   : > { %3651 = vmatpush.bf16.msrb.mxu2 %v11427_v44  ;;  %4598 = vmatpush.bf16.msra.mxu1 %v11707_v24  ;;  %v14830_v44 = vld [vmem:[#allocation11 + $0x2c] sm:$0xf0]  ;;  %v12218_v25 = vld [vmem:[#allocation11 + $0x580] sm:$0xf] }
 0x2fe   : > { %4583 = vmatpush.bf16.msrb.mxu3 %v11595_v19  ;;  %v11530_v19 = vld [vmem:[#allocation11 + $0x20] sm:$0xf]  ;;  %v14978_v38 = vld [vmem:[#allocation11 + $0x4cc] sm:$0xf0] }
 0x2ff   : > { %3636 = vmatpush.bf16.msrb.mxu0 %v11315_v59  ;;  %v11979_v59 = vor.u32 %v14942_v22, %v11978_v62  ;;  %v11531_v29 = vor.u32 %v14830_v44, %v11530_v19  ;;  %v11946_v32 = vld [vmem:[#allocation11 + $0x360] sm:$0xf]  ;;  %v14998_v8 = vld [vmem:[#allocation11 + $0x56c] sm:$0xf0] }
 0x300   : > { %11511 = vmatmul.msk.bf16.vlgmr.msrb.gmra.mxu2 %vm1913_vm5, %v17246_v35  ;;  %v14906_v35 = vld [vmem:[#allocation11 + $0x28c] sm:$0xf0]  ;;  %v11786_v16 = vld [vmem:[#allocation11 + $0x220] sm:$0xf]  ;;  %v11947_v27 = vor.u32 %v14934_v31, %v11946_v32  ;;  %v17285_v62 = vpop.f32.mrf.mxu3 }
 0x301   : > { %4609 = vmatpush.bf16.msra.mxu2 %v11883_v11  ;;  %4599 = vmatpush.bf16.msra.mxu1 %v11691_v5  ;;  %v11835_v24 = vor.u32 %v14906_v35, %v11834_v54  ;;  %v11818_v11 = vld [vmem:[#allocation11 + $0x260] sm:$0xf]  ;;  %v12235_v5 = vor.u32 %v15006_v55, %v12234_v45  ;;  %v14930_v54 = vld [vmem:[#allocation11 + $0x34c] sm:$0xf0]  ;;  %v14852_v45 = vld [vmem:[#allocation11 + $0xe4] sm:$0xf] }
 0x302   : > { %4584 = vmatpush.bf16.msrb.mxu3 %v11579_v61  ;;  %v11643_v61 = vor.u32 %v14858_v14, %v11642_v18  ;;  %v11819_v58 = vor.u32 %v14902_v13, %v11818_v11  ;;  %v12202_v53 = vld [vmem:[#allocation11 + $0x560] sm:$0xf]  ;;  %v14890_v19 = vld [vmem:[#allocation11 + $0x20c] sm:$0xf0]  ;;  %v17287_v18 = vpop.f32.mrf.mxu2 }
 0x303   : > { %3637 = vmatpush.bf16.msrb.mxu0 %v11299_v43  ;;  %v11963_v43 = vor.u32 %v14938_v52, %v11962_v39  ;;  %v12106_v44 = vld [vmem:[#allocation11 + $0x4a0] sm:$0xf]  ;;  %v14994_v13 = vld [vmem:[#allocation11 + $0x54c] sm:$0xf0] }
 0x304   : > { %v11914_v39 = vld [vmem:[#allocation11 + $0x320] sm:$0xf]  ;;  %v14926_v52 = vld [vmem:[#allocation11 + $0x32c] sm:$0xf0] }
 0x305   : > { %4610 = vmatpush.bf16.msra.mxu2 %v11867_v12  ;;  %4600 = vmatpush.bf16.msra.mxu1 %v11675_v2  ;;  %v14982_v12 = vld [vmem:[#allocation11 + $0x4ec] sm:$0xf0]  ;;  %v12122_v2 = vld [vmem:[#allocation11 + $0x4c0] sm:$0xf] }
 0x306   : > { %4585 = vmatpush.bf16.msrb.mxu3 %v11563_v42  ;;  %3638 = vmatmul.bf16.vlgmr.msrb.gmra.mxu0 %v17255_v4  ;;  %v11514_v4 = vld [vmem:[#allocation11] sm:$0xf]  ;;  %v12139_v17 = vor.u32 %v14982_v12, %v12138_v34  ;;  %v11803_v42 = vor.u32 %v14898_v26, %v11802_v1  ;;  %v12123_v35 = vor.u32 %v14978_v38, %v12122_v2  ;;  %v14970_v34 = vld [vmem:[#allocation11 + $0x48c] sm:$0xf0] }
 0x307   : > { %4623 = vmatpush.bf16.msra.mxu0 %v12011_v21  ;;  %v15002_v21 = vld [vmem:[#allocation11 + $0x58c] sm:$0xf0]  ;;  %v11515_v30 = vor.u32 %v14826_v48, %v11514_v4  ;;  %v12090_v1 = vld [vmem:[#allocation11 + $0x480] sm:$0xf] }
 0x308   : > { %v12219_v0 = vor.u32 %v15002_v21, %v12218_v25  ;;  %v12170_v26 = vld [vmem:[#allocation11 + $0x520] sm:$0xf]  ;;  %v14990_v25 = vld [vmem:[#allocation11 + $0x52c] sm:$0xf0]  ;;  %v14848_v21 = vld [vmem:[#allocation11 + $0xc4] sm:$0xf]  ;;  %v12091_v31 = vor.u32 %v14970_v34, %v12090_v1 }
 0x309   : > { %4611 = vmatpush.bf16.msra.mxu2 %v11851_v60  ;;  %4601 = vmatpush.bf16.msra.mxu1 %v11659_v7  ;;  %v14894_v60 = vld [vmem:[#allocation11 + $0x22c] sm:$0xf0]  ;;  %v12203_v7 = vor.u32 %v14998_v8, %v12202_v53  ;;  %v12074_v2 = vld [vmem:[#allocation11 + $0x460] sm:$0xf]  ;;  %v14876_v34 = vld [vmem:[#allocation11 + $0x1a4] sm:$0xf] }
 0x30a   : > { %4586 = vmatpush.bf16.msrb.mxu3 %v11547_v33  ;;  %v11770_v33 = vld [vmem:[#allocation11 + $0x200] sm:$0xf]  ;;  %v11787_v22 = vor.u32 %v14894_v60, %v11786_v16  ;;  %v14922_v32 = vld [vmem:[#allocation11 + $0x30c] sm:$0xf0]  ;;  %v12171_v16 = vor.u32 %v14990_v25, %v12170_v26 }
 0x30b   : > { %4624 = vmatpush.bf16.msra.mxu0 %v11995_v51  ;;  %v11930_v51 = vld [vmem:[#allocation11 + $0x340] sm:$0xf]  ;;  %v3359_v14 = vpop.f32.mrf.mxu0  ;;  %v14966_v38 = vld [vmem:[#allocation11 + $0x46c] sm:$0xf0] }
 0x30c   : > { %v11931_v11 = vor.u32 %v14930_v54, %v11930_v51  ;;  %v3360_v55 = vadd.f32 %v3359_v14, %v17281_v37  ;;  %v11612_v37 = vld [vmem:[#allocation11 + $0xd0] sm:$0xf0]  ;;  %v12154_v51 = vld [vmem:[#allocation11 + $0x500] sm:$0xf]  ;;  %v14986_v54 = vld [vmem:[#allocation11 + $0x50c] sm:$0xf0] }
 0x30d   : > { %4612 = vmatpush.bf16.msra.mxu2 %v11835_v24  ;;  %4602 = vmatpush.bf16.msra.mxu1 %v11643_v61  ;;  %v14974_v24 = vld [vmem:[#allocation11 + $0x4ac] sm:$0xf0]  ;;  %v3373_v61 = vpop.f32.mrf.mxu1  ;;  %v11615_v53 = vor.u32 %v14848_v21, %v11612_v37  ;;  %v14880_v14 = vld [vmem:[#allocation11 + $0x1c4] sm:$0xf]  ;;  %v12042_v26 = vld [vmem:[#allocation11 + $0x420] sm:$0xf] }
 0x30e   : > { %4587 = vmatpush.bf16.msrb.mxu3 %v11531_v29  ;;  %v11628_v29 = vld [vmem:[#allocation11 + $0xf0] sm:$0xf0]  ;;  %v12107_v4 = vor.u32 %v14974_v24, %v12106_v44  ;;  %v3374_v48 = vadd.f32 %v3373_v61, %v3360_v55  ;;  %v12075_v24 = vor.u32 %v14966_v38, %v12074_v2  ;;  %v14962_v55 = vld [vmem:[#allocation11 + $0x44c] sm:$0xf0]  ;;  %v14840_v61 = vld [vmem:[#allocation11 + $0x84] sm:$0xf] }
 0x30f   : > { %4625 = vmatpush.bf16.msra.mxu0 %v11979_v59  ;;  %v12186_v59 = vld [vmem:[#allocation11 + $0x540] sm:$0xf]  ;;  %v11631_v12 = vor.u32 %v14852_v45, %v11628_v29  ;;  %v11884_v44 = vld [vmem:[#allocation11 + $0x2f0] sm:$0xf0]  ;;  %v14958_v25 = vld [vmem:[#allocation11 + $0x42c] sm:$0xf0] }
 0x310   : > { %4603 = vmatmul.bf16.vlgmr.msra.gmra.mxu1 %v17153_v36  ;;  %v12058_v45 = vld [vmem:[#allocation11 + $0x440] sm:$0xf]  ;;  %v12043_v2 = vor.u32 %v14958_v25, %v12042_v26  ;;  %v14872_v38 = vld [vmem:[#allocation11 + $0x184] sm:$0xf]  ;;  %v11532_v26 = vld [vmem:[#allocation11 + $0x30] sm:$0xf0] }
 0x311   : > { %4613 = vmatpush.bf16.msra.mxu2 %v11819_v58  ;;  %4653 = vmatpush.bf16.msrb.mxu1 %v12235_v5  ;;  %v11771_v58 = vor.u32 %v14890_v19, %v11770_v33  ;;  %v12187_v5 = vor.u32 %v14994_v13, %v12186_v59  ;;  %v14916_v19 = vld [vmem:[#allocation11 + $0x2e4] sm:$0xf]  ;;  %v12155_v13 = vor.u32 %v14986_v54, %v12154_v51 }
 0x312   : > { %4588 = vmatpush.bf16.msrb.mxu3 %v11515_v30  ;;  %v11898_v30 = vld [vmem:[#allocation11 + $0x300] sm:$0xf]  ;;  %v12059_v1 = vor.u32 %v14962_v55, %v12058_v45  ;;  %v11692_v45 = vld [vmem:[#allocation11 + $0x170] sm:$0xf0]  ;;  %v14900_v25 = vld [vmem:[#allocation11 + $0x264] sm:$0xf] }
 0x313   : > { %4626 = vmatpush.bf16.msra.mxu0 %v11963_v43  ;;  %v11915_v43 = vor.u32 %v14926_v52, %v11914_v39  ;;  %v17291_v60 = vpop.f32.mrf.mxu0  ;;  %v11899_v8 = vor.u32 %v14922_v32, %v11898_v30  ;;  %v11887_v52 = vor.u32 %v14916_v19, %v11884_v44  ;;  %v11548_v44 = vld [vmem:[#allocation11 + $0x50] sm:$0xf0] }
 0x315   : > { %4614 = vmatpush.bf16.msra.mxu2 %v11803_v42  ;;  %4654 = vmatpush.bf16.msrb.mxu1 %v12219_v0  ;;  %v11756_v42 = vld [vmem:[#allocation11 + $0x1f0] sm:$0xf0]  ;;  %v3401_v0 = vpop.f32.mrf.mxu3  ;;  %v17294_v59 = vpop.f32.mrf.mxu1 }
 0x316   : > { %4637 = vmatpush.bf16.msra.mxu3 %v12139_v17  ;;  %v14884_v17 = vld [vmem:[#allocation11 + $0x1e4] sm:$0xf] }
 0x317   : > { %4589 = vmatmul.bf16.vlgmr.msrb.gmra.mxu3 %v17115_v46  ;;  %4627 = vmatpush.bf16.msra.mxu0 %v11947_v27  ;;  %v3387_v27 = vpop.f32.mrf.mxu2 }
 0x318   : > { %v3388_v33 = vadd.f32 %v3387_v27, %v3374_v48  ;;  %v11580_v48 = vld [vmem:[#allocation11 + $0x90] sm:$0xf0] }
 0x319   : > { %4615 = vmatpush.bf16.msra.mxu2 %v11787_v22  ;;  %4655 = vmatpush.bf16.msrb.mxu1 %v12203_v7  ;;  %v11759_v22 = vor.u32 %v14884_v17, %v11756_v42  ;;  %v11596_v7 = vld [vmem:[#allocation11 + $0xb0] sm:$0xf0]  ;;  %v11583_v30 = vor.u32 %v14840_v61, %v11580_v48 }
 0x31a   : > { %4638 = vmatpush.bf16.msra.mxu3 %v12123_v35  ;;  %v14844_v35 = vld [vmem:[#allocation11 + $0xa4] sm:$0xf]  ;;  %v17296_v29 = vadd.f32 %v3401_v0, %v3388_v33  ;;  %v11564_v42 = vld [vmem:[#allocation11 + $0x70] sm:$0xf0] }
 0x31b   : > { %4628 = vmatpush.bf16.msra.mxu0 %v11931_v11  ;;  %v11740_v11 = vld [vmem:[#allocation11 + $0x1d0] sm:$0xf0]  ;;  %v11599_v39 = vor.u32 %v14844_v35, %v11596_v7  ;;  %v3429_v37 = vpop.f32.mrf.mxu0  ;;  %v14908_v0 = vld [vmem:[#allocation11 + $0x2a4] sm:$0xf] }
 0x31c   : > { %v11708_v27 = vld [vmem:[#allocation11 + $0x190] sm:$0xf0]  ;;  %v14832_v35 = vld [vmem:[#allocation11 + $0x44] sm:$0xf] }
 0x31d   : > { %4616 = vmatpush.bf16.msra.mxu2 %v11771_v58  ;;  %4656 = vmatpush.bf16.msrb.mxu1 %v12187_v5  ;;  %v14912_v58 = vld [vmem:[#allocation11 + $0x2c4] sm:$0xf]  ;;  %v11868_v5 = vld [vmem:[#allocation11 + $0x2d0] sm:$0xf0]  ;;  %v3443_v7 = vpop.f32.mrf.mxu1  ;;  %v11711_v19 = vor.u32 %v14872_v38, %v11708_v27 }
 0x31e   : > { %4639 = vmatpush.bf16.msra.mxu3 %v12107_v4  ;;  %v11743_v4 = vor.u32 %v14880_v14, %v11740_v11  ;;  %v11871_v32 = vor.u32 %v14912_v58, %v11868_v5  ;;  %v14948_v33 = vld [vmem:[#allocation11 + $0x3e4] sm:$0xf]  ;;  %v11836_v14 = vld [vmem:[#allocation11 + $0x290] sm:$0xf0] }
 0x31f   : > { %4629 = vmatpush.bf16.msra.mxu0 %v11915_v43  ;;  %v17298_v43 = vpop.f32.mrf.mxu3  ;;  %v17301_v21 = vpop.f32.mrf.mxu2  ;;  %v14828_v58 = vld [vmem:[#allocation11 + $0x24] sm:$0xf]  ;;  %v11516_v38 = vld [vmem:[#allocation11 + $0x10] sm:$0xf0] }
 0x320   : > { %4617 = vmatmul.bf16.vlgmr.msra.gmra.mxu2 %v17217_v49  ;;  %v14944_v5 = vld [vmem:[#allocation11 + $0x3c4] sm:$0xf] }
 0x321   : > { %4665 = vmatpush.bf16.msrb.mxu2 %v11631_v12  ;;  %4657 = vmatpush.bf16.msrb.mxu1 %v12171_v16  ;;  %v11724_v12 = vld [vmem:[#allocation11 + $0x1b0] sm:$0xf0]  ;;  %v14940_v27 = vld [vmem:[#allocation11 + $0x3a4] sm:$0xf] }
 0x322   : > { %4640 = vmatpush.bf16.msra.mxu3 %v12091_v31  ;;  %v14836_v31 = vld [vmem:[#allocation11 + $0x64] sm:$0xf]  ;;  %v11727_v17 = vor.u32 %v14876_v34, %v11724_v12  ;;  %v11852_v16 = vld [vmem:[#allocation11 + $0x2b0] sm:$0xf0] }
 0x323   : > { %4630 = vmatpush.bf16.msra.mxu0 %v11899_v8  ;;  %v14954_v8 = vld [vmem:[#allocation11 + $0x40c] sm:$0xf0]  ;;  %v11567_v51 = vor.u32 %v14836_v31, %v11564_v42  ;;  %v11855_v54 = vor.u32 %v14908_v0, %v11852_v16  ;;  %v17305_v34 = vpop.f32.mrf.mxu0  ;;  %v14864_v31 = vld [vmem:[#allocation11 + $0x144] sm:$0xf]  ;;  %v11535_v16 = vor.u32 %v14828_v58, %v11532_v26 }
 0x324   : > { %18003 = vst [vmem:[#allocation26_spill] sm:$0xff] %v17305_v34  ;;  %v14856_v58 = vld [vmem:[#allocation11 + $0x104] sm:$0xf] }
 0x325   : > { %4666 = vmatpush.bf16.msrb.mxu2 %v11615_v53  ;;  %4658 = vmatpush.bf16.msrb.mxu1 %v12155_v13  ;;  %v12026_v53 = vld [vmem:[#allocation11 + $0x400] sm:$0xf]  ;;  %v14868_v13 = vld [vmem:[#allocation11 + $0x164] sm:$0xf] }
 0x326   : > { %4641 = vmatpush.bf16.msra.mxu3 %v12075_v24  ;;  %4631 = vmatmul.bf16.vlgmr.msra.gmra.mxu0 %v17214_v40  ;;  %v14904_v24 = vld [vmem:[#allocation11 + $0x284] sm:$0xf]  ;;  %v12027_v11 = vor.u32 %v14954_v8, %v12026_v53  ;;  %v11695_v12 = vor.u32 %v14868_v13, %v11692_v45  ;;  %v11980_v53 = vld [vmem:[#allocation11 + $0x3b0] sm:$0xf0] }
 0x327   : > { %4679 = vmatpush.bf16.msrb.mxu0 %v11759_v22  ;;  %v12012_v22 = vld [vmem:[#allocation11 + $0x3f0] sm:$0xf0]  ;;  %v3415_v55 = vpop.f32.mrf.mxu3  ;;  %v3457_v61 = vpop.f32.mrf.mxu2  ;;  %v11839_v48 = vor.u32 %v14904_v24, %v11836_v14  ;;  %v14936_v13 = vld [vmem:[#allocation11 + $0x384] sm:$0xf] }
 0x328   : > { %12248 = vmatmul.msk.bf16.vlgmr.msrb.gmra.mxu1 %vm1913_vm5, %v17223_v47  ;;  %v11964_v45 = vld [vmem:[#allocation11 + $0x390] sm:$0xf0]  ;;  %v15004_v26 = vld [vmem:[#allocation11 + $0x5a4] sm:$0xf] }
 0x329   : > { %4667 = vmatpush.bf16.msrb.mxu2 %v11599_v39  ;;  %4693 = vmatpush.bf16.msra.mxu1 %v11887_v52  ;;  %v12015_v39 = vor.u32 %v14948_v33, %v12012_v22  ;;  %v3430_v52 = vadd.f32 %v3429_v37, %v3415_v55  ;;  %v14824_v37 = vld [vmem:[#allocation11 + $0x4] sm:$0xf]  ;;  %v12140_v33 = vld [vmem:[#allocation11 + $0x4f0] sm:$0xf0] }
 0x32a   : > { %4642 = vmatpush.bf16.msra.mxu3 %v12059_v1  ;;  %v11996_v1 = vld [vmem:[#allocation11 + $0x3d0] sm:$0xf0]  ;;  %v14860_v22 = vld [vmem:[#allocation11 + $0x124] sm:$0xf]  ;;  %v11519_v14 = vor.u32 %v14824_v37, %v11516_v38 }
 0x32b   : > { %4680 = vmatpush.bf16.msrb.mxu0 %v11743_v4  ;;  %v11551_v4 = vor.u32 %v14832_v35, %v11548_v44  ;;  %v11999_v42 = vor.u32 %v14944_v5, %v11996_v1  ;;  %v14980_v35 = vld [vmem:[#allocation11 + $0x4e4] sm:$0xf]  ;;  %v11983_v44 = vor.u32 %v14940_v27, %v11980_v53  ;;  %v11644_v5 = vld [vmem:[#allocation11 + $0x110] sm:$0xf0]  ;;  %v17314_v1 = vpop.f32.mrf.mxu0 }
 0x32c   : > { %v12143_v55 = vor.u32 %v14980_v35, %v12140_v33  ;;  %v11647_v37 = vor.u32 %v14856_v58, %v11644_v5  ;;  %v14972_v38 = vld [vmem:[#allocation11 + $0x4a4] sm:$0xf]  ;;  %v12108_v53 = vld [vmem:[#allocation11 + $0x4b0] sm:$0xf0] }
 0x32d   : > { %4668 = vmatpush.bf16.msrb.mxu2 %v11583_v30  ;;  %4694 = vmatpush.bf16.msra.mxu1 %v11871_v32  ;;  %v11820_v30 = vld [vmem:[#allocation11 + $0x270] sm:$0xf0]  ;;  %v3444_v32 = vadd.f32 %v3443_v7, %v3430_v52  ;;  %v14892_v52 = vld [vmem:[#allocation11 + $0x224] sm:$0xf] }
 0x32e   : > { %4643 = vmatpush.bf16.msra.mxu3 %v12043_v2  ;;  %v11823_v2 = vor.u32 %v14900_v25, %v11820_v30  ;;  %v11660_v7 = vld [vmem:[#allocation11 + $0x130] sm:$0xf0]  ;;  %v15000_v35 = vld [vmem:[#allocation11 + $0x584] sm:$0xf] }
 0x32f   : > { %4681 = vmatpush.bf16.msrb.mxu0 %v11727_v17  ;;  %v11676_v17 = vld [vmem:[#allocation11 + $0x150] sm:$0xf0]  ;;  %v17307_v0 = vadd.f32 %v3457_v61, %v3444_v32  ;;  %v17312_v24 = vpop.f32.mrf.mxu2  ;;  %v17316_v30 = vpop.f32.mrf.mxu3  ;;  %v14996_v5 = vld [vmem:[#allocation11 + $0x564] sm:$0xf] }
 0x330   : > { %v11679_v8 = vor.u32 %v14864_v31, %v11676_v17  ;;  %18005 = vst [vmem:[#allocation28_spill] sm:$0xff] %v17312_v24  ;;  %v11788_v61 = vld [vmem:[#allocation11 + $0x230] sm:$0xf0]  ;;  %v14932_v31 = vld [vmem:[#allocation11 + $0x364] sm:$0xf] }
 0x331   : > { %4669 = vmatpush.bf16.msrb.mxu2 %v11567_v51  ;;  %4695 = vmatpush.bf16.msra.mxu1 %v11855_v54  ;;  %v14896_v51 = vld [vmem:[#allocation11 + $0x244] sm:$0xf]  ;;  %v11804_v54 = vld [vmem:[#allocation11 + $0x250] sm:$0xf0]  ;;  %18006 = vst [vmem:[#allocation29_spill] sm:$0xff] %v17316_v30  ;;  %v11791_v32 = vor.u32 %v14892_v52, %v11788_v61 }
 0x332   : > { %4644 = vmatpush.bf16.msra.mxu3 %v12027_v11  ;;  %v11807_v11 = vor.u32 %v14896_v51, %v11804_v54  ;;  %v12236_v25 = vld [vmem:[#allocation11 + $0x5b0] sm:$0xf0]  ;;  %v14855_v51 = vld [vmem:[#allocation11 + $0xf4] sm:$0xf0]  ;;  %v15358_v24 = vld [vmem:[#allocation11 + $0x10ac] sm:$0xf0] }
 0x333   : > { %4682 = vmatpush.bf16.msrb.mxu0 %v11711_v19  ;;  %v17310_v19 = vpop.f32.mrf.mxu1  ;;  %v11948_v17 = vld [vmem:[#allocation11 + $0x370] sm:$0xf0]  ;;  %v12239_v27 = vor.u32 %v15004_v26, %v12236_v25  ;;  %v14924_v25 = vld [vmem:[#allocation11 + $0x324] sm:$0xf] }
 0x334   : > { %18004 = vst [vmem:[#allocation27_spill] sm:$0xff] %v17310_v19  ;;  %v11951_v54 = vor.u32 %v14932_v31, %v11948_v17  ;;  %v12220_v33 = vld [vmem:[#allocation11 + $0x590] sm:$0xf0]  ;;  %v17320_v31 = vpop.f32.mrf.mxu0  ;;  %v15216_v19 = vld [vmem:[#allocation11 + $0xc44] sm:$0xf] }
 0x335   : > { %4670 = vmatpush.bf16.msrb.mxu2 %v11551_v4  ;;  %4696 = vmatpush.bf16.msra.mxu1 %v11839_v48  ;;  %v14976_v4 = vld [vmem:[#allocation11 + $0x4c4] sm:$0xf]  ;;  %v12124_v48 = vld [vmem:[#allocation11 + $0x4d0] sm:$0xf0]  ;;  %v12223_v52 = vor.u32 %v15000_v35, %v12220_v33  ;;  %18007 = vst [vmem:[#allocation30_spill] sm:$0xff] %v17320_v31 }
 0x336   : > { %4707 = vmatpush.bf16.msrb.mxu3 %v12015_v39  ;;  %v11663_v39 = vor.u32 %v14860_v22, %v11660_v7  ;;  %v14928_v7 = vld [vmem:[#allocation11 + $0x344] sm:$0xf]  ;;  %v12092_v61 = vld [vmem:[#allocation11 + $0x490] sm:$0xf0] }
 0x337   : > { %4645 = vmatmul.bf16.vlgmr.msra.gmra.mxu3 %v17220_v23  ;;  %4683 = vmatpush.bf16.msrb.mxu0 %v11695_v12  ;;  %v11967_v12 = vor.u32 %v14936_v13, %v11964_v45  ;;  %v12111_v13 = vor.u32 %v14972_v38, %v12108_v53  ;;  %v12076_v38 = vld [vmem:[#allocation11 + $0x470] sm:$0xf0]  ;;  %v14847_v53 = vld [vmem:[#allocation11 + $0xb4] sm:$0xf0]  ;;  %v15212_v30 = vld [vmem:[#allocation11 + $0xc24] sm:$0xf] }
 0x338   : > { %v11900_v33 = vld [vmem:[#allocation11 + $0x310] sm:$0xf0] }
 0x339   : > { %4671 = vmatpush.bf16.msrb.mxu2 %v11535_v16  ;;  %4697 = vmatpush.bf16.msra.mxu1 %v11823_v2  ;;  %v14888_v16 = vld [vmem:[#allocation11 + $0x204] sm:$0xf]  ;;  %v11772_v2 = vld [vmem:[#allocation11 + $0x210] sm:$0xf0] }
 0x33a   : > { %4708 = vmatpush.bf16.msrb.mxu3 %v11999_v42  ;;  %v12127_v42 = vor.u32 %v14976_v4, %v12124_v48  ;;  %v11775_v22 = vor.u32 %v14888_v16, %v11772_v2  ;;  %v11618_v4 = vld [vmem:[#allocation11 + $0xc8] sm:$0xf]  ;;  %v14851_v48 = vld [vmem:[#allocation11 + $0xd4] sm:$0xf0]  ;;  %v3471_v26 = vpop.f32.mrf.mxu3  ;;  %v14964_v16 = vld [vmem:[#allocation11 + $0x464] sm:$0xf] }
 0x33b   : > { %4684 = vmatpush.bf16.msrb.mxu0 %v11679_v8  ;;  %v11634_v8 = vld [vmem:[#allocation11 + $0xe8] sm:$0xf]  ;;  %v3472_v17 = vadd.f32 %v3471_v26, %v17307_v0  ;;  %v14920_v0 = vld [vmem:[#allocation11 + $0x304] sm:$0xf] }
 0x33c   : > { %v11635_v45 = vor.u32 %v14855_v51, %v11634_v8  ;;  %v14992_v51 = vld [vmem:[#allocation11 + $0x544] sm:$0xf] }
 0x33d   : > { %4672 = vmatpush.bf16.msrb.mxu2 %v11519_v14  ;;  %4698 = vmatpush.bf16.msra.mxu1 %v11807_v11  ;;  %v3499_v14 = vpop.f32.mrf.mxu1  ;;  %v3513_v11 = vpop.f32.mrf.mxu2  ;;  %v17325_v35 = vadd.f32 %v17314_v1, %v3472_v17  ;;  %v14956_v26 = vld [vmem:[#allocation11 + $0x424] sm:$0xf] }
 0x33e   : > { %4709 = vmatpush.bf16.msrb.mxu3 %v11983_v44  ;;  %v11932_v44 = vld [vmem:[#allocation11 + $0x350] sm:$0xf0] }
 0x33f   : > { %4685 = vmatpush.bf16.msrb.mxu0 %v11663_v39  ;;  %v3514_v39 = vadd.f32 %v3513_v11, %v3499_v14  ;;  %v11935_v58 = vor.u32 %v14928_v7, %v11932_v44  ;;  %v14960_v44 = vld [vmem:[#allocation11 + $0x444] sm:$0xf]  ;;  %v11762_v14 = vld [vmem:[#allocation11 + $0x1e8] sm:$0xf]  ;;  %v14887_v11 = vld [vmem:[#allocation11 + $0x1f4] sm:$0xf0] }
 0x340   : > { %4673 = vmatmul.bf16.vlgmr.msrb.gmra.mxu2 %v17115_v46  ;;  %v11763_v1 = vor.u32 %v14887_v11, %v11762_v14  ;;  %v11554_v14 = vld [vmem:[#allocation11 + $0x48] sm:$0xf]  ;;  %v14835_v11 = vld [vmem:[#allocation11 + $0x54] sm:$0xf0] }
 0x341   : > { %4721 = vmatpush.bf16.msra.mxu2 %v12143_v55  ;;  %4699 = vmatpush.bf16.msra.mxu1 %v11791_v32  ;;  %v14968_v55 = vld [vmem:[#allocation11 + $0x484] sm:$0xf]  ;;  %v11916_v32 = vld [vmem:[#allocation11 + $0x330] sm:$0xf0] }
 0x342   : > { %4710 = vmatpush.bf16.msrb.mxu3 %v11967_v12  ;;  %v12204_v12 = vld [vmem:[#allocation11 + $0x570] sm:$0xf0]  ;;  %v11919_v8 = vor.u32 %v14924_v25, %v11916_v32  ;;  %v11746_v25 = vld [vmem:[#allocation11 + $0x1c8] sm:$0xf]  ;;  %v14883_v32 = vld [vmem:[#allocation11 + $0x1d4] sm:$0xf0] }
 0x343   : > { %4686 = vmatpush.bf16.msrb.mxu0 %v11647_v37  ;;  %v11619_v37 = vor.u32 %v14851_v48, %v11618_v4  ;;  %v12207_v2 = vor.u32 %v14996_v5, %v12204_v12  ;;  %v14988_v4 = vld [vmem:[#allocation11 + $0x524] sm:$0xf]  ;;  %v12172_v48 = vld [vmem:[#allocation11 + $0x530] sm:$0xf0] }
 0x345   : > { %4722 = vmatpush.bf16.msra.mxu2 %v12127_v42  ;;  %4700 = vmatpush.bf16.msra.mxu1 %v11775_v22  ;;  %v12095_v42 = vor.u32 %v14968_v55, %v12092_v61  ;;  %v12079_v22 = vor.u32 %v14964_v16, %v12076_v38  ;;  %v11586_v55 = vld [vmem:[#allocation11 + $0x88] sm:$0xf]  ;;  %v11903_v61 = vor.u32 %v14920_v0, %v11900_v33  ;;  %v14984_v38 = vld [vmem:[#allocation11 + $0x504] sm:$0xf] }
 0x346   : > { %4711 = vmatpush.bf16.msrb.mxu3 %v11951_v54  ;;  %4687 = vmatmul.bf16.vlgmr.msrb.gmra.mxu0 %v17153_v36  ;;  %v12188_v54 = vld [vmem:[#allocation11 + $0x550] sm:$0xf0]  ;;  %v11570_v16 = vld [vmem:[#allocation11 + $0x68] sm:$0xf]  ;;  %v14952_v33 = vld [vmem:[#allocation11 + $0x404] sm:$0xf] }
 0x347   : > { %4737 = vmatpush.bf16.msra.mxu0 %v12239_v27  ;;  %v11602_v27 = vld [vmem:[#allocation11 + $0xa8] sm:$0xf] }
 0x348   : > { %4701 = vmatmul.bf16.vlgmr.msra.gmra.mxu1 %v17217_v49  ;;  %v11603_v7 = vor.u32 %v14847_v53, %v11602_v27  ;;  %v12156_v27 = vld [vmem:[#allocation11 + $0x510] sm:$0xf0]  ;;  %v11747_v53 = vor.u32 %v14883_v32, %v11746_v25  ;;  %v14831_v25 = vld [vmem:[#allocation11 + $0x34] sm:$0xf0] }
 0x349   : > { %4723 = vmatpush.bf16.msra.mxu2 %v12111_v13  ;;  %4749 = vmatpush.bf16.msrb.mxu1 %v11635_v45  ;;  %v12191_v13 = vor.u32 %v14992_v51, %v12188_v54  ;;  %v12060_v45 = vld [vmem:[#allocation11 + $0x450] sm:$0xf0]  ;;  %v14919_v51 = vld [vmem:[#allocation11 + $0x2f4] sm:$0xf0] }
 0x34a   : > { %4712 = vmatpush.bf16.msrb.mxu3 %v11935_v58  ;;  %v3527_v58 = vpop.f32.mrf.mxu0  ;;  %v12063_v5 = vor.u32 %v14960_v44, %v12060_v45  ;;  %v12028_v44 = vld [vmem:[#allocation11 + $0x410] sm:$0xf0]  ;;  %v12018_v45 = vld [vmem:[#allocation11 + $0x3e8] sm:$0xf] }
 0x34b   : > { %4738 = vmatpush.bf16.msra.mxu0 %v12223_v52  ;;  %v14843_v52 = vld [vmem:[#allocation11 + $0x94] sm:$0xf0]  ;;  %v17327_v17 = vadd.f32 %v3527_v58, %v3514_v39  ;;  %v11714_v58 = vld [vmem:[#allocation11 + $0x188] sm:$0xf] }
 0x34c   : > { %v11587_v12 = vor.u32 %v14843_v52, %v11586_v55  ;;  %v14879_v39 = vld [vmem:[#allocation11 + $0x1b4] sm:$0xf0] }
 0x34d   : > { %4724 = vmatpush.bf16.msra.mxu2 %v12095_v42  ;;  %4750 = vmatpush.bf16.msrb.mxu1 %v11619_v37  ;;  %v12175_v42 = vor.u32 %v14988_v4, %v12172_v48  ;;  %v12044_v37 = vld [vmem:[#allocation11 + $0x430] sm:$0xf0]  ;;  %v14951_v55 = vld [vmem:[#allocation11 + $0x3f4] sm:$0xf0]  ;;  %v12031_v48 = vor.u32 %v14952_v33, %v12028_v44  ;;  %v11522_v33 = vld [vmem:[#allocation11 + $0x8] sm:$0xf] }
 0x34e   : > { %4713 = vmatpush.bf16.msrb.mxu3 %v11919_v8  ;;  %v11890_v8 = vld [vmem:[#allocation11 + $0x2e8] sm:$0xf]  ;;  %v12047_v54 = vor.u32 %v14956_v26, %v12044_v37  ;;  %v14915_v4 = vld [vmem:[#allocation11 + $0x2d4] sm:$0xf0] }
 0x34f   : > { %4739 = vmatpush.bf16.msra.mxu0 %v12207_v2  ;;  %v14839_v2 = vld [vmem:[#allocation11 + $0x74] sm:$0xf0]  ;;  %v11538_v26 = vld [vmem:[#allocation11 + $0x28] sm:$0xf] }
 0x350   : > { %v11571_v0 = vor.u32 %v14839_v2, %v11570_v16  ;;  %v14947_v37 = vld [vmem:[#allocation11 + $0x3d4] sm:$0xf0]  ;;  %v11858_v2 = vld [vmem:[#allocation11 + $0x2a8] sm:$0xf] }
 0x351   : > { %4725 = vmatpush.bf16.msra.mxu2 %v12079_v22  ;;  %4751 = vmatpush.bf16.msrb.mxu1 %v11603_v7  ;;  %v11730_v22 = vld [vmem:[#allocation11 + $0x1a8] sm:$0xf]  ;;  %v12159_v7 = vor.u32 %v14984_v38, %v12156_v27  ;;  %v14911_v38 = vld [vmem:[#allocation11 + $0x2b4] sm:$0xf0]  ;;  %v17330_v27 = vpop.f32.mrf.mxu2 }
 0x352   : > { %4714 = vmatpush.bf16.msrb.mxu3 %v11903_v61  ;;  %v11731_v52 = vor.u32 %v14879_v39, %v11730_v22  ;;  %v11874_v61 = vld [vmem:[#allocation11 + $0x2c8] sm:$0xf]  ;;  %18008 = vst [vmem:[#allocation31_spill] sm:$0xff] %v17330_v27  ;;  %v14827_v22 = vld [vmem:[#allocation11 + $0x14] sm:$0xf0]  ;;  %v11859_v44 = vor.u32 %v14911_v38, %v11858_v2 }
 0x353   : > { %4740 = vmatpush.bf16.msra.mxu0 %v12191_v13  ;;  %v11891_v13 = vor.u32 %v14919_v51, %v11890_v8  ;;  %v11875_v32 = vor.u32 %v14915_v4, %v11874_v61  ;;  %v11539_v8 = vor.u32 %v14831_v25, %v11538_v26  ;;  %v11698_v51 = vld [vmem:[#allocation11 + $0x168] sm:$0xf]  ;;  %v11523_v61 = vor.u32 %v14827_v22, %v11522_v33  ;;  %v14939_v26 = vld [vmem:[#allocation11 + $0x394] sm:$0xf0]  ;;  %v14953_v27 = vld [vmem:[#allocation11 + $0x40c] sm:$0xf] }
 0x354   : > { %v11986_v39 = vld [vmem:[#allocation11 + $0x3a8] sm:$0xf] }
 0x355   : > { %4726 = vmatpush.bf16.msra.mxu2 %v12063_v5  ;;  %4752 = vmatpush.bf16.msrb.mxu1 %v11587_v12  ;;  %v14875_v5 = vld [vmem:[#allocation11 + $0x194] sm:$0xf0]  ;;  %v12019_v12 = vor.u32 %v14951_v55, %v12018_v45  ;;  %v11842_v55 = vld [vmem:[#allocation11 + $0x288] sm:$0xf] }
 0x356   : > { %4763 = vmatpush.bf16.msra.mxu3 %v11763_v1  ;;  %v11555_v1 = vor.u32 %v14835_v11, %v11554_v14  ;;  %v11715_v16 = vor.u32 %v14875_v5, %v11714_v58  ;;  %v14943_v14 = vld [vmem:[#allocation11 + $0x3b4] sm:$0xf0]  ;;  %v12146_v11 = vld [vmem:[#allocation11 + $0x4e8] sm:$0xf] }
 0x357   : > { %4715 = vmatmul.bf16.vlgmr.msrb.gmra.mxu3 %v17214_v40  ;;  %4741 = vmatpush.bf16.msra.mxu0 %v12175_v42  ;;  %v12002_v42 = vld [vmem:[#allocation11 + $0x3c8] sm:$0xf] }
 0x358   : > { %v11682_v4 = vld [vmem:[#allocation11 + $0x148] sm:$0xf] }
 0x359   : > { %4727 = vmatpush.bf16.msra.mxu2 %v12047_v54  ;;  %4753 = vmatpush.bf16.msrb.mxu1 %v11571_v0  ;;  %v14871_v54 = vld [vmem:[#allocation11 + $0x174] sm:$0xf0]  ;;  %v12003_v0 = vor.u32 %v14947_v37, %v12002_v42  ;;  %v11970_v5 = vld [vmem:[#allocation11 + $0x388] sm:$0xf]  ;;  %v3569_v2 = vpop.f32.mrf.mxu2 }
 0x35a   : > { %4764 = vmatpush.bf16.msra.mxu3 %v11747_v53  ;;  %v17332_v53 = vpop.f32.mrf.mxu3  ;;  %v11699_v45 = vor.u32 %v14871_v54, %v11698_v51  ;;  %v12130_v25 = vld [vmem:[#allocation11 + $0x4c8] sm:$0xf]  ;;  %v14863_v51 = vld [vmem:[#allocation11 + $0x134] sm:$0xf0] }
 0x35b   : > { %4742 = vmatpush.bf16.msra.mxu0 %v12159_v7  ;;  %18009 = vst [vmem:[#allocation32_spill] sm:$0xff] %v17332_v53  ;;  %v17336_v7 = vpop.f32.mrf.mxu1  ;;  %v11826_v37 = vld [vmem:[#allocation11 + $0x268] sm:$0xf]  ;;  %v15366_v53 = vld [vmem:[#allocation11 + $0x10ec] sm:$0xf0] }
 0x35c   : > { %18010 = vst [vmem:[#allocation33_spill] sm:$0xff] %v17336_v7  ;;  %v11954_v22 = vld [vmem:[#allocation11 + $0x368] sm:$0xf]  ;;  %v12036_v7 = vld [vmem:[#allocation11 + $0x418] sm:$0xf0] }
 0x35d   : > { %4728 = vmatpush.bf16.msra.mxu2 %v12031_v48  ;;  %4754 = vmatpush.bf16.msrb.mxu1 %v11555_v1  ;;  %v14867_v48 = vld [vmem:[#allocation11 + $0x154] sm:$0xf0]  ;;  %v11987_v1 = vor.u32 %v14943_v14, %v11986_v39 }
 0x35e   : > { %4765 = vmatpush.bf16.msra.mxu3 %v11731_v52  ;;  %12249 = vmatmul.msk.bf16.vlgmr.msra.gmra.mxu0 %vm1913_vm5, %v17223_v47  ;;  %v14907_v52 = vld [vmem:[#allocation11 + $0x294] sm:$0xf0]  ;;  %v11683_v42 = vor.u32 %v14867_v48, %v11682_v4  ;;  %v11650_v4 = vld [vmem:[#allocation11 + $0x108] sm:$0xf] }
 0x35f   : > { %4777 = vmatpush.bf16.msrb.mxu0 %v11891_v13  ;;  %v14983_v13 = vld [vmem:[#allocation11 + $0x4f4] sm:$0xf0] }
 0x360   : > { %4729 = vmatmul.bf16.vlgmr.msra.gmra.mxu2 %v17220_v23  ;;  %v12147_v58 = vor.u32 %v14983_v13, %v12146_v11  ;;  %v14935_v14 = vld [vmem:[#allocation11 + $0x374] sm:$0xf0]  ;;  %v12114_v11 = vld [vmem:[#allocation11 + $0x4a8] sm:$0xf] }
 0x361   : > { %4791 = vmatpush.bf16.msrb.mxu2 %v12019_v12  ;;  %4755 = vmatpush.bf16.msrb.mxu1 %v11539_v8  ;;  %v11843_v12 = vor.u32 %v14907_v52, %v11842_v55  ;;  %v11666_v8 = vld [vmem:[#allocation11 + $0x128] sm:$0xf]  ;;  %v14975_v13 = vld [vmem:[#allocation11 + $0x4b4] sm:$0xf0]  ;;  %v11955_v48 = vor.u32 %v14935_v14, %v11954_v22  ;;  %v17343_v14 = vpop.f32.mrf.mxu0 }
 0x362   : > { %4766 = vmatpush.bf16.msra.mxu3 %v11715_v16  ;;  %v14903_v16 = vld [vmem:[#allocation11 + $0x274] sm:$0xf0]  ;;  %v3541_v38 = vpop.f32.mrf.mxu3  ;;  %v11667_v55 = vor.u32 %v14863_v51, %v11666_v8  ;;  %v11810_v52 = vld [vmem:[#allocation11 + $0x248] sm:$0xf]  ;;  %18011 = vst [vmem:[#allocation34_spill] sm:$0xff] %v17343_v14 }
 0x363   : > { %4778 = vmatpush.bf16.msrb.mxu0 %v11875_v32  ;;  %v14979_v32 = vld [vmem:[#allocation11 + $0x4d4] sm:$0xf0]  ;;  %v3542_v54 = vadd.f32 %v3541_v38, %v17327_v17  ;;  %v3555_v39 = vpop.f32.mrf.mxu1  ;;  %v11794_v38 = vld [vmem:[#allocation11 + $0x228] sm:$0xf] }
 0x364   : > { %v12131_v33 = vor.u32 %v14979_v32, %v12130_v25  ;;  %v14859_v17 = vld [vmem:[#allocation11 + $0x114] sm:$0xf0]  ;;  %v12226_v22 = vld [vmem:[#allocation11 + $0x588] sm:$0xf] }
 0x365   : > { %4792 = vmatpush.bf16.msrb.mxu2 %v12003_v0  ;;  %4756 = vmatpush.bf16.msrb.mxu1 %v11523_v61  ;;  %v11971_v0 = vor.u32 %v14939_v26, %v11970_v5  ;;  %v14899_v61 = vld [vmem:[#allocation11 + $0x254] sm:$0xf0]  ;;  %v12242_v5 = vld [vmem:[#allocation11 + $0x5a8] sm:$0xf] }
 0x366   : > { %4767 = vmatpush.bf16.msra.mxu3 %v11699_v45  ;;  %v3556_v45 = vadd.f32 %v3555_v39, %v3542_v54  ;;  %v11811_v25 = vor.u32 %v14899_v61, %v11810_v52  ;;  %v14931_v32 = vld [vmem:[#allocation11 + $0x354] sm:$0xf0] }
 0x367   : > { %4779 = vmatpush.bf16.msrb.mxu0 %v11859_v44  ;;  %v11827_v44 = vor.u32 %v14903_v16, %v11826_v37  ;;  %v12098_v37 = vld [vmem:[#allocation11 + $0x488] sm:$0xf]  ;;  %v14971_v16 = vld [vmem:[#allocation11 + $0x494] sm:$0xf0] }
 0x368   : > { %4757 = vmatmul.bf16.vlgmr.msrb.gmra.mxu1 %v17115_v46  ;;  %v17341_v26 = vadd.f32 %v3569_v2, %v3556_v45  ;;  %v14895_v8 = vld [vmem:[#allocation11 + $0x234] sm:$0xf0]  ;;  %v17345_v2 = vpop.f32.mrf.mxu2 }
 0x369   : > { %4793 = vmatpush.bf16.msrb.mxu2 %v11987_v1  ;;  %4805 = vmatpush.bf16.msra.mxu1 %v12147_v58  ;;  %v12115_v1 = vor.u32 %v14975_v13, %v12114_v11  ;;  %v11938_v58 = vld [vmem:[#allocation11 + $0x348] sm:$0xf]  ;;  %v15003_v39 = vld [vmem:[#allocation11 + $0x594] sm:$0xf0]  ;;  %18012 = vst [vmem:[#allocation35_spill] sm:$0xff] %v17345_v2 }
 0x36a   : > { %4768 = vmatpush.bf16.msra.mxu3 %v11683_v42  ;;  %v11651_v42 = vor.u32 %v14859_v17, %v11650_v4  ;;  %v11939_v54 = vor.u32 %v14931_v32, %v11938_v58  ;;  %v14927_v11 = vld [vmem:[#allocation11 + $0x334] sm:$0xf0]  ;;  %v12082_v13 = vld [vmem:[#allocation11 + $0x468] sm:$0xf]  ;;  %v12227_v61 = vor.u32 %v15003_v39, %v12226_v22  ;;  %v14853_v4 = vld [vmem:[#allocation11 + $0xec] sm:$0xf] }
 0x36b   : > { %4780 = vmatpush.bf16.msrb.mxu0 %v11843_v12  ;;  %v15007_v12 = vld [vmem:[#allocation11 + $0x5b4] sm:$0xf0]  ;;  %v11636_v17 = vld [vmem:[#allocation11 + $0xf8] sm:$0xf0]  ;;  %v11906_v58 = vld [vmem:[#allocation11 + $0x308] sm:$0xf] }
 0x36c   : > { %v12243_v51 = vor.u32 %v15007_v12, %v12242_v5  ;;  %v14967_v45 = vld [vmem:[#allocation11 + $0x474] sm:$0xf0]  ;;  %v12210_v5 = vld [vmem:[#allocation11 + $0x568] sm:$0xf]  ;;  %v14849_v22 = vld [vmem:[#allocation11 + $0xcc] sm:$0xf] }
 0x36d   : > { %4794 = vmatpush.bf16.msrb.mxu2 %v11971_v0  ;;  %4806 = vmatpush.bf16.msra.mxu1 %v12131_v33  ;;  %v12099_v0 = vor.u32 %v14971_v16, %v12098_v37  ;;  %v11922_v33 = vld [vmem:[#allocation11 + $0x328] sm:$0xf]  ;;  %v14891_v52 = vld [vmem:[#allocation11 + $0x214] sm:$0xf0] }
 0x36e   : > { %4769 = vmatpush.bf16.msra.mxu3 %v11667_v55  ;;  %v11778_v55 = vld [vmem:[#allocation11 + $0x208] sm:$0xf]  ;;  %v14999_v12 = vld [vmem:[#allocation11 + $0x574] sm:$0xf0] }
 0x36f   : > { %4781 = vmatpush.bf16.msrb.mxu0 %v11827_v44  ;;  %v11795_v44 = vor.u32 %v14895_v8, %v11794_v38  ;;  %v14923_v32 = vld [vmem:[#allocation11 + $0x314] sm:$0xf0]  ;;  %v12066_v37 = vld [vmem:[#allocation11 + $0x448] sm:$0xf]  ;;  %v14885_v38 = vld [vmem:[#allocation11 + $0x1ec] sm:$0xf] }
 0x370   : > { %v14963_v16 = vld [vmem:[#allocation11 + $0x454] sm:$0xf0]  ;;  %v11764_v8 = vld [vmem:[#allocation11 + $0x1f8] sm:$0xf0]  ;;  %v12194_v39 = vld [vmem:[#allocation11 + $0x548] sm:$0xf] }
 0x371   : > { %4795 = vmatpush.bf16.msrb.mxu2 %v11955_v48  ;;  %4807 = vmatpush.bf16.msra.mxu1 %v12115_v1  ;;  %v11923_v48 = vor.u32 %v14927_v11, %v11922_v33  ;;  %v12083_v1 = vor.u32 %v14967_v45, %v12082_v13  ;;  %v12067_v33 = vor.u32 %v14963_v16, %v12066_v37  ;;  %v14995_v11 = vld [vmem:[#allocation11 + $0x554] sm:$0xf0]  ;;  %v3583_v13 = vpop.f32.mrf.mxu0  ;;  %v3597_v45 = vpop.f32.mrf.mxu2  ;;  %v12034_v16 = vld [vmem:[#allocation11 + $0x408] sm:$0xf] }
 0x372   : > { %4770 = vmatpush.bf16.msra.mxu3 %v11651_v42  ;;  %v11639_v42 = vor.u32 %v14853_v4, %v11636_v17  ;;  %v3598_v2 = vadd.f32 %v3597_v45, %v3583_v13  ;;  %v14881_v17 = vld [vmem:[#allocation11 + $0x1cc] sm:$0xf]  ;;  %v14991_v37 = vld [vmem:[#allocation11 + $0x534] sm:$0xf0]  ;;  %v12162_v45 = vld [vmem:[#allocation11 + $0x508] sm:$0xf] }
 0x373   : > { %4782 = vmatpush.bf16.msrb.mxu0 %v11811_v25  ;;  %v11779_v25 = vor.u32 %v14891_v52, %v11778_v55  ;;  %v12050_v55 = vld [vmem:[#allocation11 + $0x428] sm:$0xf]  ;;  %v14959_v52 = vld [vmem:[#allocation11 + $0x434] sm:$0xf0] }
 0x375   : > { %4796 = vmatpush.bf16.msrb.mxu2 %v11939_v54  ;;  %4808 = vmatpush.bf16.msra.mxu1 %v12099_v0  ;;  %v11620_v54 = vld [vmem:[#allocation11 + $0xd8] sm:$0xf0]  ;;  %v11907_v0 = vor.u32 %v14923_v32, %v11906_v58  ;;  %v12051_v58 = vor.u32 %v14959_v52, %v12050_v55  ;;  %v12178_v32 = vld [vmem:[#allocation11 + $0x528] sm:$0xf] }
 0x376   : > { %4821 = vmatpush.bf16.msrb.mxu3 %v12243_v51  ;;  %v12211_v51 = vor.u32 %v14999_v12, %v12210_v5  ;;  %v11623_v4 = vor.u32 %v14849_v22, %v11620_v54  ;;  %v12195_v5 = vor.u32 %v14995_v11, %v12194_v39  ;;  %v14845_v12 = vld [vmem:[#allocation11 + $0xac] sm:$0xf]  ;;  %v11732_v22 = vld [vmem:[#allocation11 + $0x1b8] sm:$0xf0] }
 0x377   : > { %4771 = vmatmul.bf16.vlgmr.msra.gmra.mxu3 %v17153_v36  ;;  %4783 = vmatpush.bf16.msrb.mxu0 %v11795_v44  ;;  %v11767_v44 = vor.u32 %v14885_v38, %v11764_v8  ;;  %v14877_v38 = vld [vmem:[#allocation11 + $0x1ac] sm:$0xf]  ;;  %v17351_v8 = vpop.f32.mrf.mxu1  ;;  %v12020_v39 = vld [vmem:[#allocation11 + $0x3f8] sm:$0xf0] }
 0x378   : > { %18014 = vst [vmem:[#allocation37_spill] sm:$0xff] %v17351_v8  ;;  %v14949_v54 = vld [vmem:[#allocation11 + $0x3ec] sm:$0xf]  ;;  %v11588_v11 = vld [vmem:[#allocation11 + $0x98] sm:$0xf0]  ;;  %v11735_v55 = vor.u32 %v14877_v38, %v11732_v22 }
 0x379   : > { %4797 = vmatpush.bf16.msrb.mxu2 %v11923_v48  ;;  %4809 = vmatpush.bf16.msra.mxu1 %v12083_v1  ;;  %v11604_v48 = vld [vmem:[#allocation11 + $0xb8] sm:$0xf0]  ;;  %v17348_v1 = vpop.f32.mrf.mxu3  ;;  %v12023_v52 = vor.u32 %v14949_v54, %v12020_v39  ;;  %v14945_v8 = vld [vmem:[#allocation11 + $0x3cc] sm:$0xf]  ;;  %v17356_v14 = vpop.f32.mrf.mxu2 }
 0x37a   : > { %4822 = vmatpush.bf16.msrb.mxu3 %v12227_v61  ;;  %v11748_v61 = vld [vmem:[#allocation11 + $0x1d8] sm:$0xf0]  ;;  %18013 = vst [vmem:[#allocation36_spill] sm:$0xff] %v17348_v1  ;;  %v14869_v54 = vld [vmem:[#allocation11 + $0x16c] sm:$0xf] }
 0x37b   : > { %4784 = vmatpush.bf16.msrb.mxu0 %v11779_v25  ;;  %v11751_v25 = vor.u32 %v14881_v17, %v11748_v61  ;;  %v14873_v17 = vld [vmem:[#allocation11 + $0x18c] sm:$0xf]  ;;  %v12004_v1 = vld [vmem:[#allocation11 + $0x3d8] sm:$0xf0]  ;;  %18016 = vst [vmem:[#allocation39_spill] sm:$0xff] %v17356_v14 }
 0x37c   : > { %v14917_v61 = vld [vmem:[#allocation11 + $0x2ec] sm:$0xf]  ;;  %v12007_v22 = vor.u32 %v14945_v8, %v12004_v1  ;;  %v11876_v39 = vld [vmem:[#allocation11 + $0x2d8] sm:$0xf0] }
 0x37d   : > { %4798 = vmatpush.bf16.msrb.mxu2 %v11907_v0  ;;  %4810 = vmatpush.bf16.msra.mxu1 %v12067_v33  ;;  %v12179_v0 = vor.u32 %v14991_v37, %v12178_v32  ;;  %v14841_v33 = vld [vmem:[#allocation11 + $0x8c] sm:$0xf]  ;;  %v11572_v37 = vld [vmem:[#allocation11 + $0x78] sm:$0xf0] }
 0x37e   : > { %4823 = vmatpush.bf16.msrb.mxu3 %v12211_v51  ;;  %4785 = vmatmul.bf16.vlgmr.msrb.gmra.mxu0 %v17217_v49  ;;  %v11607_v51 = vor.u32 %v14845_v12, %v11604_v48  ;;  %v11591_v12 = vor.u32 %v14841_v33, %v11588_v11  ;;  %v11716_v48 = vld [vmem:[#allocation11 + $0x198] sm:$0xf0]  ;;  %v14837_v32 = vld [vmem:[#allocation11 + $0x6c] sm:$0xf] }
 0x37f   : > { %4833 = vmatpush.bf16.msra.mxu0 %v11639_v42  ;;  %v14955_v42 = vld [vmem:[#allocation11 + $0x414] sm:$0xf0]  ;;  %v11719_v38 = vor.u32 %v14873_v17, %v11716_v48  ;;  %v3625_v33 = vpop.f32.mrf.mxu1  ;;  %v11575_v11 = vor.u32 %v14837_v32, %v11572_v37  ;;  %v14865_v17 = vld [vmem:[#allocation11 + $0x14c] sm:$0xf]  ;;  %v11684_v48 = vld [vmem:[#allocation11 + $0x158] sm:$0xf0] }
 0x380   : > { %4799 = vmatmul.bf16.vlgmr.msrb.gmra.mxu2 %v17214_v40  ;;  %v12035_v13 = vor.u32 %v14955_v42, %v12034_v16  ;;  %v17354_v42 = vpop.f32.mrf.mxu0  ;;  %v14937_v32 = vld [vmem:[#allocation11 + $0x38c] sm:$0xf]  ;;  %v11524_v14 = vld [vmem:[#allocation11 + $0x18] sm:$0xf0] }
 0x381   : > { %4847 = vmatpush.bf16.msra.mxu2 %v11767_v44  ;;  %4811 = vmatpush.bf16.msra.mxu1 %v12051_v58  ;;  %v14987_v44 = vld [vmem:[#allocation11 + $0x514] sm:$0xf0]  ;;  %v3611_v58 = vpop.f32.mrf.mxu3  ;;  %18015 = vst [vmem:[#allocation38_spill] sm:$0xff] %v17354_v42  ;;  %v14829_v37 = vld [vmem:[#allocation11 + $0x2c] sm:$0xf] }
 0x382   : > { %4824 = vmatpush.bf16.msrb.mxu3 %v12195_v5  ;;  %v12163_v5 = vor.u32 %v14987_v44, %v12162_v45  ;;  %v14941_v45 = vld [vmem:[#allocation11 + $0x3ac] sm:$0xf]  ;;  %v11988_v44 = vld [vmem:[#allocation11 + $0x3b8] sm:$0xf0] }
 0x383   : > { %4834 = vmatpush.bf16.msra.mxu0 %v11623_v4  ;;  %v11892_v4 = vld [vmem:[#allocation11 + $0x2f8] sm:$0xf0]  ;;  %v11991_v8 = vor.u32 %v14941_v45, %v11988_v44  ;;  %v14933_v45 = vld [vmem:[#allocation11 + $0x36c] sm:$0xf] }
 0x384   : > { %v11895_v16 = vor.u32 %v14917_v61, %v11892_v4  ;;  %v14909_v61 = vld [vmem:[#allocation11 + $0x2ac] sm:$0xf]  ;;  %v11860_v4 = vld [vmem:[#allocation11 + $0x2b8] sm:$0xf0] }
 0x385   : > { %4848 = vmatpush.bf16.msra.mxu2 %v11751_v25  ;;  %4812 = vmatpush.bf16.msra.mxu1 %v12035_v13  ;;  %v3612_v25 = vadd.f32 %v3611_v58, %v3598_v2  ;;  %v14833_v2 = vld [vmem:[#allocation11 + $0x4c] sm:$0xf]  ;;  %v11540_v58 = vld [vmem:[#allocation11 + $0x38] sm:$0xf0] }
 0x386   : > { %4825 = vmatpush.bf16.msrb.mxu3 %v12179_v0  ;;  %v11700_v0 = vld [vmem:[#allocation11 + $0x178] sm:$0xf0]  ;;  %v15005_v42 = vld [vmem:[#allocation11 + $0x5ac] sm:$0xf] }
 0x387   : > { %4835 = vmatpush.bf16.msra.mxu0 %v11607_v51  ;;  %v14913_v51 = vld [vmem:[#allocation11 + $0x2cc] sm:$0xf]  ;;  %v3626_v13 = vadd.f32 %v3625_v33, %v3612_v25  ;;  %v11703_v1 = vor.u32 %v14869_v54, %v11700_v0  ;;  %v11543_v0 = vor.u32 %v14829_v37, %v11540_v58  ;;  %v11956_v44 = vld [vmem:[#allocation11 + $0x378] sm:$0xf0] }
 0x388   : > { %4813 = vmatmul.bf16.vlgmr.msra.gmra.mxu1 %v17220_v23  ;;  %v3639_v25 = vpop.f32.mrf.mxu0  ;;  %v14861_v54 = vld [vmem:[#allocation11 + $0x12c] sm:$0xf]  ;;  %v11940_v58 = vld [vmem:[#allocation11 + $0x358] sm:$0xf0] }
 0x389   : > { %4849 = vmatpush.bf16.msra.mxu2 %v11735_v55  ;;  %4875 = vmatpush.bf16.msrb.mxu1 %v12023_v52  ;;  %v11556_v55 = vld [vmem:[#allocation11 + $0x58] sm:$0xf0]  ;;  %v11879_v52 = vor.u32 %v14913_v51, %v11876_v39  ;;  %v14905_v51 = vld [vmem:[#allocation11 + $0x28c] sm:$0xf]  ;;  %v3640_v33 = vadd.f32 %v3639_v25, %v3626_v13 }
 0x38a   : > { %4826 = vmatpush.bf16.msrb.mxu3 %v12163_v5  ;;  %v11972_v5 = vld [vmem:[#allocation11 + $0x398] sm:$0xf0]  ;;  %v14901_v13 = vld [vmem:[#allocation11 + $0x26c] sm:$0xf] }
 0x38b   : > { %4836 = vmatpush.bf16.msra.mxu0 %v11591_v12  ;;  %v11559_v12 = vor.u32 %v14833_v2, %v11556_v55  ;;  %v11844_v39 = vld [vmem:[#allocation11 + $0x298] sm:$0xf0]  ;;  %v3653_v2 = vpop.f32.mrf.mxu2  ;;  %v14825_v55 = vld [vmem:[#allocation11 + $0xc] sm:$0xf] }
 0x38c   : > { %v14929_v37 = vld [vmem:[#allocation11 + $0x34c] sm:$0xf] }
 0x38d   : > { %4850 = vmatpush.bf16.msra.mxu2 %v11719_v38  ;;  %4876 = vmatpush.bf16.msrb.mxu1 %v12007_v22  ;;  %v11687_v38 = vor.u32 %v14865_v17, %v11684_v48  ;;  %v11975_v22 = vor.u32 %v14937_v32, %v11972_v5  ;;  %v14857_v48 = vld [vmem:[#allocation11 + $0x10c] sm:$0xf]  ;;  %v11527_v32 = vor.u32 %v14825_v55, %v11524_v14  ;;  %v11652_v5 = vld [vmem:[#allocation11 + $0x118] sm:$0xf0] }
 0x38e   : > { %4861 = vmatpush.bf16.msra.mxu3 %v11895_v16  ;;  %v11863_v16 = vor.u32 %v14909_v61, %v11860_v4  ;;  %v14981_v61 = vld [vmem:[#allocation11 + $0x4ec] sm:$0xf]  ;;  %v11959_v4 = vor.u32 %v14933_v45, %v11956_v44  ;;  %v11924_v14 = vld [vmem:[#allocation11 + $0x338] sm:$0xf0] }
 0x38f   : > { %12250 = vmatmul.msk.bf16.vlgmr.msrb.gmra.mxu3 %vm1913_vm5, %v17223_v47  ;;  %4837 = vmatpush.bf16.msra.mxu0 %v11575_v11  ;;  %v11668_v11 = vld [vmem:[#allocation11 + $0x138] sm:$0xf0] }
 0x390   : > { %v11671_v17 = vor.u32 %v14861_v54, %v11668_v11  ;;  %v14897_v54 = vld [vmem:[#allocation11 + $0x24c] sm:$0xf]  ;;  %v11812_v11 = vld [vmem:[#allocation11 + $0x258] sm:$0xf0] }
 0x391   : > { %4851 = vmatpush.bf16.msra.mxu2 %v11703_v1  ;;  %4877 = vmatpush.bf16.msrb.mxu1 %v11991_v8  ;;  %v12148_v1 = vld [vmem:[#allocation11 + $0x4f8] sm:$0xf0]  ;;  %v17361_v8 = vadd.f32 %v3653_v2, %v3640_v33  ;;  %v15001_v2 = vld [vmem:[#allocation11 + $0x58c] sm:$0xf] }
 0x392   : > { %4862 = vmatpush.bf16.msra.mxu3 %v11879_v52  ;;  %v11847_v52 = vor.u32 %v14905_v51, %v11844_v39  ;;  %v12151_v25 = vor.u32 %v14981_v61, %v12148_v1  ;;  %v14977_v39 = vld [vmem:[#allocation11 + $0x4cc] sm:$0xf]  ;;  %v12132_v33 = vld [vmem:[#allocation11 + $0x4d8] sm:$0xf0]  ;;  %v11815_v61 = vor.u32 %v14897_v54, %v11812_v11 }
 0x393   : > { %4838 = vmatpush.bf16.msra.mxu0 %v11559_v12  ;;  %v11828_v12 = vld [vmem:[#allocation11 + $0x278] sm:$0xf0]  ;;  %v12135_v44 = vor.u32 %v14977_v39, %v12132_v33  ;;  %v14969_v33 = vld [vmem:[#allocation11 + $0x48c] sm:$0xf] }
 0x394   : > { %v11831_v51 = vor.u32 %v14901_v13, %v11828_v12  ;;  %v12228_v55 = vld [vmem:[#allocation11 + $0x598] sm:$0xf0]  ;;  %v17363_v13 = vpop.f32.mrf.mxu3  ;;  %v14921_v12 = vld [vmem:[#allocation11 + $0x30c] sm:$0xf] }
 0x395   : > { %4852 = vmatpush.bf16.msra.mxu2 %v11687_v38  ;;  %4878 = vmatpush.bf16.msrb.mxu1 %v11975_v22  ;;  %v11655_v38 = vor.u32 %v14857_v48, %v11652_v5  ;;  %v11943_v22 = vor.u32 %v14929_v37, %v11940_v58  ;;  %v12116_v1 = vld [vmem:[#allocation11 + $0x4b8] sm:$0xf0]  ;;  %18017 = vst [vmem:[#allocation40_spill] sm:$0xff] %v17363_v13  ;;  %v14997_v5 = vld [vmem:[#allocation11 + $0x56c] sm:$0xf]  ;;  %v17366_v37 = vpop.f32.mrf.mxu1 }
 0x396   : > { %4863 = vmatpush.bf16.msra.mxu3 %v11863_v16  ;;  %v12244_v16 = vld [vmem:[#allocation11 + $0x5b8] sm:$0xf0]  ;;  %18018 = vst [vmem:[#allocation41_spill] sm:$0xff] %v17366_v37  ;;  %v14889_v54 = vld [vmem:[#allocation11 + $0x20c] sm:$0xf] }
 0x397   : > { %4839 = vmatpush.bf16.msra.mxu0 %v11543_v0  ;;  %v12247_v45 = vor.u32 %v15005_v42, %v12244_v16  ;;  %v14925_v0 = vld [vmem:[#allocation11 + $0x32c] sm:$0xf]  ;;  %v11796_v48 = vld [vmem:[#allocation11 + $0x238] sm:$0xf0]  ;;  %v12231_v42 = vor.u32 %v15001_v2, %v12228_v55  ;;  %v12494_v16 = vld [vmem:[#allocation11 + $0xd60] sm:$0xf] }
 0x398   : > { %v11780_v11 = vld [vmem:[#allocation11 + $0x218] sm:$0xf0]  ;;  %v12366_v2 = vld [vmem:[#allocation11 + $0xc60] sm:$0xf]  ;;  %v15250_v37 = vld [vmem:[#allocation11 + $0xd4c] sm:$0xf0] }
 0x399   : > { %4853 = vmatpush.bf16.msra.mxu2 %v11671_v17  ;;  %4879 = vmatpush.bf16.msrb.mxu1 %v11959_v4  ;;  %v11927_v17 = vor.u32 %v14925_v0, %v11924_v14  ;;  %v14893_v4 = vld [vmem:[#allocation11 + $0x22c] sm:$0xf]  ;;  %v15282_v13 = vld [vmem:[#allocation11 + $0xe4c] sm:$0xf0] }
 0x39a   : > { %4864 = vmatpush.bf16.msra.mxu3 %v11847_v52  ;;  %v14973_v52 = vld [vmem:[#allocation11 + $0x4ac] sm:$0xf]  ;;  %v11799_v39 = vor.u32 %v14893_v4, %v11796_v48  ;;  %v12084_v48 = vld [vmem:[#allocation11 + $0x478] sm:$0xf0] }
 0x39b   : > { %4840 = vmatpush.bf16.msra.mxu0 %v11527_v32  ;;  %v11908_v32 = vld [vmem:[#allocation11 + $0x318] sm:$0xf0]  ;;  %v12119_v58 = vor.u32 %v14973_v52, %v12116_v1  ;;  %v14993_v14 = vld [vmem:[#allocation11 + $0x54c] sm:$0xf]  ;;  %v12478_v1 = vld [vmem:[#allocation11 + $0xd40] sm:$0xf] }
 0x39c   : > { %v12196_v52 = vld [vmem:[#allocation11 + $0x558] sm:$0xf0]  ;;  %v14965_v4 = vld [vmem:[#allocation11 + $0x46c] sm:$0xf] }
 0x39d   : > { %4854 = vmatpush.bf16.msra.mxu2 %v11655_v38  ;;  %4880 = vmatpush.bf16.msrb.mxu1 %v11943_v22  ;;  %v12100_v38 = vld [vmem:[#allocation11 + $0x498] sm:$0xf0]  ;;  %v11911_v22 = vor.u32 %v14921_v12, %v11908_v32  ;;  %v17369_v32 = vpop.f32.mrf.mxu0 }
 0x39e   : > { %4865 = vmatpush.bf16.msra.mxu3 %v11831_v51  ;;  %4841 = vmatmul.bf16.vlgmr.msra.gmra.mxu0 %v17115_v46  ;;  %v15254_v51 = vld [vmem:[#allocation11 + $0xd6c] sm:$0xf0]  ;;  %v12103_v55 = vor.u32 %v14969_v33, %v12100_v38  ;;  %18019 = vst [vmem:[#allocation42_spill] sm:$0xff] %v17369_v32  ;;  %v17372_v33 = vpop.f32.mrf.mxu2  ;;  %v12087_v38 = vor.u32 %v14965_v4, %v12084_v48  ;;  %v12446_v48 = vld [vmem:[#allocation11 + $0xd00] sm:$0xf] }
 0x39f   : > { %4889 = vmatpush.bf16.msrb.mxu0 %v12151_v25  ;;  %v12212_v25 = vld [vmem:[#allocation11 + $0x578] sm:$0xf0]  ;;  %v12495_v0 = vor.u32 %v15254_v51, %v12494_v16  ;;  %v12350_v16 = vld [vmem:[#allocation11 + $0xc40] sm:$0xf]  ;;  %v15218_v51 = vld [vmem:[#allocation11 + $0xc4c] sm:$0xf0] }
 0x3a0   : > { %4855 = vmatmul.bf16.vlgmr.msra.gmra.mxu2 %v17153_v36  ;;  %18020 = vst [vmem:[#allocation43_spill] sm:$0xff] %v17372_v33  ;;  %v12052_v33 = vld [vmem:[#allocation11 + $0x438] sm:$0xf0] }
 0x3a1   : > { %4905 = vmatpush.bf16.msrb.mxu2 %v12247_v45  ;;  %4881 = vmatpush.bf16.msrb.mxu1 %v11927_v17  ;;  %v12215_v45 = vor.u32 %v14997_v5, %v12212_v25  ;;  %v4590_v17 = vpop.f32.mrf.mxu3  ;;  %v12199_v5 = vor.u32 %v14993_v14, %v12196_v52  ;;  %v12479_v25 = vor.u32 %v15250_v37, %v12478_v1  ;;  %v14985_v37 = vld [vmem:[#allocation11 + $0x50c] sm:$0xf]  ;;  %v12164_v52 = vld [vmem:[#allocation11 + $0x518] sm:$0xf0]  ;;  %v12334_v1 = vld [vmem:[#allocation11 + $0xc20] sm:$0xf] }
 0x3a2   : > { %4866 = vmatpush.bf16.msra.mxu3 %v11815_v61  ;;  %v11783_v61 = vor.u32 %v14889_v54, %v11780_v11  ;;  %v12180_v54 = vld [vmem:[#allocation11 + $0x538] sm:$0xf0]  ;;  %v15246_v11 = vld [vmem:[#allocation11 + $0xd2c] sm:$0xf0] }
 0x3a3   : > { %4890 = vmatpush.bf16.msrb.mxu0 %v12135_v44  ;;  %v15222_v44 = vld [vmem:[#allocation11 + $0xc6c] sm:$0xf0] }
 0x3a4   : > { %v12367_v12 = vor.u32 %v15222_v44, %v12366_v2 }
 0x3a5   : > { %4906 = vmatpush.bf16.msrb.mxu2 %v12231_v42  ;;  %4882 = vmatpush.bf16.msrb.mxu1 %v11911_v22  ;;  %v4591_v42 = vadd.f32 %v4590_v17, %v17296_v29  ;;  %v12462_v22 = vld [vmem:[#allocation11 + $0xd20] sm:$0xf]  ;;  %v14961_v29 = vld [vmem:[#allocation11 + $0x44c] sm:$0xf]  ;;  %v15242_v17 = vld [vmem:[#allocation11 + $0xd0c] sm:$0xf0] }
 0x3a6   : > { %4867 = vmatpush.bf16.msra.mxu3 %v11799_v39  ;;  %v4604_v39 = vpop.f32.mrf.mxu1  ;;  %v12463_v44 = vor.u32 %v15246_v11, %v12462_v22  ;;  %v12430_v11 = vld [vmem:[#allocation11 + $0xce0] sm:$0xf] }
 0x3a7   : > { %4891 = vmatpush.bf16.msrb.mxu0 %v12119_v58  ;;  %v14989_v58 = vld [vmem:[#allocation11 + $0x52c] sm:$0xf]  ;;  %v4605_v2 = vadd.f32 %v4604_v39, %v4591_v42  ;;  %v15286_v42 = vld [vmem:[#allocation11 + $0xe6c] sm:$0xf0] }
 0x3a8   : > { %4883 = vmatmul.bf16.vlgmr.msrb.gmra.mxu1 %v17214_v40  ;;  %v12183_v14 = vor.u32 %v14989_v58, %v12180_v54  ;;  %v14957_v39 = vld [vmem:[#allocation11 + $0x42c] sm:$0xf]  ;;  %v12318_v58 = vld [vmem:[#allocation11 + $0xc00] sm:$0xf]  ;;  %v4632_v54 = vpop.f32.mrf.mxu0 }
 0x3a9   : > { %4907 = vmatpush.bf16.msrb.mxu2 %v12215_v45  ;;  %6062 = vmatpush.bf16.msra.mxu1 %v12495_v0  ;;  %v12068_v45 = vld [vmem:[#allocation11 + $0x458] sm:$0xf0]  ;;  %v12351_v0 = vor.u32 %v15218_v51, %v12350_v16  ;;  %v15210_v16 = vld [vmem:[#allocation11 + $0xc0c] sm:$0xf0]  ;;  %v4618_v51 = vpop.f32.mrf.mxu2 }
 0x3aa   : > { %4868 = vmatpush.bf16.msra.mxu3 %v11783_v61  ;;  %v12071_v4 = vor.u32 %v14961_v29, %v12068_v45  ;;  %v12622_v61 = vld [vmem:[#allocation11 + $0xe60] sm:$0xf]  ;;  %v15238_v29 = vld [vmem:[#allocation11 + $0xcec] sm:$0xf0]  ;;  %v4619_v32 = vadd.f32 %v4618_v51, %v4605_v2 }
 0x3ab   : > { %4892 = vmatpush.bf16.msrb.mxu0 %v12103_v55  ;;  %v15214_v55 = vld [vmem:[#allocation11 + $0xc2c] sm:$0xf0]  ;;  %v12623_v22 = vor.u32 %v15286_v42, %v12622_v61  ;;  %v12606_v45 = vld [vmem:[#allocation11 + $0xe40] sm:$0xf] }
 0x3ac   : > { %v15234_v2 = vld [vmem:[#allocation11 + $0xccc] sm:$0xf0]  ;;  %v12590_v61 = vld [vmem:[#allocation11 + $0xe20] sm:$0xf] }
 0x3ad   : > { %4908 = vmatpush.bf16.msrb.mxu2 %v12199_v5  ;;  %6063 = vmatpush.bf16.msra.mxu1 %v12479_v25  ;;  %v12167_v5 = vor.u32 %v14985_v37, %v12164_v52  ;;  %v12447_v25 = vor.u32 %v15242_v17, %v12446_v48  ;;  %v17376_v37 = vadd.f32 %v4632_v54, %v4619_v32  ;;  %v12414_v48 = vld [vmem:[#allocation11 + $0xcc0] sm:$0xf]  ;;  %v15278_v42 = vld [vmem:[#allocation11 + $0xe2c] sm:$0xf0] }
 0x3ae   : > { %6048 = vmatpush.bf16.msrb.mxu3 %v12367_v12  ;;  %v12335_v12 = vor.u32 %v15214_v55, %v12334_v1  ;;  %v12431_v52 = vor.u32 %v15238_v29, %v12430_v11  ;;  %v12302_v1 = vld [vmem:[#allocation11 + $0xbe0] sm:$0xf]  ;;  %v15206_v55 = vld [vmem:[#allocation11 + $0xbec] sm:$0xf0] }
 0x3af   : > { %4869 = vmatmul.bf16.vlgmr.msra.gmra.mxu3 %v17217_v49  ;;  %4893 = vmatpush.bf16.msrb.mxu0 %v12087_v38  ;;  %v12055_v38 = vor.u32 %v14957_v39, %v12052_v33  ;;  %v12607_v33 = vor.u32 %v15282_v13, %v12606_v45  ;;  %v12303_v32 = vor.u32 %v15206_v55, %v12302_v1  ;;  %v12734_v39 = vld [vmem:[#allocation11 + $0xf40] sm:$0xf]  ;;  %v15230_v13 = vld [vmem:[#allocation11 + $0xcac] sm:$0xf0]  ;;  %v17382_v45 = vpop.f32.mrf.mxu3 }
 0x3b0   : > { %v12574_v54 = vld [vmem:[#allocation11 + $0xe00] sm:$0xf]  ;;  %v15310_v29 = vld [vmem:[#allocation11 + $0xf2c] sm:$0xf0]  ;;  %18022 = vst [vmem:[#allocation45_spill] sm:$0xff] %v17382_v45 }
 0x3b1   : > { %4909 = vmatpush.bf16.msrb.mxu2 %v12183_v14  ;;  %6064 = vmatpush.bf16.msra.mxu1 %v12463_v44  ;;  %v12750_v14 = vld [vmem:[#allocation11 + $0xf60] sm:$0xf]  ;;  %v15318_v44 = vld [vmem:[#allocation11 + $0xf6c] sm:$0xf0] }
 0x3b2   : > { %6049 = vmatpush.bf16.msrb.mxu3 %v12351_v0  ;;  %v12319_v0 = vor.u32 %v15210_v16, %v12318_v58  ;;  %v12751_v17 = vor.u32 %v15318_v44, %v12750_v14  ;;  %v12286_v58 = vld [vmem:[#allocation11 + $0xbc0] sm:$0xf]  ;;  %v15202_v16 = vld [vmem:[#allocation11 + $0xbcc] sm:$0xf0] }
 0x3b3   : > { %4894 = vmatpush.bf16.msrb.mxu0 %v12071_v4  ;;  %v12039_v4 = vor.u32 %v14953_v27, %v12036_v7  ;;  %v12591_v27 = vor.u32 %v15278_v42, %v12590_v61  ;;  %v12398_v7 = vld [vmem:[#allocation11 + $0xca0] sm:$0xf]  ;;  %v15198_v44 = vld [vmem:[#allocation11 + $0xbac] sm:$0xf0] }
 0x3b4   : > { %v12718_v11 = vld [vmem:[#allocation11 + $0xf20] sm:$0xf]  ;;  %v15226_v55 = vld [vmem:[#allocation11 + $0xc8c] sm:$0xf0] }
 0x3b5   : > { %4910 = vmatpush.bf16.msrb.mxu2 %v12167_v5  ;;  %6065 = vmatpush.bf16.msra.mxu1 %v12447_v25  ;;  %v17380_v5 = vpop.f32.mrf.mxu1  ;;  %v12415_v25 = vor.u32 %v15234_v2, %v12414_v48  ;;  %v12270_v14 = vld [vmem:[#allocation11 + $0xba0] sm:$0xf]  ;;  %v15270_v48 = vld [vmem:[#allocation11 + $0xdec] sm:$0xf0] }
 0x3b6   : > { %6050 = vmatpush.bf16.msrb.mxu3 %v12335_v12  ;;  %v15314_v12 = vld [vmem:[#allocation11 + $0xf4c] sm:$0xf0]  ;;  %18021 = vst [vmem:[#allocation44_spill] sm:$0xff] %v17380_v5  ;;  %v12382_v1 = vld [vmem:[#allocation11 + $0xc80] sm:$0xf]  ;;  %v12271_v61 = vor.u32 %v15198_v44, %v12270_v14 }
 0x3b7   : > { %4895 = vmatpush.bf16.msrb.mxu0 %v12055_v38  ;;  %v12735_v51 = vor.u32 %v15314_v12, %v12734_v39  ;;  %v12287_v38 = vor.u32 %v15202_v16, %v12286_v58  ;;  %v12974_v2 = vld [vmem:[#allocation11 + $0x1120] sm:$0xf]  ;;  %v12383_v12 = vor.u32 %v15226_v55, %v12382_v1  ;;  %v15194_v16 = vld [vmem:[#allocation11 + $0xb8c] sm:$0xf0]  ;;  %v5106_v55 = vrot.slane %v17145_v10, 2 }
 0x3b8   : > { %12251 = vmatmul.msk.bf16.vlgmr.msrb.gmra.mxu2 %vm1913_vm5, %v17223_v47  ;;  %v12702_v42 = vld [vmem:[#allocation11 + $0xf00] sm:$0xf]  ;;  %v12384_v5 = vld [vmem:[#allocation11 + $0xc90] sm:$0xf0] }
 0x3b9   : > { %6076 = vmatpush.bf16.msra.mxu2 %v12623_v22  ;;  %6066 = vmatpush.bf16.msra.mxu1 %v12431_v52  ;;  %v15274_v22 = vld [vmem:[#allocation11 + $0xe0c] sm:$0xf0]  ;;  %v12254_v58 = vld [vmem:[#allocation11 + $0xb80] sm:$0xf] }
 0x3ba   : > { %6051 = vmatpush.bf16.msrb.mxu3 %v12319_v0  ;;  %v12399_v0 = vor.u32 %v15230_v13, %v12398_v7  ;;  %v12575_v52 = vor.u32 %v15274_v22, %v12574_v54  ;;  %v12542_v13 = vld [vmem:[#allocation11 + $0xdc0] sm:$0xf]  ;;  %v15350_v54 = vld [vmem:[#allocation11 + $0x106c] sm:$0xf0]  ;;  %v12255_v14 = vor.u32 %v15194_v16, %v12254_v58  ;;  %v4646_v1 = vpop.f32.mrf.mxu3 }
 0x3bb   : > { %4896 = vmatpush.bf16.msrb.mxu0 %v12039_v4  ;;  %v12719_v4 = vor.u32 %v15310_v29, %v12718_v11  ;;  %v15266_v11 = vld [vmem:[#allocation11 + $0xdcc] sm:$0xf0]  ;;  %v12686_v44 = vld [vmem:[#allocation11 + $0xee0] sm:$0xf] }
 0x3bc   : > { %v15370_v29 = vld [vmem:[#allocation11 + $0x110c] sm:$0xf0] }
 0x3bd   : > { %6077 = vmatpush.bf16.msra.mxu2 %v12607_v33  ;;  %6067 = vmatpush.bf16.msra.mxu1 %v12415_v25  ;;  %v12558_v33 = vld [vmem:[#allocation11 + $0xde0] sm:$0xf]  ;;  %v4660_v39 = vpop.f32.mrf.mxu1  ;;  %v5105_v25 = vrot.slane %v17153_v36, 2 }
 0x3be   : > { %6052 = vmatpush.bf16.msrb.mxu3 %v12303_v32  ;;  %4897 = vmatmul.bf16.vlgmr.msrb.gmra.mxu0 %v17220_v23  ;;  %v15306_v32 = vld [vmem:[#allocation11 + $0xf0c] sm:$0xf0] }
 0x3bf   : > { %6090 = vmatpush.bf16.msra.mxu0 %v12751_v17  ;;  %v15374_v17 = vld [vmem:[#allocation11 + $0x112c] sm:$0xf0]  ;;  %v12703_v22 = vor.u32 %v15306_v32, %v12702_v42  ;;  %v17390_v32 = vpop.f32.mrf.mxu2  ;;  %v17395_v58 = vsel %vm725_vm0, %v5105_v25, %v5106_v55  ;;  %v15220_v55 = vld [vmem:[#allocation11 + $0xc64] sm:$0xf] }
 0x3c0   : > { %v12975_v7 = vor.u32 %v15374_v17, %v12974_v2  ;;  %v12526_v17 = vld [vmem:[#allocation11 + $0xda0] sm:$0xf]  ;;  %v15346_v42 = vld [vmem:[#allocation11 + $0x104c] sm:$0xf0]  ;;  %18023 = vst [vmem:[#allocation46_spill] sm:$0xff] %v17390_v32 }
 0x3c1   : > { %6078 = vmatpush.bf16.msra.mxu2 %v12591_v27  ;;  %6068 = vmatpush.bf16.msra.mxu1 %v12399_v0  ;;  %v12559_v27 = vor.u32 %v15270_v48, %v12558_v33  ;;  %v15302_v0 = vld [vmem:[#allocation11 + $0xeec] sm:$0xf0]  ;;  %v5103_v33 = vrot.slane %v17111_v63, 2  ;;  %v4647_v48 = vadd.f32 %v4646_v1, %v17376_v37  ;;  %v12926_v1 = vld [vmem:[#allocation11 + $0x10c0] sm:$0xf] }
 0x3c2   : > { %6053 = vmatpush.bf16.msrb.mxu3 %v12287_v38  ;;  %v12958_v38 = vld [vmem:[#allocation11 + $0x1100] sm:$0xf]  ;;  %v12687_v16 = vor.u32 %v15302_v0, %v12686_v44  ;;  %v15342_v0 = vld [vmem:[#allocation11 + $0x102c] sm:$0xf0]  ;;  %v15224_v32 = vld [vmem:[#allocation11 + $0xc84] sm:$0xf] }
 0x3c3   : > { %6091 = vmatpush.bf16.msra.mxu0 %v12735_v51  ;;  %v12878_v51 = vld [vmem:[#allocation11 + $0x1060] sm:$0xf]  ;;  %v12959_v2 = vor.u32 %v15370_v29, %v12958_v38  ;;  %v17397_v37 = vadd.f32 %v4660_v39, %v4647_v48  ;;  %v15258_v29 = vld [vmem:[#allocation11 + $0xd8c] sm:$0xf0]  ;;  %v12368_v48 = vld [vmem:[#allocation11 + $0xc70] sm:$0xf0] }
 0x3c4   : > { %v12879_v31 = vor.u32 %v15350_v54, %v12878_v51  ;;  %v15262_v51 = vld [vmem:[#allocation11 + $0xdac] sm:$0xf0]  ;;  %v12942_v54 = vld [vmem:[#allocation11 + $0x10e0] sm:$0xf] }
 0x3c5   : > { %6079 = vmatpush.bf16.msra.mxu2 %v12575_v52  ;;  %6069 = vmatpush.bf16.msra.mxu1 %v12383_v12  ;;  %v5102_v52 = vrot.slane %v17115_v46, 2  ;;  %v17392_v12 = vpop.f32.mrf.mxu0  ;;  %v12943_v38 = vor.u32 %v15366_v53, %v12942_v54  ;;  %v12846_v44 = vld [vmem:[#allocation11 + $0x1020] sm:$0xf]  ;;  %v17403_v39 = vpop.f32.mrf.mxu1 }
 0x3c6   : > { %6054 = vmatpush.bf16.msrb.mxu3 %v12271_v61  ;;  %v12862_v61 = vld [vmem:[#allocation11 + $0x1040] sm:$0xf]  ;;  %18024 = vst [vmem:[#allocation47_spill] sm:$0xff] %v17392_v12 }
 0x3c7   : > { %6092 = vmatpush.bf16.msra.mxu0 %v12719_v4  ;;  %v12543_v4 = vor.u32 %v15266_v11, %v12542_v13  ;;  %v12863_v13 = vor.u32 %v15346_v42, %v12862_v61  ;;  %v12510_v11 = vld [vmem:[#allocation11 + $0xd80] sm:$0xf]  ;;  %v17401_v25 = vsel %vm725_vm0, %v5102_v52, %v5103_v33  ;;  %18025 = vst [vmem:[#allocation48_spill] sm:$0xff] %v17403_v39  ;;  %v15338_v42 = vld [vmem:[#allocation11 + $0x100c] sm:$0xf0]  ;;  %v17422_v39 = vpop.f32.mrf.mxu3 }
 0x3c8   : > { %6070 = vmatmul.bf16.vlgmr.msra.gmra.mxu1 %v17395_v58  ;;  %v12847_v52 = vor.u32 %v15342_v0, %v12846_v44  ;;  %v12511_v53 = vor.u32 %v15258_v29, %v12510_v11  ;;  %v12830_v61 = vld [vmem:[#allocation11 + $0x1000] sm:$0xf]  ;;  %v12496_v29 = vld [vmem:[#allocation11 + $0xd70] sm:$0xf0]  ;;  %18026 = vst [vmem:[#allocation49_spill] sm:$0xff] %v17422_v39  ;;  %v5114_v39 = vrot.slane %v17220_v23, 2 }
 0x3c9   : > { %6080 = vmatpush.bf16.msra.mxu2 %v12559_v27  ;;  %6120 = vmatpush.bf16.msrb.mxu1 %v12975_v7  ;;  %v12670_v27 = vld [vmem:[#allocation11 + $0xec0] sm:$0xf]  ;;  %v15298_v7 = vld [vmem:[#allocation11 + $0xecc] sm:$0xf0]  ;;  %v12831_v11 = vor.u32 %v15338_v42, %v12830_v61  ;;  %v12624_v42 = vld [vmem:[#allocation11 + $0xe70] sm:$0xf0] }
 0x3ca   : > { %6055 = vmatpush.bf16.msrb.mxu3 %v12255_v14  ;;  %v12671_v14 = vor.u32 %v15298_v7, %v12670_v27  ;;  %v12910_v7 = vld [vmem:[#allocation11 + $0x10a0] sm:$0xf] }
 0x3cb   : > { %6093 = vmatpush.bf16.msra.mxu0 %v12703_v22  ;;  %v12527_v22 = vor.u32 %v15262_v51, %v12526_v17  ;;  %v5108_v17 = vrot.slane %v17217_v49, 2  ;;  %v4674_v51 = vpop.f32.mrf.mxu2  ;;  %v12638_v44 = vld [vmem:[#allocation11 + $0xe80] sm:$0xf] }
 0x3cc   : > { %v4675_v34 = vadd.f32 %v4674_v51, %v17325_v35  ;;  %v15354_v51 = vld [vmem:[#allocation11 + $0x108c] sm:$0xf0] }
 0x3cd   : > { %6081 = vmatpush.bf16.msra.mxu2 %v12543_v4  ;;  %6121 = vmatpush.bf16.msrb.mxu1 %v12959_v2  ;;  %v12654_v4 = vld [vmem:[#allocation11 + $0xea0] sm:$0xf]  ;;  %v15294_v2 = vld [vmem:[#allocation11 + $0xeac] sm:$0xf0]  ;;  %v4688_v54 = vpop.f32.mrf.mxu0 }
 0x3ce   : > { %6104 = vmatpush.bf16.msra.mxu3 %v12879_v31  ;;  %v15362_v31 = vld [vmem:[#allocation11 + $0x10cc] sm:$0xf0]  ;;  %v12655_v27 = vor.u32 %v15294_v2, %v12654_v4  ;;  %v4689_v0 = vadd.f32 %v4688_v54, %v4675_v34  ;;  %v12894_v2 = vld [vmem:[#allocation11 + $0x1080] sm:$0xf]  ;;  %v5111_v54 = vrot.slane %v17214_v40, 2 }
 0x3cf   : > { %6056 = vmatmul.bf16.vlgmr.msrb.gmra.mxu3 %v17401_v25  ;;  %6094 = vmatpush.bf16.msra.mxu0 %v12687_v16  ;;  %v12927_v33 = vor.u32 %v15362_v31, %v12926_v1  ;;  %v12371_v16 = vor.u32 %v15220_v55, %v12368_v48  ;;  %v5109_v1 = vrot.slane %v17194_v3, 2  ;;  %v12814_v31 = vld [vmem:[#allocation11 + $0xfe0] sm:$0xf]  ;;  %v15334_v55 = vld [vmem:[#allocation11 + $0xfec] sm:$0xf0]  ;;  %v4702_v48 = vpop.f32.mrf.mxu1 }
 0x3d1   : > { %6082 = vmatpush.bf16.msra.mxu2 %v12527_v22  ;;  %6122 = vmatpush.bf16.msrb.mxu1 %v12943_v38  ;;  %v15290_v22 = vld [vmem:[#allocation11 + $0xe8c] sm:$0xf0]  ;;  %v15252_v38 = vld [vmem:[#allocation11 + $0xd64] sm:$0xf]  ;;  %v17412_v61 = vsel %vm725_vm0, %v5108_v17, %v5109_v1  ;;  %v5118_v17 = vrot.slane %v17212_v57, 2 }
 0x3d2   : > { %6105 = vmatpush.bf16.msra.mxu3 %v12863_v13  ;;  %v12352_v13 = vld [vmem:[#allocation11 + $0xc50] sm:$0xf0]  ;;  %v12639_v35 = vor.u32 %v15290_v22, %v12638_v44  ;;  %v12499_v34 = vor.u32 %v15252_v38, %v12496_v29  ;;  %v15330_v44 = vld [vmem:[#allocation11 + $0xfcc] sm:$0xf0]  ;;  %v5117_v29 = vrot.slane %v17223_v47, 2 }
 0x3d3   : > { %6095 = vmatpush.bf16.msra.mxu0 %v12671_v14  ;;  %v12911_v14 = vor.u32 %v15358_v24, %v12910_v7  ;;  %v12355_v4 = vor.u32 %v15216_v19, %v12352_v13  ;;  %v12815_v24 = vor.u32 %v15334_v55, %v12814_v31  ;;  %v5112_v19 = vrot.slane %v17225_v28, 2  ;;  %v12798_v13 = vld [vmem:[#allocation11 + $0xfc0] sm:$0xf]  ;;  %v12320_v1 = vld [vmem:[#allocation11 + $0xc10] sm:$0xf0] }
 0x3d4   : > { %v12895_v7 = vor.u32 %v15354_v51, %v12894_v2  ;;  %v15280_v31 = vld [vmem:[#allocation11 + $0xe44] sm:$0xf]  ;;  %v12608_v55 = vld [vmem:[#allocation11 + $0xe50] sm:$0xf0] }
 0x3d5   : > { %6083 = vmatpush.bf16.msra.mxu2 %v12511_v53  ;;  %6123 = vmatpush.bf16.msrb.mxu1 %v12927_v33  ;;  %v12336_v53 = vld [vmem:[#allocation11 + $0xc30] sm:$0xf0]  ;;  %v15284_v33 = vld [vmem:[#allocation11 + $0xe64] sm:$0xf]  ;;  %v17435_v12 = vpop.f32.mrf.mxu0 }
 0x3d6   : > { %6106 = vmatpush.bf16.msra.mxu3 %v12847_v52  ;;  %v17409_v52 = vadd.f32 %v4702_v48, %v4689_v0  ;;  %v12339_v22 = vor.u32 %v15212_v30, %v12336_v53  ;;  %v12627_v38 = vor.u32 %v15284_v33, %v12624_v42  ;;  %v12799_v48 = vor.u32 %v15330_v44, %v12798_v13  ;;  %v15244_v2 = vld [vmem:[#allocation11 + $0xd24] sm:$0xf]  ;;  %v12464_v51 = vld [vmem:[#allocation11 + $0xd30] sm:$0xf0]  ;;  %v12782_v30 = vld [vmem:[#allocation11 + $0xfa0] sm:$0xf] }
 0x3d7   : > { %6096 = vmatpush.bf16.msra.mxu0 %v12655_v27  ;;  %v12480_v27 = vld [vmem:[#allocation11 + $0xd50] sm:$0xf0]  ;;  %v15204_v53 = vld [vmem:[#allocation11 + $0xbe4] sm:$0xf]  ;;  %v17426_v33 = vsel %vm725_vm0, %v5117_v29, %v5118_v17  ;;  %v12467_v42 = vor.u32 %v15244_v2, %v12464_v51  ;;  %v12766_v13 = vld [vmem:[#allocation11 + $0xf80] sm:$0xf] }
 0x3d8   : > { %6084 = vmatmul.bf16.vlgmr.msra.gmra.mxu2 %v17412_v61  ;;  %v15322_v44 = vld [vmem:[#allocation11 + $0xf8c] sm:$0xf0]  ;;  %v15200_v17 = vld [vmem:[#allocation11 + $0xbc4] sm:$0xf]  ;;  %v12432_v51 = vld [vmem:[#allocation11 + $0xcf0] sm:$0xf0] }
 0x3d9   : > { %6132 = vmatpush.bf16.msrb.mxu2 %v12371_v16  ;;  %v15248_v16 = vld [vmem:[#allocation11 + $0xd44] sm:$0xf]  ;;  %6124 = vmatpush.bf16.msrb.mxu1 %v12911_v14  ;;  %v17420_v14 = vsel %vm725_vm0, %v5111_v54, %v5112_v19  ;;  %v12592_v19 = vld [vmem:[#allocation11 + $0xe30] sm:$0xf0]  ;;  %v12767_v2 = vor.u32 %v15322_v44, %v12766_v13  ;;  %18028 = vst [vmem:[#allocation51_spill] sm:$0xff] %v17435_v12 }
 0x3da   : > { %6107 = vmatpush.bf16.msra.mxu3 %v12831_v11  ;;  %v15208_v11 = vld [vmem:[#allocation11 + $0xc04] sm:$0xf]  ;;  %v12483_v0 = vor.u32 %v15248_v16, %v12480_v27  ;;  %v12560_v44 = vld [vmem:[#allocation11 + $0xdf0] sm:$0xf0] }
 0x3db   : > { %6097 = vmatpush.bf16.msra.mxu0 %v12639_v35  ;;  %v12323_v35 = vor.u32 %v15208_v11, %v12320_v1  ;;  %v15276_v54 = vld [vmem:[#allocation11 + $0xe24] sm:$0xf]  ;;  %v12752_v11 = vld [vmem:[#allocation11 + $0xf70] sm:$0xf0] }
 0x3dc   : > { %v15240_v27 = vld [vmem:[#allocation11 + $0xd04] sm:$0xf]  ;;  %v12288_v1 = vld [vmem:[#allocation11 + $0xbd0] sm:$0xf0] }
 0x3dd   : > { %6133 = vmatpush.bf16.msrb.mxu2 %v12355_v4  ;;  %6125 = vmatpush.bf16.msrb.mxu1 %v12895_v7  ;;  %v15326_v4 = vld [vmem:[#allocation11 + $0xfac] sm:$0xf0]  ;;  %v12448_v7 = vld [vmem:[#allocation11 + $0xd10] sm:$0xf0]  ;;  %v15316_v29 = vld [vmem:[#allocation11 + $0xf64] sm:$0xf]  ;;  %v4744_v45 = vpop.f32.mrf.mxu0 }
 0x3de   : > { %6108 = vmatpush.bf16.msra.mxu3 %v12815_v24  ;;  %6098 = vmatmul.bf16.vlgmr.msra.gmra.mxu0 %v17420_v14  ;;  %v12304_v24 = vld [vmem:[#allocation11 + $0xbf0] sm:$0xf0]  ;;  %v12783_v16 = vor.u32 %v15326_v4, %v12782_v30  ;;  %v4716_v30 = vpop.f32.mrf.mxu3  ;;  %v12755_v4 = vor.u32 %v15316_v29, %v12752_v11  ;;  %v15268_v13 = vld [vmem:[#allocation11 + $0xde4] sm:$0xf] }
 0x3df   : > { %6146 = vmatpush.bf16.msrb.mxu0 %v12499_v34  ;;  %v12611_v34 = vor.u32 %v15280_v31, %v12608_v55  ;;  %v15272_v31 = vld [vmem:[#allocation11 + $0xe04] sm:$0xf]  ;;  %v12576_v55 = vld [vmem:[#allocation11 + $0xe10] sm:$0xf0] }
 0x3e0   : > { %12988 = vmatmul.msk.bf16.vlgmr.msrb.gmra.mxu1 %vm1913_vm5, %v17426_v33  ;;  %v15232_v29 = vld [vmem:[#allocation11 + $0xcc4] sm:$0xf]  ;;  %v12416_v11 = vld [vmem:[#allocation11 + $0xcd0] sm:$0xf0] }
 0x3e1   : > { %6134 = vmatpush.bf16.msrb.mxu2 %v12339_v22  ;;  %6160 = vmatpush.bf16.msra.mxu1 %v12627_v38  ;;  %v12307_v22 = vor.u32 %v15204_v53, %v12304_v24  ;;  %v12595_v38 = vor.u32 %v15276_v54, %v12592_v19  ;;  %v12291_v53 = vor.u32 %v15200_v17, %v12288_v1  ;;  %v15196_v24 = vld [vmem:[#allocation11 + $0xba4] sm:$0xf]  ;;  %v12736_v19 = vld [vmem:[#allocation11 + $0xf50] sm:$0xf0] }
 0x3e2   : > { %6109 = vmatpush.bf16.msra.mxu3 %v12799_v48  ;;  %v15236_v48 = vld [vmem:[#allocation11 + $0xce4] sm:$0xf]  ;;  %v12563_v1 = vor.u32 %v15268_v13, %v12560_v44 }
 0x3e3   : > { %6147 = vmatpush.bf16.msrb.mxu0 %v12483_v0  ;;  %v12451_v0 = vor.u32 %v15240_v27, %v12448_v7  ;;  %v15312_v54 = vld [vmem:[#allocation11 + $0xf44] sm:$0xf]  ;;  %v17433_v27 = vpop.f32.mrf.mxu2  ;;  %v12272_v7 = vld [vmem:[#allocation11 + $0xbb0] sm:$0xf0] }
 0x3e4   : > { %18027 = vst [vmem:[#allocation50_spill] sm:$0xff] %v17433_v27  ;;  %v12864_v27 = vld [vmem:[#allocation11 + $0x1050] sm:$0xf0] }
 0x3e5   : > { %6135 = vmatpush.bf16.msrb.mxu2 %v12323_v35  ;;  %6161 = vmatpush.bf16.msra.mxu1 %v12611_v34  ;;  %v5115_v35 = vrot.slane %v17227_v15, 2  ;;  %v4717_v34 = vadd.f32 %v4716_v30, %v17409_v52  ;;  %v17437_v52 = vpop.f32.mrf.mxu1  ;;  %v12544_v30 = vld [vmem:[#allocation11 + $0xdd0] sm:$0xf0] }
 0x3e6   : > { %6110 = vmatpush.bf16.msra.mxu3 %v12783_v16  ;;  %v12435_v16 = vor.u32 %v15236_v48, %v12432_v51  ;;  %18029 = vst [vmem:[#allocation52_spill] sm:$0xff] %v17437_v52  ;;  %v12720_v48 = vld [vmem:[#allocation11 + $0xf30] sm:$0xf0]  ;;  %v15264_v51 = vld [vmem:[#allocation11 + $0xdc4] sm:$0xf] }
 0x3e7   : > { %6148 = vmatpush.bf16.msrb.mxu0 %v12467_v42  ;;  %v12579_v42 = vor.u32 %v15272_v31, %v12576_v55  ;;  %v17440_v17 = vsel %vm725_vm0, %v5114_v39, %v5115_v35  ;;  %v12256_v31 = vld [vmem:[#allocation11 + $0xb90] sm:$0xf0]  ;;  %v15308_v55 = vld [vmem:[#allocation11 + $0xf24] sm:$0xf]  ;;  %v12547_v35 = vor.u32 %v15264_v51, %v12544_v30  ;;  %v12387_v51 = vor.u32 %v15224_v32, %v12384_v5 }
 0x3e8   : > { %v15348_v52 = vld [vmem:[#allocation11 + $0x1064] sm:$0xf] }
 0x3e9   : > { %6136 = vmatpush.bf16.msrb.mxu2 %v12307_v22  ;;  %6162 = vmatpush.bf16.msra.mxu1 %v12595_v38  ;;  %v12739_v22 = vor.u32 %v15312_v54, %v12736_v19  ;;  %v15192_v38 = vld [vmem:[#allocation11 + $0xb84] sm:$0xf]  ;;  %v12400_v19 = vld [vmem:[#allocation11 + $0xcb0] sm:$0xf0] }
 0x3ea   : > { %6111 = vmatpush.bf16.msra.mxu3 %v12767_v2  ;;  %v12419_v2 = vor.u32 %v15232_v29, %v12416_v11  ;;  %v15228_v54 = vld [vmem:[#allocation11 + $0xca4] sm:$0xf]  ;;  %v12259_v39 = vor.u32 %v15192_v38, %v12256_v31  ;;  %v12528_v29 = vld [vmem:[#allocation11 + $0xdb0] sm:$0xf0] }
 0x3eb   : > { %6149 = vmatpush.bf16.msrb.mxu0 %v12451_v0  ;;  %v12275_v0 = vor.u32 %v15196_v24, %v12272_v7  ;;  %v12704_v24 = vld [vmem:[#allocation11 + $0xf10] sm:$0xf0]  ;;  %v4730_v7 = vpop.f32.mrf.mxu2  ;;  %v12403_v44 = vor.u32 %v15228_v54, %v12400_v19  ;;  %v15344_v11 = vld [vmem:[#allocation11 + $0x1044] sm:$0xf] }
 0x3ec   : > { %v4731_v12 = vadd.f32 %v4730_v7, %v4717_v34  ;;  %v12976_v38 = vld [vmem:[#allocation11 + $0x1130] sm:$0xf0]  ;;  %v12867_v34 = vor.u32 %v15344_v11, %v12864_v27  ;;  %v15256_v30 = vld [vmem:[#allocation11 + $0xd84] sm:$0xf] }
 0x3ed   : > { %6137 = vmatpush.bf16.msrb.mxu2 %v12291_v53  ;;  %6163 = vmatpush.bf16.msra.mxu1 %v12579_v42  ;;  %v12723_v53 = vor.u32 %v15308_v55, %v12720_v48  ;;  %v15304_v42 = vld [vmem:[#allocation11 + $0xf04] sm:$0xf]  ;;  %v12672_v7 = vld [vmem:[#allocation11 + $0xed0] sm:$0xf0] }
 0x3ee   : > { %6174 = vmatpush.bf16.msrb.mxu3 %v12755_v4  ;;  %v12880_v4 = vld [vmem:[#allocation11 + $0x1070] sm:$0xf0]  ;;  %v17443_v31 = vadd.f32 %v4744_v45, %v4731_v12  ;;  %v15300_v48 = vld [vmem:[#allocation11 + $0xee4] sm:$0xf]  ;;  %v15223_v45 = vld [vmem:[#allocation11 + $0xc74] sm:$0xf0] }
 0x3ef   : > { %6112 = vmatmul.bf16.vlgmr.msra.gmra.mxu3 %v17440_v17  ;;  %6150 = vmatpush.bf16.msrb.mxu0 %v12435_v16  ;;  %v12883_v13 = vor.u32 %v15348_v52, %v12880_v4  ;;  %v15260_v16 = vld [vmem:[#allocation11 + $0xda4] sm:$0xf]  ;;  %v12512_v4 = vld [vmem:[#allocation11 + $0xd90] sm:$0xf0] }
 0x3f0   : > { %v12531_v52 = vor.u32 %v15260_v16, %v12528_v29  ;;  %v15340_v54 = vld [vmem:[#allocation11 + $0x1024] sm:$0xf]  ;;  %v12358_v16 = vld [vmem:[#allocation11 + $0xc48] sm:$0xf]  ;;  %v15219_v29 = vld [vmem:[#allocation11 + $0xc54] sm:$0xf0] }
 0x3f1   : > { %6138 = vmatpush.bf16.msrb.mxu2 %v12275_v0  ;;  %6164 = vmatpush.bf16.msra.mxu1 %v12563_v1  ;;  %v12707_v0 = vor.u32 %v15304_v42, %v12704_v24  ;;  %v15372_v1 = vld [vmem:[#allocation11 + $0x1124] sm:$0xf]  ;;  %v12374_v42 = vld [vmem:[#allocation11 + $0xc68] sm:$0xf] }
 0x3f2   : > { %6175 = vmatpush.bf16.msrb.mxu3 %v12739_v22  ;;  %v4758_v22 = vpop.f32.mrf.mxu1  ;;  %v12979_v19 = vor.u32 %v15372_v1, %v12976_v38  ;;  %v15368_v12 = vld [vmem:[#allocation11 + $0x1104] sm:$0xf]  ;;  %v12375_v32 = vor.u32 %v15223_v45, %v12374_v42  ;;  %v17449_v1 = vpop.f32.mrf.mxu3  ;;  %v12928_v45 = vld [vmem:[#allocation11 + $0x10d0] sm:$0xf0] }
 0x3f3   : > { %6151 = vmatpush.bf16.msrb.mxu0 %v12419_v2  ;;  %v17446_v55 = vadd.f32 %v4758_v22, %v17341_v26  ;;  %v12688_v2 = vld [vmem:[#allocation11 + $0xef0] sm:$0xf0]  ;;  %v15296_v24 = vld [vmem:[#allocation11 + $0xec4] sm:$0xf]  ;;  %18030 = vst [vmem:[#allocation53_spill] sm:$0xff] %v17449_v1 }
 0x3f4   : > { %v12691_v26 = vor.u32 %v15300_v48, %v12688_v2  ;;  %v15336_v27 = vld [vmem:[#allocation11 + $0x1004] sm:$0xf]  ;;  %v12675_v11 = vor.u32 %v15296_v24, %v12672_v7  ;;  %v12359_v2 = vor.u32 %v15219_v29, %v12358_v16  ;;  %v12502_v7 = vld [vmem:[#allocation11 + $0xd68] sm:$0xf]  ;;  %v14344_v1 = vld [vmem:[#allocation11 + $0x1bd0] sm:$0xf0] }
 0x3f5   : > { %6139 = vmatpush.bf16.msrb.mxu2 %v12259_v39  ;;  %6165 = vmatpush.bf16.msra.mxu1 %v12547_v35  ;;  %v12960_v39 = vld [vmem:[#allocation11 + $0x1110] sm:$0xf0]  ;;  %v12515_v35 = vor.u32 %v15256_v30, %v12512_v4  ;;  %v15364_v22 = vld [vmem:[#allocation11 + $0x10e4] sm:$0xf] }
 0x3f6   : > { %6176 = vmatpush.bf16.msrb.mxu3 %v12723_v53  ;;  %v12848_v53 = vld [vmem:[#allocation11 + $0x1030] sm:$0xf0]  ;;  %v15292_v38 = vld [vmem:[#allocation11 + $0xea4] sm:$0xf] }
 0x3f7   : > { %6152 = vmatpush.bf16.msrb.mxu0 %v12403_v44  ;;  %v12851_v5 = vor.u32 %v15340_v54, %v12848_v53  ;;  %v12832_v44 = vld [vmem:[#allocation11 + $0x1010] sm:$0xf0]  ;;  %v12342_v54 = vld [vmem:[#allocation11 + $0xc28] sm:$0xf]  ;;  %v15360_v42 = vld [vmem:[#allocation11 + $0x10c4] sm:$0xf] }
 0x3f8   : > { %6140 = vmatmul.bf16.vlgmr.msrb.gmra.mxu2 %v17401_v25  ;;  %v12835_v48 = vor.u32 %v15336_v27, %v12832_v44  ;;  %v12816_v4 = vld [vmem:[#allocation11 + $0xff0] sm:$0xf0]  ;;  %v15328_v24 = vld [vmem:[#allocation11 + $0xfc4] sm:$0xf]  ;;  %v15211_v44 = vld [vmem:[#allocation11 + $0xc14] sm:$0xf0] }
 0x3f9   : > { %6188 = vmatpush.bf16.msra.mxu2 %v12883_v13  ;;  %6166 = vmatpush.bf16.msra.mxu1 %v12531_v52  ;;  %v12963_v13 = vor.u32 %v15368_v12, %v12960_v39  ;;  %v12656_v52 = vld [vmem:[#allocation11 + $0xeb0] sm:$0xf0]  ;;  %v15356_v29 = vld [vmem:[#allocation11 + $0x10a4] sm:$0xf] }
 0x3fa   : > { %6177 = vmatpush.bf16.msrb.mxu3 %v12707_v0  ;;  %v12944_v0 = vld [vmem:[#allocation11 + $0x10f0] sm:$0xf0]  ;;  %v12659_v53 = vor.u32 %v15292_v38, %v12656_v52 }
 0x3fb   : > { %6153 = vmatpush.bf16.msrb.mxu0 %v12387_v51  ;;  %v17452_v51 = vpop.f32.mrf.mxu0  ;;  %v12947_v30 = vor.u32 %v15364_v22, %v12944_v0  ;;  %v12640_v12 = vld [vmem:[#allocation11 + $0xe90] sm:$0xf0]  ;;  %v4772_v22 = vpop.f32.mrf.mxu3 }
 0x3fc   : > { %18031 = vst [vmem:[#allocation54_spill] sm:$0xff] %v17452_v51  ;;  %v12800_v27 = vld [vmem:[#allocation11 + $0xfd0] sm:$0xf0]  ;;  %v4773_v38 = vadd.f32 %v4772_v22, %v17446_v55  ;;  %v17458_v55 = vpop.f32.mrf.mxu1  ;;  %v15203_v22 = vld [vmem:[#allocation11 + $0xbd4] sm:$0xf0] }
 0x3fd   : > { %6189 = vmatpush.bf16.msra.mxu2 %v12867_v34  ;;  %6167 = vmatpush.bf16.msra.mxu1 %v12515_v35  ;;  %v15332_v34 = vld [vmem:[#allocation11 + $0xfe4] sm:$0xf]  ;;  %v12803_v52 = vor.u32 %v15328_v24, %v12800_v27  ;;  %18033 = vst [vmem:[#allocation56_spill] sm:$0xff] %v17458_v55  ;;  %v15287_v24 = vld [vmem:[#allocation11 + $0xe74] sm:$0xf0] }
 0x3fe   : > { %6178 = vmatpush.bf16.msrb.mxu3 %v12691_v26  ;;  %6154 = vmatmul.bf16.vlgmr.msrb.gmra.mxu0 %v17395_v58  ;;  %v15288_v26 = vld [vmem:[#allocation11 + $0xe84] sm:$0xf]  ;;  %v12819_v39 = vor.u32 %v15332_v34, %v12816_v4  ;;  %v12486_v34 = vld [vmem:[#allocation11 + $0xd48] sm:$0xf]  ;;  %v15251_v4 = vld [vmem:[#allocation11 + $0xd54] sm:$0xf0] }
 0x3ff   : > { %6204 = vmatpush.bf16.msra.mxu0 %v12979_v19  ;;  %v15215_v19 = vld [vmem:[#allocation11 + $0xc34] sm:$0xf0]  ;;  %v12643_v16 = vor.u32 %v15288_v26, %v12640_v12  ;;  %v15352_v12 = vld [vmem:[#allocation11 + $0x1084] sm:$0xf] }
 0x400   : > { %6168 = vmatmul.bf16.vlgmr.msra.gmra.mxu1 %v17412_v61  ;;  %v12343_v35 = vor.u32 %v15215_v19, %v12342_v54  ;;  %v15315_v51 = vld [vmem:[#allocation11 + $0xf54] sm:$0xf0] }
 0x401   : > { %6190 = vmatpush.bf16.msra.mxu2 %v12851_v5  ;;  %6216 = vmatpush.bf16.msrb.mxu1 %v12375_v32  ;;  %v15255_v5 = vld [vmem:[#allocation11 + $0xd74] sm:$0xf0]  ;;  %v12931_v32 = vor.u32 %v15360_v42, %v12928_v45  ;;  %v12310_v42 = vld [vmem:[#allocation11 + $0xbe8] sm:$0xf] }
 0x402   : > { %6179 = vmatpush.bf16.msrb.mxu3 %v12675_v11  ;;  %v12912_v11 = vld [vmem:[#allocation11 + $0x10b0] sm:$0xf0]  ;;  %v12503_v0 = vor.u32 %v15255_v5, %v12502_v7  ;;  %v15207_v45 = vld [vmem:[#allocation11 + $0xbf4] sm:$0xf0] }
 0x403   : > { %6205 = vmatpush.bf16.msra.mxu0 %v12963_v13  ;;  %v12326_v13 = vld [vmem:[#allocation11 + $0xc08] sm:$0xf]  ;;  %v4786_v54 = vpop.f32.mrf.mxu0  ;;  %v12915_v19 = vor.u32 %v15356_v29, %v12912_v11  ;;  %v12896_v7 = vld [vmem:[#allocation11 + $0x1090] sm:$0xf0]  ;;  %v12311_v27 = vor.u32 %v15207_v45, %v12310_v42  ;;  %v15243_v42 = vld [vmem:[#allocation11 + $0xd14] sm:$0xf0] }
 0x404   : > { %v4787_v26 = vadd.f32 %v4786_v54, %v4773_v38  ;;  %v12899_v29 = vor.u32 %v15352_v12, %v12896_v7  ;;  %v12294_v11 = vld [vmem:[#allocation11 + $0xbc8] sm:$0xf]  ;;  %v15199_v7 = vld [vmem:[#allocation11 + $0xbb4] sm:$0xf0] }
 0x405   : > { %6191 = vmatpush.bf16.msra.mxu2 %v12835_v48  ;;  %6217 = vmatpush.bf16.msrb.mxu1 %v12359_v2  ;;  %v12327_v48 = vor.u32 %v15211_v44, %v12326_v13  ;;  %v15324_v2 = vld [vmem:[#allocation11 + $0xfa4] sm:$0xf]  ;;  %v15247_v44 = vld [vmem:[#allocation11 + $0xd34] sm:$0xf0]  ;;  %v12758_v54 = vld [vmem:[#allocation11 + $0xf68] sm:$0xf] }
 0x406   : > { %6180 = vmatpush.bf16.msrb.mxu3 %v12659_v53  ;;  %v12784_v53 = vld [vmem:[#allocation11 + $0xfb0] sm:$0xf0]  ;;  %v15320_v13 = vld [vmem:[#allocation11 + $0xf84] sm:$0xf]  ;;  %v12278_v12 = vld [vmem:[#allocation11 + $0xba8] sm:$0xf] }
 0x407   : > { %6206 = vmatpush.bf16.msra.mxu0 %v12947_v30  ;;  %v17456_v30 = vpop.f32.mrf.mxu2  ;;  %v12787_v5 = vor.u32 %v15324_v2, %v12784_v53  ;;  %v12295_v2 = vor.u32 %v15203_v22, %v12294_v11  ;;  %v12454_v53 = vld [vmem:[#allocation11 + $0xd08] sm:$0xf]  ;;  %v15239_v11 = vld [vmem:[#allocation11 + $0xcf4] sm:$0xf0] }
 0x408   : > { %18032 = vst [vmem:[#allocation55_spill] sm:$0xff] %v17456_v30  ;;  %v12262_v22 = vld [vmem:[#allocation11 + $0xb88] sm:$0xf] }
 0x409   : > { %6192 = vmatpush.bf16.msra.mxu2 %v12819_v39  ;;  %6218 = vmatpush.bf16.msrb.mxu1 %v12343_v35  ;;  %v12487_v39 = vor.u32 %v15251_v4, %v12486_v34  ;;  %v12630_v35 = vld [vmem:[#allocation11 + $0xe68] sm:$0xf] }
 0x40a   : > { %6181 = vmatpush.bf16.msrb.mxu3 %v12643_v16  ;;  %v12768_v16 = vld [vmem:[#allocation11 + $0xf90] sm:$0xf0]  ;;  %v12631_v38 = vor.u32 %v15287_v24, %v12630_v35  ;;  %v12614_v4 = vld [vmem:[#allocation11 + $0xe48] sm:$0xf] }
 0x40b   : > { %6207 = vmatpush.bf16.msra.mxu0 %v12931_v32  ;;  %v12470_v32 = vld [vmem:[#allocation11 + $0xd28] sm:$0xf] }
 0x40c   : > { %v12471_v34 = vor.u32 %v15247_v44, %v12470_v32  ;;  %v12742_v24 = vld [vmem:[#allocation11 + $0xf48] sm:$0xf]  ;;  %v12455_v32 = vor.u32 %v15243_v42, %v12454_v53 }
 0x40d   : > { %6193 = vmatpush.bf16.msra.mxu2 %v12803_v52  ;;  %6219 = vmatpush.bf16.msrb.mxu1 %v12327_v48  ;;  %v15283_v52 = vld [vmem:[#allocation11 + $0xe54] sm:$0xf0]  ;;  %v12771_v48 = vor.u32 %v15320_v13, %v12768_v16  ;;  %v12598_v44 = vld [vmem:[#allocation11 + $0xe28] sm:$0xf]  ;;  %v12279_v16 = vor.u32 %v15199_v7, %v12278_v12 }
 0x40e   : > { %6230 = vmatpush.bf16.msra.mxu3 %v12503_v0  ;;  %v15319_v0 = vld [vmem:[#allocation11 + $0xf74] sm:$0xf0]  ;;  %v12615_v35 = vor.u32 %v15283_v52, %v12614_v4  ;;  %v12886_v4 = vld [vmem:[#allocation11 + $0x1068] sm:$0xf] }
 0x40f   : > { %6182 = vmatmul.bf16.vlgmr.msrb.gmra.mxu3 %v17420_v14  ;;  %6208 = vmatpush.bf16.msra.mxu0 %v12915_v19  ;;  %v4800_v45 = vpop.f32.mrf.mxu2  ;;  %v12759_v19 = vor.u32 %v15319_v0, %v12758_v54  ;;  %v12726_v54 = vld [vmem:[#allocation11 + $0xf28] sm:$0xf]  ;;  %v15351_v52 = vld [vmem:[#allocation11 + $0x1074] sm:$0xf0] }
 0x410   : > { %v4801_v55 = vadd.f32 %v4800_v45, %v4787_v26  ;;  %v12743_v26 = vor.u32 %v15315_v51, %v12742_v24  ;;  %v12422_v42 = vld [vmem:[#allocation11 + $0xcc8] sm:$0xf]  ;;  %v15235_v45 = vld [vmem:[#allocation11 + $0xcd4] sm:$0xf0] }
 0x411   : > { %6194 = vmatpush.bf16.msra.mxu2 %v12787_v5  ;;  %6220 = vmatpush.bf16.msrb.mxu1 %v12311_v27  ;;  %v15279_v5 = vld [vmem:[#allocation11 + $0xe34] sm:$0xf0]  ;;  %v17461_v27 = vpop.f32.mrf.mxu3  ;;  %v12710_v12 = vld [vmem:[#allocation11 + $0xf08] sm:$0xf] }
 0x412   : > { %6231 = vmatpush.bf16.msra.mxu3 %v12487_v39  ;;  %v4814_v39 = vpop.f32.mrf.mxu1  ;;  %18034 = vst [vmem:[#allocation57_spill] sm:$0xff] %v17461_v27  ;;  %v12599_v0 = vor.u32 %v15279_v5, %v12598_v44  ;;  %v12870_v24 = vld [vmem:[#allocation11 + $0x1048] sm:$0xf]  ;;  %v12423_v44 = vor.u32 %v15235_v45, %v12422_v42  ;;  %v15227_v42 = vld [vmem:[#allocation11 + $0xc94] sm:$0xf0] }
 0x413   : > { %6209 = vmatpush.bf16.msra.mxu0 %v12899_v29  ;;  %v4815_v13 = vadd.f32 %v4814_v39, %v4801_v55  ;;  %v12438_v29 = vld [vmem:[#allocation11 + $0xce8] sm:$0xf]  ;;  %v15347_v39 = vld [vmem:[#allocation11 + $0x1054] sm:$0xf0]  ;;  %v12488_v27 = vld [vmem:[#allocation11 + $0xd58] sm:$0xf0] }
 0x414   : > { %v12439_v55 = vor.u32 %v15239_v11, %v12438_v29  ;;  %v12566_v5 = vld [vmem:[#allocation11 + $0xde8] sm:$0xf] }
 0x415   : > { %6195 = vmatpush.bf16.msra.mxu2 %v12771_v48  ;;  %6221 = vmatpush.bf16.msrb.mxu1 %v12295_v2  ;;  %v12582_v48 = vld [vmem:[#allocation11 + $0xe08] sm:$0xf]  ;;  %v15275_v2 = vld [vmem:[#allocation11 + $0xe14] sm:$0xf0] }
 0x416   : > { %6232 = vmatpush.bf16.msra.mxu3 %v12471_v34  ;;  %12989 = vmatmul.msk.bf16.vlgmr.msra.gmra.mxu0 %vm1913_vm5, %v17426_v33  ;;  %v15311_v34 = vld [vmem:[#allocation11 + $0xf34] sm:$0xf0]  ;;  %v12583_v7 = vor.u32 %v15275_v2, %v12582_v48  ;;  %v12406_v11 = vld [vmem:[#allocation11 + $0xca8] sm:$0xf] }
 0x417   : > { %6244 = vmatpush.bf16.msrb.mxu0 %v12631_v38  ;;  %v15195_v38 = vld [vmem:[#allocation11 + $0xb94] sm:$0xf0]  ;;  %v12727_v51 = vor.u32 %v15311_v34, %v12726_v54  ;;  %v12694_v54 = vld [vmem:[#allocation11 + $0xee8] sm:$0xf] }
 0x418   : > { %6196 = vmatmul.bf16.vlgmr.msra.gmra.mxu2 %v17440_v17  ;;  %v12263_v53 = vor.u32 %v15195_v38, %v12262_v22  ;;  %v12871_v38 = vor.u32 %v15347_v39, %v12870_v24  ;;  %v12550_v2 = vld [vmem:[#allocation11 + $0xdc8] sm:$0xf]  ;;  %v15299_v24 = vld [vmem:[#allocation11 + $0xed4] sm:$0xf0] }
 0x419   : > { %6258 = vmatpush.bf16.msrb.mxu2 %v12759_v19  ;;  %6222 = vmatpush.bf16.msrb.mxu1 %v12279_v16  ;;  %v12887_v19 = vor.u32 %v15351_v52, %v12886_v4  ;;  %v4828_v29 = vpop.f32.mrf.mxu3  ;;  %v15231_v16 = vld [vmem:[#allocation11 + $0xcb4] sm:$0xf0]  ;;  %v12854_v52 = vld [vmem:[#allocation11 + $0x1028] sm:$0xf] }
 0x41a   : > { %6233 = vmatpush.bf16.msra.mxu3 %v12455_v32  ;;  %v15271_v32 = vld [vmem:[#allocation11 + $0xdf4] sm:$0xf0]  ;;  %v17466_v22 = vadd.f32 %v4828_v29, %v4815_v13  ;;  %v12407_v48 = vor.u32 %v15231_v16, %v12406_v11  ;;  %v12390_v13 = vld [vmem:[#allocation11 + $0xc88] sm:$0xf] }
 0x41b   : > { %6245 = vmatpush.bf16.msrb.mxu0 %v12615_v35  ;;  %v15307_v35 = vld [vmem:[#allocation11 + $0xf14] sm:$0xf0]  ;;  %v12567_v34 = vor.u32 %v15271_v32, %v12566_v5  ;;  %v12838_v39 = vld [vmem:[#allocation11 + $0x1008] sm:$0xf]  ;;  %v12391_v32 = vor.u32 %v15227_v42, %v12390_v13 }
 0x41c   : > { %v15303_v4 = vld [vmem:[#allocation11 + $0xef4] sm:$0xf0]  ;;  %v12518_v13 = vld [vmem:[#allocation11 + $0xd88] sm:$0xf] }
 0x41d   : > { %6259 = vmatpush.bf16.msrb.mxu2 %v12743_v26  ;;  %6223 = vmatpush.bf16.msrb.mxu1 %v12263_v53  ;;  %v12711_v26 = vor.u32 %v15307_v35, %v12710_v12  ;;  %v15267_v53 = vld [vmem:[#allocation11 + $0xdd4] sm:$0xf0]  ;;  %v12695_v45 = vor.u32 %v15303_v4, %v12694_v54  ;;  %v12982_v12 = vld [vmem:[#allocation11 + $0x1128] sm:$0xf] }
 0x41e   : > { %6234 = vmatpush.bf16.msra.mxu3 %v12439_v55  ;;  %v15343_v55 = vld [vmem:[#allocation11 + $0x1034] sm:$0xf0]  ;;  %v12966_v54 = vld [vmem:[#allocation11 + $0x1108] sm:$0xf] }
 0x41f   : > { %6246 = vmatpush.bf16.msrb.mxu0 %v12599_v0  ;;  %v17468_v0 = vpop.f32.mrf.mxu0  ;;  %v15375_v35 = vld [vmem:[#allocation11 + $0x1134] sm:$0xf0] }
 0x420   : > { %18035 = vst [vmem:[#allocation58_spill] sm:$0xff] %v17468_v0  ;;  %6224 = vmatmul.bf16.vlgmr.msrb.gmra.mxu1 %v17401_v25  ;;  %v15339_v5 = vld [vmem:[#allocation11 + $0x1014] sm:$0xf0]  ;;  %v12983_v11 = vor.u32 %v15375_v35, %v12982_v12 }
 0x421   : > { %6260 = vmatpush.bf16.msrb.mxu2 %v12727_v51  ;;  %6272 = vmatpush.bf16.msra.mxu1 %v12887_v19  ;;  %v12855_v51 = vor.u32 %v15343_v55, %v12854_v52  ;;  %v12678_v19 = vld [vmem:[#allocation11 + $0xec8] sm:$0xf]  ;;  %v15263_v29 = vld [vmem:[#allocation11 + $0xdb4] sm:$0xf0]  ;;  %v17471_v52 = vpop.f32.mrf.mxu2 }
 0x422   : > { %6235 = vmatpush.bf16.msra.mxu3 %v12423_v44  ;;  %v12534_v44 = vld [vmem:[#allocation11 + $0xda8] sm:$0xf]  ;;  %v12679_v16 = vor.u32 %v15299_v24, %v12678_v19  ;;  %v15371_v4 = vld [vmem:[#allocation11 + $0x1114] sm:$0xf0]  ;;  %18036 = vst [vmem:[#allocation59_spill] sm:$0xff] %v17471_v52 }
 0x423   : > { %6247 = vmatpush.bf16.msrb.mxu0 %v12583_v7  ;;  %v12551_v7 = vor.u32 %v15267_v53, %v12550_v2  ;;  %v15295_v2 = vld [vmem:[#allocation11 + $0xeb4] sm:$0xf0]  ;;  %v12822_v53 = vld [vmem:[#allocation11 + $0xfe8] sm:$0xf]  ;;  %v12376_v19 = vld [vmem:[#allocation11 + $0xc78] sm:$0xf0] }
 0x424   : > { %v15335_v0 = vld [vmem:[#allocation11 + $0xff4] sm:$0xf0]  ;;  %v12646_v24 = vld [vmem:[#allocation11 + $0xe88] sm:$0xf] }
 0x425   : > { %6261 = vmatpush.bf16.msrb.mxu2 %v12711_v26  ;;  %6273 = vmatpush.bf16.msra.mxu1 %v12871_v38  ;;  %v12839_v26 = vor.u32 %v15339_v5, %v12838_v39  ;;  %v12662_v38 = vld [vmem:[#allocation11 + $0xea8] sm:$0xf]  ;;  %v15259_v42 = vld [vmem:[#allocation11 + $0xd94] sm:$0xf0]  ;;  %v12823_v35 = vor.u32 %v15335_v0, %v12822_v53 }
 0x426   : > { %6236 = vmatpush.bf16.msra.mxu3 %v12407_v48  ;;  %v12663_v12 = vor.u32 %v15295_v2, %v12662_v38  ;;  %v12950_v39 = vld [vmem:[#allocation11 + $0x10e8] sm:$0xf]  ;;  %v12519_v5 = vor.u32 %v15259_v42, %v12518_v13  ;;  %v15363_v2 = vld [vmem:[#allocation11 + $0x10d4] sm:$0xf0] }
 0x427   : > { %6248 = vmatpush.bf16.msrb.mxu0 %v12567_v34  ;;  %v4842_v55 = vpop.f32.mrf.mxu0  ;;  %v12535_v34 = vor.u32 %v15263_v29, %v12534_v44  ;;  %v15291_v44 = vld [vmem:[#allocation11 + $0xe94] sm:$0xf0]  ;;  %v12934_v38 = vld [vmem:[#allocation11 + $0x10c8] sm:$0xf] }
 0x428   : > { %v4843_v48 = vadd.f32 %v4842_v55, %v17361_v8  ;;  %v12806_v8 = vld [vmem:[#allocation11 + $0xfc8] sm:$0xf]  ;;  %v15253_v55 = vld [vmem:[#allocation11 + $0xd6c] sm:$0xf]  ;;  %v12647_v0 = vor.u32 %v15291_v44, %v12646_v24  ;;  %v15327_v42 = vld [vmem:[#allocation11 + $0xfb4] sm:$0xf0] }
 0x429   : > { %6262 = vmatpush.bf16.msrb.mxu2 %v12695_v45  ;;  %6274 = vmatpush.bf16.msra.mxu1 %v12855_v51  ;;  %v12967_v45 = vor.u32 %v15371_v4, %v12966_v54  ;;  %v15221_v51 = vld [vmem:[#allocation11 + $0xc6c] sm:$0xf]  ;;  %v4856_v53 = vpop.f32.mrf.mxu2  ;;  %v12790_v13 = vld [vmem:[#allocation11 + $0xfa8] sm:$0xf]  ;;  %v15359_v44 = vld [vmem:[#allocation11 + $0x10b4] sm:$0xf0] }
 0x42a   : > { %6237 = vmatpush.bf16.msra.mxu3 %v12391_v32  ;;  %v15331_v32 = vld [vmem:[#allocation11 + $0xfd4] sm:$0xf0]  ;;  %v12379_v29 = vor.u32 %v15221_v51, %v12376_v19  ;;  %v15217_v4 = vld [vmem:[#allocation11 + $0xc4c] sm:$0xf]  ;;  %v4857_v52 = vadd.f32 %v4856_v53, %v4843_v48  ;;  %v12918_v24 = vld [vmem:[#allocation11 + $0x10a8] sm:$0xf] }
 0x42b   : > { %6249 = vmatpush.bf16.msrb.mxu0 %v12551_v7  ;;  %v15367_v7 = vld [vmem:[#allocation11 + $0x10f4] sm:$0xf0]  ;;  %v15249_v19 = vld [vmem:[#allocation11 + $0xd4c] sm:$0xf]  ;;  %v12774_v48 = vld [vmem:[#allocation11 + $0xf88] sm:$0xf] }
 0x42c   : > { %v12951_v54 = vor.u32 %v15367_v7, %v12950_v39  ;;  %v15213_v39 = vld [vmem:[#allocation11 + $0xc2c] sm:$0xf]  ;;  %v12344_v7 = vld [vmem:[#allocation11 + $0xc38] sm:$0xf0] }
 0x42d   : > { %6263 = vmatpush.bf16.msrb.mxu2 %v12679_v16  ;;  %6275 = vmatpush.bf16.msra.mxu1 %v12839_v26  ;;  %v12360_v16 = vld [vmem:[#allocation11 + $0xc58] sm:$0xf0]  ;;  %v12807_v26 = vor.u32 %v15331_v32, %v12806_v8  ;;  %v15323_v8 = vld [vmem:[#allocation11 + $0xf94] sm:$0xf0]  ;;  %v15245_v32 = vld [vmem:[#allocation11 + $0xd2c] sm:$0xf] }
 0x42e   : > { %6288 = vmatpush.bf16.msrb.mxu3 %v12983_v11  ;;  %v12504_v11 = vld [vmem:[#allocation11 + $0xd78] sm:$0xf0]  ;;  %v12363_v51 = vor.u32 %v15217_v4, %v12360_v16  ;;  %v12919_v16 = vor.u32 %v15359_v44, %v12918_v24  ;;  %v15205_v24 = vld [vmem:[#allocation11 + $0xbec] sm:$0xf] }
 0x42f   : > { %6238 = vmatmul.bf16.vlgmr.msra.gmra.mxu3 %v17395_v58  ;;  %6250 = vmatpush.bf16.msrb.mxu0 %v12535_v34  ;;  %v12507_v34 = vor.u32 %v15253_v55, %v12504_v11  ;;  %v12347_v55 = vor.u32 %v15213_v39, %v12344_v7  ;;  %v12472_v11 = vld [vmem:[#allocation11 + $0xd38] sm:$0xf0]  ;;  %v15313_v7 = vld [vmem:[#allocation11 + $0xf4c] sm:$0xf] }
 0x430   : > { %v12760_v4 = vld [vmem:[#allocation11 + $0xf78] sm:$0xf0]  ;;  %v12475_v53 = vor.u32 %v15245_v32, %v12472_v11 }
 0x431   : > { %6264 = vmatpush.bf16.msrb.mxu2 %v12663_v12  ;;  %6276 = vmatpush.bf16.msra.mxu1 %v12823_v35  ;;  %v17475_v12 = vpop.f32.mrf.mxu3  ;;  %v12791_v35 = vor.u32 %v15327_v42, %v12790_v13  ;;  %v15241_v13 = vld [vmem:[#allocation11 + $0xd0c] sm:$0xf]  ;;  %v12456_v39 = vld [vmem:[#allocation11 + $0xd18] sm:$0xf0] }
 0x432   : > { %6289 = vmatpush.bf16.msrb.mxu3 %v12967_v45  ;;  %v12935_v45 = vor.u32 %v15363_v2, %v12934_v38  ;;  %18037 = vst [vmem:[#allocation60_spill] sm:$0xff] %v17475_v12  ;;  %v12775_v38 = vor.u32 %v15323_v8, %v12774_v48  ;;  %v12902_v2 = vld [vmem:[#allocation11 + $0x1088] sm:$0xf]  ;;  %v15285_v42 = vld [vmem:[#allocation11 + $0xe6c] sm:$0xf]  ;;  %v17481_v8 = vpop.f32.mrf.mxu0  ;;  %v12459_v32 = vor.u32 %v15241_v13, %v12456_v39 }
 0x433   : > { %6251 = vmatpush.bf16.msrb.mxu0 %v12519_v5  ;;  %v12491_v5 = vor.u32 %v15249_v19, %v12488_v27  ;;  %v15355_v27 = vld [vmem:[#allocation11 + $0x1094] sm:$0xf0]  ;;  %v12744_v12 = vld [vmem:[#allocation11 + $0xf58] sm:$0xf0]  ;;  %18039 = vst [vmem:[#allocation62_spill] sm:$0xff] %v17481_v8 }
 0x434   : > { %v12312_v44 = vld [vmem:[#allocation11 + $0xbf8] sm:$0xf0]  ;;  %v12747_v11 = vor.u32 %v15313_v7, %v12744_v12 }
 0x435   : > { %6265 = vmatpush.bf16.msrb.mxu2 %v12647_v0  ;;  %6277 = vmatpush.bf16.msra.mxu1 %v12807_v26  ;;  %v15209_v0 = vld [vmem:[#allocation11 + $0xc0c] sm:$0xf]  ;;  %v12328_v26 = vld [vmem:[#allocation11 + $0xc18] sm:$0xf0] }
 0x436   : > { %6290 = vmatpush.bf16.msrb.mxu3 %v12951_v54  ;;  %6252 = vmatmul.bf16.vlgmr.msrb.gmra.mxu0 %v17412_v61  ;;  %v15317_v54 = vld [vmem:[#allocation11 + $0xf6c] sm:$0xf]  ;;  %v12331_v19 = vor.u32 %v15209_v0, %v12328_v26  ;;  %v12315_v26 = vor.u32 %v15205_v24, %v12312_v44  ;;  %v12424_v7 = vld [vmem:[#allocation11 + $0xcd8] sm:$0xf0] }
 0x437   : > { %6300 = vmatpush.bf16.msra.mxu0 %v12379_v29  ;;  %v17478_v29 = vpop.f32.mrf.mxu1  ;;  %v15305_v24 = vld [vmem:[#allocation11 + $0xf0c] sm:$0xf] }
 0x438   : > { %18038 = vst [vmem:[#allocation61_spill] sm:$0xff] %v17478_v29  ;;  %6266 = vmatmul.bf16.vlgmr.msrb.gmra.mxu2 %v17420_v14  ;;  %v17483_v29 = vpop.f32.mrf.mxu2  ;;  %v15197_v44 = vld [vmem:[#allocation11 + $0xbac] sm:$0xf] }
 0x439   : > { %6314 = vmatpush.bf16.msra.mxu2 %v12507_v34  ;;  %6278 = vmatpush.bf16.msra.mxu1 %v12791_v35  ;;  %v12763_v34 = vor.u32 %v15317_v54, %v12760_v4  ;;  %v4870_v35 = vpop.f32.mrf.mxu3  ;;  %v15237_v54 = vld [vmem:[#allocation11 + $0xcec] sm:$0xf]  ;;  %v12616_v4 = vld [vmem:[#allocation11 + $0xe58] sm:$0xf0]  ;;  %18040 = vst [vmem:[#allocation63_spill] sm:$0xff] %v17483_v29 }
 0x43a   : > { %6291 = vmatpush.bf16.msrb.mxu3 %v12935_v45  ;;  %v12903_v45 = vor.u32 %v15355_v27, %v12902_v2  ;;  %v15309_v2 = vld [vmem:[#allocation11 + $0xf2c] sm:$0xf]  ;;  %v12728_v27 = vld [vmem:[#allocation11 + $0xf38] sm:$0xf0] }
 0x43b   : > { %6301 = vmatpush.bf16.msra.mxu0 %v12363_v51  ;;  %v12632_v51 = vld [vmem:[#allocation11 + $0xe78] sm:$0xf0]  ;;  %v12731_v13 = vor.u32 %v15309_v2, %v12728_v27  ;;  %v15301_v2 = vld [vmem:[#allocation11 + $0xeec] sm:$0xf] }
 0x43c   : > { %v12635_v48 = vor.u32 %v15285_v42, %v12632_v51  ;;  %v15233_v42 = vld [vmem:[#allocation11 + $0xccc] sm:$0xf]  ;;  %v12696_v27 = vld [vmem:[#allocation11 + $0xef8] sm:$0xf0] }
 0x43d   : > { %6315 = vmatpush.bf16.msra.mxu2 %v12491_v5  ;;  %6279 = vmatpush.bf16.msra.mxu1 %v12775_v38  ;;  %v4871_v5 = vadd.f32 %v4870_v35, %v4857_v52  ;;  %v15201_v52 = vld [vmem:[#allocation11 + $0xbcc] sm:$0xf]  ;;  %v12280_v35 = vld [vmem:[#allocation11 + $0xbb8] sm:$0xf0] }
 0x43e   : > { %6292 = vmatpush.bf16.msrb.mxu3 %v12919_v16  ;;  %v12440_v16 = vld [vmem:[#allocation11 + $0xcf8] sm:$0xf0]  ;;  %v15277_v51 = vld [vmem:[#allocation11 + $0xe2c] sm:$0xf] }
 0x43f   : > { %6302 = vmatpush.bf16.msra.mxu0 %v12347_v55  ;;  %v15281_v55 = vld [vmem:[#allocation11 + $0xe4c] sm:$0xf]  ;;  %v4884_v0 = vpop.f32.mrf.mxu1  ;;  %v12443_v12 = vor.u32 %v15237_v54, %v12440_v16  ;;  %v12283_v16 = vor.u32 %v15197_v44, %v12280_v35  ;;  %v12264_v29 = vld [vmem:[#allocation11 + $0xb98] sm:$0xf0] }
 0x440   : > { %6280 = vmatmul.bf16.vlgmr.msra.gmra.mxu1 %v17440_v17  ;;  %v4885_v38 = vadd.f32 %v4884_v0, %v4871_v5  ;;  %v4898_v5 = vpop.f32.mrf.mxu0  ;;  %v15229_v54 = vld [vmem:[#allocation11 + $0xcac] sm:$0xf]  ;;  %v12680_v44 = vld [vmem:[#allocation11 + $0xed8] sm:$0xf0] }
 0x441   : > { %6316 = vmatpush.bf16.msra.mxu2 %v12475_v53  ;;  %6342 = vmatpush.bf16.msrb.mxu1 %v12763_v34  ;;  %v12296_v53 = vld [vmem:[#allocation11 + $0xbd8] sm:$0xf0]  ;;  %v12619_v34 = vor.u32 %v15281_v55, %v12616_v4  ;;  %v15273_v55 = vld [vmem:[#allocation11 + $0xe0c] sm:$0xf] }
 0x442   : > { %6293 = vmatpush.bf16.msrb.mxu3 %v12903_v45  ;;  %v12299_v39 = vor.u32 %v15201_v52, %v12296_v53  ;;  %v12712_v45 = vld [vmem:[#allocation11 + $0xf18] sm:$0xf0]  ;;  %v4899_v0 = vadd.f32 %v4898_v5, %v4885_v38  ;;  %v4912_v52 = vpop.f32.mrf.mxu2  ;;  %v15193_v53 = vld [vmem:[#allocation11 + $0xb8c] sm:$0xf] }
 0x443   : > { %6303 = vmatpush.bf16.msra.mxu0 %v12331_v19  ;;  %v12600_v19 = vld [vmem:[#allocation11 + $0xe38] sm:$0xf0]  ;;  %v15269_v38 = vld [vmem:[#allocation11 + $0xdec] sm:$0xf] }
 0x444   : > { %v12584_v4 = vld [vmem:[#allocation11 + $0xe18] sm:$0xf0]  ;;  %v17488_v8 = vadd.f32 %v4912_v52, %v4899_v0  ;;  %v15373_v5 = vld [vmem:[#allocation11 + $0x112c] sm:$0xf] }
 0x445   : > { %6317 = vmatpush.bf16.msra.mxu2 %v12459_v32  ;;  %6343 = vmatpush.bf16.msrb.mxu1 %v12747_v11  ;;  %v12427_v32 = vor.u32 %v15233_v42, %v12424_v7  ;;  %v12715_v11 = vor.u32 %v15305_v24, %v12712_v45  ;;  %v12267_v7 = vor.u32 %v15193_v53, %v12264_v29  ;;  %v12392_v24 = vld [vmem:[#allocation11 + $0xc98] sm:$0xf0]  ;;  %v15297_v45 = vld [vmem:[#allocation11 + $0xecc] sm:$0xf] }
 0x446   : > { %6328 = vmatpush.bf16.msra.mxu3 %v12635_v48  ;;  %v12603_v48 = vor.u32 %v15277_v51, %v12600_v19  ;;  %v12699_v51 = vor.u32 %v15301_v2, %v12696_v27  ;;  %v15225_v19 = vld [vmem:[#allocation11 + $0xc8c] sm:$0xf]  ;;  %v12984_v0 = vld [vmem:[#allocation11 + $0x1138] sm:$0xf0] }
 0x447   : > { %12990 = vmatmul.msk.bf16.vlgmr.msrb.gmra.mxu3 %vm1913_vm5, %v17426_v33  ;;  %6304 = vmatpush.bf16.msra.mxu0 %v12315_v26  ;;  %v12408_v26 = vld [vmem:[#allocation11 + $0xcb8] sm:$0xf0]  ;;  %v12987_v2 = vor.u32 %v15373_v5, %v12984_v0  ;;  %v15369_v52 = vld [vmem:[#allocation11 + $0x110c] sm:$0xf]  ;;  %v13234_v0 = vld [vmem:[#allocation11 + $0x1320] sm:$0xf] }
 0x448   : > { %v12411_v42 = vor.u32 %v15229_v54, %v12408_v26  ;;  %v15265_v54 = vld [vmem:[#allocation11 + $0xdcc] sm:$0xf]  ;;  %v12552_v26 = vld [vmem:[#allocation11 + $0xdd8] sm:$0xf0] }
 0x449   : > { %6318 = vmatpush.bf16.msra.mxu2 %v12443_v12  ;;  %6344 = vmatpush.bf16.msrb.mxu1 %v12731_v13  ;;  %v15349_v12 = vld [vmem:[#allocation11 + $0x106c] sm:$0xf]  ;;  %v12888_v13 = vld [vmem:[#allocation11 + $0x1078] sm:$0xf0] }
 0x44a   : > { %6329 = vmatpush.bf16.msra.mxu3 %v12619_v34  ;;  %v12587_v34 = vor.u32 %v15273_v55, %v12584_v4  ;;  %v12891_v35 = vor.u32 %v15349_v12, %v12888_v13  ;;  %v15345_v55 = vld [vmem:[#allocation11 + $0x104c] sm:$0xf]  ;;  %v12872_v4 = vld [vmem:[#allocation11 + $0x1058] sm:$0xf0]  ;;  %v12555_v12 = vor.u32 %v15265_v54, %v12552_v26 }
 0x44b   : > { %6305 = vmatpush.bf16.msra.mxu0 %v12299_v39  ;;  %v12568_v39 = vld [vmem:[#allocation11 + $0xdf8] sm:$0xf0]  ;;  %v12875_v27 = vor.u32 %v15345_v55, %v12872_v4  ;;  %v15337_v4 = vld [vmem:[#allocation11 + $0x100c] sm:$0xf] }
 0x44c   : > { %v12664_v29 = vld [vmem:[#allocation11 + $0xeb8] sm:$0xf0]  ;;  %v15257_v54 = vld [vmem:[#allocation11 + $0xd8c] sm:$0xf] }
 0x44d   : > { %6319 = vmatpush.bf16.msra.mxu2 %v12427_v32  ;;  %6345 = vmatpush.bf16.msrb.mxu1 %v12715_v11  ;;  %v12395_v32 = vor.u32 %v15225_v19, %v12392_v24  ;;  %v12683_v11 = vor.u32 %v15297_v45, %v12680_v44  ;;  %v12968_v53 = vld [vmem:[#allocation11 + $0x1118] sm:$0xf0]  ;;  %v15261_v19 = vld [vmem:[#allocation11 + $0xdac] sm:$0xf] }
 0x44e   : > { %6330 = vmatpush.bf16.msra.mxu3 %v12603_v48  ;;  %v12571_v48 = vor.u32 %v15269_v38, %v12568_v39  ;;  %v12856_v13 = vld [vmem:[#allocation11 + $0x1038] sm:$0xf0]  ;;  %v17490_v38 = vpop.f32.mrf.mxu1  ;;  %v15289_v24 = vld [vmem:[#allocation11 + $0xe8c] sm:$0xf] }
 0x44f   : > { %6306 = vmatpush.bf16.msra.mxu0 %v12283_v16  ;;  %v15293_v16 = vld [vmem:[#allocation11 + $0xeac] sm:$0xf]  ;;  %18041 = vst [vmem:[#allocation64_spill] sm:$0xff] %v17490_v38  ;;  %v12536_v39 = vld [vmem:[#allocation11 + $0xdb8] sm:$0xf0] }
 0x450   : > { %v12648_v45 = vld [vmem:[#allocation11 + $0xe98] sm:$0xf0]  ;;  %v15365_v44 = vld [vmem:[#allocation11 + $0x10ec] sm:$0xf]  ;;  %v12539_v55 = vor.u32 %v15261_v19, %v12536_v39 }
 0x451   : > { %6320 = vmatpush.bf16.msra.mxu2 %v12411_v42  ;;  %6346 = vmatpush.bf16.msrb.mxu1 %v12699_v51  ;;  %v17492_v42 = vpop.f32.mrf.mxu3  ;;  %v12667_v51 = vor.u32 %v15293_v16, %v12664_v29  ;;  %v12952_v5 = vld [vmem:[#allocation11 + $0x10f8] sm:$0xf0]  ;;  %v15361_v16 = vld [vmem:[#allocation11 + $0x10cc] sm:$0xf]  ;;  %v13106_v29 = vld [vmem:[#allocation11 + $0x1220] sm:$0xf] }
 0x452   : > { %6331 = vmatpush.bf16.msra.mxu3 %v12587_v34  ;;  %v15341_v34 = vld [vmem:[#allocation11 + $0x102c] sm:$0xf]  ;;  %18042 = vst [vmem:[#allocation65_spill] sm:$0xff] %v17492_v42  ;;  %v12520_v26 = vld [vmem:[#allocation11 + $0xd98] sm:$0xf0] }
 0x453   : > { %6307 = vmatpush.bf16.msra.mxu0 %v12267_v7  ;;  %v12971_v7 = vor.u32 %v15369_v52, %v12968_v53  ;;  %v12936_v53 = vld [vmem:[#allocation11 + $0x10d8] sm:$0xf0]  ;;  %v15536_v42 = vld [vmem:[#allocation11 + $0x1644] sm:$0xf] }
 0x454   : > { %v12824_v19 = vld [vmem:[#allocation11 + $0xff8] sm:$0xf0] }
 0x455   : > { %6321 = vmatpush.bf16.msra.mxu2 %v12395_v32  ;;  %6347 = vmatpush.bf16.msrb.mxu1 %v12683_v11  ;;  %v12840_v32 = vld [vmem:[#allocation11 + $0x1018] sm:$0xf0]  ;;  %v12651_v11 = vor.u32 %v15289_v24, %v12648_v45 }
 0x456   : > { %6332 = vmatpush.bf16.msra.mxu3 %v12571_v48  ;;  %6308 = vmatmul.bf16.vlgmr.msra.gmra.mxu0 %v17401_v25  ;;  %v15438_v48 = vld [vmem:[#allocation11 + $0x132c] sm:$0xf0]  ;;  %v12955_v25 = vor.u32 %v15365_v44, %v12952_v5  ;;  %v12843_v52 = vor.u32 %v15337_v4, %v12840_v32  ;;  %v6071_v39 = vpop.f32.mrf.mxu1  ;;  %v15357_v5 = vld [vmem:[#allocation11 + $0x10ac] sm:$0xf]  ;;  %v17498_v4 = vpop.f32.mrf.mxu0  ;;  %v12920_v32 = vld [vmem:[#allocation11 + $0x10b8] sm:$0xf0] }
 0x457   : > { %6356 = vmatpush.bf16.msrb.mxu0 %v12891_v35  ;;  %v12859_v35 = vor.u32 %v15341_v34, %v12856_v13  ;;  %v13218_v34 = vld [vmem:[#allocation11 + $0x1300] sm:$0xf]  ;;  %v15434_v13 = vld [vmem:[#allocation11 + $0x130c] sm:$0xf0]  ;;  %18044 = vst [vmem:[#allocation67_spill] sm:$0xff] %v17498_v4 }
 0x458   : > { %6322 = vmatmul.bf16.vlgmr.msra.gmra.mxu2 %v17395_v58  ;;  %v12523_v58 = vor.u32 %v15257_v54, %v12520_v26  ;;  %v13219_v44 = vor.u32 %v15434_v13, %v13218_v34  ;;  %v13202_v54 = vld [vmem:[#allocation11 + $0x12e0] sm:$0xf]  ;;  %v15430_v26 = vld [vmem:[#allocation11 + $0x12ec] sm:$0xf0]  ;;  %v15321_v4 = vld [vmem:[#allocation11 + $0xf8c] sm:$0xf] }
 0x459   : > { %6372 = vmatpush.bf16.msrb.mxu2 %v12987_v2  ;;  %6348 = vmatpush.bf16.msrb.mxu1 %v12667_v51  ;;  %v13235_v2 = vor.u32 %v15438_v48, %v13234_v0  ;;  %v6057_v51 = vpop.f32.mrf.mxu3  ;;  %v13090_v0 = vld [vmem:[#allocation11 + $0x1200] sm:$0xf]  ;;  %v17496_v48 = vpop.f32.mrf.mxu2  ;;  %v15398_v13 = vld [vmem:[#allocation11 + $0x11ec] sm:$0xf0]  ;;  %v12776_v38 = vld [vmem:[#allocation11 + $0xf98] sm:$0xf0] }
 0x45a   : > { %6333 = vmatpush.bf16.msra.mxu3 %v12555_v12  ;;  %v15333_v12 = vld [vmem:[#allocation11 + $0xfec] sm:$0xf]  ;;  %v6072_v45 = vadd.f32 %v6071_v39, %v6057_v51  ;;  %18043 = vst [vmem:[#allocation66_spill] sm:$0xff] %v17496_v48  ;;  %v13074_v34 = vld [vmem:[#allocation11 + $0x11e0] sm:$0xf] }
 0x45b   : > { %6357 = vmatpush.bf16.msrb.mxu0 %v12875_v27  ;;  %v15406_v27 = vld [vmem:[#allocation11 + $0x122c] sm:$0xf0]  ;;  %v15325_v39 = vld [vmem:[#allocation11 + $0xfac] sm:$0xf]  ;;  %v12792_v51 = vld [vmem:[#allocation11 + $0xfb8] sm:$0xf0] }
 0x45c   : > { %v13107_v24 = vor.u32 %v15406_v27, %v13106_v29  ;;  %v12923_v29 = vor.u32 %v15357_v5, %v12920_v32  ;;  %v13203_v27 = vor.u32 %v15430_v26, %v13202_v54  ;;  %v13058_v5 = vld [vmem:[#allocation11 + $0x11c0] sm:$0xf]  ;;  %v15422_v26 = vld [vmem:[#allocation11 + $0x12ac] sm:$0xf0] }
 0x45d   : > { %6373 = vmatpush.bf16.msrb.mxu2 %v12971_v7  ;;  %6349 = vmatpush.bf16.msrb.mxu1 %v12651_v11  ;;  %v12939_v7 = vor.u32 %v15361_v16, %v12936_v53  ;;  %v15329_v11 = vld [vmem:[#allocation11 + $0xfcc] sm:$0xf]  ;;  %v12904_v53 = vld [vmem:[#allocation11 + $0x1098] sm:$0xf0]  ;;  %v13170_v54 = vld [vmem:[#allocation11 + $0x12a0] sm:$0xf] }
 0x45e   : > { %6334 = vmatpush.bf16.msra.mxu3 %v12539_v55  ;;  %v12827_v55 = vor.u32 %v15333_v12, %v12824_v19  ;;  %v15353_v16 = vld [vmem:[#allocation11 + $0x108c] sm:$0xf]  ;;  %v13186_v12 = vld [vmem:[#allocation11 + $0x12c0] sm:$0xf]  ;;  %v15426_v19 = vld [vmem:[#allocation11 + $0x12cc] sm:$0xf0]  ;;  %v6099_v32 = vpop.f32.mrf.mxu0 }
 0x45f   : > { %6358 = vmatpush.bf16.msrb.mxu0 %v12859_v35  ;;  %v15402_v35 = vld [vmem:[#allocation11 + $0x120c] sm:$0xf0] }
 0x460   : > { %6350 = vmatmul.bf16.vlgmr.msrb.gmra.mxu1 %v17420_v14  ;;  %v13362_v14 = vld [vmem:[#allocation11 + $0x1420] sm:$0xf]  ;;  %v15466_v48 = vld [vmem:[#allocation11 + $0x140c] sm:$0xf0] }
 0x461   : > { %6374 = vmatpush.bf16.msrb.mxu2 %v12955_v25  ;;  %7538 = vmatpush.bf16.msra.mxu1 %v13235_v2  ;;  %v12808_v25 = vld [vmem:[#allocation11 + $0xfd8] sm:$0xf0]  ;;  %v13091_v2 = vor.u32 %v15402_v35, %v13090_v0  ;;  %v15394_v0 = vld [vmem:[#allocation11 + $0x11cc] sm:$0xf0]  ;;  %v6085_v35 = vpop.f32.mrf.mxu2 }
 0x462   : > { %6335 = vmatpush.bf16.msra.mxu3 %v12523_v58  ;;  %v15470_v58 = vld [vmem:[#allocation11 + $0x142c] sm:$0xf0] }
 0x463   : > { %6359 = vmatpush.bf16.msrb.mxu0 %v12843_v52  ;;  %v12811_v52 = vor.u32 %v15329_v11, %v12808_v25  ;;  %v13346_v11 = vld [vmem:[#allocation11 + $0x1400] sm:$0xf]  ;;  %v6086_v25 = vadd.f32 %v6085_v35, %v6072_v45  ;;  %v15418_v45 = vld [vmem:[#allocation11 + $0x128c] sm:$0xf0] }
 0x464   : > { %v15386_v35 = vld [vmem:[#allocation11 + $0x118c] sm:$0xf0] }
 0x465   : > { %6375 = vmatpush.bf16.msrb.mxu2 %v12939_v7  ;;  %7539 = vmatpush.bf16.msra.mxu1 %v13219_v44  ;;  %v12907_v7 = vor.u32 %v15353_v16, %v12904_v53  ;;  %v13187_v44 = vor.u32 %v15426_v19, %v13186_v12  ;;  %v17502_v16 = vadd.f32 %v6099_v32, %v6086_v25  ;;  %v13154_v19 = vld [vmem:[#allocation11 + $0x1280] sm:$0xf] }
 0x466   : > { %7524 = vmatpush.bf16.msrb.mxu3 %v13107_v24  ;;  %v13075_v24 = vor.u32 %v15398_v13, %v13074_v34  ;;  %v13171_v53 = vor.u32 %v15422_v26, %v13170_v54  ;;  %v13042_v34 = vld [vmem:[#allocation11 + $0x11a0] sm:$0xf]  ;;  %v15390_v13 = vld [vmem:[#allocation11 + $0x11ac] sm:$0xf0]  ;;  %v12779_v12 = vor.u32 %v15321_v4, %v12776_v38 }
 0x467   : > { %6336 = vmatmul.bf16.vlgmr.msra.gmra.mxu3 %v17412_v61  ;;  %6360 = vmatpush.bf16.msrb.mxu0 %v12827_v55  ;;  %v13363_v61 = vor.u32 %v15470_v58, %v13362_v14  ;;  %v12795_v55 = vor.u32 %v15325_v39, %v12792_v51  ;;  %v17504_v14 = vpop.f32.mrf.mxu1  ;;  %v13330_v39 = vld [vmem:[#allocation11 + $0x13e0] sm:$0xf]  ;;  %v15462_v51 = vld [vmem:[#allocation11 + $0x13ec] sm:$0xf0] }
 0x468   : > { %v13331_v38 = vor.u32 %v15462_v51, %v13330_v39  ;;  %v15414_v4 = vld [vmem:[#allocation11 + $0x126c] sm:$0xf0]  ;;  %v13442_v51 = vld [vmem:[#allocation11 + $0x14c0] sm:$0xf] }
 0x469   : > { %6376 = vmatpush.bf16.msrb.mxu2 %v12923_v29  ;;  %7540 = vmatpush.bf16.msra.mxu1 %v13203_v27  ;;  %v13490_v29 = vld [vmem:[#allocation11 + $0x1520] sm:$0xf]  ;;  %v15502_v27 = vld [vmem:[#allocation11 + $0x152c] sm:$0xf0] }
 0x46a   : > { %7525 = vmatpush.bf16.msrb.mxu3 %v13091_v2  ;;  %v13059_v2 = vor.u32 %v15394_v0, %v13058_v5  ;;  %v13491_v58 = vor.u32 %v15502_v27, %v13490_v29  ;;  %v13155_v5 = vor.u32 %v15418_v45, %v13154_v19  ;;  %v13026_v0 = vld [vmem:[#allocation11 + $0x1180] sm:$0xf]  ;;  %v15494_v26 = vld [vmem:[#allocation11 + $0x14ec] sm:$0xf0] }
 0x46b   : > { %6361 = vmatpush.bf16.msrb.mxu0 %v12811_v52  ;;  %v13347_v52 = vor.u32 %v15466_v48, %v13346_v11  ;;  %v13138_v48 = vld [vmem:[#allocation11 + $0x1260] sm:$0xf]  ;;  %v13027_v54 = vor.u32 %v15386_v35, %v13026_v0  ;;  %v17508_v11 = vpop.f32.mrf.mxu3  ;;  %v15382_v29 = vld [vmem:[#allocation11 + $0x116c] sm:$0xf0] }
 0x46c   : > { %v13139_v25 = vor.u32 %v15414_v4, %v13138_v48  ;;  %v15454_v19 = vld [vmem:[#allocation11 + $0x13ac] sm:$0xf0]  ;;  %v13714_v45 = vld [vmem:[#allocation11 + $0x16e0] sm:$0xf] }
 0x46d   : > { %6377 = vmatpush.bf16.msrb.mxu2 %v12907_v7  ;;  %7541 = vmatpush.bf16.msra.mxu1 %v13187_v44  ;;  %v13474_v7 = vld [vmem:[#allocation11 + $0x1500] sm:$0xf]  ;;  %v15498_v44 = vld [vmem:[#allocation11 + $0x150c] sm:$0xf0] }
 0x46e   : > { %7526 = vmatpush.bf16.msrb.mxu3 %v13075_v24  ;;  %v13043_v24 = vor.u32 %v15390_v13, %v13042_v34  ;;  %v13475_v32 = vor.u32 %v15498_v44, %v13474_v7  ;;  %v15410_v34 = vld [vmem:[#allocation11 + $0x124c] sm:$0xf0]  ;;  %v13298_v13 = vld [vmem:[#allocation11 + $0x13a0] sm:$0xf]  ;;  %v6581_v7 = vrot.slane %v17153_v36, 3 }
 0x46f   : > { %6362 = vmatpush.bf16.msrb.mxu0 %v12795_v55  ;;  %v15458_v55 = vld [vmem:[#allocation11 + $0x13cc] sm:$0xf0]  ;;  %v12994_v44 = vld [vmem:[#allocation11 + $0x1140] sm:$0xf]  ;;  %v13299_v0 = vor.u32 %v15454_v19, %v13298_v13 }
 0x470   : > { %12991 = vmatmul.msk.bf16.vlgmr.msrb.gmra.mxu2 %vm1913_vm5, %v17426_v33  ;;  %v13458_v33 = vld [vmem:[#allocation11 + $0x14e0] sm:$0xf]  ;;  %v15534_v4 = vld [vmem:[#allocation11 + $0x162c] sm:$0xf0] }
 0x471   : > { %7552 = vmatpush.bf16.msra.mxu2 %v13363_v61  ;;  %7542 = vmatpush.bf16.msra.mxu1 %v13171_v53  ;;  %v13314_v61 = vld [vmem:[#allocation11 + $0x13c0] sm:$0xf] }
 0x472   : > { %7527 = vmatpush.bf16.msrb.mxu3 %v13059_v2  ;;  %v13010_v2 = vld [vmem:[#allocation11 + $0x1160] sm:$0xf]  ;;  %v13315_v27 = vor.u32 %v15458_v55, %v13314_v61  ;;  %v15450_v61 = vld [vmem:[#allocation11 + $0x138c] sm:$0xf0] }
 0x473   : > { %6363 = vmatpush.bf16.msrb.mxu0 %v12779_v12  ;;  %v13122_v53 = vld [vmem:[#allocation11 + $0x1240] sm:$0xf]  ;;  %v13459_v12 = vor.u32 %v15494_v26, %v13458_v33  ;;  %v13011_v39 = vor.u32 %v15382_v29, %v13010_v2  ;;  %v6113_v36 = vpop.f32.mrf.mxu3  ;;  %v6582_v2 = vrot.slane %v17145_v10, 3 }
 0x474   : > { %v13618_v48 = vld [vmem:[#allocation11 + $0x1620] sm:$0xf]  ;;  %v6114_v13 = vadd.f32 %v6113_v36, %v17502_v16  ;;  %v13108_v36 = vld [vmem:[#allocation11 + $0x1230] sm:$0xf0] }
 0x475   : > { %7553 = vmatpush.bf16.msra.mxu2 %v13347_v52  ;;  %7543 = vmatpush.bf16.msra.mxu1 %v13155_v5  ;;  %v6127_v52 = vpop.f32.mrf.mxu1  ;;  %v15378_v5 = vld [vmem:[#allocation11 + $0x114c] sm:$0xf0]  ;;  %v13698_v55 = vld [vmem:[#allocation11 + $0x16c0] sm:$0xf]  ;;  %v13619_v29 = vor.u32 %v15534_v4, %v13618_v48  ;;  %v17521_v10 = vsel %vm6577_vm6, %v6581_v7, %v6582_v2 }
 0x476   : > { %7528 = vmatpush.bf16.msrb.mxu3 %v13043_v24  ;;  %6364 = vmatmul.bf16.vlgmr.msrb.gmra.mxu0 %v17440_v17  ;;  %v15490_v24 = vld [vmem:[#allocation11 + $0x14cc] sm:$0xf0]  ;;  %v13123_v17 = vor.u32 %v15410_v34, %v13122_v53  ;;  %v12995_v33 = vor.u32 %v15378_v5, %v12994_v44  ;;  %v13426_v26 = vld [vmem:[#allocation11 + $0x14a0] sm:$0xf]  ;;  %v6579_v53 = vrot.slane %v17111_v63, 3  ;;  %v17515_v34 = vpop.f32.mrf.mxu0  ;;  %v6128_v44 = vadd.f32 %v6127_v52, %v6114_v13 }
 0x477   : > { %7566 = vmatpush.bf16.msra.mxu0 %v13491_v58  ;;  %v15558_v58 = vld [vmem:[#allocation11 + $0x16ec] sm:$0xf0]  ;;  %v13682_v63 = vld [vmem:[#allocation11 + $0x16a0] sm:$0xf] }
 0x478   : > { %v13715_v35 = vor.u32 %v15558_v58, %v13714_v45  ;;  %v13266_v45 = vld [vmem:[#allocation11 + $0x1360] sm:$0xf]  ;;  %v15482_v5 = vld [vmem:[#allocation11 + $0x148c] sm:$0xf0]  ;;  %v17530_v48 = vadd.f32 %v6128_v44, %v17397_v37 }
 0x479   : > { %7554 = vmatpush.bf16.msra.mxu2 %v13331_v38  ;;  %7544 = vmatpush.bf16.msra.mxu1 %v13139_v25  ;;  %v13282_v38 = vld [vmem:[#allocation11 + $0x1380] sm:$0xf]  ;;  %v15486_v25 = vld [vmem:[#allocation11 + $0x14ac] sm:$0xf0] }
 0x47a   : > { %7529 = vmatpush.bf16.msrb.mxu3 %v13027_v54  ;;  %v15554_v54 = vld [vmem:[#allocation11 + $0x16cc] sm:$0xf0]  ;;  %v13602_v58 = vld [vmem:[#allocation11 + $0x1600] sm:$0xf] }
 0x47b   : > { %7567 = vmatpush.bf16.msra.mxu0 %v13475_v32  ;;  %v13443_v32 = vor.u32 %v15490_v24, %v13442_v51  ;;  %v13699_v19 = vor.u32 %v15554_v54, %v13698_v55  ;;  %v17518_v51 = vpop.f32.mrf.mxu2  ;;  %v15446_v24 = vld [vmem:[#allocation11 + $0x136c] sm:$0xf0]  ;;  %v13410_v16 = vld [vmem:[#allocation11 + $0x1480] sm:$0xf] }
 0x47c   : > { %v13250_v7 = vld [vmem:[#allocation11 + $0x1340] sm:$0xf]  ;;  %v13267_v4 = vor.u32 %v15446_v24, %v13266_v45  ;;  %v15526_v55 = vld [vmem:[#allocation11 + $0x15ec] sm:$0xf0]  ;;  %v13411_v54 = vor.u32 %v15482_v5, %v13410_v16  ;;  %v13092_v16 = vld [vmem:[#allocation11 + $0x1210] sm:$0xf0] }
 0x47d   : > { %7555 = vmatpush.bf16.msra.mxu2 %v13315_v27  ;;  %7545 = vmatpush.bf16.msra.mxu1 %v13123_v17  ;;  %v6578_v27 = vrot.slane %v17115_v46, 3  ;;  %v13427_v46 = vor.u32 %v15486_v25, %v13426_v26  ;;  %v15550_v17 = vld [vmem:[#allocation11 + $0x16ac] sm:$0xf0]  ;;  %v15404_v25 = vld [vmem:[#allocation11 + $0x1224] sm:$0xf] }
 0x47e   : > { %7530 = vmatpush.bf16.msrb.mxu3 %v13011_v39  ;;  %v15530_v39 = vld [vmem:[#allocation11 + $0x160c] sm:$0xf0]  ;;  %v13683_v52 = vor.u32 %v15550_v17, %v13682_v63  ;;  %v13394_v2 = vld [vmem:[#allocation11 + $0x1460] sm:$0xf]  ;;  %v15400_v17 = vld [vmem:[#allocation11 + $0x1204] sm:$0xf] }
 0x47f   : > { %7568 = vmatpush.bf16.msra.mxu0 %v13459_v12  ;;  %v13283_v12 = vor.u32 %v15450_v61, %v13282_v38  ;;  %v13603_v38 = vor.u32 %v15530_v39, %v13602_v58  ;;  %v13586_v61 = vld [vmem:[#allocation11 + $0x15e0] sm:$0xf]  ;;  %v15546_v26 = vld [vmem:[#allocation11 + $0x168c] sm:$0xf0]  ;;  %v13111_v39 = vor.u32 %v15404_v25, %v13108_v36 }
 0x480   : > { %7546 = vmatmul.bf16.vlgmr.msra.gmra.mxu1 %v17521_v10  ;;  %v13587_v37 = vor.u32 %v15526_v55, %v13586_v61  ;;  %v15522_v45 = vld [vmem:[#allocation11 + $0x15cc] sm:$0xf0]  ;;  %v13650_v24 = vld [vmem:[#allocation11 + $0x1660] sm:$0xf] }
 0x481   : > { %7556 = vmatpush.bf16.msra.mxu2 %v13299_v0  ;;  %7596 = vmatpush.bf16.msrb.mxu1 %v13715_v35  ;;  %v17524_v0 = vpop.f32.mrf.mxu1  ;;  %v17527_v35 = vsel %vm6577_vm6, %v6578_v27, %v6579_v53  ;;  %v6155_v27 = vpop.f32.mrf.mxu0  ;;  %v15542_v63 = vld [vmem:[#allocation11 + $0x166c] sm:$0xf0]  ;;  %v13378_v5 = vld [vmem:[#allocation11 + $0x1440] sm:$0xf] }
 0x482   : > { %7531 = vmatpush.bf16.msrb.mxu3 %v12995_v33  ;;  %v13666_v33 = vld [vmem:[#allocation11 + $0x1680] sm:$0xf]  ;;  %v13651_v55 = vor.u32 %v15542_v63, %v13650_v24 }
 0x483   : > { %7569 = vmatpush.bf16.msra.mxu0 %v13443_v32  ;;  %v15442_v32 = vld [vmem:[#allocation11 + $0x134c] sm:$0xf0]  ;;  %v13667_v13 = vor.u32 %v15546_v26, %v13666_v33  ;;  %v6141_v58 = vpop.f32.mrf.mxu2  ;;  %v13095_v26 = vor.u32 %v15400_v17, %v13092_v16  ;;  %v13634_v36 = vld [vmem:[#allocation11 + $0x1640] sm:$0xf] }
 0x484   : > { %v13251_v53 = vor.u32 %v15442_v32, %v13250_v7  ;;  %v6156_v44 = vadd.f32 %v6155_v27, %v6141_v58  ;;  %v15436_v7 = vld [vmem:[#allocation11 + $0x1324] sm:$0xf]  ;;  %v13236_v32 = vld [vmem:[#allocation11 + $0x1330] sm:$0xf0]  ;;  %v15518_v33 = vld [vmem:[#allocation11 + $0x15ac] sm:$0xf0] }
 0x485   : > { %7557 = vmatpush.bf16.msra.mxu2 %v13283_v12  ;;  %7597 = vmatpush.bf16.msrb.mxu1 %v13699_v19  ;;  %v6584_v12 = vrot.slane %v17217_v49, 3  ;;  %v13570_v19 = vld [vmem:[#allocation11 + $0x15c0] sm:$0xf]  ;;  %v6585_v49 = vrot.slane %v17194_v3, 3  ;;  %v13239_v27 = vor.u32 %v15436_v7, %v13236_v32  ;;  %v6588_v58 = vrot.slane %v17225_v28, 3 }
 0x486   : > { %7580 = vmatpush.bf16.msra.mxu3 %v13619_v29  ;;  %v15478_v29 = vld [vmem:[#allocation11 + $0x146c] sm:$0xf0]  ;;  %v13538_v63 = vld [vmem:[#allocation11 + $0x1580] sm:$0xf]  ;;  %v13348_v28 = vld [vmem:[#allocation11 + $0x1410] sm:$0xf0] }
 0x487   : > { %7532 = vmatmul.bf16.vlgmr.msrb.gmra.mxu3 %v17527_v35  ;;  %7570 = vmatpush.bf16.msra.mxu0 %v13427_v46  ;;  %v13395_v46 = vor.u32 %v15478_v29, %v13394_v2  ;;  %v15538_v2 = vld [vmem:[#allocation11 + $0x164c] sm:$0xf0]  ;;  %v15396_v29 = vld [vmem:[#allocation11 + $0x11e4] sm:$0xf] }
 0x488   : > { %v13635_v24 = vor.u32 %v15538_v2, %v13634_v36  ;;  %v15514_v17 = vld [vmem:[#allocation11 + $0x158c] sm:$0xf0] }
 0x489   : > { %7558 = vmatpush.bf16.msra.mxu2 %v13267_v4  ;;  %7598 = vmatpush.bf16.msrb.mxu1 %v13683_v52  ;;  %v6169_v4 = vpop.f32.mrf.mxu1  ;;  %v13571_v52 = vor.u32 %v15522_v45, %v13570_v19  ;;  %v13076_v19 = vld [vmem:[#allocation11 + $0x11f0] sm:$0xf0]  ;;  %v15468_v45 = vld [vmem:[#allocation11 + $0x1424] sm:$0xf]  ;;  %v13539_v32 = vor.u32 %v15514_v17, %v13538_v63 }
 0x48a   : > { %7581 = vmatpush.bf16.msra.mxu3 %v13603_v38  ;;  %v15474_v38 = vld [vmem:[#allocation11 + $0x144c] sm:$0xf0]  ;;  %v17534_v61 = vadd.f32 %v6169_v4, %v6156_v44  ;;  %v13079_v44 = vor.u32 %v15396_v29, %v13076_v19  ;;  %v13044_v29 = vld [vmem:[#allocation11 + $0x11b0] sm:$0xf0]  ;;  %v15500_v63 = vld [vmem:[#allocation11 + $0x1524] sm:$0xf] }
 0x48b   : > { %7571 = vmatpush.bf16.msra.mxu0 %v13411_v54  ;;  %v13554_v54 = vld [vmem:[#allocation11 + $0x15a0] sm:$0xf]  ;;  %v13379_v25 = vor.u32 %v15474_v38, %v13378_v5  ;;  %v6593_v5 = vrot.slane %v17223_v47, 3  ;;  %v15392_v38 = vld [vmem:[#allocation11 + $0x11c4] sm:$0xf] }
 0x48c   : > { %v13555_v3 = vor.u32 %v15518_v33, %v13554_v54  ;;  %v13522_v54 = vld [vmem:[#allocation11 + $0x1560] sm:$0xf]  ;;  %v15510_v47 = vld [vmem:[#allocation11 + $0x156c] sm:$0xf0]  ;;  %v13332_v19 = vld [vmem:[#allocation11 + $0x13f0] sm:$0xf0] }
 0x48d   : > { %7559 = vmatpush.bf16.msra.mxu2 %v13251_v53  ;;  %7599 = vmatpush.bf16.msrb.mxu1 %v13667_v13  ;;  %v13364_v53 = vld [vmem:[#allocation11 + $0x1430] sm:$0xf0]  ;;  %v6587_v13 = vrot.slane %v17214_v40, 3 }
 0x48e   : > { %7582 = vmatpush.bf16.msra.mxu3 %v13587_v37  ;;  %v17538_v37 = vsel %vm6577_vm6, %v6584_v12, %v6585_v49  ;;  %v6594_v12 = vrot.slane %v17212_v57, 3  ;;  %v13367_v16 = vor.u32 %v15468_v45, %v13364_v53  ;;  %v13060_v40 = vld [vmem:[#allocation11 + $0x11d0] sm:$0xf0]  ;;  %v15428_v49 = vld [vmem:[#allocation11 + $0x12e4] sm:$0xf]  ;;  %v17548_v57 = vpop.f32.mrf.mxu3  ;;  %v13523_v45 = vor.u32 %v15510_v47, %v13522_v54 }
 0x48f   : > { %7572 = vmatpush.bf16.msra.mxu0 %v13395_v46  ;;  %v13220_v46 = vld [vmem:[#allocation11 + $0x1310] sm:$0xf0]  ;;  %v17546_v7 = vsel %vm6577_vm6, %v6587_v13, %v6588_v58  ;;  %v13063_v33 = vor.u32 %v15392_v38, %v13060_v40  ;;  %v15424_v53 = vld [vmem:[#allocation11 + $0x12c4] sm:$0xf]  ;;  %v13506_v13 = vld [vmem:[#allocation11 + $0x1540] sm:$0xf] }
 0x490   : > { %7560 = vmatmul.bf16.vlgmr.msra.gmra.mxu2 %v17538_v37  ;;  %v17552_v36 = vsel %vm6577_vm6, %v6593_v5, %v6594_v12  ;;  %v15506_v58 = vld [vmem:[#allocation11 + $0x154c] sm:$0xf0]  ;;  %v13492_v17 = vld [vmem:[#allocation11 + $0x1530] sm:$0xf0] }
 0x491   : > { %7608 = vmatpush.bf16.msrb.mxu2 %v13111_v39  ;;  %v15432_v39 = vld [vmem:[#allocation11 + $0x1304] sm:$0xf]  ;;  %7600 = vmatpush.bf16.msrb.mxu1 %v13651_v55  ;;  %v13204_v55 = vld [vmem:[#allocation11 + $0x12f0] sm:$0xf0]  ;;  %v13507_v38 = vor.u32 %v15506_v58, %v13506_v13 }
 0x492   : > { %7583 = vmatpush.bf16.msra.mxu3 %v13571_v52  ;;  %v13223_v4 = vor.u32 %v15432_v39, %v13220_v46  ;;  %v15464_v52 = vld [vmem:[#allocation11 + $0x1404] sm:$0xf]  ;;  %v13207_v2 = vor.u32 %v15428_v49, %v13204_v55  ;;  %v13316_v5 = vld [vmem:[#allocation11 + $0x13d0] sm:$0xf0]  ;;  %v6591_v49 = vrot.slane %v17227_v15, 3  ;;  %v17561_v15 = vpop.f32.mrf.mxu0 }
 0x493   : > { %7573 = vmatpush.bf16.msra.mxu0 %v13379_v25  ;;  %v15388_v25 = vld [vmem:[#allocation11 + $0x11a4] sm:$0xf]  ;;  %v13172_v40 = vld [vmem:[#allocation11 + $0x12b0] sm:$0xf0] }
 0x494   : > { %v13047_v39 = vor.u32 %v15388_v25, %v13044_v29  ;;  %v13476_v25 = vld [vmem:[#allocation11 + $0x1510] sm:$0xf0] }
 0x495   : > { %7609 = vmatpush.bf16.msrb.mxu2 %v13095_v26  ;;  %7601 = vmatpush.bf16.msrb.mxu1 %v13635_v24  ;;  %v13351_v26 = vor.u32 %v15464_v52, %v13348_v28  ;;  %v15384_v24 = vld [vmem:[#allocation11 + $0x1184] sm:$0xf]  ;;  %v13495_v28 = vor.u32 %v15500_v63, %v13492_v17  ;;  %v13460_v63 = vld [vmem:[#allocation11 + $0x14f0] sm:$0xf0] }
 0x496   : > { %7584 = vmatpush.bf16.msra.mxu3 %v13555_v3  ;;  %7574 = vmatmul.bf16.vlgmr.msra.gmra.mxu0 %v17546_v7  ;;  %v13188_v3 = vld [vmem:[#allocation11 + $0x12d0] sm:$0xf0]  ;;  %v6183_v52 = vpop.f32.mrf.mxu3 }
 0x497   : > { %7622 = vmatpush.bf16.msrb.mxu0 %v13239_v27  ;;  %v15460_v27 = vld [vmem:[#allocation11 + $0x13e4] sm:$0xf]  ;;  %v13191_v12 = vor.u32 %v15424_v53, %v13188_v3  ;;  %v6184_v55 = vadd.f32 %v6183_v52, %v17534_v61  ;;  %v13156_v53 = vld [vmem:[#allocation11 + $0x1290] sm:$0xf0] }
 0x498   : > { %13728 = vmatmul.msk.bf16.vlgmr.msrb.gmra.mxu1 %vm1913_vm5, %v17552_v36  ;;  %v13335_v46 = vor.u32 %v15460_v27, %v13332_v19  ;;  %v13012_v27 = vld [vmem:[#allocation11 + $0x1170] sm:$0xf0]  ;;  %v15452_v19 = vld [vmem:[#allocation11 + $0x13a4] sm:$0xf] }
 0x499   : > { %7610 = vmatpush.bf16.msrb.mxu2 %v13079_v44  ;;  %7636 = vmatpush.bf16.msra.mxu1 %v13367_v16  ;;  %v13028_v44 = vld [vmem:[#allocation11 + $0x1190] sm:$0xf0]  ;;  %v15456_v16 = vld [vmem:[#allocation11 + $0x13c4] sm:$0xf] }
 0x49a   : > { %7585 = vmatpush.bf16.msra.mxu3 %v13539_v32  ;;  %v6590_v32 = vrot.slane %v17220_v23, 3  ;;  %v13031_v54 = vor.u32 %v15384_v24, %v13028_v44  ;;  %v13319_v47 = vor.u32 %v15456_v16, %v13316_v5  ;;  %v15416_v23 = vld [vmem:[#allocation11 + $0x1284] sm:$0xf]  ;;  %v13284_v44 = vld [vmem:[#allocation11 + $0x1390] sm:$0xf0] }
 0x49b   : > { %7623 = vmatpush.bf16.msrb.mxu0 %v13223_v4  ;;  %v15420_v4 = vld [vmem:[#allocation11 + $0x12a4] sm:$0xf]  ;;  %v13159_v17 = vor.u32 %v15416_v23, %v13156_v53  ;;  %v13620_v5 = vld [vmem:[#allocation11 + $0x1630] sm:$0xf0]  ;;  %v6211_v53 = vpop.f32.mrf.mxu0 }
 0x49c   : > { %v13175_v29 = vor.u32 %v15420_v4, %v13172_v40  ;;  %v15376_v3 = vld [vmem:[#allocation11 + $0x1144] sm:$0xf]  ;;  %v17564_v13 = vsel %vm6577_vm6, %v6590_v32, %v6591_v49  ;;  %v13140_v4 = vld [vmem:[#allocation11 + $0x1270] sm:$0xf0] }
 0x49d   : > { %7611 = vmatpush.bf16.msrb.mxu2 %v13063_v33  ;;  %7637 = vmatpush.bf16.msra.mxu1 %v13351_v26  ;;  %v15380_v33 = vld [vmem:[#allocation11 + $0x1164] sm:$0xf]  ;;  %v13444_v49 = vld [vmem:[#allocation11 + $0x14d0] sm:$0xf0] }
 0x49e   : > { %7586 = vmatpush.bf16.msra.mxu3 %v13523_v45  ;;  %v15496_v26 = vld [vmem:[#allocation11 + $0x1504] sm:$0xf]  ;;  %v13300_v45 = vld [vmem:[#allocation11 + $0x13b0] sm:$0xf0]  ;;  %v13015_v58 = vor.u32 %v15380_v33, %v13012_v27 }
 0x49f   : > { %7624 = vmatpush.bf16.msrb.mxu0 %v13207_v2  ;;  %v17559_v2 = vpop.f32.mrf.mxu2  ;;  %v13479_v61 = vor.u32 %v15496_v26, %v13476_v25  ;;  %v15492_v24 = vld [vmem:[#allocation11 + $0x14e4] sm:$0xf]  ;;  %v13268_v25 = vld [vmem:[#allocation11 + $0x1370] sm:$0xf0] }
 0x4a0   : > { %v15532_v16 = vld [vmem:[#allocation11 + $0x1624] sm:$0xf]  ;;  %v13463_v40 = vor.u32 %v15492_v24, %v13460_v63  ;;  %v13124_v23 = vld [vmem:[#allocation11 + $0x1250] sm:$0xf0] }
 0x4a1   : > { %7612 = vmatpush.bf16.msrb.mxu2 %v13047_v39  ;;  %7638 = vmatpush.bf16.msra.mxu1 %v13335_v46  ;;  %v13303_v39 = vor.u32 %v15452_v19, %v13300_v45  ;;  %v12996_v46 = vld [vmem:[#allocation11 + $0x1150] sm:$0xf0]  ;;  %v15488_v32 = vld [vmem:[#allocation11 + $0x14c4] sm:$0xf] }
 0x4a2   : > { %7587 = vmatpush.bf16.msra.mxu3 %v13507_v38  ;;  %v15412_v38 = vld [vmem:[#allocation11 + $0x1264] sm:$0xf]  ;;  %v12999_v52 = vor.u32 %v15376_v3, %v12996_v46  ;;  %v13604_v19 = vld [vmem:[#allocation11 + $0x1610] sm:$0xf0] }
 0x4a3   : > { %7625 = vmatpush.bf16.msrb.mxu0 %v13191_v12  ;;  %v15448_v12 = vld [vmem:[#allocation11 + $0x1384] sm:$0xf]  ;;  %v13143_v33 = vor.u32 %v15412_v38, %v13140_v4  ;;  %v13428_v63 = vld [vmem:[#allocation11 + $0x14b0] sm:$0xf0] }
 0x4a4   : > { %v15444_v26 = vld [vmem:[#allocation11 + $0x1364] sm:$0xf] }
 0x4a5   : > { %7613 = vmatpush.bf16.msrb.mxu2 %v13031_v54  ;;  %7639 = vmatpush.bf16.msra.mxu1 %v13319_v47  ;;  %v13623_v47 = vor.u32 %v15532_v16, %v13620_v5  ;;  %v15408_v45 = vld [vmem:[#allocation11 + $0x1244] sm:$0xf]  ;;  %v13271_v46 = vor.u32 %v15444_v26, %v13268_v25  ;;  %v17567_v5 = vpop.f32.mrf.mxu1  ;;  %v13412_v26 = vld [vmem:[#allocation11 + $0x1490] sm:$0xf0] }
 0x4a6   : > { %7650 = vmatpush.bf16.msrb.mxu3 %v13495_v28  ;;  %v13287_v28 = vor.u32 %v15448_v12, %v13284_v44  ;;  %v15484_v24 = vld [vmem:[#allocation11 + $0x14a4] sm:$0xf]  ;;  %v13127_v12 = vor.u32 %v15408_v45, %v13124_v23  ;;  %v13098_v45 = vld [vmem:[#allocation11 + $0x1208] sm:$0xf]  ;;  %v15403_v23 = vld [vmem:[#allocation11 + $0x1214] sm:$0xf0] }
 0x4a7   : > { %7588 = vmatmul.bf16.vlgmr.msra.gmra.mxu3 %v17564_v13  ;;  %7626 = vmatpush.bf16.msrb.mxu0 %v13175_v29  ;;  %v6197_v54 = vpop.f32.mrf.mxu2  ;;  %v15528_v29 = vld [vmem:[#allocation11 + $0x1604] sm:$0xf] }
 0x4a8   : > { %v6198_v27 = vadd.f32 %v6197_v54, %v6184_v55  ;;  %v15440_v44 = vld [vmem:[#allocation11 + $0x1344] sm:$0xf]  ;;  %v13252_v55 = vld [vmem:[#allocation11 + $0x1350] sm:$0xf0] }
 0x4a9   : > { %7614 = vmatpush.bf16.msrb.mxu2 %v13015_v58  ;;  %7640 = vmatpush.bf16.msra.mxu1 %v13303_v39  ;;  %v15556_v58 = vld [vmem:[#allocation11 + $0x16e4] sm:$0xf]  ;;  %v13716_v39 = vld [vmem:[#allocation11 + $0x16f0] sm:$0xf0] }
 0x4aa   : > { %7651 = vmatpush.bf16.msrb.mxu3 %v13479_v61  ;;  %v13447_v61 = vor.u32 %v15488_v32, %v13444_v49  ;;  %v6212_v3 = vadd.f32 %v6211_v53, %v6198_v27  ;;  %v15524_v16 = vld [vmem:[#allocation11 + $0x15e4] sm:$0xf]  ;;  %v13719_v4 = vor.u32 %v15556_v58, %v13716_v39  ;;  %v13114_v32 = vld [vmem:[#allocation11 + $0x1228] sm:$0xf]  ;;  %v13700_v54 = vld [vmem:[#allocation11 + $0x16d0] sm:$0xf0]  ;;  %v17573_v39 = vpop.f32.mrf.mxu3 }
 0x4ab   : > { %7627 = vmatpush.bf16.msrb.mxu0 %v13159_v17  ;;  %v13607_v17 = vor.u32 %v15528_v29, %v13604_v19  ;;  %v15552_v49 = vld [vmem:[#allocation11 + $0x16c4] sm:$0xf]  ;;  %v13572_v19 = vld [vmem:[#allocation11 + $0x15d0] sm:$0xf0]  ;;  %18045 = vst [vmem:[#allocation68_spill] sm:$0xff] %v17573_v39 }
 0x4ac   : > { %v17570_v38 = vadd.f32 %v6212_v3, %v17443_v31  ;;  %v15520_v31 = vld [vmem:[#allocation11 + $0x15c4] sm:$0xf]  ;;  %v13703_v27 = vor.u32 %v15552_v49, %v13700_v54  ;;  %v13684_v58 = vld [vmem:[#allocation11 + $0x16b0] sm:$0xf0] }
 0x4ad   : > { %7615 = vmatpush.bf16.msrb.mxu2 %v12999_v52  ;;  %7641 = vmatpush.bf16.msra.mxu1 %v13287_v28  ;;  %v15407_v52 = vld [vmem:[#allocation11 + $0x1234] sm:$0xf0]  ;;  %v13431_v28 = vor.u32 %v15484_v24, %v13428_v63  ;;  %v15476_v3 = vld [vmem:[#allocation11 + $0x1464] sm:$0xf]  ;;  %v13575_v24 = vor.u32 %v15520_v31, %v13572_v19  ;;  %v13099_v63 = vor.u32 %v15403_v23, %v13098_v45  ;;  %v13380_v54 = vld [vmem:[#allocation11 + $0x1450] sm:$0xf0] }
 0x4ae   : > { %7652 = vmatpush.bf16.msrb.mxu3 %v13463_v40  ;;  %v13588_v40 = vld [vmem:[#allocation11 + $0x15f0] sm:$0xf0]  ;;  %v13115_v29 = vor.u32 %v15407_v52, %v13114_v32  ;;  %v15544_v52 = vld [vmem:[#allocation11 + $0x1684] sm:$0xf]  ;;  %v13066_v19 = vld [vmem:[#allocation11 + $0x11c8] sm:$0xf] }
 0x4af   : > { %7628 = vmatpush.bf16.msrb.mxu0 %v13143_v33  ;;  %v15480_v33 = vld [vmem:[#allocation11 + $0x1484] sm:$0xf]  ;;  %v13591_v25 = vor.u32 %v15524_v16, %v13588_v40  ;;  %v13556_v16 = vld [vmem:[#allocation11 + $0x15b0] sm:$0xf0]  ;;  %v15399_v40 = vld [vmem:[#allocation11 + $0x11f4] sm:$0xf0] }
 0x4b0   : > { %7616 = vmatmul.bf16.vlgmr.msrb.gmra.mxu2 %v17527_v35  ;;  %v13415_v53 = vor.u32 %v15480_v33, %v13412_v26  ;;  %v15472_v49 = vld [vmem:[#allocation11 + $0x1444] sm:$0xf]  ;;  %v15395_v45 = vld [vmem:[#allocation11 + $0x11d4] sm:$0xf0] }
 0x4b1   : > { %7664 = vmatpush.bf16.msra.mxu2 %v13623_v47  ;;  %7642 = vmatpush.bf16.msra.mxu1 %v13271_v46  ;;  %v13255_v47 = vor.u32 %v15440_v44, %v13252_v55  ;;  %v13396_v46 = vld [vmem:[#allocation11 + $0x1470] sm:$0xf0]  ;;  %v6225_v44 = vpop.f32.mrf.mxu1  ;;  %v15512_v26 = vld [vmem:[#allocation11 + $0x1584] sm:$0xf]  ;;  %v13383_v23 = vor.u32 %v15472_v49, %v13380_v54  ;;  %v15391_v49 = vld [vmem:[#allocation11 + $0x11b4] sm:$0xf0] }
 0x4b2   : > { %7653 = vmatpush.bf16.msrb.mxu3 %v13447_v61  ;;  %v15548_v61 = vld [vmem:[#allocation11 + $0x16a4] sm:$0xf]  ;;  %v13399_v32 = vor.u32 %v15476_v3, %v13396_v46 }
 0x4b3   : > { %7629 = vmatpush.bf16.msrb.mxu0 %v13127_v12  ;;  %v17576_v12 = vpop.f32.mrf.mxu0  ;;  %v13687_v55 = vor.u32 %v15548_v61, %v13684_v58  ;;  %v13652_v61 = vld [vmem:[#allocation11 + $0x1670] sm:$0xf0]  ;;  %v6239_v58 = vpop.f32.mrf.mxu3  ;;  %v15592_v39 = vld [vmem:[#allocation11 + $0x1804] sm:$0xf] }
 0x4b4   : > { %18046 = vst [vmem:[#allocation69_spill] sm:$0xff] %v17576_v12  ;;  %v6240_v46 = vadd.f32 %v6239_v58, %v6225_v44  ;;  %v15387_v58 = vld [vmem:[#allocation11 + $0x1194] sm:$0xf0] }
 0x4b5   : > { %7665 = vmatpush.bf16.msra.mxu2 %v13607_v17  ;;  %7643 = vmatpush.bf16.msra.mxu1 %v13255_v47  ;;  %v15516_v17 = vld [vmem:[#allocation11 + $0x15a4] sm:$0xf]  ;;  %v15499_v12 = vld [vmem:[#allocation11 + $0x1514] sm:$0xf0] }
 0x4b6   : > { %7654 = vmatpush.bf16.msrb.mxu3 %v13431_v28  ;;  %7630 = vmatmul.bf16.vlgmr.msrb.gmra.mxu0 %v17521_v10  ;;  %v13668_v28 = vld [vmem:[#allocation11 + $0x1690] sm:$0xf0]  ;;  %v13559_v47 = vor.u32 %v15516_v17, %v13556_v16  ;;  %v15508_v17 = vld [vmem:[#allocation11 + $0x1564] sm:$0xf]  ;;  %v13226_v16 = vld [vmem:[#allocation11 + $0x1308] sm:$0xf] }
 0x4b7   : > { %7680 = vmatpush.bf16.msra.mxu0 %v13719_v4  ;;  %v13082_v4 = vld [vmem:[#allocation11 + $0x11e8] sm:$0xf]  ;;  %v13671_v31 = vor.u32 %v15544_v52, %v13668_v28  ;;  %v13524_v28 = vld [vmem:[#allocation11 + $0x1570] sm:$0xf0] }
 0x4b8   : > { %7644 = vmatmul.bf16.vlgmr.msra.gmra.mxu1 %v17538_v37  ;;  %v13083_v33 = vor.u32 %v15399_v40, %v13082_v4  ;;  %v15435_v4 = vld [vmem:[#allocation11 + $0x1314] sm:$0xf0]  ;;  %v17579_v40 = vpop.f32.mrf.mxu2 }
 0x4b9   : > { %7666 = vmatpush.bf16.msra.mxu2 %v13591_v25  ;;  %7692 = vmatpush.bf16.msrb.mxu1 %v13115_v29  ;;  %v13242_v25 = vld [vmem:[#allocation11 + $0x1328] sm:$0xf]  ;;  %v15439_v29 = vld [vmem:[#allocation11 + $0x1334] sm:$0xf0]  ;;  %18047 = vst [vmem:[#allocation70_spill] sm:$0xff] %v17579_v40  ;;  %v17581_v44 = vpop.f32.mrf.mxu1 }
 0x4ba   : > { %7655 = vmatpush.bf16.msrb.mxu3 %v13415_v53  ;;  %v15540_v53 = vld [vmem:[#allocation11 + $0x1664] sm:$0xf]  ;;  %v13243_v3 = vor.u32 %v15439_v29, %v13242_v25  ;;  %v13636_v25 = vld [vmem:[#allocation11 + $0x1650] sm:$0xf0]  ;;  %18048 = vst [vmem:[#allocation71_spill] sm:$0xff] %v17581_v44  ;;  %v13527_v29 = vor.u32 %v15508_v17, %v13524_v28 }
 0x4bb   : > { %7681 = vmatpush.bf16.msra.mxu0 %v13703_v27  ;;  %v13540_v27 = vld [vmem:[#allocation11 + $0x1590] sm:$0xf0]  ;;  %v13655_v52 = vor.u32 %v15540_v53, %v13652_v61  ;;  %v13639_v53 = vor.u32 %v15536_v42, %v13636_v25  ;;  %v13034_v61 = vld [vmem:[#allocation11 + $0x1188] sm:$0xf]  ;;  %v15383_v25 = vld [vmem:[#allocation11 + $0x1174] sm:$0xf0] }
 0x4bc   : > { %v13035_v17 = vor.u32 %v15387_v58, %v13034_v61  ;;  %v13194_v28 = vld [vmem:[#allocation11 + $0x12c8] sm:$0xf]  ;;  %v15423_v61 = vld [vmem:[#allocation11 + $0x12b4] sm:$0xf0] }
 0x4bd   : > { %7667 = vmatpush.bf16.msra.mxu2 %v13575_v24  ;;  %7693 = vmatpush.bf16.msrb.mxu1 %v13099_v63  ;;  %v13543_v24 = vor.u32 %v15512_v26, %v13540_v27  ;;  %v13067_v63 = vor.u32 %v15395_v45, %v13066_v19  ;;  %v15471_v26 = vld [vmem:[#allocation11 + $0x1434] sm:$0xf0]  ;;  %v15504_v19 = vld [vmem:[#allocation11 + $0x1544] sm:$0xf]  ;;  %v13018_v42 = vld [vmem:[#allocation11 + $0x1168] sm:$0xf] }
 0x4be   : > { %7656 = vmatpush.bf16.msrb.mxu3 %v13399_v32  ;;  %v13050_v32 = vld [vmem:[#allocation11 + $0x11a8] sm:$0xf]  ;;  %v15431_v45 = vld [vmem:[#allocation11 + $0x12f4] sm:$0xf0] }
 0x4bf   : > { %7682 = vmatpush.bf16.msra.mxu0 %v13687_v55  ;;  %v6253_v55 = vpop.f32.mrf.mxu0  ;;  %v13051_v27 = vor.u32 %v15391_v49, %v13050_v32  ;;  %v15427_v32 = vld [vmem:[#allocation11 + $0x12d4] sm:$0xf0]  ;;  %v13002_v58 = vld [vmem:[#allocation11 + $0x1148] sm:$0xf] }
 0x4c0   : > { %v6254_v54 = vadd.f32 %v6253_v55, %v6240_v46  ;;  %v13498_v55 = vld [vmem:[#allocation11 + $0x1528] sm:$0xf]  ;;  %v6267_v49 = vpop.f32.mrf.mxu2 }
 0x4c1   : > { %7668 = vmatpush.bf16.msra.mxu2 %v13559_v47  ;;  %7694 = vmatpush.bf16.msrb.mxu1 %v13083_v33  ;;  %v13227_v47 = vor.u32 %v15435_v4, %v13226_v16  ;;  %v13370_v33 = vld [vmem:[#allocation11 + $0x1428] sm:$0xf] }
 0x4c2   : > { %7657 = vmatpush.bf16.msrb.mxu3 %v13383_v23  ;;  %v13508_v23 = vld [vmem:[#allocation11 + $0x1550] sm:$0xf0]  ;;  %v13371_v46 = vor.u32 %v15471_v26, %v13370_v33  ;;  %v13354_v4 = vld [vmem:[#allocation11 + $0x1408] sm:$0xf]  ;;  %v6268_v44 = vadd.f32 %v6267_v49, %v6254_v54  ;;  %v15419_v49 = vld [vmem:[#allocation11 + $0x1294] sm:$0xf0] }
 0x4c3   : > { %7683 = vmatpush.bf16.msra.mxu0 %v13671_v31  ;;  %v13210_v31 = vld [vmem:[#allocation11 + $0x12e8] sm:$0xf] }
 0x4c4   : > { %v13211_v16 = vor.u32 %v15431_v45, %v13210_v31  ;;  %v13482_v26 = vld [vmem:[#allocation11 + $0x1508] sm:$0xf]  ;;  %v13195_v31 = vor.u32 %v15427_v32, %v13194_v28 }
 0x4c5   : > { %7669 = vmatpush.bf16.msra.mxu2 %v13543_v24  ;;  %7695 = vmatpush.bf16.msrb.mxu1 %v13067_v63  ;;  %v15467_v24 = vld [vmem:[#allocation11 + $0x1414] sm:$0xf0]  ;;  %v13511_v63 = vor.u32 %v15504_v19, %v13508_v23  ;;  %v13338_v45 = vld [vmem:[#allocation11 + $0x13e8] sm:$0xf]  ;;  %v13019_v23 = vor.u32 %v15383_v25, %v13018_v42  ;;  %v13483_v54 = vor.u32 %v15499_v12, %v13482_v26 }
 0x4c6   : > { %7706 = vmatpush.bf16.msra.mxu3 %v13243_v3  ;;  %v15503_v3 = vld [vmem:[#allocation11 + $0x1534] sm:$0xf0]  ;;  %v13355_v33 = vor.u32 %v15467_v24, %v13354_v4  ;;  %v13626_v4 = vld [vmem:[#allocation11 + $0x1628] sm:$0xf] }
 0x4c7   : > { %7658 = vmatmul.bf16.vlgmr.msrb.gmra.mxu3 %v17546_v7  ;;  %7684 = vmatpush.bf16.msra.mxu0 %v13655_v52  ;;  %v13499_v52 = vor.u32 %v15503_v3, %v13498_v55  ;;  %v13466_v55 = vld [vmem:[#allocation11 + $0x14e8] sm:$0xf]  ;;  %v15535_v24 = vld [vmem:[#allocation11 + $0x1634] sm:$0xf0] }
 0x4c8   : > { %v13162_v32 = vld [vmem:[#allocation11 + $0x1288] sm:$0xf] }
 0x4c9   : > { %7670 = vmatpush.bf16.msra.mxu2 %v13527_v29  ;;  %7696 = vmatpush.bf16.msrb.mxu1 %v13051_v27  ;;  %v15463_v29 = vld [vmem:[#allocation11 + $0x13f4] sm:$0xf0]  ;;  %v17584_v27 = vpop.f32.mrf.mxu3  ;;  %v13450_v42 = vld [vmem:[#allocation11 + $0x14c8] sm:$0xf] }
 0x4ca   : > { %7707 = vmatpush.bf16.msra.mxu3 %v13227_v47  ;;  %v6281_v47 = vpop.f32.mrf.mxu1  ;;  %18049 = vst [vmem:[#allocation72_spill] sm:$0xff] %v17584_v27  ;;  %v13339_v3 = vor.u32 %v15463_v29, %v13338_v45  ;;  %v13610_v26 = vld [vmem:[#allocation11 + $0x1608] sm:$0xf]  ;;  %v13163_v45 = vor.u32 %v15419_v49, %v13162_v32  ;;  %v15411_v32 = vld [vmem:[#allocation11 + $0x1254] sm:$0xf0] }
 0x4cb   : > { %7685 = vmatpush.bf16.msra.mxu0 %v13639_v53  ;;  %v6282_v19 = vadd.f32 %v6281_v47, %v6268_v44  ;;  %v13178_v53 = vld [vmem:[#allocation11 + $0x12a8] sm:$0xf]  ;;  %v15531_v47 = vld [vmem:[#allocation11 + $0x1614] sm:$0xf0] }
 0x4cc   : > { %v13179_v44 = vor.u32 %v15423_v61, %v13178_v53  ;;  %v13306_v29 = vld [vmem:[#allocation11 + $0x13a8] sm:$0xf] }
 0x4cd   : > { %7671 = vmatpush.bf16.msra.mxu2 %v13511_v63  ;;  %7697 = vmatpush.bf16.msrb.mxu1 %v13035_v17  ;;  %v13322_v63 = vld [vmem:[#allocation11 + $0x13c8] sm:$0xf]  ;;  %v15459_v17 = vld [vmem:[#allocation11 + $0x13d4] sm:$0xf0] }
 0x4ce   : > { %7708 = vmatpush.bf16.msra.mxu3 %v13211_v16  ;;  %13729 = vmatmul.msk.bf16.vlgmr.msra.gmra.mxu0 %vm1913_vm5, %v17552_v36  ;;  %v15495_v16 = vld [vmem:[#allocation11 + $0x14f4] sm:$0xf0]  ;;  %v13323_v25 = vor.u32 %v15459_v17, %v13322_v63  ;;  %v13146_v61 = vld [vmem:[#allocation11 + $0x1268] sm:$0xf] }
 0x4cf   : > { %7720 = vmatpush.bf16.msrb.mxu0 %v13371_v46  ;;  %v15379_v46 = vld [vmem:[#allocation11 + $0x1154] sm:$0xf0]  ;;  %v13467_v12 = vor.u32 %v15495_v16, %v13466_v55  ;;  %v13434_v55 = vld [vmem:[#allocation11 + $0x14a8] sm:$0xf] }
 0x4d0   : > { %7672 = vmatmul.bf16.vlgmr.msra.gmra.mxu2 %v17564_v13  ;;  %v13003_v28 = vor.u32 %v15379_v46, %v13002_v58  ;;  %v13611_v46 = vor.u32 %v15531_v47, %v13610_v26  ;;  %v15487_v16 = vld [vmem:[#allocation11 + $0x14b4] sm:$0xf0]  ;;  %v13290_v17 = vld [vmem:[#allocation11 + $0x1388] sm:$0xf] }
 0x4d1   : > { %7734 = vmatpush.bf16.msrb.mxu2 %v13499_v52  ;;  %7698 = vmatpush.bf16.msrb.mxu1 %v13019_v23  ;;  %v13627_v52 = vor.u32 %v15535_v24, %v13626_v4  ;;  %v6295_v53 = vpop.f32.mrf.mxu3  ;;  %v15415_v23 = vld [vmem:[#allocation11 + $0x1274] sm:$0xf0]  ;;  %v13594_v4 = vld [vmem:[#allocation11 + $0x15e8] sm:$0xf]  ;;  %v13435_v49 = vor.u32 %v15487_v16, %v13434_v55  ;;  %v17593_v55 = vpop.f32.mrf.mxu0 }
 0x4d2   : > { %7709 = vmatpush.bf16.msra.mxu3 %v13195_v31  ;;  %v15455_v31 = vld [vmem:[#allocation11 + $0x13b4] sm:$0xf0]  ;;  %v6296_v58 = vadd.f32 %v6295_v53, %v6282_v19  ;;  %v13147_v63 = vor.u32 %v15415_v23, %v13146_v61  ;;  %v13130_v19 = vld [vmem:[#allocation11 + $0x1248] sm:$0xf]  ;;  %18050 = vst [vmem:[#allocation73_spill] sm:$0xff] %v17593_v55  ;;  %v17595_v16 = vpop.f32.mrf.mxu2 }
 0x4d3   : > { %7721 = vmatpush.bf16.msrb.mxu0 %v13355_v33  ;;  %v15491_v33 = vld [vmem:[#allocation11 + $0x14d4] sm:$0xf0]  ;;  %18051 = vst [vmem:[#allocation74_spill] sm:$0xff] %v17595_v16 }
 0x4d4   : > { %v15527_v24 = vld [vmem:[#allocation11 + $0x15f4] sm:$0xf0] }
 0x4d5   : > { %7735 = vmatpush.bf16.msrb.mxu2 %v13483_v54  ;;  %7699 = vmatpush.bf16.msrb.mxu1 %v13003_v28  ;;  %v13451_v54 = vor.u32 %v15491_v33, %v13450_v42  ;;  %v15451_v28 = vld [vmem:[#allocation11 + $0x1394] sm:$0xf0]  ;;  %v13722_v42 = vld [vmem:[#allocation11 + $0x16e8] sm:$0xf] }
 0x4d6   : > { %7710 = vmatpush.bf16.msra.mxu3 %v13179_v44  ;;  %v17590_v44 = vadd.f32 %v6296_v58, %v17466_v22  ;;  %v13291_v33 = vor.u32 %v15451_v28, %v13290_v17  ;;  %v15483_v26 = vld [vmem:[#allocation11 + $0x1494] sm:$0xf0]  ;;  %v13578_v22 = vld [vmem:[#allocation11 + $0x15c8] sm:$0xf] }
 0x4d7   : > { %7722 = vmatpush.bf16.msrb.mxu0 %v13339_v3  ;;  %v13307_v3 = vor.u32 %v15455_v31, %v13306_v29  ;;  %v15523_v47 = vld [vmem:[#allocation11 + $0x15d4] sm:$0xf0]  ;;  %v13131_v29 = vor.u32 %v15411_v32, %v13130_v19  ;;  %v13402_v58 = vld [vmem:[#allocation11 + $0x1468] sm:$0xf]  ;;  %v15405_v32 = vld [vmem:[#allocation11 + $0x122c] sm:$0xf] }
 0x4d8   : > { %7700 = vmatmul.bf16.vlgmr.msrb.gmra.mxu1 %v17527_v35  ;;  %v15447_v31 = vld [vmem:[#allocation11 + $0x1374] sm:$0xf0]  ;;  %v13579_v23 = vor.u32 %v15523_v47, %v13578_v22  ;;  %v13258_v17 = vld [vmem:[#allocation11 + $0x1348] sm:$0xf] }
 0x4d9   : > { %7736 = vmatpush.bf16.msrb.mxu2 %v13467_v12  ;;  %7748 = vmatpush.bf16.msra.mxu1 %v13627_v52  ;;  %v13595_v12 = vor.u32 %v15527_v24, %v13594_v4  ;;  %v13418_v52 = vld [vmem:[#allocation11 + $0x1488] sm:$0xf]  ;;  %v15479_v4 = vld [vmem:[#allocation11 + $0x1474] sm:$0xf0] }
 0x4da   : > { %7711 = vmatpush.bf16.msra.mxu3 %v13163_v45  ;;  %v13274_v45 = vld [vmem:[#allocation11 + $0x1368] sm:$0xf]  ;;  %v13419_v61 = vor.u32 %v15483_v26, %v13418_v52  ;;  %v15443_v28 = vld [vmem:[#allocation11 + $0x1354] sm:$0xf0] }
 0x4db   : > { %7723 = vmatpush.bf16.msrb.mxu0 %v13323_v25  ;;  %v15559_v25 = vld [vmem:[#allocation11 + $0x16f4] sm:$0xf0]  ;;  %v13562_v24 = vld [vmem:[#allocation11 + $0x15a8] sm:$0xf]  ;;  %v6323_v16 = vpop.f32.mrf.mxu2 }
 0x4dc   : > { %v13723_v53 = vor.u32 %v15559_v25, %v13722_v42  ;;  %v13386_v42 = vld [vmem:[#allocation11 + $0x1448] sm:$0xf]  ;;  %v15551_v26 = vld [vmem:[#allocation11 + $0x16b4] sm:$0xf0] }
 0x4dd   : > { %7737 = vmatpush.bf16.msrb.mxu2 %v13451_v54  ;;  %7749 = vmatpush.bf16.msra.mxu1 %v13611_v46  ;;  %v13706_v54 = vld [vmem:[#allocation11 + $0x16c8] sm:$0xf]  ;;  %v15555_v46 = vld [vmem:[#allocation11 + $0x16d4] sm:$0xf0] }
 0x4de   : > { %7712 = vmatpush.bf16.msra.mxu3 %v13147_v63  ;;  %v15519_v63 = vld [vmem:[#allocation11 + $0x15b4] sm:$0xf0]  ;;  %v13707_v19 = vor.u32 %v15555_v46, %v13706_v54  ;;  %v13690_v25 = vld [vmem:[#allocation11 + $0x16a8] sm:$0xf]  ;;  %v15401_v46 = vld [vmem:[#allocation11 + $0x120c] sm:$0xf] }
 0x4df   : > { %7724 = vmatpush.bf16.msrb.mxu0 %v13307_v3  ;;  %v13275_v3 = vor.u32 %v15447_v31, %v13274_v45  ;;  %v13563_v52 = vor.u32 %v15519_v63, %v13562_v24  ;;  %v15475_v22 = vld [vmem:[#allocation11 + $0x1454] sm:$0xf0]  ;;  %v13546_v47 = vld [vmem:[#allocation11 + $0x1588] sm:$0xf]  ;;  %v15437_v31 = vld [vmem:[#allocation11 + $0x132c] sm:$0xf]  ;;  %v13691_v54 = vor.u32 %v15551_v26, %v13690_v25  ;;  %v6309_v63 = vpop.f32.mrf.mxu0 }
 0x4e0   : > { %v15547_v24 = vld [vmem:[#allocation11 + $0x1694] sm:$0xf0]  ;;  %v6324_v55 = vadd.f32 %v6323_v16, %v6309_v63  ;;  %v15397_v26 = vld [vmem:[#allocation11 + $0x11ec] sm:$0xf]  ;;  %v13514_v16 = vld [vmem:[#allocation11 + $0x1548] sm:$0xf] }
 0x4e1   : > { %7738 = vmatpush.bf16.msrb.mxu2 %v13435_v49  ;;  %7750 = vmatpush.bf16.msra.mxu1 %v13595_v12  ;;  %v13116_v49 = vld [vmem:[#allocation11 + $0x1238] sm:$0xf0]  ;;  %v13403_v12 = vor.u32 %v15479_v4, %v13402_v58  ;;  %v13674_v4 = vld [vmem:[#allocation11 + $0x1688] sm:$0xf] }
 0x4e2   : > { %7713 = vmatpush.bf16.msra.mxu3 %v13131_v29  ;;  %v15515_v29 = vld [vmem:[#allocation11 + $0x1594] sm:$0xf0]  ;;  %v13119_v45 = vor.u32 %v15405_v32, %v13116_v49  ;;  %v15433_v49 = vld [vmem:[#allocation11 + $0x130c] sm:$0xf]  ;;  %v13675_v25 = vor.u32 %v15547_v24, %v13674_v4  ;;  %v13068_v4 = vld [vmem:[#allocation11 + $0x11d8] sm:$0xf0] }
 0x4e3   : > { %7725 = vmatpush.bf16.msrb.mxu0 %v13291_v33  ;;  %v13259_v33 = vor.u32 %v15443_v28, %v13258_v17  ;;  %v13547_v58 = vor.u32 %v15515_v29, %v13546_v47  ;;  %v13530_v17 = vld [vmem:[#allocation11 + $0x1568] sm:$0xf]  ;;  %v15511_v28 = vld [vmem:[#allocation11 + $0x1574] sm:$0xf0]  ;;  %v17606_v27 = vpop.f32.mrf.mxu2 }
 0x4e4   : > { %v15543_v47 = vld [vmem:[#allocation11 + $0x1674] sm:$0xf0]  ;;  %v13642_v63 = vld [vmem:[#allocation11 + $0x1648] sm:$0xf]  ;;  %18055 = vst [vmem:[#allocation78_spill] sm:$0xff] %v17606_v27 }
 0x4e5   : > { %7739 = vmatpush.bf16.msrb.mxu2 %v13419_v61  ;;  %7751 = vmatpush.bf16.msra.mxu1 %v13579_v23  ;;  %v13100_v61 = vld [vmem:[#allocation11 + $0x1218] sm:$0xf0]  ;;  %v13387_v23 = vor.u32 %v15475_v22, %v13386_v42  ;;  %v13531_v42 = vor.u32 %v15511_v28, %v13530_v17  ;;  %v13658_v22 = vld [vmem:[#allocation11 + $0x1668] sm:$0xf]  ;;  %v15507_v29 = vld [vmem:[#allocation11 + $0x1554] sm:$0xf0] }
 0x4e6   : > { %7764 = vmatpush.bf16.msrb.mxu3 %v13723_v53  ;;  %v13244_v53 = vld [vmem:[#allocation11 + $0x1338] sm:$0xf0]  ;;  %v13103_v32 = vor.u32 %v15401_v46, %v13100_v61  ;;  %v15501_v46 = vld [vmem:[#allocation11 + $0x152c] sm:$0xf]  ;;  %v13515_v24 = vor.u32 %v15507_v29, %v13514_v16 }
 0x4e7   : > { %7714 = vmatmul.bf16.vlgmr.msra.gmra.mxu3 %v17521_v10  ;;  %7726 = vmatpush.bf16.msrb.mxu0 %v13275_v3  ;;  %v13247_v3 = vor.u32 %v15437_v31, %v13244_v53  ;;  %v17601_v31 = vpop.f32.mrf.mxu1  ;;  %v13500_v61 = vld [vmem:[#allocation11 + $0x1538] sm:$0xf0]  ;;  %v17604_v29 = vpop.f32.mrf.mxu0 }
 0x4e8   : > { %18053 = vst [vmem:[#allocation76_spill] sm:$0xff] %v17601_v31  ;;  %v13503_v28 = vor.u32 %v15501_v46, %v13500_v61  ;;  %v13484_v31 = vld [vmem:[#allocation11 + $0x1518] sm:$0xf0]  ;;  %v15421_v46 = vld [vmem:[#allocation11 + $0x12ac] sm:$0xf] }
 0x4e9   : > { %7740 = vmatpush.bf16.msrb.mxu2 %v13403_v12  ;;  %7752 = vmatpush.bf16.msra.mxu1 %v13563_v52  ;;  %v13084_v12 = vld [vmem:[#allocation11 + $0x11f8] sm:$0xf0]  ;;  %v17598_v52 = vpop.f32.mrf.mxu3  ;;  %18054 = vst [vmem:[#allocation77_spill] sm:$0xff] %v17604_v29 }
 0x4ea   : > { %7765 = vmatpush.bf16.msrb.mxu3 %v13707_v19  ;;  %v13228_v19 = vld [vmem:[#allocation11 + $0x1318] sm:$0xf0]  ;;  %18052 = vst [vmem:[#allocation75_spill] sm:$0xff] %v17598_v52  ;;  %v13087_v53 = vor.u32 %v15397_v26, %v13084_v12  ;;  %v15497_v52 = vld [vmem:[#allocation11 + $0x150c] sm:$0xf] }
 0x4eb   : > { %7727 = vmatpush.bf16.msrb.mxu0 %v13259_v33  ;;  %v13231_v33 = vor.u32 %v15433_v49, %v13228_v19  ;;  %v15425_v49 = vld [vmem:[#allocation11 + $0x12cc] sm:$0xf]  ;;  %v13196_v12 = vld [vmem:[#allocation11 + $0x12d8] sm:$0xf0] }
 0x4ec   : > { %v15469_v19 = vld [vmem:[#allocation11 + $0x142c] sm:$0xf]  ;;  %v13356_v61 = vld [vmem:[#allocation11 + $0x1418] sm:$0xf0] }
 0x4ed   : > { %7741 = vmatpush.bf16.msrb.mxu2 %v13387_v23  ;;  %7753 = vmatpush.bf16.msra.mxu1 %v13547_v58  ;;  %v13659_v23 = vor.u32 %v15543_v47, %v13658_v22  ;;  %v15393_v58 = vld [vmem:[#allocation11 + $0x11cc] sm:$0xf]  ;;  %v13052_v47 = vld [vmem:[#allocation11 + $0x11b8] sm:$0xf0] }
 0x4ee   : > { %7766 = vmatpush.bf16.msrb.mxu3 %v13691_v54  ;;  %7728 = vmatmul.bf16.vlgmr.msrb.gmra.mxu0 %v17538_v37  ;;  %v13212_v54 = vld [vmem:[#allocation11 + $0x12f8] sm:$0xf0]  ;;  %v13071_v26 = vor.u32 %v15393_v58, %v13068_v4  ;;  %v15389_v22 = vld [vmem:[#allocation11 + $0x11ac] sm:$0xf] }
 0x4ef   : > { %7776 = vmatpush.bf16.msra.mxu0 %v13119_v45  ;;  %v15429_v45 = vld [vmem:[#allocation11 + $0x12ec] sm:$0xf]  ;;  %v6351_v58 = vpop.f32.mrf.mxu1  ;;  %v13055_v4 = vor.u32 %v15389_v22, %v13052_v47  ;;  %v13004_v27 = vld [vmem:[#allocation11 + $0x1158] sm:$0xf0] }
 0x4f0   : > { %7742 = vmatmul.bf16.vlgmr.msrb.gmra.mxu2 %v17546_v7  ;;  %v13215_v17 = vor.u32 %v15429_v45, %v13212_v54  ;;  %v13199_v45 = vor.u32 %v15425_v49, %v13196_v12  ;;  %v13487_v54 = vor.u32 %v15497_v52, %v13484_v31  ;;  %v15417_v49 = vld [vmem:[#allocation11 + $0x128c] sm:$0xf]  ;;  %v13164_v12 = vld [vmem:[#allocation11 + $0x1298] sm:$0xf0] }
 0x4f1   : > { %7790 = vmatpush.bf16.msra.mxu2 %v13247_v3  ;;  %7754 = vmatpush.bf16.msra.mxu1 %v13531_v42  ;;  %v15539_v3 = vld [vmem:[#allocation11 + $0x1654] sm:$0xf0]  ;;  %v6337_v42 = vpop.f32.mrf.mxu3  ;;  %v15489_v22 = vld [vmem:[#allocation11 + $0x14cc] sm:$0xf] }
 0x4f2   : > { %7767 = vmatpush.bf16.msrb.mxu3 %v13675_v25  ;;  %v13643_v25 = vor.u32 %v15539_v3, %v13642_v63  ;;  %v15493_v63 = vld [vmem:[#allocation11 + $0x14ec] sm:$0xf]  ;;  %v13468_v3 = vld [vmem:[#allocation11 + $0x14f8] sm:$0xf0] }
 0x4f3   : > { %7777 = vmatpush.bf16.msra.mxu0 %v13103_v32  ;;  %v13372_v32 = vld [vmem:[#allocation11 + $0x1438] sm:$0xf0]  ;;  %v13471_v31 = vor.u32 %v15493_v63, %v13468_v3  ;;  %v15381_v47 = vld [vmem:[#allocation11 + $0x116c] sm:$0xf] }
 0x4f4   : > { %v13375_v16 = vor.u32 %v15469_v19, %v13372_v32  ;;  %v15461_v19 = vld [vmem:[#allocation11 + $0x13ec] sm:$0xf]  ;;  %v13340_v32 = vld [vmem:[#allocation11 + $0x13f8] sm:$0xf0] }
 0x4f5   : > { %7791 = vmatpush.bf16.msra.mxu2 %v13231_v33  ;;  %7755 = vmatpush.bf16.msra.mxu1 %v13515_v24  ;;  %v6338_v33 = vadd.f32 %v6337_v42, %v6324_v55  ;;  %v15385_v55 = vld [vmem:[#allocation11 + $0x118c] sm:$0xf]  ;;  %v13020_v42 = vld [vmem:[#allocation11 + $0x1178] sm:$0xf0] }
 0x4f6   : > { %7768 = vmatpush.bf16.msrb.mxu3 %v13659_v23  ;;  %v13180_v23 = vld [vmem:[#allocation11 + $0x12b8] sm:$0xf0]  ;;  %v15485_v63 = vld [vmem:[#allocation11 + $0x14ac] sm:$0xf] }
 0x4f7   : > { %7778 = vmatpush.bf16.msra.mxu0 %v13087_v53  ;;  %v15465_v53 = vld [vmem:[#allocation11 + $0x140c] sm:$0xf]  ;;  %v6352_v24 = vadd.f32 %v6351_v58, %v6338_v33  ;;  %v13183_v52 = vor.u32 %v15421_v46, %v13180_v23  ;;  %v6365_v33 = vpop.f32.mrf.mxu0  ;;  %v13023_v23 = vor.u32 %v15381_v47, %v13020_v42  ;;  %v13436_v3 = vld [vmem:[#allocation11 + $0x14b8] sm:$0xf0] }
 0x4f8   : > { %7756 = vmatmul.bf16.vlgmr.msra.gmra.mxu1 %v17564_v13  ;;  %v15413_v46 = vld [vmem:[#allocation11 + $0x126c] sm:$0xf]  ;;  %v13420_v42 = vld [vmem:[#allocation11 + $0x1498] sm:$0xf0] }
 0x4f9   : > { %7792 = vmatpush.bf16.msra.mxu2 %v13215_v17  ;;  %7818 = vmatpush.bf16.msrb.mxu1 %v13503_v28  ;;  %v13036_v17 = vld [vmem:[#allocation11 + $0x1198] sm:$0xf0]  ;;  %v13359_v28 = vor.u32 %v15465_v53, %v13356_v61  ;;  %v15457_v53 = vld [vmem:[#allocation11 + $0x13cc] sm:$0xf]  ;;  %v6366_v58 = vadd.f32 %v6365_v33, %v6352_v24 }
 0x4fa   : > { %7769 = vmatpush.bf16.msrb.mxu3 %v13643_v25  ;;  %v13452_v25 = vld [vmem:[#allocation11 + $0x14d8] sm:$0xf0]  ;;  %v15481_v47 = vld [vmem:[#allocation11 + $0x148c] sm:$0xf] }
 0x4fb   : > { %7779 = vmatpush.bf16.msra.mxu0 %v13071_v26  ;;  %v13039_v26 = vor.u32 %v15385_v55, %v13036_v17  ;;  %v13324_v61 = vld [vmem:[#allocation11 + $0x13d8] sm:$0xf0]  ;;  %v6379_v55 = vpop.f32.mrf.mxu2  ;;  %v15377_v17 = vld [vmem:[#allocation11 + $0x114c] sm:$0xf] }
 0x4fc   : > { %v6380_v29 = vadd.f32 %v6379_v55, %v6366_v58  ;;  %v13308_v24 = vld [vmem:[#allocation11 + $0x13b8] sm:$0xf0]  ;;  %v13423_v58 = vor.u32 %v15481_v47, %v13420_v42  ;;  %v15549_v47 = vld [vmem:[#allocation11 + $0x16ac] sm:$0xf] }
 0x4fd   : > { %7793 = vmatpush.bf16.msra.mxu2 %v13199_v45  ;;  %7819 = vmatpush.bf16.msrb.mxu1 %v13487_v54  ;;  %v13167_v45 = vor.u32 %v15417_v49, %v13164_v12  ;;  %v13455_v54 = vor.u32 %v15489_v22, %v13452_v25  ;;  %v15453_v12 = vld [vmem:[#allocation11 + $0x13ac] sm:$0xf]  ;;  %v13007_v22 = vor.u32 %v15377_v17, %v13004_v27  ;;  %v13132_v25 = vld [vmem:[#allocation11 + $0x1258] sm:$0xf0] }
 0x4fe   : > { %7804 = vmatpush.bf16.msra.mxu3 %v13375_v16  ;;  %v13343_v16 = vor.u32 %v15461_v19, %v13340_v32  ;;  %v13439_v19 = vor.u32 %v15485_v63, %v13436_v3  ;;  %v15409_v32 = vld [vmem:[#allocation11 + $0x124c] sm:$0xf]  ;;  %v13292_v63 = vld [vmem:[#allocation11 + $0x1398] sm:$0xf0] }
 0x4ff   : > { %13730 = vmatmul.msk.bf16.vlgmr.msrb.gmra.mxu3 %vm1913_vm5, %v17552_v36  ;;  %7780 = vmatpush.bf16.msra.mxu0 %v13055_v4  ;;  %v13148_v4 = vld [vmem:[#allocation11 + $0x1278] sm:$0xf0]  ;;  %v15553_v3 = vld [vmem:[#allocation11 + $0x16cc] sm:$0xf] }
 0x500   : > { %v13151_v49 = vor.u32 %v15413_v46, %v13148_v4  ;;  %v13135_v46 = vor.u32 %v15409_v32, %v13132_v25  ;;  %v15449_v4 = vld [vmem:[#allocation11 + $0x138c] sm:$0xf]  ;;  %v13404_v27 = vld [vmem:[#allocation11 + $0x1478] sm:$0xf0] }
 0x501   : > { %7794 = vmatpush.bf16.msra.mxu2 %v13183_v52  ;;  %7820 = vmatpush.bf16.msrb.mxu1 %v13471_v31  ;;  %v15533_v52 = vld [vmem:[#allocation11 + $0x162c] sm:$0xf]  ;;  %v13628_v31 = vld [vmem:[#allocation11 + $0x1638] sm:$0xf0]  ;;  %v13295_v17 = vor.u32 %v15449_v4, %v13292_v63 }
 0x502   : > { %7805 = vmatpush.bf16.msra.mxu3 %v13359_v28  ;;  %v13327_v28 = vor.u32 %v15457_v53, %v13324_v61  ;;  %v13631_v33 = vor.u32 %v15533_v52, %v13628_v31  ;;  %v13724_v53 = vld [vmem:[#allocation11 + $0x16f8] sm:$0xf0]  ;;  %v13311_v61 = vor.u32 %v15453_v12, %v13308_v24  ;;  %v17614_v31 = vpop.f32.mrf.mxu1  ;;  %v15445_v32 = vld [vmem:[#allocation11 + $0x136c] sm:$0xf] }
 0x503   : > { %7781 = vmatpush.bf16.msra.mxu0 %v13039_v26  ;;  %v17612_v26 = vadd.f32 %v6380_v29, %v17488_v8  ;;  %v15477_v29 = vld [vmem:[#allocation11 + $0x146c] sm:$0xf]  ;;  %v13708_v55 = vld [vmem:[#allocation11 + $0x16d8] sm:$0xf0]  ;;  %18056 = vst [vmem:[#allocation79_spill] sm:$0xff] %v17614_v31 }
 0x504   : > { %v13596_v52 = vld [vmem:[#allocation11 + $0x15f8] sm:$0xf0]  ;;  %v13711_v24 = vor.u32 %v15553_v3, %v13708_v55  ;;  %v13958_v55 = vld [vmem:[#allocation11 + $0x18c0] sm:$0xf] }
 0x505   : > { %7795 = vmatpush.bf16.msra.mxu2 %v13167_v45  ;;  %7821 = vmatpush.bf16.msrb.mxu1 %v13455_v54  ;;  %v15529_v45 = vld [vmem:[#allocation11 + $0x160c] sm:$0xf]  ;;  %v13612_v54 = vld [vmem:[#allocation11 + $0x1618] sm:$0xf0]  ;;  %v14118_v31 = vld [vmem:[#allocation11 + $0x1a00] sm:$0xf] }
 0x506   : > { %7806 = vmatpush.bf16.msra.mxu3 %v13343_v16  ;;  %v15557_v16 = vld [vmem:[#allocation11 + $0x16ec] sm:$0xf]  ;;  %v13276_v12 = vld [vmem:[#allocation11 + $0x1378] sm:$0xf0] }
 0x507   : > { %7782 = vmatpush.bf16.msra.mxu0 %v13023_v23  ;;  %v13727_v8 = vor.u32 %v15557_v16, %v13724_v53  ;;  %v13615_v23 = vor.u32 %v15529_v45, %v13612_v54  ;;  %v13388_v25 = vld [vmem:[#allocation11 + $0x1458] sm:$0xf0]  ;;  %v13974_v16 = vld [vmem:[#allocation11 + $0x18e0] sm:$0xf]  ;;  %v15622_v53 = vld [vmem:[#allocation11 + $0x18ec] sm:$0xf0] }
 0x508   : > { %v15521_v45 = vld [vmem:[#allocation11 + $0x15cc] sm:$0xf]  ;;  %v13580_v54 = vld [vmem:[#allocation11 + $0x15d8] sm:$0xf0]  ;;  %v13975_v63 = vor.u32 %v15622_v53, %v13974_v16  ;;  %v17620_v16 = vpop.f32.mrf.mxu2  ;;  %v17622_v53 = vpop.f32.mrf.mxu0 }
 0x509   : > { %7796 = vmatpush.bf16.msra.mxu2 %v13151_v49  ;;  %7822 = vmatpush.bf16.msrb.mxu1 %v13439_v19  ;;  %v17616_v49 = vpop.f32.mrf.mxu3  ;;  %v13407_v19 = vor.u32 %v15477_v29, %v13404_v27  ;;  %v13260_v4 = vld [vmem:[#allocation11 + $0x1358] sm:$0xf0]  ;;  %v13846_v29 = vld [vmem:[#allocation11 + $0x17e0] sm:$0xf]  ;;  %v15590_v27 = vld [vmem:[#allocation11 + $0x17ec] sm:$0xf0] }
 0x50a   : > { %7807 = vmatpush.bf16.msra.mxu3 %v13327_v28  ;;  %v15525_v28 = vld [vmem:[#allocation11 + $0x15ec] sm:$0xf]  ;;  %18057 = vst [vmem:[#allocation80_spill] sm:$0xff] %v17616_v49  ;;  %v13676_v3 = vld [vmem:[#allocation11 + $0x1698] sm:$0xf0] }
 0x50b   : > { %7783 = vmatpush.bf16.msra.mxu0 %v13007_v22  ;;  %v15473_v22 = vld [vmem:[#allocation11 + $0x144c] sm:$0xf]  ;;  %v13599_v42 = vor.u32 %v15525_v28, %v13596_v52  ;;  %v15618_v28 = vld [vmem:[#allocation11 + $0x18cc] sm:$0xf0]  ;;  %v13564_v52 = vld [vmem:[#allocation11 + $0x15b8] sm:$0xf0] }
 0x50c   : > { %18058 = vst [vmem:[#allocation81_spill] sm:$0xff] %v17620_v16  ;;  %v15505_v16 = vld [vmem:[#allocation11 + $0x154c] sm:$0xf]  ;;  %v15658_v49 = vld [vmem:[#allocation11 + $0x1a0c] sm:$0xf0] }
 0x50d   : > { %7797 = vmatpush.bf16.msra.mxu2 %v13135_v46  ;;  %7823 = vmatpush.bf16.msrb.mxu1 %v13423_v58  ;;  %v13391_v46 = vor.u32 %v15473_v22, %v13388_v25  ;;  %v15441_v58 = vld [vmem:[#allocation11 + $0x134c] sm:$0xf]  ;;  %v13959_v25 = vor.u32 %v15618_v28, %v13958_v55  ;;  %18059 = vst [vmem:[#allocation82_spill] sm:$0xff] %v17622_v53  ;;  %v15582_v55 = vld [vmem:[#allocation11 + $0x17ac] sm:$0xf0] }
 0x50e   : > { %7808 = vmatpush.bf16.msra.mxu3 %v13311_v61  ;;  %7784 = vmatmul.bf16.vlgmr.msra.gmra.mxu0 %v17527_v35  ;;  %v13279_v61 = vor.u32 %v15445_v32, %v13276_v12  ;;  %v7547_v32 = vpop.f32.mrf.mxu1  ;;  %v13847_v12 = vor.u32 %v15590_v27, %v13846_v29  ;;  %v13644_v27 = vld [vmem:[#allocation11 + $0x1658] sm:$0xf0]  ;;  %v13926_v28 = vld [vmem:[#allocation11 + $0x1880] sm:$0xf] }
 0x50f   : > { %7832 = vmatpush.bf16.msrb.mxu0 %v13631_v33  ;;  %v13692_v33 = vld [vmem:[#allocation11 + $0x16b8] sm:$0xf0] }
 0x510   : > { %7798 = vmatmul.bf16.vlgmr.msra.gmra.mxu2 %v17521_v10  ;;  %v13695_v35 = vor.u32 %v15549_v47, %v13692_v33  ;;  %v13263_v10 = vor.u32 %v15441_v58, %v13260_v4  ;;  %v15541_v47 = vld [vmem:[#allocation11 + $0x166c] sm:$0xf]  ;;  %v13830_v33 = vld [vmem:[#allocation11 + $0x17c0] sm:$0xf]  ;;  %v15614_v58 = vld [vmem:[#allocation11 + $0x18ac] sm:$0xf0] }
 0x511   : > { %7848 = vmatpush.bf16.msrb.mxu2 %v13727_v8  ;;  %7824 = vmatpush.bf16.msrb.mxu1 %v13407_v19  ;;  %v15545_v8 = vld [vmem:[#allocation11 + $0x168c] sm:$0xf]  ;;  %v7533_v19 = vpop.f32.mrf.mxu3  ;;  %v13548_v4 = vld [vmem:[#allocation11 + $0x1598] sm:$0xf0] }
 0x512   : > { %7809 = vmatpush.bf16.msra.mxu3 %v13295_v17  ;;  %v15517_v17 = vld [vmem:[#allocation11 + $0x15ac] sm:$0xf]  ;;  %v7548_v22 = vadd.f32 %v7547_v32, %v7533_v19  ;;  %v13532_v32 = vld [vmem:[#allocation11 + $0x1578] sm:$0xf0] }
 0x513   : > { %7833 = vmatpush.bf16.msrb.mxu0 %v13615_v23  ;;  %v13583_v23 = vor.u32 %v15521_v45, %v13580_v54  ;;  %v13660_v45 = vld [vmem:[#allocation11 + $0x1678] sm:$0xf0]  ;;  %v13942_v54 = vld [vmem:[#allocation11 + $0x18a0] sm:$0xf] }
 0x514   : > { %v13943_v29 = vor.u32 %v15614_v58, %v13942_v54  ;;  %v15606_v54 = vld [vmem:[#allocation11 + $0x186c] sm:$0xf0]  ;;  %v14086_v58 = vld [vmem:[#allocation11 + $0x19c0] sm:$0xf]  ;;  %v13516_v53 = vld [vmem:[#allocation11 + $0x1558] sm:$0xf0] }
 0x515   : > { %7849 = vmatpush.bf16.msrb.mxu2 %v13711_v24  ;;  %7825 = vmatpush.bf16.msrb.mxu1 %v13391_v46  ;;  %v13679_v24 = vor.u32 %v15545_v8, %v13676_v3  ;;  %v15513_v46 = vld [vmem:[#allocation11 + $0x158c] sm:$0xf]  ;;  %v13663_v8 = vor.u32 %v15541_v47, %v13660_v45  ;;  %v13814_v3 = vld [vmem:[#allocation11 + $0x17a0] sm:$0xf]  ;;  %v15578_v47 = vld [vmem:[#allocation11 + $0x178c] sm:$0xf0] }
 0x516   : > { %7810 = vmatpush.bf16.msra.mxu3 %v13279_v61  ;;  %v13567_v61 = vor.u32 %v15517_v17, %v13564_v52  ;;  %v15610_v17 = vld [vmem:[#allocation11 + $0x188c] sm:$0xf0]  ;;  %v15509_v52 = vld [vmem:[#allocation11 + $0x156c] sm:$0xf]  ;;  %v13815_v19 = vor.u32 %v15582_v55, %v13814_v3  ;;  %v13910_v45 = vld [vmem:[#allocation11 + $0x1860] sm:$0xf] }
 0x517   : > { %7834 = vmatpush.bf16.msrb.mxu0 %v13599_v42  ;;  %v15586_v42 = vld [vmem:[#allocation11 + $0x17cc] sm:$0xf0]  ;;  %v13782_v3 = vld [vmem:[#allocation11 + $0x1760] sm:$0xf] }
 0x518   : > { %7826 = vmatmul.bf16.vlgmr.msrb.gmra.mxu1 %v17546_v7  ;;  %v14102_v7 = vld [vmem:[#allocation11 + $0x19e0] sm:$0xf]  ;;  %v15574_v55 = vld [vmem:[#allocation11 + $0x176c] sm:$0xf0] }
 0x519   : > { %7850 = vmatpush.bf16.msrb.mxu2 %v13695_v35  ;;  %8996 = vmatpush.bf16.msra.mxu1 %v13975_v63  ;;  %v13831_v35 = vor.u32 %v15586_v42, %v13830_v33  ;;  %v15537_v63 = vld [vmem:[#allocation11 + $0x164c] sm:$0xf]  ;;  %v7561_v33 = vpop.f32.mrf.mxu2  ;;  %v7575_v42 = vpop.f32.mrf.mxu0 }
 0x51a   : > { %7811 = vmatpush.bf16.msra.mxu3 %v13263_v10  ;;  %v15654_v10 = vld [vmem:[#allocation11 + $0x19ec] sm:$0xf0] }
 0x51b   : > { %7835 = vmatpush.bf16.msrb.mxu0 %v13583_v23  ;;  %v13551_v23 = vor.u32 %v15513_v46, %v13548_v4  ;;  %v7562_v46 = vadd.f32 %v7561_v33, %v7548_v22  ;;  %v15650_v4 = vld [vmem:[#allocation11 + $0x19cc] sm:$0xf0] }
 0x51c   : > { %v15602_v22 = vld [vmem:[#allocation11 + $0x184c] sm:$0xf0] }
 0x51d   : > { %7851 = vmatpush.bf16.msrb.mxu2 %v13679_v24  ;;  %8997 = vmatpush.bf16.msra.mxu1 %v13959_v25  ;;  %v13927_v24 = vor.u32 %v15610_v17, %v13926_v28  ;;  %v13798_v25 = vld [vmem:[#allocation11 + $0x1780] sm:$0xf]  ;;  %v13519_v28 = vor.u32 %v15505_v16, %v13516_v53  ;;  %v15570_v33 = vld [vmem:[#allocation11 + $0x174c] sm:$0xf0] }
 0x51e   : > { %8982 = vmatpush.bf16.msrb.mxu3 %v13847_v12  ;;  %v13647_v12 = vor.u32 %v15537_v63, %v13644_v27  ;;  %v17626_v63 = vadd.f32 %v7575_v42, %v7562_v46  ;;  %v13911_v27 = vor.u32 %v15606_v54, %v13910_v45  ;;  %v13894_v17 = vld [vmem:[#allocation11 + $0x1840] sm:$0xf]  ;;  %v15598_v42 = vld [vmem:[#allocation11 + $0x182c] sm:$0xf0]  ;;  %v17632_v46 = vpop.f32.mrf.mxu3 }
 0x51f   : > { %7812 = vmatmul.bf16.vlgmr.msra.gmra.mxu3 %v17538_v37  ;;  %7836 = vmatpush.bf16.msrb.mxu0 %v13567_v61  ;;  %v14103_v37 = vor.u32 %v15654_v10, %v14102_v7  ;;  %v13535_v61 = vor.u32 %v15509_v52, %v13532_v32  ;;  %v17628_v7 = vpop.f32.mrf.mxu1  ;;  %v14070_v52 = vld [vmem:[#allocation11 + $0x19a0] sm:$0xf]  ;;  %v15646_v32 = vld [vmem:[#allocation11 + $0x19ac] sm:$0xf0] }
 0x520   : > { %v14071_v16 = vor.u32 %v15646_v32, %v14070_v52  ;;  %v13878_v53 = vld [vmem:[#allocation11 + $0x1820] sm:$0xf]  ;;  %v15642_v45 = vld [vmem:[#allocation11 + $0x198c] sm:$0xf0] }
 0x521   : > { %7852 = vmatpush.bf16.msrb.mxu2 %v13663_v8  ;;  %8998 = vmatpush.bf16.msra.mxu1 %v13943_v29  ;;  %v14230_v8 = vld [vmem:[#allocation11 + $0x1ae0] sm:$0xf]  ;;  %v15686_v29 = vld [vmem:[#allocation11 + $0x1aec] sm:$0xf0] }
 0x522   : > { %8983 = vmatpush.bf16.msrb.mxu3 %v13831_v35  ;;  %v13799_v35 = vor.u32 %v15578_v47, %v13798_v25  ;;  %v14231_v10 = vor.u32 %v15686_v29, %v14230_v8  ;;  %v13895_v25 = vor.u32 %v15602_v22, %v13894_v17  ;;  %v13766_v47 = vld [vmem:[#allocation11 + $0x1740] sm:$0xf]  ;;  %v15566_v8 = vld [vmem:[#allocation11 + $0x172c] sm:$0xf0] }
 0x523   : > { %7837 = vmatpush.bf16.msrb.mxu0 %v13551_v23  ;;  %v14087_v23 = vor.u32 %v15650_v4, %v14086_v58  ;;  %v13767_v54 = vor.u32 %v15570_v33, %v13766_v47  ;;  %v15678_v58 = vld [vmem:[#allocation11 + $0x1aac] sm:$0xf0]  ;;  %v13879_v4 = vor.u32 %v15598_v42, %v13878_v53  ;;  %v14454_v22 = vld [vmem:[#allocation11 + $0x1ca0] sm:$0xf] }
 0x524   : > { %v15638_v17 = vld [vmem:[#allocation11 + $0x196c] sm:$0xf0]  ;;  %v14182_v32 = vld [vmem:[#allocation11 + $0x1a80] sm:$0xf] }
 0x525   : > { %7853 = vmatpush.bf16.msrb.mxu2 %v13647_v12  ;;  %8999 = vmatpush.bf16.msra.mxu1 %v13927_v24  ;;  %v14214_v12 = vld [vmem:[#allocation11 + $0x1ac0] sm:$0xf]  ;;  %v15682_v24 = vld [vmem:[#allocation11 + $0x1acc] sm:$0xf0] }
 0x526   : > { %8984 = vmatpush.bf16.msrb.mxu3 %v13815_v19  ;;  %v13783_v19 = vor.u32 %v15574_v55, %v13782_v3  ;;  %v15594_v3 = vld [vmem:[#allocation11 + $0x180c] sm:$0xf0]  ;;  %v14038_v55 = vld [vmem:[#allocation11 + $0x1960] sm:$0xf] }
 0x527   : > { %7838 = vmatpush.bf16.msrb.mxu0 %v13535_v61  ;;  %v14054_v61 = vld [vmem:[#allocation11 + $0x1980] sm:$0xf]  ;;  %v15718_v53 = vld [vmem:[#allocation11 + $0x1bec] sm:$0xf0] }
 0x528   : > { %13731 = vmatmul.msk.bf16.vlgmr.msrb.gmra.mxu2 %vm1913_vm5, %v17552_v36  ;;  %v14198_v36 = vld [vmem:[#allocation11 + $0x1aa0] sm:$0xf]  ;;  %v14055_v29 = vor.u32 %v15642_v45, %v14054_v61  ;;  %v15738_v45 = vld [vmem:[#allocation11 + $0x1c8c] sm:$0xf0] }
 0x529   : > { %9010 = vmatpush.bf16.msra.mxu2 %v14103_v37  ;;  %9000 = vmatpush.bf16.msra.mxu1 %v13911_v27  ;;  %v14215_v37 = vor.u32 %v15682_v24, %v14214_v12  ;;  %v13862_v27 = vld [vmem:[#allocation11 + $0x1800] sm:$0xf]  ;;  %v15562_v24 = vld [vmem:[#allocation11 + $0x170c] sm:$0xf0] }
 0x52a   : > { %8985 = vmatpush.bf16.msrb.mxu3 %v13799_v35  ;;  %v13750_v35 = vld [vmem:[#allocation11 + $0x1720] sm:$0xf] }
 0x52b   : > { %7839 = vmatpush.bf16.msrb.mxu0 %v13519_v28  ;;  %v14199_v28 = vor.u32 %v15678_v58, %v14198_v36  ;;  %v13751_v52 = vor.u32 %v15566_v8, %v13750_v35  ;;  %v13734_v12 = vld [vmem:[#allocation11 + $0x1700] sm:$0xf]  ;;  %v15670_v58 = vld [vmem:[#allocation11 + $0x1a6c] sm:$0xf0]  ;;  %v17635_v8 = vpop.f32.mrf.mxu0 }
 0x52c   : > { %v14022_v33 = vld [vmem:[#allocation11 + $0x1940] sm:$0xf] }
 0x52d   : > { %9011 = vmatpush.bf16.msra.mxu2 %v14087_v23  ;;  %9001 = vmatpush.bf16.msra.mxu1 %v13895_v25  ;;  %v7603_v23 = vpop.f32.mrf.mxu1  ;;  %v14039_v25 = vor.u32 %v15638_v17, %v14038_v55  ;;  %v14438_v61 = vld [vmem:[#allocation11 + $0x1c80] sm:$0xf]  ;;  %v15714_v17 = vld [vmem:[#allocation11 + $0x1bcc] sm:$0xf0] }
 0x52e   : > { %8986 = vmatpush.bf16.msrb.mxu3 %v13783_v19  ;;  %7840 = vmatmul.bf16.vlgmr.msrb.gmra.mxu0 %v17564_v13  ;;  %v15674_v19 = vld [vmem:[#allocation11 + $0x1a8c] sm:$0xf0]  ;;  %v13863_v13 = vor.u32 %v15594_v3, %v13862_v27  ;;  %v14166_v36 = vld [vmem:[#allocation11 + $0x1a60] sm:$0xf]  ;;  %v14439_v3 = vor.u32 %v15738_v45, %v14438_v61 }
 0x52f   : > { %9024 = vmatpush.bf16.msra.mxu0 %v14231_v10  ;;  %v15742_v10 = vld [vmem:[#allocation11 + $0x1cac] sm:$0xf0]  ;;  %v14183_v42 = vor.u32 %v15674_v19, %v14182_v32  ;;  %v14006_v55 = vld [vmem:[#allocation11 + $0x1920] sm:$0xf] }
 0x530   : > { %v14455_v47 = vor.u32 %v15742_v10, %v14454_v22  ;;  %v17638_v22 = vpop.f32.mrf.mxu2  ;;  %v14167_v10 = vor.u32 %v15670_v58, %v14166_v36  ;;  %v14422_v32 = vld [vmem:[#allocation11 + $0x1c60] sm:$0xf]  ;;  %v15734_v19 = vld [vmem:[#allocation11 + $0x1c6c] sm:$0xf0]  ;;  %v15588_v36 = vld [vmem:[#allocation11 + $0x17e4] sm:$0xf] }
 0x531   : > { %9012 = vmatpush.bf16.msra.mxu2 %v14071_v16  ;;  %9002 = vmatpush.bf16.msra.mxu1 %v13879_v4  ;;  %v14358_v16 = vld [vmem:[#allocation11 + $0x1be0] sm:$0xf]  ;;  %v7589_v4 = vpop.f32.mrf.mxu3  ;;  %v13848_v58 = vld [vmem:[#allocation11 + $0x17f0] sm:$0xf0] }
 0x532   : > { %8987 = vmatpush.bf16.msrb.mxu3 %v13767_v54  ;;  %v13735_v54 = vor.u32 %v15562_v24, %v13734_v12  ;;  %v14359_v35 = vor.u32 %v15718_v53, %v14358_v16  ;;  %v14150_v12 = vld [vmem:[#allocation11 + $0x1a40] sm:$0xf]  ;;  %v14423_v53 = vor.u32 %v15734_v19, %v14422_v32  ;;  %v15726_v19 = vld [vmem:[#allocation11 + $0x1c2c] sm:$0xf0] }
 0x533   : > { %9025 = vmatpush.bf16.msra.mxu0 %v14215_v37  ;;  %v15634_v37 = vld [vmem:[#allocation11 + $0x194c] sm:$0xf0]  ;;  %v14406_v45 = vld [vmem:[#allocation11 + $0x1c40] sm:$0xf] }
 0x534   : > { %v14023_v27 = vor.u32 %v15634_v37, %v14022_v33  ;;  %v14326_v37 = vld [vmem:[#allocation11 + $0x1ba0] sm:$0xf] }
 0x535   : > { %9013 = vmatpush.bf16.msra.mxu2 %v14055_v29  ;;  %9003 = vmatpush.bf16.msra.mxu1 %v13863_v13  ;;  %v7590_v29 = vadd.f32 %v7589_v4, %v17626_v63  ;;  %v15666_v63 = vld [vmem:[#allocation11 + $0x1a4c] sm:$0xf0]  ;;  %v17641_v24 = vpop.f32.mrf.mxu1  ;;  %v14134_v4 = vld [vmem:[#allocation11 + $0x1a20] sm:$0xf] }
 0x536   : > { %8988 = vmatpush.bf16.msrb.mxu3 %v13751_v52  ;;  %v15630_v52 = vld [vmem:[#allocation11 + $0x192c] sm:$0xf0]  ;;  %v14151_v61 = vor.u32 %v15666_v63, %v14150_v12  ;;  %v14390_v32 = vld [vmem:[#allocation11 + $0x1c20] sm:$0xf]  ;;  %v13832_v63 = vld [vmem:[#allocation11 + $0x17d0] sm:$0xf0] }
 0x537   : > { %9026 = vmatpush.bf16.msra.mxu0 %v14199_v28  ;;  %v14342_v28 = vld [vmem:[#allocation11 + $0x1bc0] sm:$0xf]  ;;  %v7604_v13 = vadd.f32 %v7603_v23, %v7590_v29  ;;  %v14007_v16 = vor.u32 %v15630_v52, %v14006_v55  ;;  %v15710_v23 = vld [vmem:[#allocation11 + $0x1bac] sm:$0xf0]  ;;  %v7631_v29 = vpop.f32.mrf.mxu0  ;;  %v13851_v52 = vor.u32 %v15588_v36, %v13848_v58 }
 0x538   : > { %9004 = vmatmul.bf16.vlgmr.msra.gmra.mxu1 %v17151_v20  ;;  %v14310_v55 = vld [vmem:[#allocation11 + $0x1b80] sm:$0xf]  ;;  %v15722_v58 = vld [vmem:[#allocation11 + $0x1c0c] sm:$0xf0] }
 0x539   : > { %9014 = vmatpush.bf16.msra.mxu2 %v14039_v25  ;;  %9054 = vmatpush.bf16.msrb.mxu1 %v14455_v47  ;;  %v14343_v25 = vor.u32 %v15714_v17, %v14342_v28  ;;  %v13990_v47 = vld [vmem:[#allocation11 + $0x1900] sm:$0xf]  ;;  %v17644_v33 = vadd.f32 %v7604_v13, %v17530_v48  ;;  %v14327_v48 = vor.u32 %v15710_v23, %v14326_v37  ;;  %v15706_v28 = vld [vmem:[#allocation11 + $0x1b8c] sm:$0xf0]  ;;  %v7617_v17 = vpop.f32.mrf.mxu2  ;;  %v15584_v13 = vld [vmem:[#allocation11 + $0x17c4] sm:$0xf] }
 0x53a   : > { %8989 = vmatpush.bf16.msrb.mxu3 %v13735_v54  ;;  %v15730_v54 = vld [vmem:[#allocation11 + $0x1c4c] sm:$0xf0]  ;;  %v7632_v12 = vadd.f32 %v7631_v29, %v7617_v17  ;;  %v13976_v37 = vld [vmem:[#allocation11 + $0x18f0] sm:$0xf0]  ;;  %v14294_v23 = vld [vmem:[#allocation11 + $0x1b60] sm:$0xf] }
 0x53b   : > { %9027 = vmatpush.bf16.msra.mxu0 %v14183_v42  ;;  %v15626_v42 = vld [vmem:[#allocation11 + $0x190c] sm:$0xf0]  ;;  %v14374_v36 = vld [vmem:[#allocation11 + $0x1c00] sm:$0xf]  ;;  %v13816_v29 = vld [vmem:[#allocation11 + $0x17b0] sm:$0xf0] }
 0x53c   : > { %v14375_v17 = vor.u32 %v15722_v58, %v14374_v36  ;;  %v13784_v58 = vld [vmem:[#allocation11 + $0x1770] sm:$0xf0] }
 0x53d   : > { %9015 = vmatpush.bf16.msra.mxu2 %v14023_v27  ;;  %9055 = vmatpush.bf16.msrb.mxu1 %v14439_v3  ;;  %v13991_v27 = vor.u32 %v15626_v42, %v13990_v47  ;;  %v14407_v3 = vor.u32 %v15730_v54, %v14406_v45  ;;  %v14391_v42 = vor.u32 %v15726_v19, %v14390_v32  ;;  %v14278_v32 = vld [vmem:[#allocation11 + $0x1b40] sm:$0xf] }
 0x53e   : > { %9038 = vmatpush.bf16.msra.mxu3 %v14359_v35  ;;  %v15662_v35 = vld [vmem:[#allocation11 + $0x1a2c] sm:$0xf0]  ;;  %v13835_v45 = vor.u32 %v15584_v13, %v13832_v63  ;;  %v14119_v54 = vor.u32 %v15658_v49, %v14118_v31  ;;  %v13800_v13 = vld [vmem:[#allocation11 + $0x1790] sm:$0xf0] }
 0x53f   : > { %8990 = vmatmul.bf16.vlgmr.msrb.gmra.mxu3 %v17117_v50  ;;  %9028 = vmatpush.bf16.msra.mxu0 %v14167_v10  ;;  %v14135_v10 = vor.u32 %v15662_v35, %v14134_v4  ;;  %v15580_v4 = vld [vmem:[#allocation11 + $0x17a4] sm:$0xf]  ;;  %v14088_v63 = vld [vmem:[#allocation11 + $0x19d0] sm:$0xf0] }
 0x540   : > { %v13819_v31 = vor.u32 %v15580_v4, %v13816_v29  ;;  %v15644_v4 = vld [vmem:[#allocation11 + $0x19a4] sm:$0xf] }
 0x541   : > { %9016 = vmatpush.bf16.msra.mxu2 %v14007_v16  ;;  %9056 = vmatpush.bf16.msrb.mxu1 %v14423_v53  ;;  %v14311_v16 = vor.u32 %v15706_v28, %v14310_v55  ;;  %v15620_v53 = vld [vmem:[#allocation11 + $0x18e4] sm:$0xf]  ;;  %v14104_v55 = vld [vmem:[#allocation11 + $0x19f0] sm:$0xf0] }
 0x542   : > { %9039 = vmatpush.bf16.msra.mxu3 %v14343_v25  ;;  %v7645_v25 = vpop.f32.mrf.mxu1  ;;  %v13979_v35 = vor.u32 %v15620_v53, %v13976_v37  ;;  %v13944_v53 = vld [vmem:[#allocation11 + $0x18b0] sm:$0xf0]  ;;  %v17650_v37 = vpop.f32.mrf.mxu3 }
 0x543   : > { %9029 = vmatpush.bf16.msra.mxu0 %v14151_v61  ;;  %v17647_v47 = vadd.f32 %v7645_v25, %v7632_v12  ;;  %v15702_v61 = vld [vmem:[#allocation11 + $0x1b6c] sm:$0xf0]  ;;  %v15648_v12 = vld [vmem:[#allocation11 + $0x19c4] sm:$0xf] }
 0x544   : > { %v14295_v28 = vor.u32 %v15702_v61, %v14294_v23  ;;  %v15694_v23 = vld [vmem:[#allocation11 + $0x1b2c] sm:$0xf0] }
 0x545   : > { %9017 = vmatpush.bf16.msra.mxu2 %v13991_v27  ;;  %9057 = vmatpush.bf16.msrb.mxu1 %v14407_v3  ;;  %v15616_v27 = vld [vmem:[#allocation11 + $0x18c4] sm:$0xf]  ;;  %v13960_v3 = vld [vmem:[#allocation11 + $0x18d0] sm:$0xf0] }
 0x546   : > { %9040 = vmatpush.bf16.msra.mxu3 %v14327_v48  ;;  %v15652_v48 = vld [vmem:[#allocation11 + $0x19e4] sm:$0xf]  ;;  %v13963_v19 = vor.u32 %v15616_v27, %v13960_v3  ;;  %v15690_v27 = vld [vmem:[#allocation11 + $0x1b0c] sm:$0xf0] }
 0x547   : > { %9030 = vmatpush.bf16.msra.mxu0 %v14135_v10  ;;  %v14107_v49 = vor.u32 %v15652_v48, %v14104_v55  ;;  %v15576_v10 = vld [vmem:[#allocation11 + $0x1784] sm:$0xf]  ;;  %v13928_v55 = vld [vmem:[#allocation11 + $0x1890] sm:$0xf0] }
 0x548   : > { %9018 = vmatmul.bf16.vlgmr.msra.gmra.mxu2 %v17159_v6  ;;  %v13803_v61 = vor.u32 %v15576_v10, %v13800_v13  ;;  %v15608_v48 = vld [vmem:[#allocation11 + $0x1884] sm:$0xf]  ;;  %v13768_v10 = vld [vmem:[#allocation11 + $0x1750] sm:$0xf0] }
 0x549   : > { %9066 = vmatpush.bf16.msrb.mxu2 %v13851_v52  ;;  %9058 = vmatpush.bf16.msrb.mxu1 %v14391_v42  ;;  %v15698_v52 = vld [vmem:[#allocation11 + $0x1b4c] sm:$0xf0]  ;;  %v14262_v42 = vld [vmem:[#allocation11 + $0x1b20] sm:$0xf]  ;;  %v14056_v13 = vld [vmem:[#allocation11 + $0x1990] sm:$0xf0] }
 0x54a   : > { %9041 = vmatpush.bf16.msra.mxu3 %v14311_v16  ;;  %v14279_v25 = vor.u32 %v15698_v52, %v14278_v32  ;;  %v15612_v16 = vld [vmem:[#allocation11 + $0x18a4] sm:$0xf]  ;;  %v14263_v29 = vor.u32 %v15694_v23, %v14262_v42 }
 0x54b   : > { %9031 = vmatpush.bf16.msra.mxu0 %v14119_v54  ;;  %v15572_v54 = vld [vmem:[#allocation11 + $0x1764] sm:$0xf]  ;;  %v13947_v36 = vor.u32 %v15612_v16, %v13944_v53  ;;  %v7659_v16 = vpop.f32.mrf.mxu3 }
 0x54c   : > { %v13787_v3 = vor.u32 %v15572_v54, %v13784_v58  ;;  %v15568_v32 = vld [vmem:[#allocation11 + $0x1744] sm:$0xf]  ;;  %v7660_v42 = vadd.f32 %v7659_v16, %v17647_v47  ;;  %v14216_v58 = vld [vmem:[#allocation11 + $0x1ad0] sm:$0xf0] }
 0x54d   : > { %9067 = vmatpush.bf16.msrb.mxu2 %v13835_v45  ;;  %9059 = vmatpush.bf16.msrb.mxu1 %v14375_v17  ;;  %v14091_v45 = vor.u32 %v15648_v12, %v14088_v63  ;;  %v15684_v52 = vld [vmem:[#allocation11 + $0x1ae4] sm:$0xf]  ;;  %v13771_v23 = vor.u32 %v15568_v32, %v13768_v10  ;;  %v13736_v32 = vld [vmem:[#allocation11 + $0x1710] sm:$0xf0] }
 0x54e   : > { %9042 = vmatpush.bf16.msra.mxu3 %v14295_v28  ;;  %9032 = vmatmul.bf16.vlgmr.msra.gmra.mxu0 %v17229_v56  ;;  %v14246_v28 = vld [vmem:[#allocation11 + $0x1b00] sm:$0xf]  ;;  %v15604_v63 = vld [vmem:[#allocation11 + $0x1864] sm:$0xf]  ;;  %v14200_v10 = vld [vmem:[#allocation11 + $0x1ab0] sm:$0xf0] }
 0x54f   : > { %9080 = vmatpush.bf16.msrb.mxu0 %v13979_v35  ;;  %v14072_v35 = vld [vmem:[#allocation11 + $0x19b0] sm:$0xf0]  ;;  %v14247_v12 = vor.u32 %v15690_v27, %v14246_v28  ;;  %v15680_v54 = vld [vmem:[#allocation11 + $0x1ac4] sm:$0xf] }
 0x550   : > { %14468 = vmatmul.msk.bf16.vlgmr.msrb.gmra.mxu1 %vm1913_vm5, %v17233_v9  ;;  %v14075_v17 = vor.u32 %v15644_v4, %v14072_v35  ;;  %v7633_v4 = vpop.f32.mrf.mxu0  ;;  %v15600_v28 = vld [vmem:[#allocation11 + $0x1844] sm:$0xf]  ;;  %v13896_v27 = vld [vmem:[#allocation11 + $0x1850] sm:$0xf0] }
 0x551   : > { %9068 = vmatpush.bf16.msrb.mxu2 %v13819_v31  ;;  %9094 = vmatpush.bf16.msra.mxu1 %v14107_v49  ;;  %v14232_v31 = vld [vmem:[#allocation11 + $0x1af0] sm:$0xf0]  ;;  %v13931_v49 = vor.u32 %v15608_v48, %v13928_v55  ;;  %v15560_v47 = vld [vmem:[#allocation11 + $0x1704] sm:$0xf] }
 0x552   : > { %9043 = vmatpush.bf16.msra.mxu3 %v14279_v25  ;;  %v13912_v25 = vld [vmem:[#allocation11 + $0x1870] sm:$0xf0]  ;;  %v14235_v53 = vor.u32 %v15684_v52, %v14232_v31  ;;  %v14219_v52 = vor.u32 %v15680_v54, %v14216_v58  ;;  %v15676_v31 = vld [vmem:[#allocation11 + $0x1aa4] sm:$0xf] }
 0x553   : > { %9081 = vmatpush.bf16.msrb.mxu0 %v13963_v19  ;;  %v15640_v19 = vld [vmem:[#allocation11 + $0x1984] sm:$0xf]  ;;  %v13915_v35 = vor.u32 %v15604_v63, %v13912_v25  ;;  %v13752_v48 = vld [vmem:[#allocation11 + $0x1730] sm:$0xf0] }
 0x554   : > { %v14040_v55 = vld [vmem:[#allocation11 + $0x1970] sm:$0xf0]  ;;  %v15716_v63 = vld [vmem:[#allocation11 + $0x1be4] sm:$0xf] }
 0x555   : > { %9069 = vmatpush.bf16.msrb.mxu2 %v13803_v61  ;;  %9095 = vmatpush.bf16.msra.mxu1 %v14091_v45  ;;  %v14059_v61 = vor.u32 %v15640_v19, %v14056_v13  ;;  %v15564_v45 = vld [vmem:[#allocation11 + $0x1724] sm:$0xf]  ;;  %v14024_v13 = vld [vmem:[#allocation11 + $0x1950] sm:$0xf0] }
 0x556   : > { %9044 = vmatpush.bf16.msra.mxu3 %v14263_v29  ;;  %v15636_v29 = vld [vmem:[#allocation11 + $0x1964] sm:$0xf]  ;;  %v13880_v16 = vld [vmem:[#allocation11 + $0x1830] sm:$0xf0] }
 0x557   : > { %9082 = vmatpush.bf16.msrb.mxu0 %v13947_v36  ;;  %v7619_v36 = vpop.f32.mrf.mxu2  ;;  %v15632_v19 = vld [vmem:[#allocation11 + $0x1944] sm:$0xf]  ;;  %v14184_v54 = vld [vmem:[#allocation11 + $0x1a90] sm:$0xf0] }
 0x558   : > { %v15596_v25 = vld [vmem:[#allocation11 + $0x1824] sm:$0xf]  ;;  %v7687_v58 = vpop.f32.mrf.mxu0  ;;  %v7634_v30 = vadd.f32 %v7633_v4, %v7619_v36  ;;  %v13992_v4 = vld [vmem:[#allocation11 + $0x1910] sm:$0xf0] }
 0x559   : > { %9070 = vmatpush.bf16.msrb.mxu2 %v13787_v3  ;;  %9096 = vmatpush.bf16.msra.mxu1 %v14075_v17  ;;  %v13755_v3 = vor.u32 %v15564_v45, %v13752_v48  ;;  %v14043_v17 = vor.u32 %v15636_v29, %v14040_v55  ;;  %v15672_v45 = vld [vmem:[#allocation11 + $0x1a84] sm:$0xf] }
 0x55a   : > { %9045 = vmatpush.bf16.msra.mxu3 %v14247_v12  ;;  %v14360_v12 = vld [vmem:[#allocation11 + $0x1bf0] sm:$0xf0]  ;;  %v15628_v55 = vld [vmem:[#allocation11 + $0x1924] sm:$0xf] }
 0x55b   : > { %9083 = vmatpush.bf16.msrb.mxu0 %v13931_v49  ;;  %v13899_v49 = vor.u32 %v15600_v28, %v13896_v27  ;;  %v14363_v29 = vor.u32 %v15716_v63, %v14360_v12  ;;  %v14008_v28 = vld [vmem:[#allocation11 + $0x1930] sm:$0xf0]  ;;  %v15712_v27 = vld [vmem:[#allocation11 + $0x1bc4] sm:$0xf] }
 0x55c   : > { %v14347_v63 = vor.u32 %v15712_v27, %v14344_v1  ;;  %v15708_v12 = vld [vmem:[#allocation11 + $0x1ba4] sm:$0xf] }
 0x55d   : > { %9071 = vmatpush.bf16.msrb.mxu2 %v13771_v23  ;;  %9097 = vmatpush.bf16.msra.mxu1 %v14059_v61  ;;  %v13739_v23 = vor.u32 %v15560_v47, %v13736_v32  ;;  %v14027_v61 = vor.u32 %v15632_v19, %v14024_v13  ;;  %v15740_v47 = vld [vmem:[#allocation11 + $0x1ca4] sm:$0xf]  ;;  %v14168_v19 = vld [vmem:[#allocation11 + $0x1a70] sm:$0xf0]  ;;  %v7661_v13 = vpop.f32.mrf.mxu3 }
 0x55e   : > { %9108 = vmatpush.bf16.msrb.mxu3 %v14235_v53  ;;  %v14203_v53 = vor.u32 %v15676_v31, %v14200_v10  ;;  %v7647_v31 = vpop.f32.mrf.mxu1  ;;  %v14011_v10 = vor.u32 %v15628_v55, %v14008_v28  ;;  %v15704_v55 = vld [vmem:[#allocation11 + $0x1b84] sm:$0xf] }
 0x55f   : > { %9046 = vmatmul.bf16.vlgmr.msra.gmra.mxu3 %v17231_v41  ;;  %9084 = vmatpush.bf16.msrb.mxu0 %v13915_v35  ;;  %v7673_v48 = vpop.f32.mrf.mxu2  ;;  %v13883_v35 = vor.u32 %v15596_v25, %v13880_v16  ;;  %v7648_v25 = vadd.f32 %v7647_v31, %v7634_v30  ;;  %v13838_v31 = vld [vmem:[#allocation11 + $0x17c8] sm:$0xf] }
 0x560   : > { %v7674_v40 = vadd.f32 %v7673_v48, %v7660_v42  ;;  %v15624_v42 = vld [vmem:[#allocation11 + $0x1904] sm:$0xf] }
 0x561   : > { %9072 = vmatpush.bf16.msrb.mxu2 %v13755_v3  ;;  %9098 = vmatpush.bf16.msra.mxu1 %v14043_v17  ;;  %v14187_v3 = vor.u32 %v15672_v45, %v14184_v54  ;;  %v14456_v17 = vld [vmem:[#allocation11 + $0x1cb0] sm:$0xf0]  ;;  %v15736_v54 = vld [vmem:[#allocation11 + $0x1c84] sm:$0xf]  ;;  %v7662_v48 = vadd.f32 %v7661_v13, %v7648_v25  ;;  %v13995_v1 = vor.u32 %v15624_v42, %v13992_v4 }
 0x562   : > { %9109 = vmatpush.bf16.msrb.mxu3 %v14219_v52  ;;  %v13864_v52 = vld [vmem:[#allocation11 + $0x1810] sm:$0xf0]  ;;  %v7688_v32 = vadd.f32 %v7687_v58, %v7674_v40  ;;  %v13854_v40 = vld [vmem:[#allocation11 + $0x17e8] sm:$0xf]  ;;  %v15700_v42 = vld [vmem:[#allocation11 + $0x1b64] sm:$0xf] }
 0x563   : > { %9085 = vmatpush.bf16.msrb.mxu0 %v13899_v49  ;;  %v15668_v49 = vld [vmem:[#allocation11 + $0x1a64] sm:$0xf]  ;;  %v13867_v36 = vor.u32 %v15592_v39, %v13864_v52  ;;  %v14328_v45 = vld [vmem:[#allocation11 + $0x1bb0] sm:$0xf0] }
 0x564   : > { %v17658_v16 = vadd.f32 %v7688_v32, %v17570_v38  ;;  %v14440_v58 = vld [vmem:[#allocation11 + $0x1c90] sm:$0xf0]  ;;  %v15664_v39 = vld [vmem:[#allocation11 + $0x1a44] sm:$0xf]  ;;  %v14331_v30 = vor.u32 %v15708_v12, %v14328_v45  ;;  %v15583_v45 = vld [vmem:[#allocation11 + $0x17b4] sm:$0xf0] }
 0x565   : > { %9073 = vmatpush.bf16.msrb.mxu2 %v13739_v23  ;;  %9099 = vmatpush.bf16.msra.mxu1 %v14027_v61  ;;  %v15591_v23 = vld [vmem:[#allocation11 + $0x17f4] sm:$0xf0]  ;;  %v14171_v61 = vor.u32 %v15668_v49, %v14168_v19  ;;  %v14443_v27 = vor.u32 %v15736_v54, %v14440_v58  ;;  %v14312_v52 = vld [vmem:[#allocation11 + $0x1b90] sm:$0xf0]  ;;  %v15732_v32 = vld [vmem:[#allocation11 + $0x1c64] sm:$0xf] }
 0x566   : > { %9110 = vmatpush.bf16.msrb.mxu3 %v14203_v53  ;;  %v14459_v53 = vor.u32 %v15740_v47, %v14456_v17  ;;  %v13855_v38 = vor.u32 %v15591_v23, %v13854_v40  ;;  %v7689_v47 = vpop.f32.mrf.mxu0  ;;  %v15660_v19 = vld [vmem:[#allocation11 + $0x1a24] sm:$0xf]  ;;  %v14136_v13 = vld [vmem:[#allocation11 + $0x1a30] sm:$0xf0]  ;;  %v7701_v4 = vpop.f32.mrf.mxu1 }
 0x567   : > { %9086 = vmatpush.bf16.msrb.mxu0 %v13883_v35  ;;  %v7675_v35 = vpop.f32.mrf.mxu2  ;;  %v14296_v25 = vld [vmem:[#allocation11 + $0x1b70] sm:$0xf0]  ;;  %v14139_v40 = vor.u32 %v15660_v19, %v14136_v13  ;;  %v15728_v23 = vld [vmem:[#allocation11 + $0x1c44] sm:$0xf]  ;;  %v13966_v13 = vld [vmem:[#allocation11 + $0x18c8] sm:$0xf] }
 0x568   : > { %9074 = vmatmul.bf16.vlgmr.msrb.gmra.mxu2 %v17117_v50  ;;  %v7676_v28 = vadd.f32 %v7675_v35, %v7662_v48  ;;  %v15656_v54 = vld [vmem:[#allocation11 + $0x1a04] sm:$0xf]  ;;  %v14120_v58 = vld [vmem:[#allocation11 + $0x1a10] sm:$0xf0]  ;;  %v14299_v48 = vor.u32 %v15700_v42, %v14296_v25  ;;  %v15623_v35 = vld [vmem:[#allocation11 + $0x18f4] sm:$0xf0] }
 0x569   : > { %9122 = vmatpush.bf16.msra.mxu2 %v14363_v29  ;;  %9100 = vmatpush.bf16.msra.mxu1 %v14011_v10  ;;  %v14152_v29 = vld [vmem:[#allocation11 + $0x1a50] sm:$0xf0]  ;;  %v15692_v19 = vld [vmem:[#allocation11 + $0x1b24] sm:$0xf]  ;;  %v13790_v25 = vld [vmem:[#allocation11 + $0x1768] sm:$0xf] }
 0x56a   : > { %9111 = vmatpush.bf16.msrb.mxu3 %v14187_v3  ;;  %v15587_v3 = vld [vmem:[#allocation11 + $0x17d4] sm:$0xf0]  ;;  %v14155_v17 = vor.u32 %v15664_v39, %v14152_v29  ;;  %v14424_v10 = vld [vmem:[#allocation11 + $0x1c70] sm:$0xf0]  ;;  %v17661_v49 = vadd.f32 %v7689_v47, %v7676_v28  ;;  %v15696_v39 = vld [vmem:[#allocation11 + $0x1b44] sm:$0xf] }
 0x56b   : > { %9087 = vmatpush.bf16.msrb.mxu0 %v13867_v36  ;;  %v13839_v36 = vor.u32 %v15587_v3, %v13838_v31  ;;  %v14427_v12 = vor.u32 %v15732_v32, %v14424_v10  ;;  %v13982_v29 = vld [vmem:[#allocation11 + $0x18e8] sm:$0xf]  ;;  %v15579_v28 = vld [vmem:[#allocation11 + $0x1794] sm:$0xf0]  ;;  %v14392_v31 = vld [vmem:[#allocation11 + $0x1c30] sm:$0xf0]  ;;  %v7715_v3 = vpop.f32.mrf.mxu3 }
 0x56c   : > { %v13983_v47 = vor.u32 %v15623_v35, %v13982_v29  ;;  %v13950_v29 = vld [vmem:[#allocation11 + $0x18a8] sm:$0xf]  ;;  %v15615_v35 = vld [vmem:[#allocation11 + $0x18b4] sm:$0xf0] }
 0x56d   : > { %9123 = vmatpush.bf16.msra.mxu2 %v14347_v63  ;;  %9101 = vmatpush.bf16.msra.mxu1 %v13995_v1  ;;  %v14315_v63 = vor.u32 %v15704_v55, %v14312_v52  ;;  %v13806_v55 = vld [vmem:[#allocation11 + $0x1788] sm:$0xf]  ;;  %v15724_v52 = vld [vmem:[#allocation11 + $0x1c24] sm:$0xf] }
 0x56e   : > { %9112 = vmatpush.bf16.msrb.mxu3 %v14171_v61  ;;  %9088 = vmatmul.bf16.vlgmr.msrb.gmra.mxu0 %v17151_v20  ;;  %v14408_v61 = vld [vmem:[#allocation11 + $0x1c50] sm:$0xf0]  ;;  %v13807_v10 = vor.u32 %v15579_v28, %v13806_v55  ;;  %v14395_v42 = vor.u32 %v15724_v52, %v14392_v31  ;;  %v13774_v55 = vld [vmem:[#allocation11 + $0x1748] sm:$0xf]  ;;  %v15571_v28 = vld [vmem:[#allocation11 + $0x1754] sm:$0xf0] }
 0x56f   : > { %9138 = vmatpush.bf16.msra.mxu0 %v14459_v53  ;;  %v13822_v53 = vld [vmem:[#allocation11 + $0x17a8] sm:$0xf]  ;;  %v15687_v31 = vld [vmem:[#allocation11 + $0x1af4] sm:$0xf0] }
 0x570   : > { %9102 = vmatmul.bf16.vlgmr.msra.gmra.mxu1 %v17159_v6  ;;  %v13823_v1 = vor.u32 %v15583_v45, %v13822_v53  ;;  %v15575_v53 = vld [vmem:[#allocation11 + $0x1774] sm:$0xf0]  ;;  %v14238_v52 = vld [vmem:[#allocation11 + $0x1ae8] sm:$0xf] }
 0x571   : > { %9124 = vmatpush.bf16.msra.mxu2 %v14331_v30  ;;  %9150 = vmatpush.bf16.msrb.mxu1 %v13855_v38  ;;  %v14411_v30 = vor.u32 %v15728_v23, %v14408_v61  ;;  %v14280_v38 = vld [vmem:[#allocation11 + $0x1b50] sm:$0xf0]  ;;  %v7703_v61 = vpop.f32.mrf.mxu1 }
 0x572   : > { %9113 = vmatpush.bf16.msrb.mxu3 %v14155_v17  ;;  %v7716_v17 = vadd.f32 %v7715_v3, %v7701_v4  ;;  %v14283_v32 = vor.u32 %v15696_v39, %v14280_v38  ;;  %v14376_v23 = vld [vmem:[#allocation11 + $0x1c10] sm:$0xf0]  ;;  %v15688_v39 = vld [vmem:[#allocation11 + $0x1b04] sm:$0xf] }
 0x573   : > { %9139 = vmatpush.bf16.msra.mxu0 %v14443_v27  ;;  %v14123_v27 = vor.u32 %v15656_v54, %v14120_v58  ;;  %v14110_v54 = vld [vmem:[#allocation11 + $0x19e8] sm:$0xf]  ;;  %v15655_v58 = vld [vmem:[#allocation11 + $0x19f4] sm:$0xf0]  ;;  %v14248_v38 = vld [vmem:[#allocation11 + $0x1b10] sm:$0xf0]  ;;  %v7717_v3 = vpop.f32.mrf.mxu3 }
 0x575   : > { %9125 = vmatpush.bf16.msra.mxu2 %v14315_v63  ;;  %9151 = vmatpush.bf16.msrb.mxu1 %v13839_v36  ;;  %v15619_v63 = vld [vmem:[#allocation11 + $0x18d4] sm:$0xf0]  ;;  %v7729_v36 = vpop.f32.mrf.mxu0 }
 0x576   : > { %9114 = vmatpush.bf16.msrb.mxu3 %v14139_v40  ;;  %v7730_v45 = vadd.f32 %v7729_v36, %v7716_v17  ;;  %v15720_v40 = vld [vmem:[#allocation11 + $0x1c04] sm:$0xf]  ;;  %v13967_v4 = vor.u32 %v15619_v63, %v13966_v13  ;;  %v14094_v17 = vld [vmem:[#allocation11 + $0x19c8] sm:$0xf]  ;;  %v13775_v13 = vor.u32 %v15571_v28, %v13774_v55  ;;  %v15611_v36 = vld [vmem:[#allocation11 + $0x1894] sm:$0xf0] }
 0x577   : > { %9140 = vmatpush.bf16.msra.mxu0 %v14427_v12  ;;  %v14264_v12 = vld [vmem:[#allocation11 + $0x1b30] sm:$0xf0]  ;;  %v13934_v63 = vld [vmem:[#allocation11 + $0x1888] sm:$0xf] }
 0x578   : > { %v13918_v55 = vld [vmem:[#allocation11 + $0x1868] sm:$0xf] }
 0x579   : > { %9126 = vmatpush.bf16.msra.mxu2 %v14299_v48  ;;  %9152 = vmatpush.bf16.msrb.mxu1 %v13823_v1  ;;  %v14267_v48 = vor.u32 %v15692_v19, %v14264_v12  ;;  %v13791_v1 = vor.u32 %v15575_v53, %v13790_v25  ;;  %v14251_v19 = vor.u32 %v15688_v39, %v14248_v38  ;;  %v13758_v53 = vld [vmem:[#allocation11 + $0x1728] sm:$0xf] }
 0x57a   : > { %9115 = vmatpush.bf16.msrb.mxu3 %v14123_v27  ;;  %v14111_v27 = vor.u32 %v15655_v58, %v14110_v54  ;;  %v14239_v25 = vor.u32 %v15687_v31, %v14238_v52  ;;  %v14222_v58 = vld [vmem:[#allocation11 + $0x1ac8] sm:$0xf] }
 0x57b   : > { %9141 = vmatpush.bf16.msra.mxu0 %v14411_v30  ;;  %v14379_v30 = vor.u32 %v15720_v40, %v14376_v23  ;;  %v15567_v40 = vld [vmem:[#allocation11 + $0x1734] sm:$0xf0]  ;;  %v13742_v28 = vld [vmem:[#allocation11 + $0x1708] sm:$0xf] }
 0x57c   : > { %v13759_v38 = vor.u32 %v15567_v40, %v13758_v53  ;;  %v14206_v52 = vld [vmem:[#allocation11 + $0x1aa8] sm:$0xf] }
 0x57d   : > { %9127 = vmatpush.bf16.msra.mxu2 %v14283_v32  ;;  %9153 = vmatpush.bf16.msrb.mxu1 %v13807_v10  ;;  %v15651_v32 = vld [vmem:[#allocation11 + $0x19d4] sm:$0xf0]  ;;  %v7718_v10 = vadd.f32 %v7717_v3, %v7703_v61  ;;  %v7731_v12 = vpop.f32.mrf.mxu0  ;;  %v13935_v61 = vor.u32 %v15611_v36, %v13934_v63  ;;  %v13902_v63 = vld [vmem:[#allocation11 + $0x1848] sm:$0xf] }
 0x57e   : > { %9164 = vmatpush.bf16.msra.mxu3 %v13983_v47  ;;  %v13951_v47 = vor.u32 %v15615_v35, %v13950_v29  ;;  %v15683_v29 = vld [vmem:[#allocation11 + $0x1ad4] sm:$0xf0]  ;;  %v7757_v35 = vpop.f32.mrf.mxu1  ;;  %v14190_v53 = vld [vmem:[#allocation11 + $0x1a88] sm:$0xf] }
 0x57f   : > { %9116 = vmatmul.bf16.vlgmr.msrb.gmra.mxu3 %v17229_v56  ;;  %9142 = vmatpush.bf16.msra.mxu0 %v14395_v42  ;;  %v7743_v42 = vpop.f32.mrf.mxu2  ;;  %v7732_v54 = vadd.f32 %v7731_v12, %v7718_v10  ;;  %v15679_v3 = vld [vmem:[#allocation11 + $0x1ab4] sm:$0xf0]  ;;  %v14062_v10 = vld [vmem:[#allocation11 + $0x1988] sm:$0xf] }
 0x580   : > { %v7744_v23 = vadd.f32 %v7743_v42, %v7730_v45  ;;  %v14223_v45 = vor.u32 %v15683_v29, %v14222_v58  ;;  %v15603_v36 = vld [vmem:[#allocation11 + $0x1854] sm:$0xf0]  ;;  %v14207_v12 = vor.u32 %v15679_v3, %v14206_v52  ;;  %v14350_v58 = vld [vmem:[#allocation11 + $0x1bc8] sm:$0xf] }
 0x581   : > { %9128 = vmatpush.bf16.msra.mxu2 %v14267_v48  ;;  %9154 = vmatpush.bf16.msrb.mxu1 %v13791_v1  ;;  %v14078_v48 = vld [vmem:[#allocation11 + $0x19a8] sm:$0xf]  ;;  %v15647_v1 = vld [vmem:[#allocation11 + $0x19b4] sm:$0xf0] }
 0x582   : > { %9165 = vmatpush.bf16.msra.mxu3 %v13967_v4  ;;  %v14095_v4 = vor.u32 %v15651_v32, %v14094_v17  ;;  %v7758_v39 = vadd.f32 %v7757_v35, %v7744_v23  ;;  %v14079_v31 = vor.u32 %v15647_v1, %v14078_v48  ;;  %v15719_v17 = vld [vmem:[#allocation11 + $0x1bf4] sm:$0xf0]  ;;  %v14046_v48 = vld [vmem:[#allocation11 + $0x1968] sm:$0xf] }
 0x583   : > { %9143 = vmatpush.bf16.msra.mxu0 %v14379_v30  ;;  %v15607_v30 = vld [vmem:[#allocation11 + $0x1874] sm:$0xf0]  ;;  %v14174_v52 = vld [vmem:[#allocation11 + $0x1a68] sm:$0xf] }
 0x584   : > { %v13919_v32 = vor.u32 %v15607_v30, %v13918_v55  ;;  %v15715_v29 = vld [vmem:[#allocation11 + $0x1bd4] sm:$0xf0]  ;;  %v7771_v55 = vpop.f32.mrf.mxu3  ;;  %v13886_v30 = vld [vmem:[#allocation11 + $0x1828] sm:$0xf] }
 0x585   : > { %9129 = vmatpush.bf16.msra.mxu2 %v14251_v19  ;;  %9155 = vmatpush.bf16.msrb.mxu1 %v13775_v13  ;;  %v15643_v19 = vld [vmem:[#allocation11 + $0x1994] sm:$0xf0] }
 0x586   : > { %9166 = vmatpush.bf16.msra.mxu3 %v13951_v47  ;;  %14469 = vmatmul.msk.bf16.vlgmr.msra.gmra.mxu0 %vm1913_vm5, %v17233_v9  ;;  %v14366_v47 = vld [vmem:[#allocation11 + $0x1be8] sm:$0xf]  ;;  %v14063_v23 = vor.u32 %v15643_v19, %v14062_v10  ;;  %v7759_v35 = vpop.f32.mrf.mxu1  ;;  %v15639_v1 = vld [vmem:[#allocation11 + $0x1974] sm:$0xf0] }
 0x587   : > { %9178 = vmatpush.bf16.msrb.mxu0 %v14111_v27  ;;  %v15563_v27 = vld [vmem:[#allocation11 + $0x1714] sm:$0xf0]  ;;  %v7745_v42 = vpop.f32.mrf.mxu2  ;;  %v14030_v19 = vld [vmem:[#allocation11 + $0x1948] sm:$0xf] }
 0x588   : > { %9130 = vmatmul.bf16.vlgmr.msra.gmra.mxu2 %v17231_v41  ;;  %v13743_v13 = vor.u32 %v15563_v27, %v13742_v28  ;;  %v7746_v40 = vadd.f32 %v7745_v42, %v7732_v54  ;;  %v15599_v28 = vld [vmem:[#allocation11 + $0x1834] sm:$0xf0]  ;;  %v14351_v54 = vor.u32 %v15715_v29, %v14350_v58  ;;  %v14014_v29 = vld [vmem:[#allocation11 + $0x1928] sm:$0xf] }
 0x589   : > { %9192 = vmatpush.bf16.msrb.mxu2 %v14239_v25  ;;  %9156 = vmatpush.bf16.msrb.mxu1 %v13759_v38  ;;  %v14367_v25 = vor.u32 %v15719_v17, %v14366_v47  ;;  %v15671_v3 = vld [vmem:[#allocation11 + $0x1a74] sm:$0xf0]  ;;  %v14334_v47 = vld [vmem:[#allocation11 + $0x1ba8] sm:$0xf]  ;;  %v13887_v10 = vor.u32 %v15599_v28, %v13886_v30 }
 0x58a   : > { %9167 = vmatpush.bf16.msra.mxu3 %v13935_v61  ;;  %v13903_v61 = vor.u32 %v15603_v36, %v13902_v63  ;;  %v7760_v38 = vadd.f32 %v7759_v35, %v7746_v40  ;;  %v15711_v17 = vld [vmem:[#allocation11 + $0x1bb4] sm:$0xf0]  ;;  %v14175_v36 = vor.u32 %v15671_v3, %v14174_v52  ;;  %v14142_v28 = vld [vmem:[#allocation11 + $0x1a28] sm:$0xf] }
 0x58b   : > { %9179 = vmatpush.bf16.msrb.mxu0 %v14095_v4  ;;  %v15675_v4 = vld [vmem:[#allocation11 + $0x1a94] sm:$0xf0]  ;;  %v14335_v42 = vor.u32 %v15711_v17, %v14334_v47  ;;  %v13998_v47 = vld [vmem:[#allocation11 + $0x1908] sm:$0xf] }
 0x58c   : > { %v14191_v27 = vor.u32 %v15675_v4, %v14190_v53  ;;  %v15595_v63 = vld [vmem:[#allocation11 + $0x1814] sm:$0xf0] }
 0x58d   : > { %9193 = vmatpush.bf16.msrb.mxu2 %v14223_v45  ;;  %9157 = vmatpush.bf16.msrb.mxu1 %v13743_v13  ;;  %v7772_v45 = vadd.f32 %v7771_v55, %v7758_v39  ;;  %v15635_v13 = vld [vmem:[#allocation11 + $0x1954] sm:$0xf0]  ;;  %v13870_v39 = vld [vmem:[#allocation11 + $0x1808] sm:$0xf] }
 0x58e   : > { %9168 = vmatpush.bf16.msra.mxu3 %v13919_v32  ;;  %v15743_v53 = vld [vmem:[#allocation11 + $0x1cb4] sm:$0xf0]  ;;  %v14031_v40 = vor.u32 %v15635_v13, %v14030_v19  ;;  %v13871_v58 = vor.u32 %v15595_v63, %v13870_v39  ;;  %v15589_v19 = vld [vmem:[#allocation11 + $0x17ec] sm:$0xf]  ;;  %v14126_v63 = vld [vmem:[#allocation11 + $0x1a08] sm:$0xf] }
 0x58f   : > { %9180 = vmatpush.bf16.msrb.mxu0 %v14079_v31  ;;  %v14047_v31 = vor.u32 %v15639_v1, %v14046_v48  ;;  %v17670_v32 = vadd.f32 %v7772_v45, %v17590_v44  ;;  %v14318_v44 = vld [vmem:[#allocation11 + $0x1b88] sm:$0xf]  ;;  %v15707_v4 = vld [vmem:[#allocation11 + $0x1b94] sm:$0xf0] }
 0x590   : > { %9158 = vmatmul.bf16.vlgmr.msrb.gmra.mxu1 %v17117_v50  ;;  %v15631_v35 = vld [vmem:[#allocation11 + $0x1934] sm:$0xf0]  ;;  %v14319_v30 = vor.u32 %v15707_v4, %v14318_v44  ;;  %v14446_v45 = vld [vmem:[#allocation11 + $0x1c88] sm:$0xf]  ;;  %v15621_v44 = vld [vmem:[#allocation11 + $0x18ec] sm:$0xf] }
 0x591   : > { %9194 = vmatpush.bf16.msrb.mxu2 %v14207_v12  ;;  %9206 = vmatpush.bf16.msra.mxu1 %v14367_v25  ;;  %v14158_v12 = vld [vmem:[#allocation11 + $0x1a48] sm:$0xf]  ;;  %v15663_v52 = vld [vmem:[#allocation11 + $0x1a34] sm:$0xf0]  ;;  %v13984_v4 = vld [vmem:[#allocation11 + $0x18f8] sm:$0xf0] }
 0x592   : > { %9169 = vmatpush.bf16.msra.mxu3 %v13903_v61  ;;  %v14462_v25 = vld [vmem:[#allocation11 + $0x1ca8] sm:$0xf]  ;;  %v7773_v61 = vpop.f32.mrf.mxu3  ;;  %v15703_v3 = vld [vmem:[#allocation11 + $0x1b74] sm:$0xf0]  ;;  %v14143_v13 = vor.u32 %v15663_v52, %v14142_v28 }
 0x593   : > { %9181 = vmatpush.bf16.msrb.mxu0 %v14063_v23  ;;  %v15667_v23 = vld [vmem:[#allocation11 + $0x1a54] sm:$0xf0]  ;;  %v14463_v48 = vor.u32 %v15743_v53, %v14462_v25  ;;  %v17673_v1 = vadd.f32 %v7773_v61, %v7760_v38  ;;  %v13856_v38 = vld [vmem:[#allocation11 + $0x17f8] sm:$0xf0]  ;;  %v14286_v53 = vld [vmem:[#allocation11 + $0x1b48] sm:$0xf] }
 0x594   : > { %v14159_v55 = vor.u32 %v15667_v23, %v14158_v12  ;;  %v15627_v17 = vld [vmem:[#allocation11 + $0x1914] sm:$0xf0]  ;;  %v13859_v23 = vor.u32 %v15589_v19, %v13856_v38  ;;  %v13840_v61 = vld [vmem:[#allocation11 + $0x17d8] sm:$0xf0]  ;;  %v15581_v19 = vld [vmem:[#allocation11 + $0x17ac] sm:$0xf] }
 0x595   : > { %9195 = vmatpush.bf16.msrb.mxu2 %v14191_v27  ;;  %9207 = vmatpush.bf16.msra.mxu1 %v14351_v54  ;;  %v15739_v27 = vld [vmem:[#allocation11 + $0x1c94] sm:$0xf0]  ;;  %v14015_v54 = vor.u32 %v15631_v35, %v14014_v29  ;;  %v13999_v12 = vor.u32 %v15627_v17, %v13998_v47  ;;  %v15585_v35 = vld [vmem:[#allocation11 + $0x17cc] sm:$0xf]  ;;  %v13968_v17 = vld [vmem:[#allocation11 + $0x18d8] sm:$0xf0] }
 0x596   : > { %9170 = vmatpush.bf16.msra.mxu3 %v13887_v10  ;;  %v14447_v10 = vor.u32 %v15739_v27, %v14446_v45  ;;  %v15659_v25 = vld [vmem:[#allocation11 + $0x1a14] sm:$0xf0]  ;;  %v7799_v45 = vpop.f32.mrf.mxu2  ;;  %v13987_v27 = vor.u32 %v15621_v44, %v13984_v4  ;;  %v15617_v47 = vld [vmem:[#allocation11 + $0x18cc] sm:$0xf]  ;;  %v13824_v38 = vld [vmem:[#allocation11 + $0x17b8] sm:$0xf0] }
 0x597   : > { %9182 = vmatpush.bf16.msrb.mxu0 %v14047_v31  ;;  %v14302_v31 = vld [vmem:[#allocation11 + $0x1b68] sm:$0xf]  ;;  %v15731_v28 = vld [vmem:[#allocation11 + $0x1c54] sm:$0xf0]  ;;  %v14240_v44 = vld [vmem:[#allocation11 + $0x1af8] sm:$0xf0] }
 0x598   : > { %v14303_v39 = vor.u32 %v15703_v3, %v14302_v31  ;;  %v15695_v52 = vld [vmem:[#allocation11 + $0x1b34] sm:$0xf0]  ;;  %v13843_v3 = vor.u32 %v15585_v35, %v13840_v61  ;;  %v14382_v61 = vld [vmem:[#allocation11 + $0x1c08] sm:$0xf] }
 0x599   : > { %9196 = vmatpush.bf16.msrb.mxu2 %v14175_v36  ;;  %9208 = vmatpush.bf16.msra.mxu1 %v14335_v42  ;;  %v14430_v36 = vld [vmem:[#allocation11 + $0x1c68] sm:$0xf]  ;;  %v15735_v42 = vld [vmem:[#allocation11 + $0x1c74] sm:$0xf0] }
 0x59a   : > { %9171 = vmatpush.bf16.msra.mxu3 %v13871_v58  ;;  %v7785_v58 = vpop.f32.mrf.mxu0  ;;  %v14431_v29 = vor.u32 %v15735_v42, %v14430_v36  ;;  %v13971_v36 = vor.u32 %v15617_v47, %v13968_v17  ;;  %v14254_v42 = vld [vmem:[#allocation11 + $0x1b08] sm:$0xf]  ;;  %v13936_v17 = vld [vmem:[#allocation11 + $0x1898] sm:$0xf0] }
 0x59b   : > { %9183 = vmatpush.bf16.msrb.mxu0 %v14031_v40  ;;  %v15699_v40 = vld [vmem:[#allocation11 + $0x1b54] sm:$0xf0]  ;;  %v7800_v31 = vadd.f32 %v7799_v45, %v7785_v58  ;;  %v15577_v58 = vld [vmem:[#allocation11 + $0x178c] sm:$0xf] }
 0x59d   : > { %9197 = vmatpush.bf16.msrb.mxu2 %v14159_v55  ;;  %9209 = vmatpush.bf16.msra.mxu1 %v14319_v30  ;;  %v14287_v55 = vor.u32 %v15699_v40, %v14286_v53  ;;  %v14414_v30 = vld [vmem:[#allocation11 + $0x1c48] sm:$0xf]  ;;  %v13827_v53 = vor.u32 %v15581_v19, %v13824_v38  ;;  %v13952_v40 = vld [vmem:[#allocation11 + $0x18b8] sm:$0xf0] }
 0x59e   : > { %9222 = vmatpush.bf16.msrb.mxu3 %v14463_v48  ;;  %v14127_v48 = vor.u32 %v15659_v25, %v14126_v63  ;;  %v15727_v63 = vld [vmem:[#allocation11 + $0x1c34] sm:$0xf0]  ;;  %v15613_v25 = vld [vmem:[#allocation11 + $0x18ac] sm:$0xf]  ;;  %v14224_v19 = vld [vmem:[#allocation11 + $0x1ad8] sm:$0xf0] }
 0x59f   : > { %9172 = vmatmul.bf16.vlgmr.msra.gmra.mxu3 %v17151_v20  ;;  %9184 = vmatpush.bf16.msrb.mxu0 %v14015_v54  ;;  %v14270_v54 = vld [vmem:[#allocation11 + $0x1b28] sm:$0xf] }
 0x5a1   : > { %9198 = vmatpush.bf16.msrb.mxu2 %v14143_v13  ;;  %9210 = vmatpush.bf16.msra.mxu1 %v14303_v39  ;;  %v14271_v13 = vor.u32 %v15695_v52, %v14270_v54  ;;  %v14398_v39 = vld [vmem:[#allocation11 + $0x1c28] sm:$0xf]  ;;  %v15653_v54 = vld [vmem:[#allocation11 + $0x19ec] sm:$0xf]  ;;  %v14112_v52 = vld [vmem:[#allocation11 + $0x19f8] sm:$0xf0] }
 0x5a2   : > { %9223 = vmatpush.bf16.msrb.mxu3 %v14447_v10  ;;  %v14415_v10 = vor.u32 %v15731_v28, %v14414_v30  ;;  %v14399_v4 = vor.u32 %v15727_v63, %v14398_v39  ;;  %v7801_v30 = vpop.f32.mrf.mxu2  ;;  %v13955_v28 = vor.u32 %v15613_v25, %v13952_v40  ;;  %v13792_v39 = vld [vmem:[#allocation11 + $0x1778] sm:$0xf0]  ;;  %v7827_v63 = vpop.f32.mrf.mxu1 }
 0x5a3   : > { %9185 = vmatpush.bf16.msrb.mxu0 %v13999_v12  ;;  %v15691_v12 = vld [vmem:[#allocation11 + $0x1b14] sm:$0xf0] }
 0x5a4   : > { %v14255_v35 = vor.u32 %v15691_v12, %v14254_v42  ;;  %v7813_v42 = vpop.f32.mrf.mxu3  ;;  %v14115_v12 = vor.u32 %v15653_v54, %v14112_v52  ;;  %v14080_v54 = vld [vmem:[#allocation11 + $0x19b8] sm:$0xf0] }
 0x5a5   : > { %9199 = vmatpush.bf16.msrb.mxu2 %v14127_v48  ;;  %9211 = vmatpush.bf16.msra.mxu1 %v14287_v55  ;;  %v15723_v48 = vld [vmem:[#allocation11 + $0x1c14] sm:$0xf0]  ;;  %v7787_v55 = vpop.f32.mrf.mxu0 }
 0x5a6   : > { %9224 = vmatpush.bf16.msrb.mxu3 %v14431_v29  ;;  %9186 = vmatmul.bf16.vlgmr.msrb.gmra.mxu0 %v17159_v6  ;;  %v13808_v29 = vld [vmem:[#allocation11 + $0x1798] sm:$0xf0]  ;;  %v14383_v38 = vor.u32 %v15723_v48, %v14382_v61 }
 0x5a7   : > { %9234 = vmatpush.bf16.msra.mxu0 %v13859_v23  ;;  %v15685_v23 = vld [vmem:[#allocation11 + $0x1aec] sm:$0xf]  ;;  %v13811_v47 = vor.u32 %v15577_v58, %v13808_v29  ;;  %v13920_v29 = vld [vmem:[#allocation11 + $0x1878] sm:$0xf0] }
 0x5a8   : > { %9200 = vmatmul.bf16.vlgmr.msrb.gmra.mxu2 %v17229_v56  ;;  %v14243_v45 = vor.u32 %v15685_v23, %v14240_v44  ;;  %v15605_v23 = vld [vmem:[#allocation11 + $0x186c] sm:$0xf]  ;;  %v13776_v48 = vld [vmem:[#allocation11 + $0x1758] sm:$0xf0] }
 0x5a9   : > { %9248 = vmatpush.bf16.msra.mxu2 %v13987_v27  ;;  %9212 = vmatpush.bf16.msra.mxu1 %v14271_v13  ;;  %v15609_v27 = vld [vmem:[#allocation11 + $0x188c] sm:$0xf] }
 0x5aa   : > { %9225 = vmatpush.bf16.msrb.mxu3 %v14415_v10  ;;  %v15681_v10 = vld [vmem:[#allocation11 + $0x1acc] sm:$0xf]  ;;  %v13939_v25 = vor.u32 %v15609_v27, %v13936_v17 }
 0x5ab   : > { %9235 = vmatpush.bf16.msra.mxu0 %v13843_v3  ;;  %v7802_v3 = vadd.f32 %v7801_v30, %v7787_v55  ;;  %v15573_v13 = vld [vmem:[#allocation11 + $0x176c] sm:$0xf]  ;;  %v14227_v40 = vor.u32 %v15681_v10, %v14224_v19  ;;  %v13923_v30 = vor.u32 %v15605_v23, %v13920_v29  ;;  %v14192_v10 = vld [vmem:[#allocation11 + $0x1a98] sm:$0xf0] }
 0x5ac   : > { %v15649_v44 = vld [vmem:[#allocation11 + $0x19cc] sm:$0xf]  ;;  %v13795_v58 = vor.u32 %v15573_v13, %v13792_v39  ;;  %v7815_v13 = vpop.f32.mrf.mxu3  ;;  %v14064_v23 = vld [vmem:[#allocation11 + $0x1998] sm:$0xf0] }
 0x5ad   : > { %9249 = vmatpush.bf16.msra.mxu2 %v13971_v36  ;;  %9213 = vmatpush.bf16.msra.mxu1 %v14255_v35  ;;  %v7814_v36 = vadd.f32 %v7813_v42, %v7800_v31  ;;  %v15677_v55 = vld [vmem:[#allocation11 + $0x1aac] sm:$0xf]  ;;  %v7841_v42 = vpop.f32.mrf.mxu0 }
 0x5ae   : > { %9226 = vmatpush.bf16.msrb.mxu3 %v14399_v4  ;;  %v14208_v4 = vld [vmem:[#allocation11 + $0x1ab8] sm:$0xf0]  ;;  %v15569_v35 = vld [vmem:[#allocation11 + $0x174c] sm:$0xf] }
 0x5af   : > { %9236 = vmatpush.bf16.msra.mxu0 %v13827_v53  ;;  %v14096_v53 = vld [vmem:[#allocation11 + $0x19d8] sm:$0xf0]  ;;  %v7828_v61 = vadd.f32 %v7827_v63, %v7814_v36  ;;  %v15645_v27 = vld [vmem:[#allocation11 + $0x19ac] sm:$0xf]  ;;  %v13779_v52 = vor.u32 %v15569_v35, %v13776_v48  ;;  %v7816_v63 = vadd.f32 %v7815_v13, %v7802_v3 }
 0x5b0   : > { %9214 = vmatmul.bf16.vlgmr.msra.gmra.mxu1 %v17231_v41  ;;  %v14099_v31 = vor.u32 %v15649_v44, %v14096_v53  ;;  %v15673_v17 = vld [vmem:[#allocation11 + $0x1a8c] sm:$0xf]  ;;  %v14083_v39 = vor.u32 %v15645_v27, %v14080_v54  ;;  %v7829_v44 = vpop.f32.mrf.mxu1  ;;  %v7855_v53 = vpop.f32.mrf.mxu2  ;;  %v14176_v35 = vld [vmem:[#allocation11 + $0x1a78] sm:$0xf0] }
 0x5b1   : > { %9250 = vmatpush.bf16.msra.mxu2 %v13955_v28  ;;  %9276 = vmatpush.bf16.msrb.mxu1 %v14243_v45  ;;  %v14211_v28 = vor.u32 %v15677_v55, %v14208_v4  ;;  %v15601_v45 = vld [vmem:[#allocation11 + $0x184c] sm:$0xf]  ;;  %v14195_v36 = vor.u32 %v15673_v17, %v14192_v10  ;;  %v13888_v55 = vld [vmem:[#allocation11 + $0x1838] sm:$0xf0]  ;;  %v7830_v48 = vadd.f32 %v7829_v44, %v7816_v63 }
 0x5b2   : > { %9227 = vmatpush.bf16.msrb.mxu3 %v14383_v38  ;;  %v15565_v19 = vld [vmem:[#allocation11 + $0x172c] sm:$0xf]  ;;  %v13760_v38 = vld [vmem:[#allocation11 + $0x1738] sm:$0xf0] }
 0x5b3   : > { %9237 = vmatpush.bf16.msra.mxu0 %v13811_v47  ;;  %v13904_v47 = vld [vmem:[#allocation11 + $0x1858] sm:$0xf0]  ;;  %v13763_v29 = vor.u32 %v15565_v19, %v13760_v38  ;;  %v15669_v4 = vld [vmem:[#allocation11 + $0x1a6c] sm:$0xf] }
 0x5b4   : > { %v13744_v27 = vld [vmem:[#allocation11 + $0x1718] sm:$0xf0]  ;;  %v15593_v17 = vld [vmem:[#allocation11 + $0x180c] sm:$0xf] }
 0x5b5   : > { %9251 = vmatpush.bf16.msra.mxu2 %v13939_v25  ;;  %9277 = vmatpush.bf16.msrb.mxu1 %v14227_v40  ;;  %v15597_v25 = vld [vmem:[#allocation11 + $0x182c] sm:$0xf]  ;;  %v13872_v38 = vld [vmem:[#allocation11 + $0x1818] sm:$0xf0] }
 0x5b6   : > { %9262 = vmatpush.bf16.msra.mxu3 %v14115_v12  ;;  %v13907_v12 = vor.u32 %v15601_v45, %v13904_v47  ;;  %v15641_v40 = vld [vmem:[#allocation11 + $0x198c] sm:$0xf]  ;;  %v14368_v45 = vld [vmem:[#allocation11 + $0x1bf8] sm:$0xf0]  ;;  %v13891_v54 = vor.u32 %v15597_v25, %v13888_v55  ;;  %v14179_v47 = vor.u32 %v15669_v4, %v14176_v35  ;;  %v7843_v25 = vpop.f32.mrf.mxu0  ;;  %v13875_v44 = vor.u32 %v15593_v17, %v13872_v38 }
 0x5b7   : > { %14470 = vmatmul.msk.bf16.vlgmr.msrb.gmra.mxu3 %vm1913_vm5, %v17233_v9  ;;  %9238 = vmatpush.bf16.msra.mxu0 %v13795_v58  ;;  %v7842_v58 = vadd.f32 %v7841_v42, %v7828_v61  ;;  %v15637_v10 = vld [vmem:[#allocation11 + $0x196c] sm:$0xf]  ;;  %v14048_v61 = vld [vmem:[#allocation11 + $0x1978] sm:$0xf0]  ;;  %v7844_v55 = vadd.f32 %v7843_v25, %v7830_v48 }
 0x5b8   : > { %v15665_v13 = vld [vmem:[#allocation11 + $0x1a4c] sm:$0xf]  ;;  %v14160_v63 = vld [vmem:[#allocation11 + $0x1a58] sm:$0xf0] }
 0x5b9   : > { %9252 = vmatpush.bf16.msra.mxu2 %v13923_v30  ;;  %9278 = vmatpush.bf16.msrb.mxu1 %v14211_v28  ;;  %v7856_v3 = vadd.f32 %v7855_v53, %v7842_v58  ;;  %v14067_v30 = vor.u32 %v15641_v40, %v14064_v23  ;;  %v15717_v28 = vld [vmem:[#allocation11 + $0x1bec] sm:$0xf]  ;;  %v14464_v40 = vld [vmem:[#allocation11 + $0x1cb8] sm:$0xf0]  ;;  %v14051_v23 = vor.u32 %v15637_v10, %v14048_v61 }
 0x5ba   : > { %9263 = vmatpush.bf16.msra.mxu3 %v14099_v31  ;;  %v15561_v31 = vld [vmem:[#allocation11 + $0x170c] sm:$0xf]  ;;  %v14371_v42 = vor.u32 %v15717_v28, %v14368_v45  ;;  %v14163_v53 = vor.u32 %v15665_v13, %v14160_v63  ;;  %v14144_v35 = vld [vmem:[#allocation11 + $0x1a38] sm:$0xf0] }
 0x5bb   : > { %9239 = vmatpush.bf16.msra.mxu0 %v13779_v52  ;;  %v17682_v52 = vadd.f32 %v7856_v3, %v17612_v26  ;;  %v13747_v19 = vor.u32 %v15561_v31, %v13744_v27  ;;  %v15633_v58 = vld [vmem:[#allocation11 + $0x194c] sm:$0xf]  ;;  %v14032_v26 = vld [vmem:[#allocation11 + $0x1958] sm:$0xf0]  ;;  %v7857_v31 = vpop.f32.mrf.mxu2 }
 0x5bc   : > { %v15661_v4 = vld [vmem:[#allocation11 + $0x1a2c] sm:$0xf]  ;;  %v17684_v28 = vadd.f32 %v7857_v31, %v7844_v55  ;;  %v14035_v45 = vor.u32 %v15633_v58, %v14032_v26  ;;  %v14016_v48 = vld [vmem:[#allocation11 + $0x1938] sm:$0xf0] }
 0x5bd   : > { %9253 = vmatpush.bf16.msra.mxu2 %v13907_v12  ;;  %9279 = vmatpush.bf16.msrb.mxu1 %v14195_v36  ;;  %v15713_v12 = vld [vmem:[#allocation11 + $0x1bcc] sm:$0xf]  ;;  %v14352_v36 = vld [vmem:[#allocation11 + $0x1bd8] sm:$0xf0]  ;;  %v14147_v17 = vor.u32 %v15661_v4, %v14144_v35 }
 0x5be   : > { %9264 = vmatpush.bf16.msra.mxu3 %v14083_v39  ;;  %v15741_v39 = vld [vmem:[#allocation11 + $0x1cac] sm:$0xf]  ;;  %v14355_v27 = vor.u32 %v15713_v12, %v14352_v36  ;;  %v14128_v38 = vld [vmem:[#allocation11 + $0x1a18] sm:$0xf0] }
 0x5bf   : > { %9240 = vmatpush.bf16.msra.mxu0 %v13763_v29  ;;  %v14467_v29 = vor.u32 %v15741_v39, %v14464_v40  ;;  %v15737_v3 = vld [vmem:[#allocation11 + $0x1c8c] sm:$0xf]  ;;  %v14000_v25 = vld [vmem:[#allocation11 + $0x1918] sm:$0xf0] }
 0x5c0   : > { %v15629_v10 = vld [vmem:[#allocation11 + $0x192c] sm:$0xf]  ;;  %v14416_v58 = vld [vmem:[#allocation11 + $0x1c58] sm:$0xf0] }
 0x5c1   : > { %9254 = vmatpush.bf16.msra.mxu2 %v13891_v54  ;;  %9280 = vmatpush.bf16.msrb.mxu1 %v14179_v47  ;;  %v15709_v54 = vld [vmem:[#allocation11 + $0x1bac] sm:$0xf]  ;;  %v14336_v47 = vld [vmem:[#allocation11 + $0x1bb8] sm:$0xf0]  ;;  %v14019_v39 = vor.u32 %v15629_v10, %v14016_v48 }
 0x5c2   : > { %9265 = vmatpush.bf16.msra.mxu3 %v14067_v30  ;;  %v14448_v30 = vld [vmem:[#allocation11 + $0x1c98] sm:$0xf0]  ;;  %v14339_v13 = vor.u32 %v15709_v54, %v14336_v47  ;;  %v15733_v63 = vld [vmem:[#allocation11 + $0x1c6c] sm:$0xf] }
 0x5c3   : > { %9241 = vmatpush.bf16.msra.mxu0 %v13747_v19  ;;  %v14451_v61 = vor.u32 %v15737_v3, %v14448_v30  ;;  %v15657_v19 = vld [vmem:[#allocation11 + $0x1a0c] sm:$0xf]  ;;  %v14400_v31 = vld [vmem:[#allocation11 + $0x1c38] sm:$0xf0]  ;;  %v3348_v30 = vadd.f32 %v17285_v62, %v17287_v18  ;;  %v8991_v62 = vpop.f32.mrf.mxu3 }
 0x5c4   : > { %v15705_v40 = vld [vmem:[#allocation11 + $0x1b8c] sm:$0xf]  ;;  %v14131_v12 = vor.u32 %v15657_v19, %v14128_v38  ;;  %v14288_v3 = vld [vmem:[#allocation11 + $0x1b58] sm:$0xf0]  ;;  %v9005_v19 = vpop.f32.mrf.mxu1 }
 0x5c5   : > { %9255 = vmatpush.bf16.msra.mxu2 %v13875_v44  ;;  %9281 = vmatpush.bf16.msrb.mxu1 %v14163_v53  ;;  %v15625_v36 = vld [vmem:[#allocation11 + $0x190c] sm:$0xf]  ;;  %v3362_v10 = vadd.f32 %v17291_v60, %v3348_v30 }
 0x5c6   : > { %9266 = vmatpush.bf16.msra.mxu3 %v14051_v23  ;;  %9242 = vmatmul.bf16.vlgmr.msra.gmra.mxu0 %v17117_v50  ;;  %v14320_v23 = vld [vmem:[#allocation11 + $0x1b98] sm:$0xf0]  ;;  %v15729_v53 = vld [vmem:[#allocation11 + $0x1c4c] sm:$0xf]  ;;  %v14003_v26 = vor.u32 %v15625_v36, %v14000_v25 }
 0x5c7   : > { %9290 = vmatpush.bf16.msrb.mxu0 %v14371_v42  ;;  %v14432_v42 = vld [vmem:[#allocation11 + $0x1c78] sm:$0xf0]  ;;  %v14323_v50 = vor.u32 %v15705_v40, %v14320_v23  ;;  %v15701_v55 = vld [vmem:[#allocation11 + $0x1b6c] sm:$0xf] }
 0x5c8   : > { %9256 = vmatmul.bf16.vlgmr.msra.gmra.mxu2 %v17151_v20  ;;  %v14435_v44 = vor.u32 %v15733_v63, %v14432_v42  ;;  %v14419_v20 = vor.u32 %v15729_v53, %v14416_v58  ;;  %v15725_v35 = vld [vmem:[#allocation11 + $0x1c2c] sm:$0xf]  ;;  %v14256_v63 = vld [vmem:[#allocation11 + $0x1b18] sm:$0xf0] }
 0x5c9   : > { %9306 = vmatpush.bf16.msrb.mxu2 %v14467_v29  ;;  %9282 = vmatpush.bf16.msrb.mxu1 %v14147_v17  ;;  %v14304_v29 = vld [vmem:[#allocation11 + $0x1b78] sm:$0xf0]  ;;  %v15721_v47 = vld [vmem:[#allocation11 + $0x1c0c] sm:$0xf] }
 0x5ca   : > { %9267 = vmatpush.bf16.msra.mxu3 %v14035_v45  ;;  %v14307_v4 = vor.u32 %v15701_v55, %v14304_v29  ;;  %v14403_v45 = vor.u32 %v15725_v35, %v14400_v31  ;;  %v14384_v17 = vld [vmem:[#allocation11 + $0x1c18] sm:$0xf0]  ;;  %v15693_v48 = vld [vmem:[#allocation11 + $0x1b2c] sm:$0xf] }
 0x5cb   : > { %9291 = vmatpush.bf16.msrb.mxu0 %v14355_v27  ;;  %v15697_v27 = vld [vmem:[#allocation11 + $0x1b4c] sm:$0xf]  ;;  %v9019_v23 = vpop.f32.mrf.mxu2  ;;  %v8993_v36 = vpop.f32.mrf.mxu3  ;;  %v18061_v25 = vld [vmem:[#allocation44_spill] sm:$0xff] }
 0x5cc   : > { %v14291_v54 = vor.u32 %v15697_v27, %v14288_v3  ;;  %v15689_v18 = vld [vmem:[#allocation11 + $0x1b0c] sm:$0xf] }
 0x5cd   : > { %9307 = vmatpush.bf16.msrb.mxu2 %v14451_v61  ;;  %9283 = vmatpush.bf16.msrb.mxu1 %v14131_v12  ;;  %v14272_v61 = vld [vmem:[#allocation11 + $0x1b38] sm:$0xf0]  ;;  %v14259_v42 = vor.u32 %v15689_v18, %v14256_v63  ;;  %v9007_v12 = vpop.f32.mrf.mxu1  ;;  %v18062_v58 = vld [vmem:[#allocation46_spill] sm:$0xff]  ;;  %v18066_v63 = vld [vmem:[#allocation29_spill] sm:$0xff] }
 0x5ce   : > { %9268 = vmatpush.bf16.msra.mxu3 %v14019_v39  ;;  %v14275_v38 = vor.u32 %v15693_v48, %v14272_v61  ;;  %v18060_v39 = vld [vmem:[#allocation45_spill] sm:$0xff]  ;;  %v9008_v27 = vadd.f32 %v9007_v12, %v8993_v36 }
 0x5cf   : > { %9292 = vmatpush.bf16.msrb.mxu0 %v14339_v13  ;;  %v3376_v13 = vadd.f32 %v17294_v59, %v3362_v10  ;;  %v6074_v59 = vadd.f32 %v17504_v14, %v17508_v11 }
 0x5d0   : > { %9284 = vmatmul.bf16.vlgmr.msrb.gmra.mxu1 %v17229_v56  ;;  %v14387_v56 = vor.u32 %v15721_v47, %v14384_v17  ;;  %v18065_v17 = vld [vmem:[#allocation48_spill] sm:$0xff] }
 0x5d1   : > { %9308 = vmatpush.bf16.msrb.mxu2 %v14435_v44  ;;  %v6088_v53 = vadd.f32 %v17518_v51, %v6074_v59 }
 0x5d2   : > { %9269 = vmatpush.bf16.msra.mxu3 %v14003_v26 }
 0x5d3   : > { %9293 = vmatpush.bf16.msrb.mxu0 %v14323_v50  ;;  %v9033_v50 = vpop.f32.mrf.mxu0  ;;  %v6102_v29 = vadd.f32 %v17515_v34, %v6088_v53  ;;  %v9021_v11 = vpop.f32.mrf.mxu2 }
 0x5d5   : > { %9309 = vmatpush.bf16.msrb.mxu2 %v14419_v20  ;;  %9270 = vmatmul.bf16.vlgmr.msra.gmra.mxu3 %v17159_v6  ;;  %v3390_v6 = vadd.f32 %v17301_v21, %v3376_v13  ;;  %v9006_v21 = vadd.f32 %v9005_v19, %v8991_v62  ;;  %v9061_v20 = vpop.f32.mrf.mxu1  ;;  %v6116_v31 = vadd.f32 %v17548_v57, %v6102_v29  ;;  %v18072_v29 = vld [vmem:[#allocation50_spill] sm:$0xff] }
 0x5d7   : > { %9294 = vmatpush.bf16.msrb.mxu0 %v14307_v4  ;;  %v3404_v60 = vadd.f32 %v17298_v43, %v3390_v6  ;;  %v9020_v43 = vadd.f32 %v9019_v23, %v9006_v21  ;;  %v18063_v4 = vld [vmem:[#allocation47_spill] sm:$0xff]  ;;  %v6130_v47 = vadd.f32 %v17524_v0, %v6116_v31 }
 0x5d8   : > { %v18068_v23 = vld [vmem:[#allocation27_spill] sm:$0xff] }
 0x5d9   : > { %9310 = vmatpush.bf16.msrb.mxu2 %v14403_v45  ;;  %v4593_v40 = vadd.f32 %v18060_v39, %v3404_v60 }
 0x5db   : > { %9295 = vmatpush.bf16.msrb.mxu0 %v14291_v54  ;;  %v4607_v44 = vadd.f32 %v18061_v25, %v4593_v40  ;;  %v9035_v34 = vpop.f32.mrf.mxu0  ;;  %v17714_v54 = vld [vmem:[#allocation12] sm:$0xf] }
 0x5dc   : > { %v9328_v61 = vperm.slane %v17714_v54, 0 }
 0x5dd   : > { %9311 = vmatpush.bf16.msrb.mxu2 %v14387_v56  ;;  %v4621_v26 = vadd.f32 %v18062_v58, %v4607_v44 }
 0x5df   : > { %9296 = vmatpush.bf16.msrb.mxu0 %v14275_v38  ;;  %v4635_v14 = vadd.f32 %v18063_v4, %v4621_v26  ;;  %v18071_v26 = vld [vmem:[#allocation30_spill] sm:$0xff] }
 0x5e0   : > { %14471 = vmatmul.msk.bf16.vlgmr.msrb.gmra.mxu2 %vm1913_vm5, %v17233_v9  ;;  %v7550_v9 = vadd.f32 %v17628_v7, %v17632_v46  ;;  %v18064_v46 = vld [vmem:[#allocation49_spill] sm:$0xff] }
 0x5e1   : > { %v4649_v3 = vadd.f32 %v18064_v46, %v4635_v14 }
 0x5e2   : > { %v7564_v55 = vadd.f32 %v17638_v22, %v7550_v9  ;;  %v9047_v35 = vpop.f32.mrf.mxu3  ;;  %v9022_v22 = vadd.f32 %v9021_v11, %v9008_v27  ;;  %v6158_v11 = vadd.f32 %v17561_v15, %v17559_v2 }
 0x5e3   : > { %9297 = vmatpush.bf16.msrb.mxu0 %v14259_v42  ;;  %v4663_v10 = vadd.f32 %v18065_v17, %v4649_v3  ;;  %v9348_v42 = vld [vmem:[%s17725_s12 + $0x20] sm:$0x7f]  ;;  %v18074_v3 = vld [vmem:[#allocation52_spill] sm:$0xff] }
 0x5e4   : > { %v7578_v51 = vadd.f32 %v17635_v8, %v7564_v55  ;;  %v9036_v48 = vadd.f32 %v9035_v34, %v9022_v22  ;;  %v18075_v22 = vld [vmem:[#allocation68_spill] sm:$0xff] }
 0x5e5   : > { %v6388_v19 = vadd.f32 %v6130_v47, %v4663_v10  ;;  %v18076_v10 = vld [vmem:[#allocation53_spill] sm:$0xff] }
 0x5e6   : > { %9298 = vmatmul.bf16.vlgmr.msrb.gmra.mxu0 %v17231_v41  ;;  %v9034_v41 = vadd.f32 %v9033_v50, %v9020_v43  ;;  %v7592_v30 = vadd.f32 %v17650_v37, %v7578_v51  ;;  %v9063_v37 = vpop.f32.mrf.mxu1  ;;  %v18069_v50 = vld [vmem:[#allocation28_spill] sm:$0xff]  ;;  %v18073_v51 = vld [vmem:[#allocation51_spill] sm:$0xff] }
 0x5e7   : > { %v18070_v43 = vld [vmem:[#allocation32_spill] sm:$0xff] }
 0x5e8   : > { %v9048_v7 = vadd.f32 %v9047_v35, %v9034_v41  ;;  %v7606_v57 = vadd.f32 %v17641_v24, %v7592_v30  ;;  %v9344_v24 = vld [vmem:[%s17725_s12] sm:$0xff] }
 0x5ea   : > { %v9062_v45 = vadd.f32 %v9061_v20, %v9048_v7  ;;  %v9049_v56 = vpop.f32.mrf.mxu3  ;;  %v7864_v38 = vadd.f32 %v7606_v57, %v6388_v19  ;;  %v6172_v7 = vadd.f32 %v17567_v5, %v6158_v11 }
 0x5eb   : > { %v9050_v0 = vadd.f32 %v9049_v56, %v9036_v48  ;;  %v9075_v21 = vpop.f32.mrf.mxu2  ;;  %v9089_v25 = vpop.f32.mrf.mxu0  ;;  %v18077_v48 = vld [vmem:[#allocation70_spill] sm:$0xff]  ;;  %v18078_v56 = vld [vmem:[#allocation55_spill] sm:$0xff] }
 0x5ec   : > { %v9318_v8 = vadd.f32 %v9062_v45, %v17644_v33  ;;  %v18067_v33 = vld [vmem:[#allocation26_spill] sm:$0xff]  ;;  %v9090_v35 = vadd.f32 %v9089_v25, %v9075_v21  ;;  %v6186_v45 = vadd.f32 %v18075_v22, %v6172_v7 }
 0x5ed   : > { %v9064_v62 = vadd.f32 %v9063_v37, %v9050_v0  ;;  %v3432_v6 = vadd.f32 %v18067_v33, %v18066_v63  ;;  %v18079_v37 = vld [vmem:[#allocation69_spill] sm:$0xff]  ;;  %v9329_v33 = vperm.slane %v17714_v54, 1  ;;  %v9345_v21 = vld [vmem:[%s17725_s12 + $0x8] sm:$0xff] }
 0x5ee   : > { %v9336_v13 = vadd.f32 %v9328_v61, %v9318_v8  ;;  %v9103_v20 = vpop.f32.mrf.mxu1  ;;  %v6200_v8 = vadd.f32 %v18077_v48, %v6186_v45 }
 0x5ef   : > { %v9322_v18 = vadd.f32 %v9064_v62, %v7864_v38  ;;  %v3446_v12 = vadd.f32 %v18068_v23, %v3432_v6  ;;  %v9104_v46 = vadd.f32 %v9103_v20, %v9090_v35  ;;  %v18080_v62 = vld [vmem:[#allocation54_spill] sm:$0xff] }
 0x5f0   : > { %v9352_v39 = vmul.f32 %v9344_v24, %v9336_v13  ;;  %v6214_v38 = vadd.f32 %v18079_v37, %v6200_v8  ;;  %v18092_v37 = vld [vmem:[#allocation58_spill] sm:$0xff] }
 0x5f1   : > { %v9340_v60 = vadd.f32 %v9328_v61, %v9322_v18  ;;  %v3460_v53 = vadd.f32 %v18069_v50, %v3446_v12 }
 0x5f2   : > { %v9368_v36 = vrot.slane %v9352_v39, 2 }
 0x5f3   : > { %v17731_v40 = vmul.f32 %v9348_v42, %v9340_v60  ;;  %v3474_v58 = vadd.f32 %v18070_v43, %v3460_v53  ;;  %v9077_v4 = vpop.f32.mrf.mxu2  ;;  %v9091_v14 = vpop.f32.mrf.mxu0 }
 0x5f4   : > { %v9092_v61 = vadd.f32 %v9091_v14, %v9077_v4  ;;  %v18084_v14 = vld [vmem:[#allocation36_spill] sm:$0xff] }
 0x5f5   : > { %v9369_v59 = vrot.slane %v17731_v40, 2  ;;  %v3488_v55 = vadd.f32 %v18071_v26, %v3474_v58  ;;  %v18081_v58 = vld [vmem:[#allocation33_spill] sm:$0xff]  ;;  %v18082_v26 = vld [vmem:[#allocation31_spill] sm:$0xff] }
 0x5f6   : > { %v9105_v15 = vpop.f32.mrf.mxu1 }
 0x5f7   : > { %v9370_v44 = vsel %vm725_vm0, %v9368_v36, %v9369_v59  ;;  %v4677_v41 = vadd.f32 %v18072_v29, %v3488_v55  ;;  %v9106_v13 = vadd.f32 %v9105_v15, %v9092_v61  ;;  %v3516_v55 = vadd.f32 %v18082_v26, %v18081_v58  ;;  %v18083_v29 = vld [vmem:[#allocation34_spill] sm:$0xff]  ;;  %v18090_v61 = vld [vmem:[#allocation57_spill] sm:$0xff] }
 0x5f8   : > { %v17739_v9 = vmax.f32 %v9352_v39, %v9370_v44  ;;  %v9349_v44 = vld [vmem:[%s17725_s12 + $0x28] sm:$0x7f]  ;;  %v9330_v26 = vperm.slane %v17714_v54, 2 }
 0x5f9   : > { %v4691_v27 = vadd.f32 %v18073_v51, %v4677_v41  ;;  %v3530_v41 = vadd.f32 %v18083_v29, %v3516_v55  ;;  %v18085_v51 = vld [vmem:[#allocation37_spill] sm:$0xff] }
 0x5fa   : > { %9404 = vrot.lane.b32.xlu0 %v17739_v9, %s16372_s18 }
 0x5fb   : > { %v4705_v30 = vadd.f32 %v18074_v3, %v4691_v27  ;;  %v18086_v3 = vld [vmem:[#allocation35_spill] sm:$0xff] }
 0x5fd   : > { %v4719_v57 = vadd.f32 %v18076_v10, %v4705_v30  ;;  %v18088_v10 = vld [vmem:[#allocation71_spill] sm:$0xff] }
 0x5ff   : > { %v4733_v19 = vadd.f32 %v18078_v56, %v4719_v57  ;;  %v18089_v57 = vld [vmem:[#allocation72_spill] sm:$0xff] }
 0x600   : > { %v6242_v48 = vadd.f32 %v18089_v57, %v18088_v10 }
 0x601   : > { %v4747_v24 = vadd.f32 %v18080_v62, %v4733_v19  ;;  %v18091_v19 = vld [vmem:[#allocation73_spill] sm:$0xff] }
 0x602   : > { %v9117_v31 = vpop.f32.mrf.mxu3 }
 0x603   : > { %v9118_v34 = vadd.f32 %v9117_v31, %v9104_v46  ;;  %v9145_v47 = vpop.f32.mrf.mxu0  ;;  %v6389_v42 = vadd.f32 %v6214_v38, %v4747_v24  ;;  %v18094_v24 = vld [vmem:[#allocation59_spill] sm:$0xff] }
 0x605   : > { %v7865_v23 = vadd.f32 %v17661_v49, %v6389_v42  ;;  %v3544_v49 = vadd.f32 %v18084_v14, %v3530_v41  ;;  %v18095_v42 = vld [vmem:[#allocation76_spill] sm:$0xff] }
 0x607   : > { %v3558_v27 = vadd.f32 %v18085_v51, %v3544_v49  ;;  %v9350_v51 = vld [vmem:[%s17725_s12 + $0x30] sm:$0x7f] }
 0x609   : > { %v3572_v30 = vadd.f32 %v18086_v3, %v3558_v27  ;;  %v18099_v3 = vld [vmem:[#allocation38_spill] sm:$0xff] }
 0x60a   : > { %v9119_v5 = vpop.f32.mrf.mxu3 }
 0x60b   : > { %v9131_v17 = vpop.f32.mrf.mxu2  ;;  %v9120_v18 = vadd.f32 %v9119_v5, %v9106_v13  ;;  %v9147_v39 = vpop.f32.mrf.mxu0 }
 0x60c   : > { %v9132_v2 = vadd.f32 %v9131_v17, %v9118_v34  ;;  %v17781_v34 = vmax.f32 %v17731_v40, %v9369_v59  ;;  %v18093_v40 = vld [vmem:[#allocation74_spill] sm:$0xff] }
 0x60d   : > { %v9159_v43 = vpop.f32.mrf.mxu1 }
 0x60e   : > { %v9146_v0 = vadd.f32 %v9145_v47, %v9132_v2  ;;  %v18087_v47 = vld [vmem:[#allocation56_spill] sm:$0xff] }
 0x60f   : > { %v4761_v17 = vadd.f32 %v18087_v47, %v3572_v30  ;;  %v18100_v30 = vld [vmem:[#allocation39_spill] sm:$0xff]  ;;  %v18101_v47 = vld [vmem:[#allocation40_spill] sm:$0xff] }
 0x610   : > { %v9319_v63 = vadd.f32 %v9146_v0, %v17658_v16  ;;  %v6256_v0 = vadd.f32 %v18091_v19, %v6242_v48  ;;  %v18104_v19 = vld [vmem:[#allocation43_spill] sm:$0xff] }
 0x611   : > { %v4775_v2 = vadd.f32 %v18090_v61, %v4761_v17 }
 0x612   : > { %v9337_v12 = vadd.f32 %v9329_v33, %v9319_v63  ;;  %v6270_v59 = vadd.f32 %v18093_v40, %v6256_v0 }
 0x613   : > { %v9133_v6 = vpop.f32.mrf.mxu2  ;;  %v4789_v38 = vadd.f32 %v18092_v37, %v4775_v2  ;;  %v18103_v2 = vld [vmem:[#allocation42_spill] sm:$0xff] }
 0x614   : > { %v9134_v60 = vadd.f32 %v9133_v6, %v9120_v18  ;;  %v9353_v53 = vmul.f32 %v9345_v21, %v9337_v12  ;;  %v18096_v12 = vld [vmem:[#allocation61_spill] sm:$0xff]  ;;  %v18097_v21 = vld [vmem:[#allocation75_spill] sm:$0xff] }
 0x615   : > { %v9161_v7 = vpop.f32.mrf.mxu1  ;;  %v4803_v18 = vadd.f32 %v18094_v24, %v4789_v38  ;;  %v18105_v38 = vld [vmem:[#allocation62_spill] sm:$0xff] }
 0x616   : > { %v9148_v36 = vadd.f32 %v9147_v39, %v9134_v60  ;;  %v9371_v20 = vrot.slane %v9353_v53, 2  ;;  %v6284_v60 = vadd.f32 %v18095_v42, %v6270_v59  ;;  %v18106_v59 = vld [vmem:[#allocation77_spill] sm:$0xff] }
 0x618   : > { %v9323_v25 = vadd.f32 %v9148_v36, %v7865_v23  ;;  %v4817_v36 = vadd.f32 %v18096_v12, %v4803_v18 }
 0x61a   : > { %v9341_v50 = vadd.f32 %v9329_v33, %v9323_v25  ;;  %v6298_v25 = vadd.f32 %v18097_v21, %v6284_v60  ;;  %v18110_v60 = vld [vmem:[#allocation65_spill] sm:$0xff] }
 0x61c   : > { %v17764_v16 = vmul.f32 %v9349_v44, %v9341_v50 }
 0x61e   : > { %v9372_v4 = vrot.slane %v17764_v16, 2 }
 0x620   : > { %v9373_v11 = vsel %vm725_vm0, %v9371_v20, %v9372_v4 }
 0x621   : > { %v17772_v31 = vmax.f32 %v9353_v53, %v9373_v11  ;;  %v18098_v53 = vld [vmem:[#allocation60_spill] sm:$0xff] }
 0x622   : > { %v9173_v35 = vpop.f32.mrf.mxu3  ;;  %v9346_v11 = vld [vmem:[%s17725_s12 + $0x10] sm:$0xff] }
 0x623   : > { %9406 = vrot.lane.b32.xlu1 %v17772_v31, %s16372_s18  ;;  %v9187_v46 = vpop.f32.mrf.mxu0  ;;  %v9174_v22 = vadd.f32 %v9173_v35, %v9159_v43  ;;  %v4831_v43 = vadd.f32 %v18098_v53, %v4817_v36  ;;  %v18113_v53 = vld [vmem:[#allocation82_spill] sm:$0xff] }
 0x625   : > { %v9188_v15 = vadd.f32 %v9187_v46, %v9174_v22  ;;  %v6390_v55 = vadd.f32 %v6298_v25, %v4831_v43  ;;  %v3600_v22 = vadd.f32 %v18100_v30, %v18099_v3  ;;  %v9331_v3 = vperm.slane %v17714_v54, 3 }
 0x627   : > { %v7866_v20 = vadd.f32 %v17673_v1, %v6390_v55  ;;  %v3614_v17 = vadd.f32 %v18101_v47, %v3600_v22 }
 0x62a   : > { %v9175_v8 = vpop.f32.mrf.mxu3 }
 0x62b   : > { %v9201_v45 = vpop.f32.mrf.mxu2  ;;  %9412 = vrot.lane.b32.xlu1 %v17781_v34, %s16372_s18  ;;  %v9176_v13 = vadd.f32 %v9175_v8, %v9161_v7  ;;  %v9189_v62 = vpop.f32.mrf.mxu0  ;;  %v18102_v8 = vld [vmem:[#allocation41_spill] sm:$0xff] }
 0x62c   : > { %v9202_v5 = vadd.f32 %v9201_v45, %v9188_v15  ;;  %v3628_v61 = vadd.f32 %v18102_v8, %v3614_v17  ;;  %v9347_v8 = vld [vmem:[%s17725_s12 + $0x18] sm:$0xff] }
 0x62d   : > { %v9215_v56 = vpop.f32.mrf.mxu1  ;;  %v9190_v39 = vadd.f32 %v9189_v62, %v9176_v13  ;;  %v18107_v13 = vld [vmem:[#allocation78_spill] sm:$0xff] }
 0x62e   : > { %v9216_v63 = vadd.f32 %v9215_v56, %v9202_v5  ;;  %v3642_v15 = vadd.f32 %v18103_v2, %v3628_v61  ;;  %v17818_v56 = vmax.f32 %v17764_v16, %v9372_v4  ;;  %v6326_v62 = vadd.f32 %v18107_v13, %v18106_v59  ;;  %v9351_v2 = vld [vmem:[%s17725_s12 + $0x38] sm:$0x7f] }
 0x62f   : > { %v9451_v13 = vlaneseq }
 0x630   : > { %v3656_v0 = vadd.f32 %v18104_v19, %v3642_v15 }
 0x631   : > { %vm17847_vm8 = vcmp.lt.s32.totalorder %v9451_v13, 64  ;;  %vm9460_vm9 = vcmp.ge.s32.totalorder %v9451_v13, 64  ;;  %vm9461_vm10 = vcmp.lt.s32.totalorder %v9451_v13, 128  ;;  %v15754_v13 = vld [vmem:[#allocation14 + $0x50] sm:$0xff] }
 0x632   : > { %v4845_v40 = vadd.f32 %v18105_v38, %v3656_v0  ;;  %vm17878_vm11 = vmand %vm9460_vm9, %vm9461_vm10 }
 0x633   : > { %v9203_v33 = vpop.f32.mrf.mxu2 }
 0x634   : > { %v9204_v44 = vadd.f32 %v9203_v33, %v9190_v39 }
 0x635   : > { %v9217_v50 = vpop.f32.mrf.mxu1 }
 0x636   : > { %v9218_v29 = vadd.f32 %v9217_v50, %v9204_v44  ;;  %v18112_v44 = vld [vmem:[#allocation64_spill] sm:$0xff] }
 0x63a   : > { %v9229_v6 = vpop.f32.mrf.mxu3 }
 0x63b   : > { %v9230_v23 = vadd.f32 %v9229_v6, %v9216_v63  ;;  %v18108_v63 = vld [vmem:[#allocation63_spill] sm:$0xff]  ;;  %v18109_v6 = vld [vmem:[#allocation80_spill] sm:$0xff] }
 0x63c   : > { %v4859_v33 = vadd.f32 %v18108_v63, %v4845_v40  ;;  %v6340_v42 = vadd.f32 %v18109_v6, %v6326_v62  ;;  %v15753_v63 = vld [vmem:[#allocation14 + $0x48] sm:$0xff] }
 0x63d   : > { %v9320_v58 = vadd.f32 %v9230_v23, %v17670_v32  ;;  %v18111_v23 = vld [vmem:[#allocation79_spill] sm:$0xff] }
 0x63e   : > { %v4873_v39 = vadd.f32 %v18110_v60, %v4859_v33  ;;  %v6354_v12 = vadd.f32 %v18111_v23, %v6340_v42 }
 0x63f   : > { %v9338_v14 = vadd.f32 %v9330_v26, %v9320_v58 }
 0x640   : > { %v4887_v50 = vadd.f32 %v18112_v44, %v4873_v39  ;;  %v6368_v43 = vadd.f32 %v18113_v53, %v6354_v12 }
 0x641   : > { %v9354_v7 = vmul.f32 %v9346_v11, %v9338_v14 }
 0x642   : > { %v9231_v41 = vpop.f32.mrf.mxu3 }
 0x643   : > { %v9232_v49 = vadd.f32 %v9231_v41, %v9218_v29  ;;  %v9374_v45 = vrot.slane %v9354_v7, 2  ;;  %v9243_v1 = vpop.f32.mrf.mxu0  ;;  %v18114_v29 = vld [vmem:[#allocation67_spill] sm:$0xff] }
 0x644   : > { %v4901_v41 = vadd.f32 %v18114_v29, %v4887_v50 }
 0x645   : > { %v9324_v35 = vadd.f32 %v9232_v49, %v7866_v20  ;;  %v18115_v49 = vld [vmem:[#allocation81_spill] sm:$0xff] }
 0x646   : > { %v6382_v11 = vadd.f32 %v18115_v49, %v6368_v43 }
 0x647   : > { %v9342_v27 = vadd.f32 %v9330_v26, %v9324_v35 }
 0x649   : > { %v17802_v46 = vmul.f32 %v9350_v51, %v9342_v27  ;;  %v18116_v51 = vld [vmem:[#allocation66_spill] sm:$0xff] }
 0x64a   : > { %v4915_v27 = vadd.f32 %v18116_v51, %v4901_v41 }
 0x64b   : > { %v9375_v32 = vrot.slane %v17802_v46, 2  ;;  %v9257_v48 = vpop.f32.mrf.mxu2  ;;  %v9245_v37 = vpop.f32.mrf.mxu0 }
 0x64c   : > { %v9258_v24 = vadd.f32 %v9257_v48, %v9243_v1 }
 0x64d   : > { %v9376_v10 = vsel %vm725_vm0, %v9374_v45, %v9375_v32  ;;  %v9285_v4 = vpop.f32.mrf.mxu1  ;;  %v6391_v45 = vadd.f32 %v6382_v11, %v4915_v27 }
 0x64e   : > { %v17809_v57 = vmax.f32 %v9354_v7, %v9376_v10 }
 0x64f   : > { %v7867_v10 = vadd.f32 %v17684_v28, %v6391_v45  ;;  %v9394_v28 = vmax.f32 %v17802_v46, %v9375_v32  ;;  %v15775_v45 = vld [vmem:[#allocation14 + $0xf8] sm:$0xff] }
 0x650   : > { %9408 = vrot.lane.b32.xlu2 %v17809_v57, %s16372_s18  ;;  %10112 = vmatpush.bf16.msra.mxu0 %v15775_v45  ;;  %v15784_v45 = vld [vmem:[#allocation14 + $0x140] sm:$0xff] }
 0x653   : > { %v9259_v18 = vpop.f32.mrf.mxu2 }
 0x654   : > { %v9260_v58 = vadd.f32 %v9259_v18, %v9245_v37 }
 0x655   : > { %v9287_v35 = vpop.f32.mrf.mxu1 }
 0x658   : > { %v9271_v5 = vpop.f32.mrf.mxu3  ;;  %9414 = vrot.lane.b32.xlu2 %v17818_v56, %s16372_s18 }
 0x659   : > { %v9272_v16 = vadd.f32 %v9271_v5, %v9258_v24 }
 0x65b   : > { %v9286_v36 = vadd.f32 %v9285_v4, %v9272_v16 }
 0x660   : > { %v9273_v21 = vpop.f32.mrf.mxu3 }
 0x661   : > { %v9274_v20 = vadd.f32 %v9273_v21, %v9260_v58 }
 0x663   : > { %v9299_v25 = vpop.f32.mrf.mxu0  ;;  %v9313_v26 = vpop.f32.mrf.mxu2  ;;  %v9288_v30 = vadd.f32 %v9287_v35, %v9274_v20 }
 0x664   : > { %v9300_v55 = vadd.f32 %v9299_v25, %v9286_v36 }
 0x666   : > { %v9314_v14 = vadd.f32 %v9313_v26, %v9300_v55 }
 0x668   : > { %v9321_v7 = vadd.f32 %v9314_v14, %v17682_v52 }
 0x66a   : > { %v9339_v1 = vadd.f32 %v9331_v3, %v9321_v7 }
 0x66b   : > { %v9301_v22 = vpop.f32.mrf.mxu0  ;;  %v9315_v17 = vpop.f32.mrf.mxu2 }
 0x66c   : > { %v9302_v47 = vadd.f32 %v9301_v22, %v9288_v30  ;;  %v9355_v19 = vmul.f32 %v9347_v8, %v9339_v1  ;;  %v9405_v40 = vpop.permute.xlu0 %9404  ;;  %v15759_v30 = vld [vmem:[#allocation14 + $0x78] sm:$0xff]  ;;  %v15774_v1 = vld [vmem:[#allocation14 + $0xf0] sm:$0xff]  ;;  %v15757_v8 = vld [vmem:[#allocation14 + $0x68] sm:$0xff] }
 0x66d   : > { %v15767_v22 = vld [vmem:[#allocation14 + $0xb8] sm:$0xff]  ;;  %10086 = vmatpush.bf16.msra.mxu1 %v15759_v30  ;;  %10113 = vmatpush.bf16.msra.mxu0 %v15774_v1  ;;  %v15801_v30 = vld [vmem:[#allocation14 + $0x1c8] sm:$0xff] }
 0x66e   : > { %v9316_v48 = vadd.f32 %v9315_v17, %v9302_v47  ;;  %v9377_v37 = vrot.slane %v9355_v19, 2  ;;  %v15750_v47 = vld [vmem:[#allocation14 + $0x30] sm:$0xff]  ;;  %10099 = vmatpush.bf16.msra.mxu2 %v15767_v22  ;;  %v15776_v22 = vld [vmem:[#allocation14 + $0x100] sm:$0xff] }
 0x66f   : > { %v15758_v17 = vld [vmem:[#allocation14 + $0x70] sm:$0xff] }
 0x670   : > { %v9325_v61 = vadd.f32 %v9316_v48, %v7867_v10  ;;  %v15766_v10 = vld [vmem:[#allocation14 + $0xb0] sm:$0xff]  ;;  %v15749_v48 = vld [vmem:[#allocation14 + $0x28] sm:$0xff] }
 0x671   : > { %10087 = vmatpush.bf16.msra.mxu1 %v15758_v17  ;;  %v15800_v17 = vld [vmem:[#allocation14 + $0x1c0] sm:$0xff] }
 0x672   : > { %v9343_v15 = vadd.f32 %v9331_v3, %v9325_v61  ;;  %v15751_v3 = vld [vmem:[#allocation14 + $0x38] sm:$0xff]  ;;  %10100 = vmatpush.bf16.msra.mxu2 %v15766_v10 }
 0x673   : > { %10073 = vmatpush.bf16.msrb.mxu3 %v15751_v3  ;;  %v15793_v3 = vld [vmem:[#allocation14 + $0x188] sm:$0xff] }
 0x674   : > { %v9359_v0 = vmul.f32 %v9351_v2, %v9343_v15  ;;  %v15765_v2 = vld [vmem:[#allocation14 + $0xa8] sm:$0xff] }
 0x675   : > { %v15773_v15 = vld [vmem:[#allocation14 + $0xe8] sm:$0xff]  ;;  %10088 = vmatpush.bf16.msra.mxu1 %v15757_v8 }
 0x676   : > { %v9378_v5 = vrot.slane %v9359_v0, 2  ;;  %10101 = vmatpush.bf16.msra.mxu2 %v15765_v2  ;;  %10114 = vmatpush.bf16.msra.mxu0 %v15773_v15 }
 0x677   : > { %10074 = vmatpush.bf16.msrb.mxu3 %v15750_v47  ;;  %v15792_v47 = vld [vmem:[#allocation14 + $0x180] sm:$0xff] }
 0x678   : > { %v9395_v52 = vmax.f32 %v9359_v0, %v9378_v5  ;;  %v9379_v54 = vsel %vm725_vm0, %v9377_v37, %v9378_v5  ;;  %v15756_v0 = vld [vmem:[#allocation14 + $0x60] sm:$0xff] }
 0x679   : > { %v9391_v38 = vmax.f32 %v9355_v19, %v9379_v54  ;;  %v15748_v19 = vld [vmem:[#allocation14 + $0x20] sm:$0xff]  ;;  %10089 = vmatpush.bf16.msra.mxu1 %v15756_v0  ;;  %v15747_v54 = vld [vmem:[#allocation14 + $0x18] sm:$0xff] }
 0x67a   : > { %9418 = vrot.lane.b32.xlu1 %v9395_v52, %s16372_s18  ;;  %v15764_v5 = vld [vmem:[#allocation14 + $0xa0] sm:$0xff] }
 0x67b   : > { %9410 = vrot.lane.b32.xlu0 %v9391_v38, %s16372_s18  ;;  %10075 = vmatpush.bf16.msrb.mxu3 %v15749_v48  ;;  %v15772_v37 = vld [vmem:[#allocation14 + $0xe0] sm:$0xff] }
 0x67c   : > { %10102 = vmatpush.bf16.msra.mxu2 %v15764_v5  ;;  %10115 = vmatpush.bf16.msra.mxu0 %v15772_v37 }
 0x67f   : > { %10076 = vmatpush.bf16.msrb.mxu3 %v15748_v19 }
 0x683   : > { %9416 = vrot.lane.b32.xlu0 %v9394_v28, %s16372_s18  ;;  %10077 = vmatpush.bf16.msrb.mxu3 %v15747_v54 }
 0x695   : > { %v9407_v59 = vpop.permute.xlu1 %9406 }
 0x696   : > { %v9421_v62 = vsel %vm9420_vm7, %v9405_v40, %v9407_v59  ;;  %v15771_v40 = vld [vmem:[#allocation14 + $0xd8] sm:$0xff] }
 0x697   : > { %v9435_v24 = vmax.f32 %v17739_v9, %v9421_v62  ;;  %10116 = vmatpush.bf16.msra.mxu0 %v15771_v40  ;;  %v15762_v62 = vld [vmem:[#allocation14 + $0x90] sm:$0xff] }
 0x699   : > { %v9443_v18 = vmax.f32 %v9435_v24, 0.0  ;;  %v15770_v24 = vld [vmem:[#allocation14 + $0xd0] sm:$0xff] }
 0x69b   : > { %9471 = vst [vmem:[#allocation1] sm:$0xff] %v9443_v18  ;;  %10117 = vmatpush.bf16.msra.mxu0 %v15770_v24  ;;  %v15813_v24 = vld [vmem:[%s18121_s25 + $0x28] sm:$0xff] }
 0x69c   : > { %9455 = vst.msk [vmem:[#allocation2] sm:$0x1] %vm17847_vm8, %v9443_v18  ;;  %v15745_v18 = vld [vmem:[#allocation14 + $0x8] sm:$0xff] }
 0x69d   : > { %v9413_v9 = vpop.permute.xlu1 %9412 }
 0x6a2   : > { %v9473_v46 = vld [vmem:[#allocation1 + $0x4] ss:$9 sm:$0xff] }
 0x6a3   : > { %9475 = vst.msk [vmem:[#allocation2 + $0x2] sm:$0x1] %vm17847_vm8, %v9473_v46 }
 0x6aa   : > { %v9409_v32 = vpop.permute.xlu2 %9408 }
 0x6ab   : > { %v9422_v33 = vsel %vm9420_vm7, %v9407_v59, %v9409_v32  ;;  %v15746_v59 = vld [vmem:[#allocation14 + $0x10] sm:$0xff] }
 0x6ac   : > { %v9436_v6 = vmax.f32 %v17772_v31, %v9422_v33  ;;  %10078 = vmatpush.bf16.msrb.mxu3 %v15746_v59  ;;  %v15761_v33 = vld [vmem:[#allocation14 + $0x88] sm:$0xff] }
 0x6ae   : > { %v9444_v42 = vmax.f32 %v9436_v6, 0.0  ;;  %v15769_v6 = vld [vmem:[#allocation14 + $0xc8] sm:$0xff] }
 0x6af   : > { %10118 = vmatpush.bf16.msra.mxu0 %v15769_v6  ;;  %v9688_v6 = vld [vmem:[#allocation15] sm:$0x1] }
 0x6b0   : > { %9476 = vst [vmem:[#allocation1] sm:$0xff] %v9444_v42  ;;  %9457 = vrot.lane.b32.xlu2 %v9444_v42, %s16372_s18  ;;  %10079 = vmatpush.bf16.msrb.mxu3 %v15745_v18  ;;  %v15744_v42 = vld [vmem:[#allocation14] sm:$0xff] }
 0x6b1   : > { %v15812_v18 = vld [vmem:[%s18121_s25 + $0x20] sm:$0xff] }
 0x6b2   : > { %v9415_v16 = vpop.permute.xlu2 %9414 }
 0x6b3   : > { %v9424_v4 = vsel %vm9420_vm7, %v9413_v9, %v9415_v16  ;;  %v15752_v9 = vld [vmem:[#allocation14 + $0x40] sm:$0xff] }
 0x6b4   : > { %v9439_v60 = vmax.f32 %v17781_v34, %v9424_v4  ;;  %v15768_v4 = vld [vmem:[#allocation14 + $0xc0] sm:$0xff]  ;;  %10080 = vmatpush.bf16.msrb.mxu3 %v15744_v42 }
 0x6b5   : > { %10119 = vmatpush.bf16.msra.mxu0 %v15768_v4 }
 0x6b6   : > { %v9447_v39 = vmax.f32 %v9439_v60, 0.0  ;;  %v15783_v60 = vld [vmem:[#allocation14 + $0x138] sm:$0xff] }
 0x6b7   : > { %v9478_v23 = vld [vmem:[#allocation1 + $0x4] ss:$9 sm:$0xff] }
 0x6b8   : > { %9479 = vrot.lane.b32.xlu1 %v9478_v23, %s16372_s18  ;;  %9496 = vst.msk [vmem:[#allocation2 + $0x4] sm:$0x1] %vm17847_vm8, %v9447_v39  ;;  %v15799_v23 = vld [vmem:[#allocation14 + $0x1b8] sm:$0xff]  ;;  %10125 = vmatpush.bf16.msra.mxu3 %v15783_v60 }
 0x6ec   : > { %v9419_v12 = vpop.permute.xlu1 %9418 }
 0x6ed   : > { %v9442_v36 = vmax.f32 %v9395_v52, %v9419_v12  ;;  %v9411_v31 = vpop.permute.xlu0 %9410 }
 0x6ee   : > { %v9423_v21 = vsel %vm9420_vm7, %v9409_v32, %v9411_v31  ;;  %v9438_v34 = vmax.f32 %v9391_v38, %v9411_v31  ;;  %v15755_v38 = vld [vmem:[#allocation14 + $0x58] sm:$0xff]  ;;  %v15782_v31 = vld [vmem:[#allocation14 + $0x130] sm:$0xff] }
 0x6ef   : > { %v9450_v25 = vmax.f32 %v9442_v36, 0.0  ;;  %v9437_v44 = vmax.f32 %v17809_v57, %v9423_v21  ;;  %10090 = vmatpush.bf16.msra.mxu1 %v15755_v38  ;;  %v15790_v21 = vld [vmem:[#allocation14 + $0x170] sm:$0xff]  ;;  %10126 = vmatpush.bf16.msra.mxu3 %v15782_v31 }
 0x6f0   : > { %v9446_v29 = vmax.f32 %v9438_v34, 0.0  ;;  %v15789_v34 = vld [vmem:[#allocation14 + $0x168] sm:$0xff] }
 0x6f1   : > { %v9445_v50 = vmax.f32 %v9437_v44, 0.0  ;;  %9504 = vrot.lane.b32.xlu1 %v9450_v25, %s16372_s18  ;;  %v15806_v44 = vld [vmem:[#allocation14 + $0x1f0] sm:$0xff] }
 0x6f3   : > { %9484 = vst [vmem:[#allocation1] sm:$0xff] %v9445_v50  ;;  %10091 = vmatpush.bf16.msra.mxu1 %v15754_v13  ;;  %v15815_v13 = vld [vmem:[%s18121_s25 + $0x38] sm:$0xff] }
 0x6f4   : > { %9464 = vst.msk [vmem:[#allocation2 + $0x1] sm:$0x1] %vm17847_vm8, %v9445_v50  ;;  %v15781_v50 = vld [vmem:[#allocation14 + $0x128] sm:$0xff] }
 0x6f5   : > { %v9417_v53 = vpop.permute.xlu0 %9416  ;;  %10127 = vmatpush.bf16.msra.mxu3 %v15781_v50 }
 0x6f6   : > { %v9425_v43 = vsel %vm9420_vm7, %v9415_v16, %v9417_v53  ;;  %v9426_v58 = vsel %vm9420_vm7, %v9417_v53, %v9419_v12  ;;  %v15760_v16 = vld [vmem:[#allocation14 + $0x80] sm:$0xff]  ;;  %v15807_v12 = vld [vmem:[#allocation14 + $0x1f8] sm:$0xff]  ;;  %v15797_v53 = vld [vmem:[#allocation14 + $0x1a8] sm:$0xff] }
 0x6f7   : > { %v9440_v26 = vmax.f32 %v17818_v56, %v9425_v43  ;;  %v9441_v55 = vmax.f32 %v9394_v28, %v9426_v58  ;;  %v15763_v28 = vld [vmem:[#allocation14 + $0x98] sm:$0xff]  ;;  %10092 = vmatpush.bf16.msra.mxu1 %v15753_v63  ;;  %10164 = vmatpush.bf16.msrb.mxu0 %v15807_v12  ;;  %v15805_v43 = vld [vmem:[#allocation14 + $0x1e8] sm:$0xff]  ;;  %v15780_v58 = vld [vmem:[#allocation14 + $0x120] sm:$0xff] }
 0x6f8   : > { %10103 = vmatpush.bf16.msra.mxu2 %v15763_v28  ;;  %v15808_v12 = vld [vmem:[%s18121_s25] sm:$0xff] }
 0x6f9   : > { %v9448_v41 = vmax.f32 %v9440_v26, 0.0  ;;  %v9449_v20 = vmax.f32 %v9441_v55, 0.0  ;;  %v15788_v26 = vld [vmem:[#allocation14 + $0x160] sm:$0xff]  ;;  %10128 = vmatpush.bf16.msra.mxu3 %v15780_v58 }
 0x6fa   : > { %v9486_v57 = vld [vmem:[#allocation1 + $0x4] ss:$9 sm:$0xff] }
 0x6fb   : > { %9489 = vst [vmem:[#allocation1] sm:$0xff] %v9446_v29  ;;  %9498 = vrot.lane.b32.xlu0 %v9448_v41, %s16372_s18  ;;  %10093 = vmatpush.bf16.msra.mxu1 %v15752_v9  ;;  %v15796_v55 = vld [vmem:[#allocation14 + $0x1a0] sm:$0xff] }
 0x6fc   : > { %9488 = vst.msk [vmem:[#allocation2 + $0x3] sm:$0x1] %vm17847_vm8, %v9486_v57  ;;  %10104 = vmatpush.bf16.msra.mxu2 %v15762_v62  ;;  %10165 = vmatpush.bf16.msrb.mxu0 %v15806_v44  ;;  %v15795_v57 = vld [vmem:[#allocation14 + $0x198] sm:$0xff] }
 0x6fd   : > { %9502 = vst.msk [vmem:[#allocation2 + $0x5] sm:$0x1] %vm17847_vm8, %v9449_v20  ;;  %v15814_v62 = vld [vmem:[%s18121_s25 + $0x30] sm:$0xff] }
 0x700   : > { %10105 = vmatpush.bf16.msra.mxu2 %v15761_v33  ;;  %10166 = vmatpush.bf16.msrb.mxu0 %v15805_v43  ;;  %v15810_v33 = vld [vmem:[%s18121_s25 + $0x10] sm:$0xff] }
 0x702   : > { %v9491_v14 = vld [vmem:[#allocation1 + $0x4] ss:$9 sm:$0xff] }
 0x703   : > { %9492 = vrot.lane.b32.xlu2 %v9491_v14, %s16372_s18  ;;  %9509 = vst [vmem:[#allocation1] sm:$0xff] %v9447_v39  ;;  %9466 = vrot.lane.b32.xlu0 %v9446_v29, %s16372_s18  ;;  %v15791_v39 = vld [vmem:[#allocation14 + $0x178] sm:$0xff]  ;;  %v15804_v29 = vld [vmem:[#allocation14 + $0x1e0] sm:$0xff] }
 0x704   : > { %10106 = vmatpush.bf16.msra.mxu2 %v15760_v16  ;;  %10138 = vmatpush.bf16.msrb.mxu1 %v15791_v39  ;;  %v15803_v14 = vld [vmem:[#allocation14 + $0x1d8] sm:$0xff]  ;;  %v15809_v39 = vld [vmem:[%s18121_s25 + $0x8] sm:$0xff] }
 0x705   : > { %10167 = vmatpush.bf16.msrb.mxu0 %v15804_v29 }
 0x708   : > { %10151 = vmatpush.bf16.msrb.mxu2 %v15799_v23  ;;  %10139 = vmatpush.bf16.msrb.mxu1 %v15790_v21 }
 0x709   : > { %10168 = vmatpush.bf16.msrb.mxu0 %v15803_v14 }
 0x70a   : > { %v9511_v56 = vld [vmem:[#allocation1 + $0x4] ss:$9 sm:$0xff]  ;;  %v9458_v11 = vpop.permute.xlu2 %9457 }
 0x70b   : > { %9514 = vst [vmem:[#allocation1] sm:$0xff] %v9448_v41  ;;  %v15779_v41 = vld [vmem:[#allocation14 + $0x118] sm:$0xff] }
 0x70c   : > { %9513 = vst.msk [vmem:[#allocation2 + $0x6] sm:$0x1] %vm17847_vm8, %v9511_v56  ;;  %10140 = vmatpush.bf16.msrb.mxu1 %v15789_v34  ;;  %10129 = vmatpush.bf16.msra.mxu3 %v15779_v41  ;;  %v15778_v56 = vld [vmem:[#allocation14 + $0x110] sm:$0xff] }
 0x70d   : > { %9463 = vst.msk [vmem:[#allocation2] sm:$0x1] %vm17878_vm11, %v9458_v11  ;;  %v15786_v11 = vld [vmem:[#allocation14 + $0x150] sm:$0xff] }
 0x710   : > { %10141 = vmatpush.bf16.msrb.mxu1 %v15788_v26  ;;  %10130 = vmatpush.bf16.msra.mxu3 %v15778_v56 }
 0x712   : > { %v9516_v35 = vld [vmem:[#allocation1 + $0x4] ss:$9 sm:$0xff] }
 0x713   : > { %9517 = vrot.lane.b32.xlu2 %v9516_v35, %s16372_s18  ;;  %9522 = vst [vmem:[#allocation1] sm:$0xff] %v9449_v20  ;;  %v15787_v20 = vld [vmem:[#allocation14 + $0x158] sm:$0xff]  ;;  %v15794_v35 = vld [vmem:[#allocation14 + $0x190] sm:$0xff] }
 0x714   : > { %10142 = vmatpush.bf16.msrb.mxu1 %v15787_v20  ;;  %v10178_v20 = vld [vmem:[%s515_s30] sm:$0x1]  ;;  %s10262_s30 = scalar_lea.sflag [#allocation5], %s16589_s11 }
 0x718   : > { %10143 = vmatpush.bf16.msrb.mxu1 %v15786_v11 }
 0x71a   : > { %v9524_v51 = vld [vmem:[#allocation1 + $0x4] ss:$9 sm:$0xff] }
 0x71b   : > { %9527 = vst [vmem:[#allocation1] sm:$0xff] %v9450_v25  ;;  %v15798_v25 = vld [vmem:[#allocation14 + $0x1b0] sm:$0xff] }
 0x71c   : > { %9526 = vst.msk [vmem:[#allocation2 + $0x7] sm:$0x1] %vm17847_vm8, %v9524_v51  ;;  %10152 = vmatpush.bf16.msrb.mxu2 %v15798_v25  ;;  %v15802_v51 = vld [vmem:[#allocation14 + $0x1d0] sm:$0xff] }
 0x71d   : > { %10169 = vmatpush.bf16.msrb.mxu0 %v15802_v51  ;;  %v10197_v51 = vld [vmem:[#allocation17] sm:$0x1] }
 0x720   : > { %10153 = vmatpush.bf16.msrb.mxu2 %v15797_v53 }
 0x721   : > { %10170 = vmatpush.bf16.msrb.mxu0 %v15801_v30 }
 0x722   : > { %v9529_v27 = vld [vmem:[#allocation1 + $0x4] ss:$9 sm:$0xff] }
 0x723   : > { %9530 = vrot.lane.b32.xlu0 %v9529_v27, %s16372_s18  ;;  %v15777_v27 = vld [vmem:[#allocation14 + $0x108] sm:$0xff] }
 0x724   : > { %10154 = vmatpush.bf16.msrb.mxu2 %v15796_v55  ;;  %10131 = vmatpush.bf16.msra.mxu3 %v15777_v27 }
 0x725   : > { %10171 = vmatpush.bf16.msrb.mxu0 %v15800_v17 }
 0x728   : > { %10155 = vmatpush.bf16.msrb.mxu2 %v15795_v57  ;;  %10132 = vmatpush.bf16.msra.mxu3 %v15776_v22 }
 0x72a   : > { %v9480_v7 = vpop.permute.xlu1 %9479 }
 0x72b   : > { %9482 = vst.msk [vmem:[#allocation2 + $0x2] sm:$0x1] %vm17878_vm11, %v9480_v7  ;;  %v15785_v7 = vld [vmem:[#allocation14 + $0x148] sm:$0xff] }
 0x72c   : > { %10156 = vmatpush.bf16.msrb.mxu2 %v15794_v35  ;;  %10144 = vmatpush.bf16.msrb.mxu1 %v15785_v7 }
 0x730   : > { %10157 = vmatpush.bf16.msrb.mxu2 %v15793_v3  ;;  %10145 = vmatpush.bf16.msrb.mxu1 %v15784_v45 }
 0x734   : > { %10158 = vmatpush.bf16.msrb.mxu2 %v15792_v47 }
 0x75d   : > { %v9493_v61 = vpop.permute.xlu2 %9492 }
 0x75e   : > { %9495 = vst.msk [vmem:[#allocation2 + $0x3] sm:$0x1] %vm17878_vm11, %v9493_v61 }
 0x763   : > { %v9505_v52 = vpop.permute.xlu1 %9504 }
 0x764   : > { %9507 = vst.msk [vmem:[#allocation2 + $0x5] sm:$0x1] %vm17878_vm11, %v9505_v52 }
 0x76d   : > { %v9499_v46 = vpop.permute.xlu0 %9498  ;;  %v9518_v32 = vpop.permute.xlu2 %9517 }
 0x76e   : > { %9501 = vst.msk [vmem:[#allocation2 + $0x4] sm:$0x1] %vm17878_vm11, %v9499_v46 }
 0x76f   : > { %9520 = vst.msk [vmem:[#allocation2 + $0x6] sm:$0x1] %vm17878_vm11, %v9518_v32  ;;  %v15811_v32 = vld [vmem:[%s18121_s25 + $0x18] sm:$0xff] }
 0x775   : > { %v9467_v36 = vpop.permute.xlu0 %9466 }
 0x776   : > { %9469 = vst.msk [vmem:[#allocation2 + $0x1] sm:$0x1] %vm17878_vm11, %v9467_v36 }
 0x795   : > { %v9531_v10 = vpop.permute.xlu0 %9530 }
 0x796   : > { %9533 = vst.msk [vmem:[#allocation2 + $0x7] sm:$0x1] %vm17878_vm11, %v9531_v10 }
 0x79d   : > { %v9534_v1 = vld [vmem:[#allocation2] sm:$0xff] }
 0x79e   : > { %v9536_v48 = vperm.slane %v9534_v1, 0  ;;  %v9537_v8 = vperm.slane %v9534_v1, 1  ;;  %v9538_v61 = vperm.slane %v9534_v1, 2  ;;  %v9539_v2 = vperm.slane %v9534_v1, 3 }
 0x79f   : > { %v9540_v37 = vperm.slane %v9534_v1, 4  ;;  %v9541_v52 = vperm.slane %v9534_v1, 5  ;;  %v9542_v54 = vperm.slane %v9534_v1, 6  ;;  %v9543_v38 = vperm.slane %v9534_v1, 7 }
 0x7a0   : > { %v9552_v15 = vpack.c.bf16 %v9536_v48, %v9536_v48  ;;  %v9553_v19 = vpack.c.bf16 %v9537_v8, %v9537_v8  ;;  %v9554_v0 = vpack.c.bf16 %v9538_v61, %v9538_v61  ;;  %v9555_v5 = vpack.c.bf16 %v9539_v2, %v9539_v2 }
 0x7a1   : > { %v9556_v28 = vpack.c.bf16 %v9540_v37, %v9540_v37  ;;  %v9557_v49 = vpack.c.bf16 %v9541_v52, %v9541_v52  ;;  %v9558_v40 = vpack.c.bf16 %v9542_v54, %v9542_v54  ;;  %v9559_v59 = vpack.c.bf16 %v9543_v38, %v9543_v38 }
 0x7a2   : > { %10081 = vmatmul.bf16.vlgmr.msrb.gmra.mxu3 %v9552_v15  ;;  %10094 = vmatmul.bf16.vlgmr.msra.gmra.mxu1 %v9553_v19 }
 0x7a3   : > { %10107 = vmatmul.bf16.vlgmr.msra.gmra.mxu2 %v9554_v0  ;;  %10120 = vmatmul.bf16.vlgmr.msra.gmra.mxu0 %v9555_v5 }
 0x7a4   : > { %10246 = vmatpush.bf16.msrb.mxu3 %v15815_v13 }
 0x7a8   : > { %10247 = vmatpush.bf16.msrb.mxu3 %v15814_v62 }
 0x7ac   : > { %10248 = vmatpush.bf16.msrb.mxu3 %v15813_v24 }
 0x7b0   : > { %10249 = vmatpush.bf16.msrb.mxu3 %v15812_v18 }
 0x7b2   : > { %10133 = vmatmul.bf16.vlgmr.msra.gmra.mxu3 %v9556_v28  ;;  %10146 = vmatmul.bf16.vlgmr.msrb.gmra.mxu1 %v9557_v49 }
 0x7b3   : > { %10159 = vmatmul.bf16.vlgmr.msrb.gmra.mxu2 %v9558_v40  ;;  %10172 = vmatmul.bf16.vlgmr.msrb.gmra.mxu0 %v9559_v59 }
 0x7b4   : > { %10250 = vmatpush.bf16.msrb.mxu3 %v15811_v32 }
 0x7b8   : > { %10251 = vmatpush.bf16.msrb.mxu3 %v15810_v33 }
 0x7bc   : > { %10252 = vmatpush.bf16.msrb.mxu3 %v15809_v39 }
 0x7c0   : > { %10253 = vmatpush.bf16.msrb.mxu3 %v15808_v12 }
 0x81f   : > { %v10095_v63 = vpop.f32.mrf.mxu1 }
 0x820   : > { %v10121_v46 = vpop.f32.mrf.mxu0 }
 0x825   : > { %v10082_v42 = vpop.f32.mrf.mxu3 }
 0x826   : > { %v10108_v9 = vpop.f32.mrf.mxu2  ;;  %v10083_v4 = vadd.f32 %v10082_v42, %v9688_v6 }
 0x827   : > { %v10097_v16 = vpop.f32.mrf.mxu1 }
 0x828   : > { %v10123_v60 = vpop.f32.mrf.mxu0  ;;  %v10096_v23 = vadd.f32 %v10095_v63, %v10083_v4 }
 0x82a   : > { %v10109_v25 = vadd.f32 %v10108_v9, %v10096_v23 }
 0x82c   : > { %v10122_v50 = vadd.f32 %v10121_v46, %v10109_v25 }
 0x82d   : > { %v10084_v36 = vpop.f32.mrf.mxu3 }
 0x82e   : > { %v10110_v31 = vpop.f32.mrf.mxu2 }
 0x82f   : > { %v10147_v21 = vpop.f32.mrf.mxu1 }
 0x830   : > { %v10173_v44 = vpop.f32.mrf.mxu0 }
 0x835   : > { %v10134_v34 = vpop.f32.mrf.mxu3 }
 0x836   : > { %v10135_v53 = vadd.f32 %v10134_v34, %v10122_v50  ;;  %v10160_v43 = vpop.f32.mrf.mxu2 }
 0x837   : > { %v10149_v58 = vpop.f32.mrf.mxu1 }
 0x838   : > { %v10148_v26 = vadd.f32 %v10147_v21, %v10135_v53  ;;  %v10175_v55 = vpop.f32.mrf.mxu0 }
 0x83a   : > { %v10161_v29 = vadd.f32 %v10160_v43, %v10148_v26 }
 0x83c   : > { %v10174_v41 = vadd.f32 %v10173_v44, %v10161_v29 }
 0x83d   : > { %v10136_v57 = vpop.f32.mrf.mxu3 }
 0x83e   : > { %v10177_v14 = vmax.f32 %v10174_v41, 0.0  ;;  %v10162_v56 = vpop.f32.mrf.mxu2 }
 0x840   : > { %v10179_v11 = vmul.f32 %v10178_v20, %v10177_v14 }
 0x842   : > { %v10180_v35 = vpack.c.bf16 %v10179_v11, %v10179_v11 }
 0x844   : > { %10254 = vmatmul.bf16.vlgmr.msrb.gmra.mxu3 %v10180_v35 }
 0x8c7   : > { %v10255_v27 = vpop.f32.mrf.mxu3 }
 0x8c8   : > { %v10256_v7 = vadd.f32 %v10255_v27, %v10197_v51 }
 0x8ca   : > { %10260 = vst.msk [vmem:[%s604_s29] sm:$0x1] %vm10259_vm12, %v10256_v7 }
 0x8cb   : > { %16295 = shalt.err (!%p16292_p10)
}
 0x8cc   : > { %15853 = dma.vmem_to_hbm [thread:$0]  (%p16534_p0), %s10273_s17, 16, %s10275_s9, %s10262_s30  }
 0x8cf   : > { %v10257_v3 = vpop.f32.mrf.mxu3 }
 0x8d0 PF: > { %s10286_s11 = sand.u32 1, %s16342_s21   ;;  %p18123_p11 = scmp.ge.s32.totalorder %s16354_s24, 2 }
 0x8d1   : > { %s10287_s27 = scalar_lea.sflag [#allocation5], %s10286_s11 }
 0x8d2   : > { %p15885_p12 = pnand %p18123_p11, %p16542_p6 }
 0x8d4   : > { %p15886_p2 = pneg %p15885_p12 }
 0x8d6   : > { %16337 = dma.done.wait (%p15886_p2), %s10287_s27, 16  }
 0x8d7   : > { %16339 = vsyncadd (%p15886_p2), %s10287_s27, 4294967280  ;;  %p31_p4 = scmp.ge.s32.totalorder %s16514_s13, 4   ;;  %s18124_s21 = smov %s16346_s22 }
 0x8d8   : > { %s18125_s22 = smov %s16350_s23  ;;  %s18126_s23 = smov %s16526_s26 }
 0x8d9   : > { %s18127_s24 = smov %s16514_s13  ;;  %33 = sbr.rel (!%p31_p4) target bundleno = 21 (0x15), region = 176 }
 0x8de   :  { %10292 = vsyncpa [#allocation4], 1 }
 0x8df   :  { %10294 = vsyncpa [#allocation4 + $0x1], 1 }
 0x8e0   :  { %10295 = vsyncpa [#allocation7], 1 }
 0x8e1   :  { %10297 = vsyncpa [#allocation7 + $0x1], 1 }
 0x8e2   :  { %10298 = vsyncpa [#allocation10], 1 }
 0x8e3   :  { %10299 = vsyncpa [#allocation13], 1 }
 0x8e4   :  { %10300 = vsyncpa [#allocation16], 1 }
 0x8e5   :  { %10301 = vsyncpa [#allocation5], 1 }
 0x8e6   :  { %10303 = vsyncpa [#allocation5 + $0x1], 1 }

</bundles_post_ra>
